<compile_context>
chip_gen: v5e
topology: v5e:2x2
jax: 0.10.0
libtpu: 0.0.40
codegen_flags: <defaults>
</compile_context>

<pallas_src>
import functools

import jax
import jax.numpy as jnp
from jax.experimental import pallas as pl
from jax.experimental.pallas import tpu as pltpu


# ----------------------------------------------------------------------------
# Tiling helper
# ----------------------------------------------------------------------------
def _pick_tile(dim, max_tile, align):
    """Largest tile <= max_tile that divides `dim` and is a multiple of `align`.
    Falls back to the full dimension (always layout-legal) if none exists."""
    if dim <= max_tile:
        return dim
    for t in range(max_tile, align - 1, -1):
        if dim % t == 0 and t % align == 0:
            return t
    return dim


# ----------------------------------------------------------------------------
# Pallas kernel: bf16 matmul + BN shift (+ optional 2x2 maxpool) + optional ReLU
# ----------------------------------------------------------------------------
def _matmul_bn_act_kernel(x_ref, w_ref, t_ref, o_ref, *, relu, pool_q):
    # bf16 inputs, f32 accumulation on the MXU; epilogue stays in f32.
    y = jnp.dot(x_ref[...], w_ref[...], preferred_element_type=jnp.float32)
    y = y + t_ref[...]                       # folded BatchNorm shift (f32)
    if pool_q is not None:
        # Rows of this block are ordered [tap0 | tap1 | tap2 | tap3] over the
        # same pool_q pooling windows, so MaxPool2d(2) is a max of 4 contiguous
        # row slabs (static slices; no strided/relayout ops needed).
        q = pool_q
        y = jnp.maximum(jnp.maximum(y[0:q, :], y[q:2 * q, :]),
                        jnp.maximum(y[2 * q:3 * q, :], y[3 * q:4 * q, :]))
    if relu:
        y = jnp.maximum(y, 0.0)
    o_ref[...] = y.astype(o_ref.dtype)       # cast (e.g. -> bf16) only on store


def fused_matmul(x, w, shift, *, relu, out_dtype,
                 tm_max=1024, tn_max=256, pool_q=None):
    """(M,K) @ (K,N) + per-column shift, optional fused 2x2 maxpool + ReLU.

    If pool_q is given, M must be a multiple of 4*pool_q and the rows of `x`
    must be grouped per block as [tap0|tap1|tap2|tap3] over pool_q windows;
    the output then has M//4 rows (one per pooling window).
    """
    M, K = x.shape
    K2, N = w.shape
    assert K == K2
    if pool_q is not None:
        tm = 4 * pool_q
        assert M % tm == 0
        out_rows, out_tm = M // 4, pool_q
    else:
        tm = _pick_tile(M, tm_max, 8)
        out_rows, out_tm = M, tm
    tn = _pick_tile(N, tn_max, 128)
    grid = (M // tm, N // tn)

    kernel = functools.partial(_matmul_bn_act_kernel, relu=relu, pool_q=pool_q)
    return pl.pallas_call(
        kernel,
        out_shape=jax.ShapeDtypeStruct((out_rows, N), out_dtype),
        grid_spec=pltpu.PrefetchScalarGridSpec(
            num_scalar_prefetch=0,
            grid=grid,
            in_specs=[
                pl.BlockSpec((tm, K), lambda i, j: (i, 0)),
                pl.BlockSpec((K, tn), lambda i, j: (0, j)),
                pl.BlockSpec((1, tn), lambda i, j: (0, j)),
            ],
            out_specs=pl.BlockSpec((out_tm, tn), lambda i, j: (i, j)),
        ),
        compiler_params=pltpu.CompilerParams(
            dimension_semantics=("parallel", "parallel"),
            vmem_limit_bytes=16 * 1024 * 1024,   # actual need ~4-5 MiB; << v7x 64 MiB
        ),
    )(x.astype(jnp.bfloat16), w.astype(jnp.bfloat16),
      shift.reshape(1, N).astype(jnp.float32))


# ----------------------------------------------------------------------------
# Plain-JAX glue: im2col (standard + pool-grouped), BN folding, param prep
# ----------------------------------------------------------------------------
# TODO(synk): im2col patch extraction itself stays in XLA glue (stride-2 taps
# are not expressible via BlockSpec index maps); only its HBM output feeds the
# fused Pallas kernel.
def im2col(x, ksize=3, stride=2, pad=1):
    """x: (N,H,W,C) -> ((N*OH*OW, k*k*C), (N,OH,OW)); patch order = (kh,kw,c)."""
    n, h, w, c = x.shape
    xp = jnp.pad(x, ((0, 0), (pad, pad), (pad, pad), (0, 0)))
    oh = (h + 2 * pad - ksize) // stride + 1
    ow = (w + 2 * pad - ksize) // stride + 1
    taps = [xp[:, kh:kh + stride * oh:stride, kw:kw + stride * ow:stride, :]
            for kh in range(ksize) for kw in range(ksize)]
    p = jnp.stack(taps, axis=3)                       # (N, OH, OW, 9, C)
    return p.reshape(n * oh * ow, ksize * ksize * c), (n, oh, ow)


def im2col_pooled(x, tm4, ksize=3, stride=2, pad=1):
    """im2col whose rows are reordered so that, within each block of 4*tm4 rows,
    the 4 MaxPool2d(2) taps of tm4 consecutive pooling windows occupy 4
    contiguous slabs of tm4 rows each. Output rows of the fused kernel then come
    out in plain (n, ph, pw) window order."""
    n, h, w, c = x.shape
    xp = jnp.pad(x, ((0, 0), (pad, pad), (pad, pad), (0, 0)))
    oh = (h + 2 * pad - ksize) // stride + 1
    ow = (w + 2 * pad - ksize) // stride + 1
    ph, pw = oh // 2, ow // 2
    taps = [xp[:, kh:kh + stride * oh:stride, kw:kw + stride * ow:stride, :]
            for kh in range(ksize) for kw in range(ksize)]
    p = jnp.stack(taps, axis=3)                       # (N, OH, OW, 9, C)
    p = p.reshape(n, ph, 2, pw, 2, ksize * ksize, c)
    p = jnp.transpose(p, (0, 1, 3, 2, 4, 5, 6))       # (N, PH, PW, 2, 2, 9, C)
    nwin = n * ph * pw
    kdim = ksize * ksize * c
    p = p.reshape(nwin, 4, kdim)                      # (windows, taps, K)
    nblk = nwin // tm4
    p = p.reshape(nblk, tm4, 4, kdim)
    p = jnp.transpose(p, (0, 2, 1, 3))                # (blocks, taps, tm4, K)
    return p.reshape(nwin * 4, kdim), (n, ph, pw)


def conv_weight_to_matrix(w):
    """PyTorch (Cout, Cin, kh, kw) -> (kh*kw*Cin, Cout), matching im2col order."""
    cout = w.shape[0]
    return jnp.transpose(w, (2, 3, 1, 0)).reshape(-1, cout)


def fold_bn(bias, bn, eps=1e-5):
    """Fold preceding bias + eval-mode BatchNorm into (scale, shift)."""
    gamma, beta, mean, var = bn
    scale = gamma / jnp.sqrt(var + eps)
    shift = beta + (bias - mean) * scale
    return scale, shift


def prepare_params(params):
    """One-time prep (outside jit): fold BN scale into weight columns,
    pre-transpose FC weights, cast all matmul weights to bf16."""
    packed = {}
    for name, bn_name in (("conv1", "bn1"), ("conv2", "bn2"), ("conv3", "bn3")):
        w, b = params[name]
        scale, shift = fold_bn(b, params[bn_name])
        wm = conv_weight_to_matrix(w) * scale[None, :]
        packed[name] = (wm.astype(jnp.bfloat16), shift.astype(jnp.float32))
    for name, bn_name in (("fc1", "bnf1"), ("fc2", "bnf2")):
        w, b = params[name]
        scale, shift = fold_bn(b, params[bn_name])
        wm = w.T * scale[None, :]
        packed[name] = (wm.astype(jnp.bfloat16), shift.astype(jnp.float32))
    w3, b3 = params["fc3"]
    packed["fc3"] = (w3.T.astype(jnp.bfloat16), b3.astype(jnp.float32))
    return packed


def init_params(key, num_classes):
    keys = iter(jax.random.split(key, 32))

    def conv_p(cin, cout):
        w = jax.random.normal(next(keys), (cout, cin, 3, 3), jnp.float32) * 0.05
        b = jax.random.normal(next(keys), (cout,), jnp.float32) * 0.05
        return w, b

    def bn_p(cdim):
        gamma = 1.0 + 0.1 * jax.random.normal(next(keys), (cdim,), jnp.float32)
        beta = 0.1 * jax.random.normal(next(keys), (cdim,), jnp.float32)
        mean = 0.1 * jax.random.normal(next(keys), (cdim,), jnp.float32)
        var = 1.0 + 0.1 * jax.random.uniform(next(keys), (cdim,), jnp.float32)
        return gamma, beta, mean, var

    def lin_p(fin, fout):
        w = jax.random.normal(next(keys), (fout, fin), jnp.float32) * 0.02
        b = jax.random.normal(next(keys), (fout,), jnp.float32) * 0.02
        return w, b

    return {
        "conv1": conv_p(3, 64), "bn1": bn_p(64),
        "conv2": conv_p(64, 128), "bn2": bn_p(128),
        "conv3": conv_p(128, 256), "bn3": bn_p(256),
        "fc1": lin_p(256 * 4 * 4, 1024), "bnf1": bn_p(1024),
        "fc2": lin_p(1024, 512), "bnf2": bn_p(512),
        "fc3": lin_p(512, num_classes),
    }


# ----------------------------------------------------------------------------
# Forward pass (matches CNN.forward in eval mode)
# ----------------------------------------------------------------------------
def cnn_forward(packed, x_nchw):
    x = jnp.transpose(x_nchw, (0, 2, 3, 1)).astype(jnp.bfloat16)   # NCHW -> NHWC

    # Conv(s2,p1) + BN + MaxPool(2) + ReLU, fully fused into one Pallas matmul
    # per layer (conv output never round-trips HBM unpooled).
    for name in ("conv1", "conv2"):
        wm, shift = packed[name]
        cout = wm.shape[1]
        n, h, w_sp, _ = x.shape
        nwin = n * (h // 4) * (w_sp // 4)
        tm4 = _pick_tile(nwin, min(512, max(8, nwin // 2)), 8)
        cols, (n, ph, pw) = im2col_pooled(x, tm4)
        y = fused_matmul(cols, wm, shift, relu=True, out_dtype=jnp.bfloat16,
                         tn_max=128, pool_q=tm4)
        x = y.reshape(n, ph, pw, cout)

    # Conv(128->256,s2,p1) + BN + ReLU (no pool)
    wm, shift = packed["conv3"]
    cols, (n, oh, ow) = im2col(x)
    y = fused_matmul(cols, wm, shift, relu=True, out_dtype=jnp.bfloat16,
                     tn_max=128)
    x = y.reshape(n, oh, ow, wm.shape[1])

    # Flatten exactly like PyTorch's NCHW .view(N, -1) (tiny tensor, ~16 KB).
    flat = jnp.transpose(x, (0, 3, 1, 2)).reshape(n, -1)

    # Dense: Dropout(identity) -> Linear -> BN1d -> ReLU, twice, then Linear.
    # Weights are already pre-transposed / scale-folded / bf16 (prep time).
    # TODO(synk): Dropout is identity (eval mode); training-mode RNG dropout not implemented.
    w1, t1 = packed["fc1"]
    h = fused_matmul(flat, w1, t1, relu=True, out_dtype=jnp.bfloat16, tn_max=256)
    w2, t2 = packed["fc2"]
    h = fused_matmul(h, w2, t2, relu=True, out_dtype=jnp.bfloat16, tn_max=256)
    w3, b3 = packed["fc3"]
    out = fused_matmul(h, w3, b3, relu=False, out_dtype=jnp.float32, tn_max=256)
    return out


if __name__ == "__main__":
    num_classes = 10
    key = jax.random.PRNGKey(0)
    pkey, xkey = jax.random.split(key)
    params = init_params(pkey, num_classes)
    packed = prepare_params(params)           # one-time: fold/transpose/bf16-cast

    # Input 128x128 so the conv stack produces 256 x 4 x 4 = 4096 features,
    # matching nn.Linear(256*4*4, 1024).
    x = jax.random.normal(xkey, (2, 3, 128, 128), jnp.float32)   # NCHW

    fwd = jax.jit(cnn_forward)
    out = fwd(packed, x)
    jax.block_until_ready(out)
    assert out.shape == (2, num_classes) and out.dtype == jnp.float32
    print("KERNEL_OK")
</pallas_src>

<mosaic_0001>
module attributes {stable_mosaic.version = 11 : i64} {
  func.func @_matmul_bn_act_kernel(%arg0: i32, %arg1: i32, %arg2: memref<2048x27xbf16, #tpu.memory_space<vmem>>, %arg3: memref<27x64xbf16, #tpu.memory_space<vmem>>, %arg4: memref<1x64xf32, #tpu.memory_space<vmem>>, %arg5: memref<512x64xbf16, #tpu.memory_space<vmem>>) attributes {dimension_semantics = [#tpu.dimension_semantics<parallel>, #tpu.dimension_semantics<parallel>], iteration_bounds = array<i64: 4, 1>, scalar_prefetch = 0 : i64, scratch_operands = 0 : i64, tpu.core_type = #tpu.core_type<tc>, window_params = [{transform_indices = @transform_0, window_bounds = array<i64: 2048, 27>}, {transform_indices = @transform_1, window_bounds = array<i64: 27, 64>}, {transform_indices = @transform_2, window_bounds = array<i64: 1, 64>}, {transform_indices = @transform_3, window_bounds = array<i64: 512, 64>}]} {
    %c0 = arith.constant 0 : index
    %c0_0 = arith.constant 0 : index
    %0 = vector.load %arg2[%c0, %c0_0] : memref<2048x27xbf16, #tpu.memory_space<vmem>>, vector<2048x27xbf16>
    %c0_1 = arith.constant 0 : index
    %c0_2 = arith.constant 0 : index
    %1 = vector.load %arg3[%c0_1, %c0_2] : memref<27x64xbf16, #tpu.memory_space<vmem>>, vector<27x64xbf16>
    %cst = arith.constant dense<0.000000e+00> : vector<2048x64xf32>
    %2 = tpu.matmul %0, %1, %cst {dimension_numbers = #tpu.dot_dimension_numbers<[1], [0], [0], [1], [0, 0, 1, 1], [], []>} : vector<2048x27xbf16>, vector<27x64xbf16>, vector<2048x64xf32> -> vector<2048x64xf32>
    %c0_3 = arith.constant 0 : index
    %c0_4 = arith.constant 0 : index
    %3 = vector.load %arg4[%c0_3, %c0_4] : memref<1x64xf32, #tpu.memory_space<vmem>>, vector<1x64xf32>
    %4 = vector.broadcast %3 : vector<1x64xf32> to vector<2048x64xf32>
    %5 = arith.addf %2, %4 : vector<2048x64xf32>
    %6 = vector.extract_strided_slice %5 {offsets = [0, 0], sizes = [512, 64], strides = [1, 1]} : vector<2048x64xf32> to vector<512x64xf32>
    %7 = vector.extract_strided_slice %5 {offsets = [512, 0], sizes = [512, 64], strides = [1, 1]} : vector<2048x64xf32> to vector<512x64xf32>
    %8 = arith.maximumf %6, %7 : vector<512x64xf32>
    %9 = vector.extract_strided_slice %5 {offsets = [1024, 0], sizes = [512, 64], strides = [1, 1]} : vector<2048x64xf32> to vector<512x64xf32>
    %10 = vector.extract_strided_slice %5 {offsets = [1536, 0], sizes = [512, 64], strides = [1, 1]} : vector<2048x64xf32> to vector<512x64xf32>
    %11 = arith.maximumf %9, %10 : vector<512x64xf32>
    %12 = arith.maximumf %8, %11 : vector<512x64xf32>
    %cst_5 = arith.constant 0.000000e+00 : f32
    %13 = vector.broadcast %cst_5 : f32 to vector<512x64xf32>
    %14 = arith.maximumf %12, %13 : vector<512x64xf32>
    %15 = arith.truncf %14 : vector<512x64xf32> to vector<512x64xbf16>
    %c0_6 = arith.constant 0 : index
    %c0_7 = arith.constant 0 : index
    %16 = vector.load %arg5[%c0_6, %c0_7] : memref<512x64xbf16, #tpu.memory_space<vmem>>, vector<512x64xbf16>
    tpu.vector_store %arg5[%c0_6, %c0_7], %15 {strides = array<i32>} : memref<512x64xbf16, #tpu.memory_space<vmem>>, vector<512x64xbf16>,
    return
  }
  func.func @transform_0(%arg0: i32, %arg1: i32) -> (i32, i32) {
    %c0_i32 = arith.constant 0 : i32
    %c0_i32_0 = arith.constant 0 : i32
    return %arg0, %c0_i32 : i32, i32
  }
  func.func @transform_1(%arg0: i32, %arg1: i32) -> (i32, i32) {
    %c0_i32 = arith.constant 0 : i32
    %c0_i32_0 = arith.constant 0 : i32
    return %c0_i32, %arg1 : i32, i32
  }
  func.func @transform_2(%arg0: i32, %arg1: i32) -> (i32, i32) {
    %c0_i32 = arith.constant 0 : i32
    %c0_i32_0 = arith.constant 0 : i32
    return %c0_i32, %arg1 : i32, i32
  }
  func.func @transform_3(%arg0: i32, %arg1: i32) -> (i32, i32) {
    %c0_i32 = arith.constant 0 : i32
    return %arg0, %arg1 : i32, i32
  }
}

module attributes {stable_mosaic.version = 11 : i64} {
  func.func @_matmul_bn_act_kernel(%arg0: i32, %arg1: i32, %arg2: memref<256x576xbf16, #tpu.memory_space<vmem>>, %arg3: memref<576x128xbf16, #tpu.memory_space<vmem>>, %arg4: memref<1x128xf32, #tpu.memory_space<vmem>>, %arg5: memref<64x128xbf16, #tpu.memory_space<vmem>>) attributes {dimension_semantics = [#tpu.dimension_semantics<parallel>, #tpu.dimension_semantics<parallel>], iteration_bounds = array<i64: 2, 1>, scalar_prefetch = 0 : i64, scratch_operands = 0 : i64, tpu.core_type = #tpu.core_type<tc>, window_params = [{transform_indices = @transform_0, window_bounds = array<i64: 256, 576>}, {transform_indices = @transform_1, window_bounds = array<i64: 576, 128>}, {transform_indices = @transform_2, window_bounds = array<i64: 1, 128>}, {transform_indices = @transform_3, window_bounds = array<i64: 64, 128>}]} {
    %c0 = arith.constant 0 : index
    %c0_0 = arith.constant 0 : index
    %0 = vector.load %arg2[%c0, %c0_0] : memref<256x576xbf16, #tpu.memory_space<vmem>>, vector<256x576xbf16>
    %c0_1 = arith.constant 0 : index
    %c0_2 = arith.constant 0 : index
    %1 = vector.load %arg3[%c0_1, %c0_2] : memref<576x128xbf16, #tpu.memory_space<vmem>>, vector<576x128xbf16>
    %cst = arith.constant dense<0.000000e+00> : vector<256x128xf32>
    %2 = tpu.matmul %0, %1, %cst {dimension_numbers = #tpu.dot_dimension_numbers<[1], [0], [0], [1], [0, 0, 1, 1], [], []>} : vector<256x576xbf16>, vector<576x128xbf16>, vector<256x128xf32> -> vector<256x128xf32>
    %c0_3 = arith.constant 0 : index
    %c0_4 = arith.constant 0 : index
    %3 = vector.load %arg4[%c0_3, %c0_4] : memref<1x128xf32, #tpu.memory_space<vmem>>, vector<1x128xf32>
    %4 = vector.broadcast %3 : vector<1x128xf32> to vector<256x128xf32>
    %5 = arith.addf %2, %4 : vector<256x128xf32>
    %6 = vector.extract_strided_slice %5 {offsets = [0, 0], sizes = [64, 128], strides = [1, 1]} : vector<256x128xf32> to vector<64x128xf32>
    %7 = vector.extract_strided_slice %5 {offsets = [64, 0], sizes = [64, 128], strides = [1, 1]} : vector<256x128xf32> to vector<64x128xf32>
    %8 = arith.maximumf %6, %7 : vector<64x128xf32>
    %9 = vector.extract_strided_slice %5 {offsets = [128, 0], sizes = [64, 128], strides = [1, 1]} : vector<256x128xf32> to vector<64x128xf32>
    %10 = vector.extract_strided_slice %5 {offsets = [192, 0], sizes = [64, 128], strides = [1, 1]} : vector<256x128xf32> to vector<64x128xf32>
    %11 = arith.maximumf %9, %10 : vector<64x128xf32>
    %12 = arith.maximumf %8, %11 : vector<64x128xf32>
    %cst_5 = arith.constant 0.000000e+00 : f32
    %13 = vector.broadcast %cst_5 : f32 to vector<64x128xf32>
    %14 = arith.maximumf %12, %13 : vector<64x128xf32>
    %15 = arith.truncf %14 : vector<64x128xf32> to vector<64x128xbf16>
    %c0_6 = arith.constant 0 : index
    %c0_7 = arith.constant 0 : index
    %16 = vector.load %arg5[%c0_6, %c0_7] : memref<64x128xbf16, #tpu.memory_space<vmem>>, vector<64x128xbf16>
    tpu.vector_store %arg5[%c0_6, %c0_7], %15 {strides = array<i32>} : memref<64x128xbf16, #tpu.memory_space<vmem>>, vector<64x128xbf16>,
    return
  }
  func.func @transform_0(%arg0: i32, %arg1: i32) -> (i32, i32) {
    %c0_i32 = arith.constant 0 : i32
    %c0_i32_0 = arith.constant 0 : i32
    return %arg0, %c0_i32 : i32, i32
  }
  func.func @transform_1(%arg0: i32, %arg1: i32) -> (i32, i32) {
    %c0_i32 = arith.constant 0 : i32
    %c0_i32_0 = arith.constant 0 : i32
    return %c0_i32, %arg1 : i32, i32
  }
  func.func @transform_2(%arg0: i32, %arg1: i32) -> (i32, i32) {
    %c0_i32 = arith.constant 0 : i32
    %c0_i32_0 = arith.constant 0 : i32
    return %c0_i32, %arg1 : i32, i32
  }
  func.func @transform_3(%arg0: i32, %arg1: i32) -> (i32, i32) {
    %c0_i32 = arith.constant 0 : i32
    return %arg0, %arg1 : i32, i32
  }
}

module attributes {stable_mosaic.version = 11 : i64} {
  func.func @_matmul_bn_act_kernel(%arg0: i32, %arg1: i32, %arg2: memref<32x1152xbf16, #tpu.memory_space<vmem>>, %arg3: memref<1152x128xbf16, #tpu.memory_space<vmem>>, %arg4: memref<1x128xf32, #tpu.memory_space<vmem>>, %arg5: memref<32x128xbf16, #tpu.memory_space<vmem>>) attributes {dimension_semantics = [#tpu.dimension_semantics<parallel>, #tpu.dimension_semantics<parallel>], iteration_bounds = array<i64: 1, 2>, scalar_prefetch = 0 : i64, scratch_operands = 0 : i64, tpu.core_type = #tpu.core_type<tc>, window_params = [{transform_indices = @transform_0, window_bounds = array<i64: 32, 1152>}, {transform_indices = @transform_1, window_bounds = array<i64: 1152, 128>}, {transform_indices = @transform_2, window_bounds = array<i64: 1, 128>}, {transform_indices = @transform_3, window_bounds = array<i64: 32, 128>}]} {
    %c0 = arith.constant 0 : index
    %c0_0 = arith.constant 0 : index
    %0 = vector.load %arg2[%c0, %c0_0] : memref<32x1152xbf16, #tpu.memory_space<vmem>>, vector<32x1152xbf16>
    %c0_1 = arith.constant 0 : index
    %c0_2 = arith.constant 0 : index
    %1 = vector.load %arg3[%c0_1, %c0_2] : memref<1152x128xbf16, #tpu.memory_space<vmem>>, vector<1152x128xbf16>
    %cst = arith.constant dense<0.000000e+00> : vector<32x128xf32>
    %2 = tpu.matmul %0, %1, %cst {dimension_numbers = #tpu.dot_dimension_numbers<[1], [0], [0], [1], [0, 0, 1, 1], [], []>} : vector<32x1152xbf16>, vector<1152x128xbf16>, vector<32x128xf32> -> vector<32x128xf32>
    %c0_3 = arith.constant 0 : index
    %c0_4 = arith.constant 0 : index
    %3 = vector.load %arg4[%c0_3, %c0_4] : memref<1x128xf32, #tpu.memory_space<vmem>>, vector<1x128xf32>
    %4 = vector.broadcast %3 : vector<1x128xf32> to vector<32x128xf32>
    %5 = arith.addf %2, %4 : vector<32x128xf32>
    %cst_5 = arith.constant 0.000000e+00 : f32
    %6 = vector.broadcast %cst_5 : f32 to vector<32x128xf32>
    %7 = arith.maximumf %5, %6 : vector<32x128xf32>
    %8 = arith.truncf %7 : vector<32x128xf32> to vector<32x128xbf16>
    %c0_6 = arith.constant 0 : index
    %c0_7 = arith.constant 0 : index
    %9 = vector.load %arg5[%c0_6, %c0_7] : memref<32x128xbf16, #tpu.memory_space<vmem>>, vector<32x128xbf16>
    tpu.vector_store %arg5[%c0_6, %c0_7], %8 {strides = array<i32>} : memref<32x128xbf16, #tpu.memory_space<vmem>>, vector<32x128xbf16>,
    return
  }
  func.func @transform_0(%arg0: i32, %arg1: i32) -> (i32, i32) {
    %c0_i32 = arith.constant 0 : i32
    %c0_i32_0 = arith.constant 0 : i32
    return %arg0, %c0_i32 : i32, i32
  }
  func.func @transform_1(%arg0: i32, %arg1: i32) -> (i32, i32) {
    %c0_i32 = arith.constant 0 : i32
    %c0_i32_0 = arith.constant 0 : i32
    return %c0_i32, %arg1 : i32, i32
  }
  func.func @transform_2(%arg0: i32, %arg1: i32) -> (i32, i32) {
    %c0_i32 = arith.constant 0 : i32
    %c0_i32_0 = arith.constant 0 : i32
    return %c0_i32, %arg1 : i32, i32
  }
  func.func @transform_3(%arg0: i32, %arg1: i32) -> (i32, i32) {
    %c0_i32 = arith.constant 0 : i32
    return %arg0, %arg1 : i32, i32
  }
}

module attributes {stable_mosaic.version = 11 : i64} {
  func.func @_matmul_bn_act_kernel(%arg0: i32, %arg1: i32, %arg2: memref<2x4096xbf16, #tpu.memory_space<vmem>>, %arg3: memref<4096x256xbf16, #tpu.memory_space<vmem>>, %arg4: memref<1x256xf32, #tpu.memory_space<vmem>>, %arg5: memref<2x256xbf16, #tpu.memory_space<vmem>>) attributes {dimension_semantics = [#tpu.dimension_semantics<parallel>, #tpu.dimension_semantics<parallel>], iteration_bounds = array<i64: 1, 4>, scalar_prefetch = 0 : i64, scratch_operands = 0 : i64, tpu.core_type = #tpu.core_type<tc>, window_params = [{transform_indices = @transform_0, window_bounds = array<i64: 2, 4096>}, {transform_indices = @transform_1, window_bounds = array<i64: 4096, 256>}, {transform_indices = @transform_2, window_bounds = array<i64: 1, 256>}, {transform_indices = @transform_3, window_bounds = array<i64: 2, 256>}]} {
    %c0 = arith.constant 0 : index
    %c0_0 = arith.constant 0 : index
    %0 = vector.load %arg2[%c0, %c0_0] : memref<2x4096xbf16, #tpu.memory_space<vmem>>, vector<2x4096xbf16>
    %c0_1 = arith.constant 0 : index
    %c0_2 = arith.constant 0 : index
    %1 = vector.load %arg3[%c0_1, %c0_2] : memref<4096x256xbf16, #tpu.memory_space<vmem>>, vector<4096x256xbf16>
    %cst = arith.constant dense<0.000000e+00> : vector<2x256xf32>
    %2 = tpu.matmul %0, %1, %cst {dimension_numbers = #tpu.dot_dimension_numbers<[1], [0], [0], [1], [0, 0, 1, 1], [], []>} : vector<2x4096xbf16>, vector<4096x256xbf16>, vector<2x256xf32> -> vector<2x256xf32>
    %c0_3 = arith.constant 0 : index
    %c0_4 = arith.constant 0 : index
    %3 = vector.load %arg4[%c0_3, %c0_4] : memref<1x256xf32, #tpu.memory_space<vmem>>, vector<1x256xf32>
    %4 = vector.broadcast %3 : vector<1x256xf32> to vector<2x256xf32>
    %5 = arith.addf %2, %4 : vector<2x256xf32>
    %cst_5 = arith.constant 0.000000e+00 : f32
    %6 = vector.broadcast %cst_5 : f32 to vector<2x256xf32>
    %7 = arith.maximumf %5, %6 : vector<2x256xf32>
    %8 = arith.truncf %7 : vector<2x256xf32> to vector<2x256xbf16>
    %c0_6 = arith.constant 0 : index
    %c0_7 = arith.constant 0 : index
    %9 = vector.load %arg5[%c0_6, %c0_7] : memref<2x256xbf16, #tpu.memory_space<vmem>>, vector<2x256xbf16>
    tpu.vector_store %arg5[%c0_6, %c0_7], %8 {strides = array<i32>} : memref<2x256xbf16, #tpu.memory_space<vmem>>, vector<2x256xbf16>,
    return
  }
  func.func @transform_0(%arg0: i32, %arg1: i32) -> (i32, i32) {
    %c0_i32 = arith.constant 0 : i32
    %c0_i32_0 = arith.constant 0 : i32
    return %arg0, %c0_i32 : i32, i32
  }
  func.func @transform_1(%arg0: i32, %arg1: i32) -> (i32, i32) {
    %c0_i32 = arith.constant 0 : i32
    %c0_i32_0 = arith.constant 0 : i32
    return %c0_i32, %arg1 : i32, i32
  }
  func.func @transform_2(%arg0: i32, %arg1: i32) -> (i32, i32) {
    %c0_i32 = arith.constant 0 : i32
    %c0_i32_0 = arith.constant 0 : i32
    return %c0_i32, %arg1 : i32, i32
  }
  func.func @transform_3(%arg0: i32, %arg1: i32) -> (i32, i32) {
    %c0_i32 = arith.constant 0 : i32
    return %arg0, %arg1 : i32, i32
  }
}

module attributes {stable_mosaic.version = 11 : i64} {
  func.func @_matmul_bn_act_kernel(%arg0: i32, %arg1: i32, %arg2: memref<2x1024xbf16, #tpu.memory_space<vmem>>, %arg3: memref<1024x256xbf16, #tpu.memory_space<vmem>>, %arg4: memref<1x256xf32, #tpu.memory_space<vmem>>, %arg5: memref<2x256xbf16, #tpu.memory_space<vmem>>) attributes {dimension_semantics = [#tpu.dimension_semantics<parallel>, #tpu.dimension_semantics<parallel>], iteration_bounds = array<i64: 1, 2>, scalar_prefetch = 0 : i64, scratch_operands = 0 : i64, tpu.core_type = #tpu.core_type<tc>, window_params = [{transform_indices = @transform_0, window_bounds = array<i64: 2, 1024>}, {transform_indices = @transform_1, window_bounds = array<i64: 1024, 256>}, {transform_indices = @transform_2, window_bounds = array<i64: 1, 256>}, {transform_indices = @transform_3, window_bounds = array<i64: 2, 256>}]} {
    %c0 = arith.constant 0 : index
    %c0_0 = arith.constant 0 : index
    %0 = vector.load %arg2[%c0, %c0_0] : memref<2x1024xbf16, #tpu.memory_space<vmem>>, vector<2x1024xbf16>
    %c0_1 = arith.constant 0 : index
    %c0_2 = arith.constant 0 : index
    %1 = vector.load %arg3[%c0_1, %c0_2] : memref<1024x256xbf16, #tpu.memory_space<vmem>>, vector<1024x256xbf16>
    %cst = arith.constant dense<0.000000e+00> : vector<2x256xf32>
    %2 = tpu.matmul %0, %1, %cst {dimension_numbers = #tpu.dot_dimension_numbers<[1], [0], [0], [1], [0, 0, 1, 1], [], []>} : vector<2x1024xbf16>, vector<1024x256xbf16>, vector<2x256xf32> -> vector<2x256xf32>
    %c0_3 = arith.constant 0 : index
    %c0_4 = arith.constant 0 : index
    %3 = vector.load %arg4[%c0_3, %c0_4] : memref<1x256xf32, #tpu.memory_space<vmem>>, vector<1x256xf32>
    %4 = vector.broadcast %3 : vector<1x256xf32> to vector<2x256xf32>
    %5 = arith.addf %2, %4 : vector<2x256xf32>
    %cst_5 = arith.constant 0.000000e+00 : f32
    %6 = vector.broadcast %cst_5 : f32 to vector<2x256xf32>
    %7 = arith.maximumf %5, %6 : vector<2x256xf32>
    %8 = arith.truncf %7 : vector<2x256xf32> to vector<2x256xbf16>
    %c0_6 = arith.constant 0 : index
    %c0_7 = arith.constant 0 : index
    %9 = vector.load %arg5[%c0_6, %c0_7] : memref<2x256xbf16, #tpu.memory_space<vmem>>, vector<2x256xbf16>
    tpu.vector_store %arg5[%c0_6, %c0_7], %8 {strides = array<i32>} : memref<2x256xbf16, #tpu.memory_space<vmem>>, vector<2x256xbf16>,
    return
  }
  func.func @transform_0(%arg0: i32, %arg1: i32) -> (i32, i32) {
    %c0_i32 = arith.constant 0 : i32
    %c0_i32_0 = arith.constant 0 : i32
    return %arg0, %c0_i32 : i32, i32
  }
  func.func @transform_1(%arg0: i32, %arg1: i32) -> (i32, i32) {
    %c0_i32 = arith.constant 0 : i32
    %c0_i32_0 = arith.constant 0 : i32
    return %c0_i32, %arg1 : i32, i32
  }
  func.func @transform_2(%arg0: i32, %arg1: i32) -> (i32, i32) {
    %c0_i32 = arith.constant 0 : i32
    %c0_i32_0 = arith.constant 0 : i32
    return %c0_i32, %arg1 : i32, i32
  }
  func.func @transform_3(%arg0: i32, %arg1: i32) -> (i32, i32) {
    %c0_i32 = arith.constant 0 : i32
    return %arg0, %arg1 : i32, i32
  }
}

module attributes {stable_mosaic.version = 11 : i64} {
  func.func @_matmul_bn_act_kernel(%arg0: i32, %arg1: i32, %arg2: memref<2x512xbf16, #tpu.memory_space<vmem>>, %arg3: memref<512x10xbf16, #tpu.memory_space<vmem>>, %arg4: memref<1x10xf32, #tpu.memory_space<vmem>>, %arg5: memref<2x10xf32, #tpu.memory_space<vmem>>) attributes {dimension_semantics = [#tpu.dimension_semantics<parallel>, #tpu.dimension_semantics<parallel>], iteration_bounds = array<i64: 1, 1>, scalar_prefetch = 0 : i64, scratch_operands = 0 : i64, tpu.core_type = #tpu.core_type<tc>, window_params = [{transform_indices = @transform_0, window_bounds = array<i64: 2, 512>}, {transform_indices = @transform_1, window_bounds = array<i64: 512, 10>}, {transform_indices = @transform_2, window_bounds = array<i64: 1, 10>}, {transform_indices = @transform_3, window_bounds = array<i64: 2, 10>}]} {
    %c0 = arith.constant 0 : index
    %c0_0 = arith.constant 0 : index
    %0 = vector.load %arg2[%c0, %c0_0] : memref<2x512xbf16, #tpu.memory_space<vmem>>, vector<2x512xbf16>
    %c0_1 = arith.constant 0 : index
    %c0_2 = arith.constant 0 : index
    %1 = vector.load %arg3[%c0_1, %c0_2] : memref<512x10xbf16, #tpu.memory_space<vmem>>, vector<512x10xbf16>
    %cst = arith.constant dense<0.000000e+00> : vector<2x10xf32>
    %2 = tpu.matmul %0, %1, %cst {dimension_numbers = #tpu.dot_dimension_numbers<[1], [0], [0], [1], [0, 0, 1, 1], [], []>} : vector<2x512xbf16>, vector<512x10xbf16>, vector<2x10xf32> -> vector<2x10xf32>
    %c0_3 = arith.constant 0 : index
    %c0_4 = arith.constant 0 : index
    %3 = vector.load %arg4[%c0_3, %c0_4] : memref<1x10xf32, #tpu.memory_space<vmem>>, vector<1x10xf32>
    %4 = vector.broadcast %3 : vector<1x10xf32> to vector<2x10xf32>
    %5 = arith.addf %2, %4 : vector<2x10xf32>
    %c0_5 = arith.constant 0 : index
    %c0_6 = arith.constant 0 : index
    %6 = vector.load %arg5[%c0_5, %c0_6] : memref<2x10xf32, #tpu.memory_space<vmem>>, vector<2x10xf32>
    tpu.vector_store %arg5[%c0_5, %c0_6], %5 {strides = array<i32>} : memref<2x10xf32, #tpu.memory_space<vmem>>, vector<2x10xf32>,
    return
  }
  func.func @transform_0(%arg0: i32, %arg1: i32) -> (i32, i32) {
    %c0_i32 = arith.constant 0 : i32
    %c0_i32_0 = arith.constant 0 : i32
    return %arg0, %c0_i32 : i32, i32
  }
  func.func @transform_1(%arg0: i32, %arg1: i32) -> (i32, i32) {
    %c0_i32 = arith.constant 0 : i32
    %c0_i32_0 = arith.constant 0 : i32
    return %c0_i32, %arg1 : i32, i32
  }
  func.func @transform_2(%arg0: i32, %arg1: i32) -> (i32, i32) {
    %c0_i32 = arith.constant 0 : i32
    %c0_i32_0 = arith.constant 0 : i32
    return %c0_i32, %arg1 : i32, i32
  }
  func.func @transform_3(%arg0: i32, %arg1: i32) -> (i32, i32) {
    %c0_i32 = arith.constant 0 : i32
    return %arg0, %arg1 : i32, i32
  }
}

</mosaic_0001>

<bundles_post_ra>
// kernel: cnn_forward.6
= control target key start
LH: loop header
LB: loop body
LE: loop exit
PB: predicated region body
PF: predicated region fallthrough
CT: control target
= control target key end

     0   :  { %s3539_s12 = smov 0   ;;  %s3541_s13 = smov 0   ;;  %s4224_s0 = inlined_call_operand.vmem [shape: bf16[8192,27], index: 0, kind: input, shape index: {}]   ;;  %s4225_s1 = inlined_call_operand.vmem [shape: bf16[27,64], index: 1, kind: input, shape index: {}]   ;;  %s4226_s2 = inlined_call_operand.vmem [shape: f32[1,64], index: 2, kind: input, shape index: {}]   ;;  %s4227_s3 = inlined_call_operand.vmem [shape: bf16[2048,64], index: 3, kind: output, shape index: {}]  }
   0x1   :  { %s3543_s14 = smov 0  }
   0x2 LB: > { %s25_s15 = sadd.s32 1, %s3512_s13  ;;  %p2675_p0 = scmp.ge.s32.totalorder %s3516_s14, 1  ;;  %s3516_s14 = sphi %s3543_s14, %s13_s14   ;;  %s3512_s13 = sphi %s3541_s13, %s4229_s13   ;;  %s3508_s12 = sphi %s3539_s12, %s4228_s12  }
   0x3   : > { %p27_p1 = scmp.ge.s32.totalorder %s25_s15, 4  ;;  %p169_p2 = scmp.lt.s32.totalorder %s3516_s14, 5 }
   0x5   : > { %s4231_s15 = smov (%p27_p1, %s25_s15), 0  ;;  %p170_p3 = pnand %p2675_p0, %p169_p2 }
   0x6   : > { %s2676_s20 = sshll.u32 (!%p170_p3), %s3508_s12, 8  ;;  %s2678_s29 = sshll.u32 (!%p170_p3), %s3508_s12, 6 }
   0x7   : > { %173 = sbr.rel (%p170_p3) target bundleno = 673 (0x2a1), region = 32  ;;  %p204_p4 = scmp.lt.s32.totalorder (!%p170_p3), %s2676_s20, 1023 }
   0x8   : > { %p217_p5 = scmp.lt.s32.totalorder (!%p170_p3), %s2678_s29, 255 }
   0xc   : > { %v3198_v0 = vld [vmem:[%s4225_s1 + $0x8] sm:$0xf]  ;;  %v3459_v1 = vld [vmem:[%s4225_s1 + $0x8] sm:$0x30]  ;;  %vm1526_vm0 = vcmask 1044480   ;;  %vm1527_vm1 = vcmask 1045504  }
   0xd   : > { %v3199_v2 = vor.u32 %v3459_v1, %v3198_v0  ;;  %v3518_v3 = vmov 65535   ;;  %s4233_s20 = smov (!%p204_p4, %s2676_s20), 1023  ;;  %v3458_v7 = vld [vmem:[%s4225_s1] sm:$0xff]  ;;  %vm1141_vm2 = vcmask 220160   ;;  %s4235_s29 = smov (!%p217_p5, %s2678_s29), 255  ;;  %vm2502_vm3 = vcmask 519168  }
   0xe   : > { %v1528_v4 = vsel %vm1526_vm0, 4294967295, %v3518_v3  ;;  %s2677_s23 = sshll.u32 %s4233_s20, 2  ;;  %v3643_v42 = vld [vmem:[%s4226_s2] ss:$0 sm:$0xff]  ;;  %s2679_s30 = sshll.u32 %s4235_s29, 2 }
   0xf   : > { %v1529_v5 = vsel %vm1527_vm1, %v1528_v4, 0  ;;  %s3572_s26 = scalar_lea.vmem %s4224_s0, %s2677_s23  ;;  %s3661_s6 = scalar_lea.vmem %s4227_s3, %s2679_s30 }
  0x10   : > { %v1531_v6 = vand.u32 %v3199_v2, %v1529_v5  ;;  %v3330_v8 = vld [vmem:[%s3572_s26] sm:$0xff]  ;;  %v3331_v12 = vld [vmem:[%s3572_s26 + $0x8] sm:$0xff]  ;;  %v3332_v16 = vld [vmem:[%s3572_s26 + $0x10] sm:$0xff] }
  0x11   : > { %v3362_v9 = vld [vmem:[%s3572_s26 + $0x100] sm:$0xff]  ;;  %v3363_v13 = vld [vmem:[%s3572_s26 + $0x108] sm:$0xff]  ;;  %v3364_v17 = vld [vmem:[%s3572_s26 + $0x110] sm:$0xff] }
  0x12   : > { %1539 = vmatpush.bf16.msra.mxu0 %v1531_v6  ;;  %3460 = vmatpush.bf16.msra.mxu1 %v1531_v6  ;;  %v3394_v10 = vld [vmem:[%s3572_s26 + $0x200] sm:$0xff]  ;;  %v3395_v14 = vld [vmem:[%s3572_s26 + $0x208] sm:$0xff]  ;;  %v3396_v18 = vld [vmem:[%s3572_s26 + $0x210] sm:$0xff] }
  0x13   : > { %3461 = vmatpush.bf16.msra.mxu2 %v1531_v6  ;;  %3462 = vmatpush.bf16.msra.mxu3 %v1531_v6  ;;  %v3426_v11 = vld [vmem:[%s3572_s26 + $0x300] sm:$0xff]  ;;  %v3427_v15 = vld [vmem:[%s3572_s26 + $0x308] sm:$0xff]  ;;  %v3428_v19 = vld [vmem:[%s3572_s26 + $0x310] sm:$0xff] }
  0x14   : > { %v3333_v20 = vld [vmem:[%s3572_s26 + $0x18] sm:$0xff]  ;;  %v3334_v24 = vld [vmem:[%s3572_s26 + $0x20] sm:$0xff]  ;;  %v3335_v28 = vld [vmem:[%s3572_s26 + $0x28] sm:$0xff] }
  0x15   : > { %v3365_v21 = vld [vmem:[%s3572_s26 + $0x118] sm:$0xff]  ;;  %v3366_v25 = vld [vmem:[%s3572_s26 + $0x120] sm:$0xff]  ;;  %v3367_v29 = vld [vmem:[%s3572_s26 + $0x128] sm:$0xff] }
  0x16   : > { %1540 = vmatpush.bf16.msra.mxu0 %v3458_v7  ;;  %3463 = vmatpush.bf16.msra.mxu1 %v3458_v7  ;;  %v3397_v22 = vld [vmem:[%s3572_s26 + $0x218] sm:$0xff]  ;;  %v3398_v26 = vld [vmem:[%s3572_s26 + $0x220] sm:$0xff]  ;;  %v3399_v30 = vld [vmem:[%s3572_s26 + $0x228] sm:$0xff] }
  0x17   : > { %3464 = vmatpush.bf16.msra.mxu2 %v3458_v7  ;;  %3465 = vmatpush.bf16.msra.mxu3 %v3458_v7  ;;  %v3429_v23 = vld [vmem:[%s3572_s26 + $0x318] sm:$0xff]  ;;  %v3430_v27 = vld [vmem:[%s3572_s26 + $0x320] sm:$0xff]  ;;  %v3431_v31 = vld [vmem:[%s3572_s26 + $0x328] sm:$0xff] }
  0x18   : > { %v3336_v32 = vld [vmem:[%s3572_s26 + $0x30] sm:$0xff]  ;;  %v3337_v36 = vld [vmem:[%s3572_s26 + $0x38] sm:$0xff]  ;;  %v3338_v40 = vld [vmem:[%s3572_s26 + $0x40] sm:$0xff] }
  0x19   : > { %3200 = vmatmul.msk.bf16.vlgmr.msra.gmra.mxu0 %vm1141_vm2, %v3330_v8  ;;  %3232 = vmatmul.msk.bf16.vlgmr.msra.gmra.mxu1 %vm1141_vm2, %v3362_v9  ;;  %v3368_v33 = vld [vmem:[%s3572_s26 + $0x130] sm:$0xff]  ;;  %v3369_v37 = vld [vmem:[%s3572_s26 + $0x138] sm:$0xff]  ;;  %v3370_v41 = vld [vmem:[%s3572_s26 + $0x140] sm:$0xff] }
  0x1a   : > { %3264 = vmatmul.msk.bf16.vlgmr.msra.gmra.mxu2 %vm1141_vm2, %v3394_v10  ;;  %3296 = vmatmul.msk.bf16.vlgmr.msra.gmra.mxu3 %vm1141_vm2, %v3426_v11  ;;  %v3400_v34 = vld [vmem:[%s3572_s26 + $0x230] sm:$0xff]  ;;  %v3401_v38 = vld [vmem:[%s3572_s26 + $0x238] sm:$0xff]  ;;  %v3402_v45 = vld [vmem:[%s3572_s26 + $0x240] sm:$0xff] }
  0x1b   : > { %v3432_v35 = vld [vmem:[%s3572_s26 + $0x330] sm:$0xff]  ;;  %v3433_v39 = vld [vmem:[%s3572_s26 + $0x338] sm:$0xff]  ;;  %v3434_v46 = vld [vmem:[%s3572_s26 + $0x340] sm:$0xff] }
  0x1c   : > { %v3339_v63 = vld [vmem:[%s3572_s26 + $0x48] sm:$0xff] }
  0x1d   : > { %v3371_v0 = vld [vmem:[%s3572_s26 + $0x148] sm:$0xff] }
  0x1e   : > { %v3403_v6 = vld [vmem:[%s3572_s26 + $0x248] sm:$0xff] }
  0x1f   : > { %v3435_v7 = vld [vmem:[%s3572_s26 + $0x348] sm:$0xff] }
  0x29   : > { %3201 = vmatmul.msk.bf16.gmra.mxu0 %vm1141_vm2, %v3331_v12  ;;  %3233 = vmatmul.msk.bf16.gmra.mxu1 %vm1141_vm2, %v3363_v13 }
  0x2a   : > { %3265 = vmatmul.msk.bf16.gmra.mxu2 %vm1141_vm2, %v3395_v14  ;;  %3297 = vmatmul.msk.bf16.gmra.mxu3 %vm1141_vm2, %v3427_v15 }
  0x39   : > { %3202 = vmatmul.msk.bf16.gmra.mxu0 %vm1141_vm2, %v3332_v16  ;;  %3234 = vmatmul.msk.bf16.gmra.mxu1 %vm1141_vm2, %v3364_v17 }
  0x3a   : > { %3266 = vmatmul.msk.bf16.gmra.mxu2 %vm1141_vm2, %v3396_v18  ;;  %3298 = vmatmul.msk.bf16.gmra.mxu3 %vm1141_vm2, %v3428_v19 }
  0x49   : > { %3203 = vmatmul.msk.bf16.gmra.mxu0 %vm1141_vm2, %v3333_v20  ;;  %3235 = vmatmul.msk.bf16.gmra.mxu1 %vm1141_vm2, %v3365_v21 }
  0x4a   : > { %3267 = vmatmul.msk.bf16.gmra.mxu2 %vm1141_vm2, %v3397_v22  ;;  %3299 = vmatmul.msk.bf16.gmra.mxu3 %vm1141_vm2, %v3429_v23 }
  0x59   : > { %3204 = vmatmul.msk.bf16.gmra.mxu0 %vm1141_vm2, %v3334_v24  ;;  %3236 = vmatmul.msk.bf16.gmra.mxu1 %vm1141_vm2, %v3366_v25 }
  0x5a   : > { %3268 = vmatmul.msk.bf16.gmra.mxu2 %vm1141_vm2, %v3398_v26  ;;  %3300 = vmatmul.msk.bf16.gmra.mxu3 %vm1141_vm2, %v3430_v27 }
  0x69   : > { %3205 = vmatmul.msk.bf16.gmra.mxu0 %vm1141_vm2, %v3335_v28  ;;  %3237 = vmatmul.msk.bf16.gmra.mxu1 %vm1141_vm2, %v3367_v29  ;;  %v3340_v29 = vld [vmem:[%s3572_s26 + $0x50] sm:$0xff] }
  0x6a   : > { %3269 = vmatmul.msk.bf16.gmra.mxu2 %vm1141_vm2, %v3399_v30  ;;  %3301 = vmatmul.msk.bf16.gmra.mxu3 %vm1141_vm2, %v3431_v31  ;;  %v3372_v30 = vld [vmem:[%s3572_s26 + $0x150] sm:$0xff] }
  0x79   : > { %3206 = vmatmul.msk.bf16.gmra.mxu0 %vm1141_vm2, %v3336_v32  ;;  %3238 = vmatmul.msk.bf16.gmra.mxu1 %vm1141_vm2, %v3368_v33 }
  0x7a   : > { %3270 = vmatmul.msk.bf16.gmra.mxu2 %vm1141_vm2, %v3400_v34  ;;  %3302 = vmatmul.msk.bf16.gmra.mxu3 %vm1141_vm2, %v3432_v35 }
  0x89   : > { %3207 = vmatmul.msk.bf16.gmra.mxu0 %vm1141_vm2, %v3337_v36  ;;  %3239 = vmatmul.msk.bf16.gmra.mxu1 %vm1141_vm2, %v3369_v37  ;;  %v3404_v36 = vld [vmem:[%s3572_s26 + $0x250] sm:$0xff] }
  0x8a   : > { %3271 = vmatmul.msk.bf16.gmra.mxu2 %vm1141_vm2, %v3401_v38  ;;  %3303 = vmatmul.msk.bf16.gmra.mxu3 %vm1141_vm2, %v3433_v39  ;;  %v3436_v37 = vld [vmem:[%s3572_s26 + $0x350] sm:$0xff] }
  0x96   : > { %v1542_v43 = vpop.f32.mrf.mxu0  ;;  %v1702_v44 = vpop.f32.mrf.mxu1 }
  0x97   : > { %v1543_v47 = vadd.f32 %v3643_v42, %v1542_v43  ;;  %v1703_v48 = vadd.f32 %v3643_v42, %v1702_v44 }
  0x99   : > { %3208 = vmatmul.msk.bf16.gmra.mxu0 %vm1141_vm2, %v3338_v40  ;;  %3240 = vmatmul.msk.bf16.gmra.mxu1 %vm1141_vm2, %v3370_v41  ;;  %v2182_v51 = vmax.f32 %v1543_v47, %v1703_v48 }
  0x9a   : > { %3272 = vmatmul.msk.bf16.gmra.mxu2 %vm1141_vm2, %v3402_v45  ;;  %3304 = vmatmul.msk.bf16.gmra.mxu3 %vm1141_vm2, %v3434_v46 }
  0x9d   : > { %v1862_v49 = vpop.f32.mrf.mxu2  ;;  %v2022_v50 = vpop.f32.mrf.mxu3 }
  0x9e   : > { %v1863_v52 = vadd.f32 %v3643_v42, %v1862_v49  ;;  %v2023_v53 = vadd.f32 %v3643_v42, %v2022_v50  ;;  %v1544_v54 = vpop.f32.mrf.mxu0  ;;  %v1704_v55 = vpop.f32.mrf.mxu1 }
  0x9f   : > { %v1545_v59 = vadd.f32 %v3643_v42, %v1544_v54  ;;  %v1705_v60 = vadd.f32 %v3643_v42, %v1704_v55 }
  0xa0   : > { %v2246_v56 = vmax.f32 %v1863_v52, %v2023_v53 }
  0xa1   : > { %v2183_v8 = vmax.f32 %v1545_v59, %v1705_v60  ;;  %v3341_v60 = vld [vmem:[%s3572_s26 + $0x58] sm:$0xff] }
  0xa2   : > { %v2310_v57 = vmax.f32 %v2182_v51, %v2246_v56 }
  0xa4   : > { %v2374_v58 = vmax.f32 %v2310_v57, 0.0 }
  0xa5   : > { %v1864_v61 = vpop.f32.mrf.mxu2  ;;  %v2024_v62 = vpop.f32.mrf.mxu3 }
  0xa6   : > { %v2438_v1 = vpack.c.bf16 %v2374_v58, %v2374_v58  ;;  %v1865_v2 = vadd.f32 %v3643_v42, %v1864_v61  ;;  %v2025_v3 = vadd.f32 %v3643_v42, %v2024_v62  ;;  %v1547_v4 = vpop.f32.mrf.mxu0  ;;  %v1707_v5 = vpop.f32.mrf.mxu1  ;;  %v3373_v61 = vld [vmem:[%s3572_s26 + $0x158] sm:$0xff] }
  0xa7   : > { %v1548_v11 = vadd.f32 %v3643_v42, %v1547_v4  ;;  %v1708_v12 = vadd.f32 %v3643_v42, %v1707_v5  ;;  %v3437_v4 = vld [vmem:[%s3572_s26 + $0x358] sm:$0xff] }
  0xa8   : > { %2503 = vst.msk [vmem:[%s3661_s6] sm:$0xf] %vm2502_vm3, %v2438_v1  ;;  %v2247_v9 = vmax.f32 %v1865_v2, %v2025_v3  ;;  %v3405_v3 = vld [vmem:[%s3572_s26 + $0x258] sm:$0xff] }
  0xa9   : > { %3209 = vmatmul.msk.bf16.gmra.mxu0 %vm1141_vm2, %v3339_v63  ;;  %3241 = vmatmul.msk.bf16.gmra.mxu1 %vm1141_vm2, %v3371_v0  ;;  %v2184_v17 = vmax.f32 %v1548_v11, %v1708_v12 }
  0xaa   : > { %v2311_v10 = vmax.f32 %v2183_v8, %v2247_v9  ;;  %3273 = vmatmul.msk.bf16.gmra.mxu2 %vm1141_vm2, %v3403_v6  ;;  %3305 = vmatmul.msk.bf16.gmra.mxu3 %vm1141_vm2, %v3435_v7 }
  0xac   : > { %v2375_v13 = vmax.f32 %v2311_v10, 0.0 }
  0xad   : > { %v1867_v14 = vpop.f32.mrf.mxu2  ;;  %v2027_v15 = vpop.f32.mrf.mxu3 }
  0xae   : > { %v2439_v16 = vpack.c.bf16 %v2375_v13, %v2375_v13  ;;  %v1868_v18 = vadd.f32 %v3643_v42, %v1867_v14  ;;  %v2028_v19 = vadd.f32 %v3643_v42, %v2027_v15  ;;  %v1549_v20 = vpop.f32.mrf.mxu0  ;;  %v1709_v21 = vpop.f32.mrf.mxu1 }
  0xaf   : > { %v1550_v25 = vadd.f32 %v3643_v42, %v1549_v20  ;;  %v1710_v26 = vadd.f32 %v3643_v42, %v1709_v21 }
  0xb0   : > { %2504 = vst.msk [vmem:[%s3661_s6 + $0x4] sm:$0xf] %vm2502_vm3, %v2439_v16  ;;  %v2248_v22 = vmax.f32 %v1868_v18, %v2028_v19 }
  0xb1   : > { %v2185_v38 = vmax.f32 %v1550_v25, %v1710_v26  ;;  %v3342_v26 = vld [vmem:[%s3572_s26 + $0x60] sm:$0xff] }
  0xb2   : > { %v2312_v23 = vmax.f32 %v2184_v17, %v2248_v22 }
  0xb4   : > { %v2376_v24 = vmax.f32 %v2312_v23, 0.0 }
  0xb5   : > { %v1869_v27 = vpop.f32.mrf.mxu2  ;;  %v2029_v28 = vpop.f32.mrf.mxu3 }
  0xb6   : > { %v2440_v31 = vpack.c.bf16 %v2376_v24, %v2376_v24  ;;  %v1870_v32 = vadd.f32 %v3643_v42, %v1869_v27  ;;  %v2030_v33 = vadd.f32 %v3643_v42, %v2029_v28  ;;  %v1552_v34 = vpop.f32.mrf.mxu0  ;;  %v1712_v35 = vpop.f32.mrf.mxu1  ;;  %v3374_v27 = vld [vmem:[%s3572_s26 + $0x160] sm:$0xff] }
  0xb7   : > { %v1553_v41 = vadd.f32 %v3643_v42, %v1552_v34  ;;  %v1713_v43 = vadd.f32 %v3643_v42, %v1712_v35  ;;  %v3438_v34 = vld [vmem:[%s3572_s26 + $0x360] sm:$0xff] }
  0xb8   : > { %2505 = vst.msk [vmem:[%s3661_s6 + $0x8] sm:$0xf] %vm2502_vm3, %v2440_v31  ;;  %v2249_v39 = vmax.f32 %v1870_v32, %v2030_v33  ;;  %v3406_v33 = vld [vmem:[%s3572_s26 + $0x260] sm:$0xff] }
  0xb9   : > { %3210 = vmatmul.msk.bf16.gmra.mxu0 %vm1141_vm2, %v3340_v29  ;;  %3242 = vmatmul.msk.bf16.gmra.mxu1 %vm1141_vm2, %v3372_v30  ;;  %v2186_v48 = vmax.f32 %v1553_v41, %v1713_v43 }
  0xba   : > { %v2313_v40 = vmax.f32 %v2185_v38, %v2249_v39  ;;  %3274 = vmatmul.msk.bf16.gmra.mxu2 %vm1141_vm2, %v3404_v36  ;;  %3306 = vmatmul.msk.bf16.gmra.mxu3 %vm1141_vm2, %v3436_v37 }
  0xbc   : > { %v2377_v44 = vmax.f32 %v2313_v40, 0.0 }
  0xbd   : > { %v1872_v45 = vpop.f32.mrf.mxu2  ;;  %v2032_v46 = vpop.f32.mrf.mxu3 }
  0xbe   : > { %v2441_v47 = vpack.c.bf16 %v2377_v44, %v2377_v44  ;;  %v1873_v49 = vadd.f32 %v3643_v42, %v1872_v45  ;;  %v2033_v50 = vadd.f32 %v3643_v42, %v2032_v46  ;;  %v1554_v51 = vpop.f32.mrf.mxu0  ;;  %v1714_v52 = vpop.f32.mrf.mxu1 }
  0xbf   : > { %v1555_v56 = vadd.f32 %v3643_v42, %v1554_v51  ;;  %v1715_v57 = vadd.f32 %v3643_v42, %v1714_v52 }
  0xc0   : > { %2506 = vst.msk [vmem:[%s3661_s6 + $0xc] sm:$0xf] %vm2502_vm3, %v2441_v47  ;;  %v2250_v53 = vmax.f32 %v1873_v49, %v2033_v50 }
  0xc1   : > { %v2187_v5 = vmax.f32 %v1555_v56, %v1715_v57  ;;  %v3343_v57 = vld [vmem:[%s3572_s26 + $0x68] sm:$0xff] }
  0xc2   : > { %v2314_v54 = vmax.f32 %v2186_v48, %v2250_v53 }
  0xc4   : > { %v2378_v55 = vmax.f32 %v2314_v54, 0.0 }
  0xc5   : > { %v1874_v58 = vpop.f32.mrf.mxu2  ;;  %v2034_v59 = vpop.f32.mrf.mxu3 }
  0xc6   : > { %v2442_v62 = vpack.c.bf16 %v2378_v55, %v2378_v55  ;;  %v1875_v63 = vadd.f32 %v3643_v42, %v1874_v58  ;;  %v2035_v0 = vadd.f32 %v3643_v42, %v2034_v59  ;;  %v1557_v1 = vpop.f32.mrf.mxu0  ;;  %v1717_v2 = vpop.f32.mrf.mxu1  ;;  %v3375_v58 = vld [vmem:[%s3572_s26 + $0x168] sm:$0xff] }
  0xc7   : > { %v1558_v8 = vadd.f32 %v3643_v42, %v1557_v1  ;;  %v1718_v9 = vadd.f32 %v3643_v42, %v1717_v2  ;;  %v3439_v1 = vld [vmem:[%s3572_s26 + $0x368] sm:$0xff] }
  0xc8   : > { %2507 = vst.msk [vmem:[%s3661_s6 + $0x10] sm:$0xf] %vm2502_vm3, %v2442_v62  ;;  %v2251_v6 = vmax.f32 %v1875_v63, %v2035_v0  ;;  %v3407_v0 = vld [vmem:[%s3572_s26 + $0x268] sm:$0xff] }
  0xc9   : > { %3211 = vmatmul.msk.bf16.gmra.mxu0 %vm1141_vm2, %v3341_v60  ;;  %3243 = vmatmul.msk.bf16.gmra.mxu1 %vm1141_vm2, %v3373_v61  ;;  %v2188_v14 = vmax.f32 %v1558_v8, %v1718_v9 }
  0xca   : > { %v2315_v7 = vmax.f32 %v2187_v5, %v2251_v6  ;;  %3275 = vmatmul.msk.bf16.gmra.mxu2 %vm1141_vm2, %v3405_v3  ;;  %3307 = vmatmul.msk.bf16.gmra.mxu3 %vm1141_vm2, %v3437_v4 }
  0xcc   : > { %v2379_v10 = vmax.f32 %v2315_v7, 0.0 }
  0xcd   : > { %v1877_v11 = vpop.f32.mrf.mxu2  ;;  %v2037_v12 = vpop.f32.mrf.mxu3 }
  0xce   : > { %v2443_v13 = vpack.c.bf16 %v2379_v10, %v2379_v10  ;;  %v1878_v15 = vadd.f32 %v3643_v42, %v1877_v11  ;;  %v2038_v16 = vadd.f32 %v3643_v42, %v2037_v12  ;;  %v1559_v17 = vpop.f32.mrf.mxu0  ;;  %v1719_v18 = vpop.f32.mrf.mxu1 }
  0xcf   : > { %v1560_v22 = vadd.f32 %v3643_v42, %v1559_v17  ;;  %v1720_v23 = vadd.f32 %v3643_v42, %v1719_v18 }
  0xd0   : > { %2508 = vst.msk [vmem:[%s3661_s6 + $0x14] sm:$0xf] %vm2502_vm3, %v2443_v13  ;;  %v2252_v19 = vmax.f32 %v1878_v15, %v2038_v16 }
  0xd1   : > { %v2189_v35 = vmax.f32 %v1560_v22, %v1720_v23  ;;  %v3344_v23 = vld [vmem:[%s3572_s26 + $0x70] sm:$0xff] }
  0xd2   : > { %v2316_v20 = vmax.f32 %v2188_v14, %v2252_v19 }
  0xd4   : > { %v2380_v21 = vmax.f32 %v2316_v20, 0.0 }
  0xd5   : > { %v1879_v24 = vpop.f32.mrf.mxu2  ;;  %v2039_v25 = vpop.f32.mrf.mxu3 }
  0xd6   : > { %v2444_v28 = vpack.c.bf16 %v2380_v21, %v2380_v21  ;;  %v1880_v29 = vadd.f32 %v3643_v42, %v1879_v24  ;;  %v2040_v30 = vadd.f32 %v3643_v42, %v2039_v25  ;;  %v1562_v31 = vpop.f32.mrf.mxu0  ;;  %v1722_v32 = vpop.f32.mrf.mxu1  ;;  %v3376_v24 = vld [vmem:[%s3572_s26 + $0x170] sm:$0xff] }
  0xd7   : > { %v1563_v38 = vadd.f32 %v3643_v42, %v1562_v31  ;;  %v1723_v39 = vadd.f32 %v3643_v42, %v1722_v32  ;;  %v3440_v31 = vld [vmem:[%s3572_s26 + $0x370] sm:$0xff] }
  0xd8   : > { %2509 = vst.msk [vmem:[%s3661_s6 + $0x18] sm:$0xf] %vm2502_vm3, %v2444_v28  ;;  %v2253_v36 = vmax.f32 %v1880_v29, %v2040_v30  ;;  %v3408_v30 = vld [vmem:[%s3572_s26 + $0x270] sm:$0xff] }
  0xd9   : > { %3212 = vmatmul.msk.bf16.gmra.mxu0 %vm1141_vm2, %v3342_v26  ;;  %3244 = vmatmul.msk.bf16.gmra.mxu1 %vm1141_vm2, %v3374_v27  ;;  %v2190_v45 = vmax.f32 %v1563_v38, %v1723_v39 }
  0xda   : > { %v2317_v37 = vmax.f32 %v2189_v35, %v2253_v36  ;;  %3276 = vmatmul.msk.bf16.gmra.mxu2 %vm1141_vm2, %v3406_v33  ;;  %3308 = vmatmul.msk.bf16.gmra.mxu3 %vm1141_vm2, %v3438_v34 }
  0xdc   : > { %v2381_v40 = vmax.f32 %v2317_v37, 0.0 }
  0xdd   : > { %v1882_v41 = vpop.f32.mrf.mxu2  ;;  %v2042_v43 = vpop.f32.mrf.mxu3 }
  0xde   : > { %v2445_v44 = vpack.c.bf16 %v2381_v40, %v2381_v40  ;;  %v1883_v46 = vadd.f32 %v3643_v42, %v1882_v41  ;;  %v2043_v47 = vadd.f32 %v3643_v42, %v2042_v43  ;;  %v1564_v48 = vpop.f32.mrf.mxu0  ;;  %v1724_v49 = vpop.f32.mrf.mxu1 }
  0xdf   : > { %v1565_v53 = vadd.f32 %v3643_v42, %v1564_v48  ;;  %v1725_v54 = vadd.f32 %v3643_v42, %v1724_v49 }
  0xe0   : > { %2510 = vst.msk [vmem:[%s3661_s6 + $0x1c] sm:$0xf] %vm2502_vm3, %v2445_v44  ;;  %v2254_v50 = vmax.f32 %v1883_v46, %v2043_v47 }
  0xe1   : > { %v2191_v2 = vmax.f32 %v1565_v53, %v1725_v54  ;;  %v3345_v54 = vld [vmem:[%s3572_s26 + $0x78] sm:$0xff] }
  0xe2   : > { %v2318_v51 = vmax.f32 %v2190_v45, %v2254_v50 }
  0xe4   : > { %v2382_v52 = vmax.f32 %v2318_v51, 0.0 }
  0xe5   : > { %v1884_v55 = vpop.f32.mrf.mxu2  ;;  %v2044_v56 = vpop.f32.mrf.mxu3 }
  0xe6   : > { %v2446_v59 = vpack.c.bf16 %v2382_v52, %v2382_v52  ;;  %v1885_v60 = vadd.f32 %v3643_v42, %v1884_v55  ;;  %v2045_v61 = vadd.f32 %v3643_v42, %v2044_v56  ;;  %v1567_v62 = vpop.f32.mrf.mxu0  ;;  %v1727_v63 = vpop.f32.mrf.mxu1  ;;  %v3377_v55 = vld [vmem:[%s3572_s26 + $0x178] sm:$0xff] }
  0xe7   : > { %v1568_v5 = vadd.f32 %v3643_v42, %v1567_v62  ;;  %v1728_v6 = vadd.f32 %v3643_v42, %v1727_v63  ;;  %v3441_v62 = vld [vmem:[%s3572_s26 + $0x378] sm:$0xff] }
  0xe8   : > { %2511 = vst.msk [vmem:[%s3661_s6 + $0x20] sm:$0xf] %vm2502_vm3, %v2446_v59  ;;  %v2255_v3 = vmax.f32 %v1885_v60, %v2045_v61  ;;  %v3409_v61 = vld [vmem:[%s3572_s26 + $0x278] sm:$0xff] }
  0xe9   : > { %3213 = vmatmul.msk.bf16.gmra.mxu0 %vm1141_vm2, %v3343_v57  ;;  %3245 = vmatmul.msk.bf16.gmra.mxu1 %vm1141_vm2, %v3375_v58  ;;  %v2192_v11 = vmax.f32 %v1568_v5, %v1728_v6 }
  0xea   : > { %v2319_v4 = vmax.f32 %v2191_v2, %v2255_v3  ;;  %3277 = vmatmul.msk.bf16.gmra.mxu2 %vm1141_vm2, %v3407_v0  ;;  %3309 = vmatmul.msk.bf16.gmra.mxu3 %vm1141_vm2, %v3439_v1 }
  0xec   : > { %v2383_v7 = vmax.f32 %v2319_v4, 0.0 }
  0xed   : > { %v1887_v8 = vpop.f32.mrf.mxu2  ;;  %v2047_v9 = vpop.f32.mrf.mxu3 }
  0xee   : > { %v2447_v10 = vpack.c.bf16 %v2383_v7, %v2383_v7  ;;  %v1888_v12 = vadd.f32 %v3643_v42, %v1887_v8  ;;  %v2048_v13 = vadd.f32 %v3643_v42, %v2047_v9  ;;  %v1569_v14 = vpop.f32.mrf.mxu0  ;;  %v1729_v15 = vpop.f32.mrf.mxu1 }
  0xef   : > { %v1570_v19 = vadd.f32 %v3643_v42, %v1569_v14  ;;  %v1730_v20 = vadd.f32 %v3643_v42, %v1729_v15 }
  0xf0   : > { %2512 = vst.msk [vmem:[%s3661_s6 + $0x24] sm:$0xf] %vm2502_vm3, %v2447_v10  ;;  %v2256_v16 = vmax.f32 %v1888_v12, %v2048_v13 }
  0xf1   : > { %v2193_v32 = vmax.f32 %v1570_v19, %v1730_v20  ;;  %v3346_v20 = vld [vmem:[%s3572_s26 + $0x80] sm:$0xff] }
  0xf2   : > { %v2320_v17 = vmax.f32 %v2192_v11, %v2256_v16 }
  0xf4   : > { %v2384_v18 = vmax.f32 %v2320_v17, 0.0 }
  0xf5   : > { %v1889_v21 = vpop.f32.mrf.mxu2  ;;  %v2049_v22 = vpop.f32.mrf.mxu3 }
  0xf6   : > { %v2448_v25 = vpack.c.bf16 %v2384_v18, %v2384_v18  ;;  %v1890_v26 = vadd.f32 %v3643_v42, %v1889_v21  ;;  %v2050_v27 = vadd.f32 %v3643_v42, %v2049_v22  ;;  %v1572_v28 = vpop.f32.mrf.mxu0  ;;  %v1732_v29 = vpop.f32.mrf.mxu1  ;;  %v3378_v21 = vld [vmem:[%s3572_s26 + $0x180] sm:$0xff] }
  0xf7   : > { %v1573_v35 = vadd.f32 %v3643_v42, %v1572_v28  ;;  %v1733_v36 = vadd.f32 %v3643_v42, %v1732_v29  ;;  %v3442_v28 = vld [vmem:[%s3572_s26 + $0x380] sm:$0xff] }
  0xf8   : > { %2513 = vst.msk [vmem:[%s3661_s6 + $0x28] sm:$0xf] %vm2502_vm3, %v2448_v25  ;;  %v2257_v33 = vmax.f32 %v1890_v26, %v2050_v27  ;;  %v3410_v27 = vld [vmem:[%s3572_s26 + $0x280] sm:$0xff] }
  0xf9   : > { %3214 = vmatmul.msk.bf16.gmra.mxu0 %vm1141_vm2, %v3344_v23  ;;  %3246 = vmatmul.msk.bf16.gmra.mxu1 %vm1141_vm2, %v3376_v24  ;;  %v2194_v41 = vmax.f32 %v1573_v35, %v1733_v36 }
  0xfa   : > { %v2321_v34 = vmax.f32 %v2193_v32, %v2257_v33  ;;  %3278 = vmatmul.msk.bf16.gmra.mxu2 %vm1141_vm2, %v3408_v30  ;;  %3310 = vmatmul.msk.bf16.gmra.mxu3 %vm1141_vm2, %v3440_v31 }
  0xfc   : > { %v2385_v37 = vmax.f32 %v2321_v34, 0.0 }
  0xfd   : > { %v1892_v38 = vpop.f32.mrf.mxu2  ;;  %v2052_v39 = vpop.f32.mrf.mxu3 }
  0xfe   : > { %v2449_v40 = vpack.c.bf16 %v2385_v37, %v2385_v37  ;;  %v1893_v43 = vadd.f32 %v3643_v42, %v1892_v38  ;;  %v2053_v44 = vadd.f32 %v3643_v42, %v2052_v39  ;;  %v1574_v45 = vpop.f32.mrf.mxu0  ;;  %v1734_v46 = vpop.f32.mrf.mxu1 }
  0xff   : > { %v1575_v50 = vadd.f32 %v3643_v42, %v1574_v45  ;;  %v1735_v51 = vadd.f32 %v3643_v42, %v1734_v46 }
 0x100   : > { %2514 = vst.msk [vmem:[%s3661_s6 + $0x2c] sm:$0xf] %vm2502_vm3, %v2449_v40  ;;  %v2258_v47 = vmax.f32 %v1893_v43, %v2053_v44 }
 0x101   : > { %v2195_v63 = vmax.f32 %v1575_v50, %v1735_v51  ;;  %v3347_v51 = vld [vmem:[%s3572_s26 + $0x88] sm:$0xff] }
 0x102   : > { %v2322_v48 = vmax.f32 %v2194_v41, %v2258_v47 }
 0x104   : > { %v2386_v49 = vmax.f32 %v2322_v48, 0.0 }
 0x105   : > { %v1894_v52 = vpop.f32.mrf.mxu2  ;;  %v2054_v53 = vpop.f32.mrf.mxu3 }
 0x106   : > { %v2450_v56 = vpack.c.bf16 %v2386_v49, %v2386_v49  ;;  %v1895_v57 = vadd.f32 %v3643_v42, %v1894_v52  ;;  %v2055_v58 = vadd.f32 %v3643_v42, %v2054_v53  ;;  %v1577_v59 = vpop.f32.mrf.mxu0  ;;  %v1737_v60 = vpop.f32.mrf.mxu1  ;;  %v3379_v52 = vld [vmem:[%s3572_s26 + $0x188] sm:$0xff] }
 0x107   : > { %v1578_v2 = vadd.f32 %v3643_v42, %v1577_v59  ;;  %v1738_v3 = vadd.f32 %v3643_v42, %v1737_v60  ;;  %v3443_v59 = vld [vmem:[%s3572_s26 + $0x388] sm:$0xff] }
 0x108   : > { %2515 = vst.msk [vmem:[%s3661_s6 + $0x30] sm:$0xf] %vm2502_vm3, %v2450_v56  ;;  %v2259_v0 = vmax.f32 %v1895_v57, %v2055_v58  ;;  %v3411_v58 = vld [vmem:[%s3572_s26 + $0x288] sm:$0xff] }
 0x109   : > { %3215 = vmatmul.msk.bf16.gmra.mxu0 %vm1141_vm2, %v3345_v54  ;;  %3247 = vmatmul.msk.bf16.gmra.mxu1 %vm1141_vm2, %v3377_v55  ;;  %v2196_v8 = vmax.f32 %v1578_v2, %v1738_v3 }
 0x10a   : > { %v2323_v1 = vmax.f32 %v2195_v63, %v2259_v0  ;;  %3279 = vmatmul.msk.bf16.gmra.mxu2 %vm1141_vm2, %v3409_v61  ;;  %3311 = vmatmul.msk.bf16.gmra.mxu3 %vm1141_vm2, %v3441_v62 }
 0x10c   : > { %v2387_v4 = vmax.f32 %v2323_v1, 0.0 }
 0x10d   : > { %v1897_v5 = vpop.f32.mrf.mxu2  ;;  %v2057_v6 = vpop.f32.mrf.mxu3 }
 0x10e   : > { %v2451_v7 = vpack.c.bf16 %v2387_v4, %v2387_v4  ;;  %v1898_v9 = vadd.f32 %v3643_v42, %v1897_v5  ;;  %v2058_v10 = vadd.f32 %v3643_v42, %v2057_v6  ;;  %v1579_v11 = vpop.f32.mrf.mxu0  ;;  %v1739_v12 = vpop.f32.mrf.mxu1 }
 0x10f   : > { %v1580_v16 = vadd.f32 %v3643_v42, %v1579_v11  ;;  %v1740_v17 = vadd.f32 %v3643_v42, %v1739_v12 }
 0x110   : > { %2516 = vst.msk [vmem:[%s3661_s6 + $0x34] sm:$0xf] %vm2502_vm3, %v2451_v7  ;;  %v2260_v13 = vmax.f32 %v1898_v9, %v2058_v10 }
 0x111   : > { %v2197_v29 = vmax.f32 %v1580_v16, %v1740_v17  ;;  %v3348_v17 = vld [vmem:[%s3572_s26 + $0x90] sm:$0xff] }
 0x112   : > { %v2324_v14 = vmax.f32 %v2196_v8, %v2260_v13 }
 0x114   : > { %v2388_v15 = vmax.f32 %v2324_v14, 0.0 }
 0x115   : > { %v1899_v18 = vpop.f32.mrf.mxu2  ;;  %v2059_v19 = vpop.f32.mrf.mxu3 }
 0x116   : > { %v2452_v22 = vpack.c.bf16 %v2388_v15, %v2388_v15  ;;  %v1900_v23 = vadd.f32 %v3643_v42, %v1899_v18  ;;  %v2060_v24 = vadd.f32 %v3643_v42, %v2059_v19  ;;  %v1582_v25 = vpop.f32.mrf.mxu0  ;;  %v1742_v26 = vpop.f32.mrf.mxu1  ;;  %v3380_v18 = vld [vmem:[%s3572_s26 + $0x190] sm:$0xff] }
 0x117   : > { %v1583_v32 = vadd.f32 %v3643_v42, %v1582_v25  ;;  %v1743_v33 = vadd.f32 %v3643_v42, %v1742_v26  ;;  %v3444_v25 = vld [vmem:[%s3572_s26 + $0x390] sm:$0xff] }
 0x118   : > { %2517 = vst.msk [vmem:[%s3661_s6 + $0x38] sm:$0xf] %vm2502_vm3, %v2452_v22  ;;  %v2261_v30 = vmax.f32 %v1900_v23, %v2060_v24  ;;  %v3412_v24 = vld [vmem:[%s3572_s26 + $0x290] sm:$0xff] }
 0x119   : > { %3216 = vmatmul.msk.bf16.gmra.mxu0 %vm1141_vm2, %v3346_v20  ;;  %3248 = vmatmul.msk.bf16.gmra.mxu1 %vm1141_vm2, %v3378_v21  ;;  %v2198_v38 = vmax.f32 %v1583_v32, %v1743_v33 }
 0x11a   : > { %v2325_v31 = vmax.f32 %v2197_v29, %v2261_v30  ;;  %3280 = vmatmul.msk.bf16.gmra.mxu2 %vm1141_vm2, %v3410_v27  ;;  %3312 = vmatmul.msk.bf16.gmra.mxu3 %vm1141_vm2, %v3442_v28 }
 0x11c   : > { %v2389_v34 = vmax.f32 %v2325_v31, 0.0 }
 0x11d   : > { %v1902_v35 = vpop.f32.mrf.mxu2  ;;  %v2062_v36 = vpop.f32.mrf.mxu3 }
 0x11e   : > { %v2453_v37 = vpack.c.bf16 %v2389_v34, %v2389_v34  ;;  %v1903_v39 = vadd.f32 %v3643_v42, %v1902_v35  ;;  %v2063_v40 = vadd.f32 %v3643_v42, %v2062_v36  ;;  %v1584_v41 = vpop.f32.mrf.mxu0  ;;  %v1744_v43 = vpop.f32.mrf.mxu1 }
 0x11f   : > { %v1585_v47 = vadd.f32 %v3643_v42, %v1584_v41  ;;  %v1745_v48 = vadd.f32 %v3643_v42, %v1744_v43 }
 0x120   : > { %2518 = vst.msk [vmem:[%s3661_s6 + $0x3c] sm:$0xf] %vm2502_vm3, %v2453_v37  ;;  %v2262_v44 = vmax.f32 %v1903_v39, %v2063_v40 }
 0x121   : > { %v2199_v60 = vmax.f32 %v1585_v47, %v1745_v48  ;;  %v3349_v48 = vld [vmem:[%s3572_s26 + $0x98] sm:$0xff] }
 0x122   : > { %v2326_v45 = vmax.f32 %v2198_v38, %v2262_v44 }
 0x124   : > { %v2390_v46 = vmax.f32 %v2326_v45, 0.0 }
 0x125   : > { %v1904_v49 = vpop.f32.mrf.mxu2  ;;  %v2064_v50 = vpop.f32.mrf.mxu3 }
 0x126   : > { %v2454_v53 = vpack.c.bf16 %v2390_v46, %v2390_v46  ;;  %v1905_v54 = vadd.f32 %v3643_v42, %v1904_v49  ;;  %v2065_v55 = vadd.f32 %v3643_v42, %v2064_v50  ;;  %v1587_v56 = vpop.f32.mrf.mxu0  ;;  %v1747_v57 = vpop.f32.mrf.mxu1  ;;  %v3381_v49 = vld [vmem:[%s3572_s26 + $0x198] sm:$0xff] }
 0x127   : > { %v1588_v63 = vadd.f32 %v3643_v42, %v1587_v56  ;;  %v1748_v0 = vadd.f32 %v3643_v42, %v1747_v57  ;;  %v3445_v56 = vld [vmem:[%s3572_s26 + $0x398] sm:$0xff] }
 0x128   : > { %2519 = vst.msk [vmem:[%s3661_s6 + $0x40] sm:$0xf] %vm2502_vm3, %v2454_v53  ;;  %v2263_v61 = vmax.f32 %v1905_v54, %v2065_v55  ;;  %v3413_v55 = vld [vmem:[%s3572_s26 + $0x298] sm:$0xff] }
 0x129   : > { %3217 = vmatmul.msk.bf16.gmra.mxu0 %vm1141_vm2, %v3347_v51  ;;  %3249 = vmatmul.msk.bf16.gmra.mxu1 %vm1141_vm2, %v3379_v52  ;;  %v2200_v5 = vmax.f32 %v1588_v63, %v1748_v0 }
 0x12a   : > { %v2327_v62 = vmax.f32 %v2199_v60, %v2263_v61  ;;  %3281 = vmatmul.msk.bf16.gmra.mxu2 %vm1141_vm2, %v3411_v58  ;;  %3313 = vmatmul.msk.bf16.gmra.mxu3 %vm1141_vm2, %v3443_v59 }
 0x12c   : > { %v2391_v1 = vmax.f32 %v2327_v62, 0.0 }
 0x12d   : > { %v1907_v2 = vpop.f32.mrf.mxu2  ;;  %v2067_v3 = vpop.f32.mrf.mxu3 }
 0x12e   : > { %v2455_v4 = vpack.c.bf16 %v2391_v1, %v2391_v1  ;;  %v1908_v6 = vadd.f32 %v3643_v42, %v1907_v2  ;;  %v2068_v7 = vadd.f32 %v3643_v42, %v2067_v3  ;;  %v1589_v8 = vpop.f32.mrf.mxu0  ;;  %v1749_v9 = vpop.f32.mrf.mxu1 }
 0x12f   : > { %v1590_v13 = vadd.f32 %v3643_v42, %v1589_v8  ;;  %v1750_v14 = vadd.f32 %v3643_v42, %v1749_v9 }
 0x130   : > { %2520 = vst.msk [vmem:[%s3661_s6 + $0x44] sm:$0xf] %vm2502_vm3, %v2455_v4  ;;  %v2264_v10 = vmax.f32 %v1908_v6, %v2068_v7 }
 0x131   : > { %v2201_v26 = vmax.f32 %v1590_v13, %v1750_v14  ;;  %v3350_v14 = vld [vmem:[%s3572_s26 + $0xa0] sm:$0xff] }
 0x132   : > { %v2328_v11 = vmax.f32 %v2200_v5, %v2264_v10 }
 0x134   : > { %v2392_v12 = vmax.f32 %v2328_v11, 0.0 }
 0x135   : > { %v1909_v15 = vpop.f32.mrf.mxu2  ;;  %v2069_v16 = vpop.f32.mrf.mxu3 }
 0x136   : > { %v2456_v19 = vpack.c.bf16 %v2392_v12, %v2392_v12  ;;  %v1910_v20 = vadd.f32 %v3643_v42, %v1909_v15  ;;  %v2070_v21 = vadd.f32 %v3643_v42, %v2069_v16  ;;  %v1592_v22 = vpop.f32.mrf.mxu0  ;;  %v1752_v23 = vpop.f32.mrf.mxu1  ;;  %v3382_v15 = vld [vmem:[%s3572_s26 + $0x1a0] sm:$0xff] }
 0x137   : > { %v1593_v29 = vadd.f32 %v3643_v42, %v1592_v22  ;;  %v1753_v30 = vadd.f32 %v3643_v42, %v1752_v23  ;;  %v3446_v22 = vld [vmem:[%s3572_s26 + $0x3a0] sm:$0xff] }
 0x138   : > { %2521 = vst.msk [vmem:[%s3661_s6 + $0x48] sm:$0xf] %vm2502_vm3, %v2456_v19  ;;  %v2265_v27 = vmax.f32 %v1910_v20, %v2070_v21  ;;  %v3414_v21 = vld [vmem:[%s3572_s26 + $0x2a0] sm:$0xff] }
 0x139   : > { %3218 = vmatmul.msk.bf16.gmra.mxu0 %vm1141_vm2, %v3348_v17  ;;  %3250 = vmatmul.msk.bf16.gmra.mxu1 %vm1141_vm2, %v3380_v18  ;;  %v2202_v35 = vmax.f32 %v1593_v29, %v1753_v30 }
 0x13a   : > { %v2329_v28 = vmax.f32 %v2201_v26, %v2265_v27  ;;  %3282 = vmatmul.msk.bf16.gmra.mxu2 %vm1141_vm2, %v3412_v24  ;;  %3314 = vmatmul.msk.bf16.gmra.mxu3 %vm1141_vm2, %v3444_v25 }
 0x13c   : > { %v2393_v31 = vmax.f32 %v2329_v28, 0.0 }
 0x13d   : > { %v1912_v32 = vpop.f32.mrf.mxu2  ;;  %v2072_v33 = vpop.f32.mrf.mxu3 }
 0x13e   : > { %v2457_v34 = vpack.c.bf16 %v2393_v31, %v2393_v31  ;;  %v1913_v36 = vadd.f32 %v3643_v42, %v1912_v32  ;;  %v2073_v37 = vadd.f32 %v3643_v42, %v2072_v33  ;;  %v1594_v38 = vpop.f32.mrf.mxu0  ;;  %v1754_v39 = vpop.f32.mrf.mxu1 }
 0x13f   : > { %v1595_v44 = vadd.f32 %v3643_v42, %v1594_v38  ;;  %v1755_v45 = vadd.f32 %v3643_v42, %v1754_v39 }
 0x140   : > { %2522 = vst.msk [vmem:[%s3661_s6 + $0x4c] sm:$0xf] %vm2502_vm3, %v2457_v34  ;;  %v2266_v40 = vmax.f32 %v1913_v36, %v2073_v37 }
 0x141   : > { %v2203_v57 = vmax.f32 %v1595_v44, %v1755_v45  ;;  %v3351_v45 = vld [vmem:[%s3572_s26 + $0xa8] sm:$0xff] }
 0x142   : > { %v2330_v41 = vmax.f32 %v2202_v35, %v2266_v40 }
 0x144   : > { %v2394_v43 = vmax.f32 %v2330_v41, 0.0 }
 0x145   : > { %v1914_v46 = vpop.f32.mrf.mxu2  ;;  %v2074_v47 = vpop.f32.mrf.mxu3 }
 0x146   : > { %v2458_v50 = vpack.c.bf16 %v2394_v43, %v2394_v43  ;;  %v1915_v51 = vadd.f32 %v3643_v42, %v1914_v46  ;;  %v2075_v52 = vadd.f32 %v3643_v42, %v2074_v47  ;;  %v1597_v53 = vpop.f32.mrf.mxu0  ;;  %v1757_v54 = vpop.f32.mrf.mxu1  ;;  %v3383_v46 = vld [vmem:[%s3572_s26 + $0x1a8] sm:$0xff] }
 0x147   : > { %v1598_v60 = vadd.f32 %v3643_v42, %v1597_v53  ;;  %v1758_v61 = vadd.f32 %v3643_v42, %v1757_v54  ;;  %v3447_v53 = vld [vmem:[%s3572_s26 + $0x3a8] sm:$0xff] }
 0x148   : > { %2523 = vst.msk [vmem:[%s3661_s6 + $0x50] sm:$0xf] %vm2502_vm3, %v2458_v50  ;;  %v2267_v58 = vmax.f32 %v1915_v51, %v2075_v52  ;;  %v3415_v52 = vld [vmem:[%s3572_s26 + $0x2a8] sm:$0xff] }
 0x149   : > { %3219 = vmatmul.msk.bf16.gmra.mxu0 %vm1141_vm2, %v3349_v48  ;;  %3251 = vmatmul.msk.bf16.gmra.mxu1 %vm1141_vm2, %v3381_v49  ;;  %v2204_v2 = vmax.f32 %v1598_v60, %v1758_v61 }
 0x14a   : > { %v2331_v59 = vmax.f32 %v2203_v57, %v2267_v58  ;;  %3283 = vmatmul.msk.bf16.gmra.mxu2 %vm1141_vm2, %v3413_v55  ;;  %3315 = vmatmul.msk.bf16.gmra.mxu3 %vm1141_vm2, %v3445_v56 }
 0x14c   : > { %v2395_v62 = vmax.f32 %v2331_v59, 0.0 }
 0x14d   : > { %v1917_v63 = vpop.f32.mrf.mxu2  ;;  %v2077_v0 = vpop.f32.mrf.mxu3 }
 0x14e   : > { %v2459_v1 = vpack.c.bf16 %v2395_v62, %v2395_v62  ;;  %v1918_v3 = vadd.f32 %v3643_v42, %v1917_v63  ;;  %v2078_v4 = vadd.f32 %v3643_v42, %v2077_v0  ;;  %v1599_v5 = vpop.f32.mrf.mxu0  ;;  %v1759_v6 = vpop.f32.mrf.mxu1 }
 0x14f   : > { %v1600_v10 = vadd.f32 %v3643_v42, %v1599_v5  ;;  %v1760_v11 = vadd.f32 %v3643_v42, %v1759_v6 }
 0x150   : > { %2524 = vst.msk [vmem:[%s3661_s6 + $0x54] sm:$0xf] %vm2502_vm3, %v2459_v1  ;;  %v2268_v7 = vmax.f32 %v1918_v3, %v2078_v4 }
 0x151   : > { %v2205_v23 = vmax.f32 %v1600_v10, %v1760_v11  ;;  %v3352_v11 = vld [vmem:[%s3572_s26 + $0xb0] sm:$0xff] }
 0x152   : > { %v2332_v8 = vmax.f32 %v2204_v2, %v2268_v7 }
 0x154   : > { %v2396_v9 = vmax.f32 %v2332_v8, 0.0 }
 0x155   : > { %v1919_v12 = vpop.f32.mrf.mxu2  ;;  %v2079_v13 = vpop.f32.mrf.mxu3 }
 0x156   : > { %v2460_v16 = vpack.c.bf16 %v2396_v9, %v2396_v9  ;;  %v1920_v17 = vadd.f32 %v3643_v42, %v1919_v12  ;;  %v2080_v18 = vadd.f32 %v3643_v42, %v2079_v13  ;;  %v1602_v19 = vpop.f32.mrf.mxu0  ;;  %v1762_v20 = vpop.f32.mrf.mxu1  ;;  %v3384_v12 = vld [vmem:[%s3572_s26 + $0x1b0] sm:$0xff] }
 0x157   : > { %v1603_v26 = vadd.f32 %v3643_v42, %v1602_v19  ;;  %v1763_v27 = vadd.f32 %v3643_v42, %v1762_v20  ;;  %v3448_v19 = vld [vmem:[%s3572_s26 + $0x3b0] sm:$0xff] }
 0x158   : > { %2525 = vst.msk [vmem:[%s3661_s6 + $0x58] sm:$0xf] %vm2502_vm3, %v2460_v16  ;;  %v2269_v24 = vmax.f32 %v1920_v17, %v2080_v18  ;;  %v3416_v18 = vld [vmem:[%s3572_s26 + $0x2b0] sm:$0xff] }
 0x159   : > { %3220 = vmatmul.msk.bf16.gmra.mxu0 %vm1141_vm2, %v3350_v14  ;;  %3252 = vmatmul.msk.bf16.gmra.mxu1 %vm1141_vm2, %v3382_v15  ;;  %v2206_v32 = vmax.f32 %v1603_v26, %v1763_v27 }
 0x15a   : > { %v2333_v25 = vmax.f32 %v2205_v23, %v2269_v24  ;;  %3284 = vmatmul.msk.bf16.gmra.mxu2 %vm1141_vm2, %v3414_v21  ;;  %3316 = vmatmul.msk.bf16.gmra.mxu3 %vm1141_vm2, %v3446_v22  ;;  %v3936_v23 = vld [vmem:[%s4226_s2] ss:$0 sm:$0xff] }
 0x15c   : > { %v2397_v28 = vmax.f32 %v2333_v25, 0.0 }
 0x15d   : > { %v1922_v29 = vpop.f32.mrf.mxu2  ;;  %v2082_v30 = vpop.f32.mrf.mxu3 }
 0x15e   : > { %v2461_v31 = vpack.c.bf16 %v2397_v28, %v2397_v28  ;;  %v1923_v33 = vadd.f32 %v3643_v42, %v1922_v29  ;;  %v2083_v34 = vadd.f32 %v3643_v42, %v2082_v30  ;;  %v1604_v35 = vpop.f32.mrf.mxu0  ;;  %v1764_v36 = vpop.f32.mrf.mxu1 }
 0x15f   : > { %v1605_v40 = vadd.f32 %v3643_v42, %v1604_v35  ;;  %v1765_v41 = vadd.f32 %v3643_v42, %v1764_v36 }
 0x160   : > { %2526 = vst.msk [vmem:[%s3661_s6 + $0x5c] sm:$0xf] %vm2502_vm3, %v2461_v31  ;;  %v2270_v37 = vmax.f32 %v1923_v33, %v2083_v34 }
 0x161   : > { %v2207_v54 = vmax.f32 %v1605_v40, %v1765_v41  ;;  %v3353_v41 = vld [vmem:[%s3572_s26 + $0xb8] sm:$0xff] }
 0x162   : > { %v2334_v38 = vmax.f32 %v2206_v32, %v2270_v37 }
 0x164   : > { %v2398_v39 = vmax.f32 %v2334_v38, 0.0 }
 0x165   : > { %v1924_v43 = vpop.f32.mrf.mxu2  ;;  %v2084_v44 = vpop.f32.mrf.mxu3 }
 0x166   : > { %v2462_v47 = vpack.c.bf16 %v2398_v39, %v2398_v39  ;;  %v1925_v48 = vadd.f32 %v3643_v42, %v1924_v43  ;;  %v2085_v49 = vadd.f32 %v3643_v42, %v2084_v44  ;;  %v1607_v50 = vpop.f32.mrf.mxu0  ;;  %v1767_v51 = vpop.f32.mrf.mxu1  ;;  %v3385_v43 = vld [vmem:[%s3572_s26 + $0x1b8] sm:$0xff] }
 0x167   : > { %v1608_v57 = vadd.f32 %v3643_v42, %v1607_v50  ;;  %v1768_v58 = vadd.f32 %v3643_v42, %v1767_v51  ;;  %v3449_v50 = vld [vmem:[%s3572_s26 + $0x3b8] sm:$0xff] }
 0x168   : > { %2527 = vst.msk [vmem:[%s3661_s6 + $0x60] sm:$0xf] %vm2502_vm3, %v2462_v47  ;;  %v2271_v55 = vmax.f32 %v1925_v48, %v2085_v49  ;;  %v3417_v49 = vld [vmem:[%s3572_s26 + $0x2b8] sm:$0xff] }
 0x169   : > { %3221 = vmatmul.msk.bf16.gmra.mxu0 %vm1141_vm2, %v3351_v45  ;;  %3253 = vmatmul.msk.bf16.gmra.mxu1 %vm1141_vm2, %v3383_v46  ;;  %v2208_v63 = vmax.f32 %v1608_v57, %v1768_v58 }
 0x16a   : > { %v2335_v56 = vmax.f32 %v2207_v54, %v2271_v55  ;;  %3285 = vmatmul.msk.bf16.gmra.mxu2 %vm1141_vm2, %v3415_v52  ;;  %3317 = vmatmul.msk.bf16.gmra.mxu3 %vm1141_vm2, %v3447_v53 }
 0x16c   : > { %v2399_v59 = vmax.f32 %v2335_v56, 0.0 }
 0x16d   : > { %v1927_v60 = vpop.f32.mrf.mxu2  ;;  %v2087_v61 = vpop.f32.mrf.mxu3 }
 0x16e   : > { %v2463_v62 = vpack.c.bf16 %v2399_v59, %v2399_v59  ;;  %v1928_v0 = vadd.f32 %v3643_v42, %v1927_v60  ;;  %v2088_v1 = vadd.f32 %v3643_v42, %v2087_v61  ;;  %v1609_v2 = vpop.f32.mrf.mxu0  ;;  %v1769_v3 = vpop.f32.mrf.mxu1 }
 0x16f   : > { %v1610_v7 = vadd.f32 %v3643_v42, %v1609_v2  ;;  %v1770_v8 = vadd.f32 %v3643_v42, %v1769_v3 }
 0x170   : > { %2528 = vst.msk [vmem:[%s3661_s6 + $0x64] sm:$0xf] %vm2502_vm3, %v2463_v62  ;;  %v2272_v4 = vmax.f32 %v1928_v0, %v2088_v1 }
 0x171   : > { %v2209_v20 = vmax.f32 %v1610_v7, %v1770_v8  ;;  %v3354_v8 = vld [vmem:[%s3572_s26 + $0xc0] sm:$0xff] }
 0x172   : > { %v2336_v5 = vmax.f32 %v2208_v63, %v2272_v4 }
 0x174   : > { %v2400_v6 = vmax.f32 %v2336_v5, 0.0 }
 0x175   : > { %v1929_v9 = vpop.f32.mrf.mxu2  ;;  %v2089_v10 = vpop.f32.mrf.mxu3 }
 0x176   : > { %v2464_v13 = vpack.c.bf16 %v2400_v6, %v2400_v6  ;;  %v1930_v14 = vadd.f32 %v3643_v42, %v1929_v9  ;;  %v2090_v15 = vadd.f32 %v3643_v42, %v2089_v10  ;;  %v1612_v16 = vpop.f32.mrf.mxu0  ;;  %v1772_v17 = vpop.f32.mrf.mxu1  ;;  %v3386_v9 = vld [vmem:[%s3572_s26 + $0x1c0] sm:$0xff] }
 0x177   : > { %v1613_v42 = vadd.f32 %v3936_v23, %v1612_v16  ;;  %v1773_v24 = vadd.f32 %v3936_v23, %v1772_v17  ;;  %v3450_v16 = vld [vmem:[%s3572_s26 + $0x3c0] sm:$0xff] }
 0x178   : > { %2529 = vst.msk [vmem:[%s3661_s6 + $0x68] sm:$0xf] %vm2502_vm3, %v2464_v13  ;;  %v2273_v21 = vmax.f32 %v1930_v14, %v2090_v15  ;;  %v3418_v15 = vld [vmem:[%s3572_s26 + $0x2c0] sm:$0xff] }
 0x179   : > { %3222 = vmatmul.msk.bf16.gmra.mxu0 %vm1141_vm2, %v3352_v11  ;;  %3254 = vmatmul.msk.bf16.gmra.mxu1 %vm1141_vm2, %v3384_v12  ;;  %v2210_v29 = vmax.f32 %v1613_v42, %v1773_v24 }
 0x17a   : > { %v2337_v22 = vmax.f32 %v2209_v20, %v2273_v21  ;;  %3286 = vmatmul.msk.bf16.gmra.mxu2 %vm1141_vm2, %v3416_v18  ;;  %3318 = vmatmul.msk.bf16.gmra.mxu3 %vm1141_vm2, %v3448_v19 }
 0x17c   : > { %v2401_v25 = vmax.f32 %v2337_v22, 0.0 }
 0x17d   : > { %v1932_v26 = vpop.f32.mrf.mxu2  ;;  %v2092_v27 = vpop.f32.mrf.mxu3 }
 0x17e   : > { %v2465_v28 = vpack.c.bf16 %v2401_v25, %v2401_v25  ;;  %v1933_v30 = vadd.f32 %v3936_v23, %v1932_v26  ;;  %v2093_v31 = vadd.f32 %v3936_v23, %v2092_v27  ;;  %v1614_v32 = vpop.f32.mrf.mxu0  ;;  %v1774_v33 = vpop.f32.mrf.mxu1 }
 0x17f   : > { %v1615_v37 = vadd.f32 %v3936_v23, %v1614_v32  ;;  %v1775_v38 = vadd.f32 %v3936_v23, %v1774_v33 }
 0x180   : > { %2530 = vst.msk [vmem:[%s3661_s6 + $0x6c] sm:$0xf] %vm2502_vm3, %v2465_v28  ;;  %v2274_v34 = vmax.f32 %v1933_v30, %v2093_v31 }
 0x181   : > { %v2211_v51 = vmax.f32 %v1615_v37, %v1775_v38  ;;  %v3355_v38 = vld [vmem:[%s3572_s26 + $0xc8] sm:$0xff] }
 0x182   : > { %v2338_v35 = vmax.f32 %v2210_v29, %v2274_v34 }
 0x184   : > { %v2402_v36 = vmax.f32 %v2338_v35, 0.0 }
 0x185   : > { %v1934_v39 = vpop.f32.mrf.mxu2  ;;  %v2094_v40 = vpop.f32.mrf.mxu3 }
 0x186   : > { %v2466_v44 = vpack.c.bf16 %v2402_v36, %v2402_v36  ;;  %v1935_v45 = vadd.f32 %v3936_v23, %v1934_v39  ;;  %v2095_v46 = vadd.f32 %v3936_v23, %v2094_v40  ;;  %v1617_v47 = vpop.f32.mrf.mxu0  ;;  %v1777_v48 = vpop.f32.mrf.mxu1  ;;  %v3387_v39 = vld [vmem:[%s3572_s26 + $0x1c8] sm:$0xff] }
 0x187   : > { %v1618_v54 = vadd.f32 %v3936_v23, %v1617_v47  ;;  %v1778_v55 = vadd.f32 %v3936_v23, %v1777_v48  ;;  %v3451_v47 = vld [vmem:[%s3572_s26 + $0x3c8] sm:$0xff] }
 0x188   : > { %2531 = vst.msk [vmem:[%s3661_s6 + $0x70] sm:$0xf] %vm2502_vm3, %v2466_v44  ;;  %v2275_v52 = vmax.f32 %v1935_v45, %v2095_v46  ;;  %v3419_v46 = vld [vmem:[%s3572_s26 + $0x2c8] sm:$0xff] }
 0x189   : > { %3223 = vmatmul.msk.bf16.gmra.mxu0 %vm1141_vm2, %v3353_v41  ;;  %3255 = vmatmul.msk.bf16.gmra.mxu1 %vm1141_vm2, %v3385_v43  ;;  %v2212_v60 = vmax.f32 %v1618_v54, %v1778_v55 }
 0x18a   : > { %v2339_v53 = vmax.f32 %v2211_v51, %v2275_v52  ;;  %3287 = vmatmul.msk.bf16.gmra.mxu2 %vm1141_vm2, %v3417_v49  ;;  %3319 = vmatmul.msk.bf16.gmra.mxu3 %vm1141_vm2, %v3449_v50 }
 0x18c   : > { %v2403_v56 = vmax.f32 %v2339_v53, 0.0 }
 0x18d   : > { %v1937_v57 = vpop.f32.mrf.mxu2  ;;  %v2097_v58 = vpop.f32.mrf.mxu3 }
 0x18e   : > { %v2467_v59 = vpack.c.bf16 %v2403_v56, %v2403_v56  ;;  %v1938_v61 = vadd.f32 %v3936_v23, %v1937_v57  ;;  %v2098_v62 = vadd.f32 %v3936_v23, %v2097_v58  ;;  %v1619_v63 = vpop.f32.mrf.mxu0  ;;  %v1779_v0 = vpop.f32.mrf.mxu1 }
 0x18f   : > { %v1620_v4 = vadd.f32 %v3936_v23, %v1619_v63  ;;  %v1780_v5 = vadd.f32 %v3936_v23, %v1779_v0 }
 0x190   : > { %2532 = vst.msk [vmem:[%s3661_s6 + $0x74] sm:$0xf] %vm2502_vm3, %v2467_v59  ;;  %v2276_v1 = vmax.f32 %v1938_v61, %v2098_v62 }
 0x191   : > { %v2213_v17 = vmax.f32 %v1620_v4, %v1780_v5  ;;  %v3356_v5 = vld [vmem:[%s3572_s26 + $0xd0] sm:$0xff] }
 0x192   : > { %v2340_v2 = vmax.f32 %v2212_v60, %v2276_v1 }
 0x194   : > { %v2404_v3 = vmax.f32 %v2340_v2, 0.0 }
 0x195   : > { %v1939_v6 = vpop.f32.mrf.mxu2  ;;  %v2099_v7 = vpop.f32.mrf.mxu3 }
 0x196   : > { %v2468_v10 = vpack.c.bf16 %v2404_v3, %v2404_v3  ;;  %v1940_v11 = vadd.f32 %v3936_v23, %v1939_v6  ;;  %v2100_v12 = vadd.f32 %v3936_v23, %v2099_v7  ;;  %v1622_v13 = vpop.f32.mrf.mxu0  ;;  %v1782_v14 = vpop.f32.mrf.mxu1  ;;  %v3388_v6 = vld [vmem:[%s3572_s26 + $0x1d0] sm:$0xff] }
 0x197   : > { %v1623_v20 = vadd.f32 %v3936_v23, %v1622_v13  ;;  %v1783_v21 = vadd.f32 %v3936_v23, %v1782_v14  ;;  %v3452_v13 = vld [vmem:[%s3572_s26 + $0x3d0] sm:$0xff] }
 0x198   : > { %2533 = vst.msk [vmem:[%s3661_s6 + $0x78] sm:$0xf] %vm2502_vm3, %v2468_v10  ;;  %v2277_v18 = vmax.f32 %v1940_v11, %v2100_v12  ;;  %v3420_v12 = vld [vmem:[%s3572_s26 + $0x2d0] sm:$0xff] }
 0x199   : > { %3224 = vmatmul.msk.bf16.gmra.mxu0 %vm1141_vm2, %v3354_v8  ;;  %3256 = vmatmul.msk.bf16.gmra.mxu1 %vm1141_vm2, %v3386_v9  ;;  %v2214_v26 = vmax.f32 %v1623_v20, %v1783_v21 }
 0x19a   : > { %v2341_v19 = vmax.f32 %v2213_v17, %v2277_v18  ;;  %3288 = vmatmul.msk.bf16.gmra.mxu2 %vm1141_vm2, %v3418_v15  ;;  %3320 = vmatmul.msk.bf16.gmra.mxu3 %vm1141_vm2, %v3450_v16 }
 0x19c   : > { %v2405_v22 = vmax.f32 %v2341_v19, 0.0 }
 0x19d   : > { %v1942_v42 = vpop.f32.mrf.mxu2  ;;  %v2102_v24 = vpop.f32.mrf.mxu3 }
 0x19e   : > { %v2469_v25 = vpack.c.bf16 %v2405_v22, %v2405_v22  ;;  %v1943_v27 = vadd.f32 %v3936_v23, %v1942_v42  ;;  %v2103_v28 = vadd.f32 %v3936_v23, %v2102_v24  ;;  %v1624_v29 = vpop.f32.mrf.mxu0  ;;  %v1784_v30 = vpop.f32.mrf.mxu1 }
 0x19f   : > { %v1625_v34 = vadd.f32 %v3936_v23, %v1624_v29  ;;  %v1785_v35 = vadd.f32 %v3936_v23, %v1784_v30 }
 0x1a0   : > { %2534 = vst.msk [vmem:[%s3661_s6 + $0x7c] sm:$0xf] %vm2502_vm3, %v2469_v25  ;;  %v2278_v31 = vmax.f32 %v1943_v27, %v2103_v28 }
 0x1a1   : > { %v2215_v48 = vmax.f32 %v1625_v34, %v1785_v35  ;;  %v3357_v35 = vld [vmem:[%s3572_s26 + $0xd8] sm:$0xff] }
 0x1a2   : > { %v2342_v32 = vmax.f32 %v2214_v26, %v2278_v31 }
 0x1a4   : > { %v2406_v33 = vmax.f32 %v2342_v32, 0.0 }
 0x1a5   : > { %v1944_v36 = vpop.f32.mrf.mxu2  ;;  %v2104_v37 = vpop.f32.mrf.mxu3 }
 0x1a6   : > { %v2470_v40 = vpack.c.bf16 %v2406_v33, %v2406_v33  ;;  %v1945_v41 = vadd.f32 %v3936_v23, %v1944_v36  ;;  %v2105_v43 = vadd.f32 %v3936_v23, %v2104_v37  ;;  %v1627_v44 = vpop.f32.mrf.mxu0  ;;  %v1787_v45 = vpop.f32.mrf.mxu1  ;;  %v3389_v36 = vld [vmem:[%s3572_s26 + $0x1d8] sm:$0xff] }
 0x1a7   : > { %v1628_v51 = vadd.f32 %v3936_v23, %v1627_v44  ;;  %v1788_v52 = vadd.f32 %v3936_v23, %v1787_v45  ;;  %v3453_v44 = vld [vmem:[%s3572_s26 + $0x3d8] sm:$0xff] }
 0x1a8   : > { %2535 = vst.msk [vmem:[%s3661_s6 + $0x80] sm:$0xf] %vm2502_vm3, %v2470_v40  ;;  %v2279_v49 = vmax.f32 %v1945_v41, %v2105_v43  ;;  %v3421_v43 = vld [vmem:[%s3572_s26 + $0x2d8] sm:$0xff] }
 0x1a9   : > { %3225 = vmatmul.msk.bf16.gmra.mxu0 %vm1141_vm2, %v3355_v38  ;;  %3257 = vmatmul.msk.bf16.gmra.mxu1 %vm1141_vm2, %v3387_v39  ;;  %v2216_v57 = vmax.f32 %v1628_v51, %v1788_v52 }
 0x1aa   : > { %v2343_v50 = vmax.f32 %v2215_v48, %v2279_v49  ;;  %3289 = vmatmul.msk.bf16.gmra.mxu2 %vm1141_vm2, %v3419_v46  ;;  %3321 = vmatmul.msk.bf16.gmra.mxu3 %vm1141_vm2, %v3451_v47 }
 0x1ac   : > { %v2407_v53 = vmax.f32 %v2343_v50, 0.0 }
 0x1ad   : > { %v1947_v54 = vpop.f32.mrf.mxu2  ;;  %v2107_v55 = vpop.f32.mrf.mxu3 }
 0x1ae   : > { %v2471_v56 = vpack.c.bf16 %v2407_v53, %v2407_v53  ;;  %v1948_v58 = vadd.f32 %v3936_v23, %v1947_v54  ;;  %v2108_v59 = vadd.f32 %v3936_v23, %v2107_v55  ;;  %v1629_v60 = vpop.f32.mrf.mxu0  ;;  %v1789_v61 = vpop.f32.mrf.mxu1 }
 0x1af   : > { %v1630_v1 = vadd.f32 %v3936_v23, %v1629_v60  ;;  %v1790_v2 = vadd.f32 %v3936_v23, %v1789_v61 }
 0x1b0   : > { %2536 = vst.msk [vmem:[%s3661_s6 + $0x84] sm:$0xf] %vm2502_vm3, %v2471_v56  ;;  %v2280_v62 = vmax.f32 %v1948_v58, %v2108_v59 }
 0x1b1   : > { %v2217_v14 = vmax.f32 %v1630_v1, %v1790_v2  ;;  %v3358_v2 = vld [vmem:[%s3572_s26 + $0xe0] sm:$0xff] }
 0x1b2   : > { %v2344_v63 = vmax.f32 %v2216_v57, %v2280_v62 }
 0x1b4   : > { %v2408_v0 = vmax.f32 %v2344_v63, 0.0 }
 0x1b5   : > { %v1949_v3 = vpop.f32.mrf.mxu2  ;;  %v2109_v4 = vpop.f32.mrf.mxu3 }
 0x1b6   : > { %v2472_v7 = vpack.c.bf16 %v2408_v0, %v2408_v0  ;;  %v1950_v8 = vadd.f32 %v3936_v23, %v1949_v3  ;;  %v2110_v9 = vadd.f32 %v3936_v23, %v2109_v4  ;;  %v1632_v10 = vpop.f32.mrf.mxu0  ;;  %v1792_v11 = vpop.f32.mrf.mxu1  ;;  %v3390_v3 = vld [vmem:[%s3572_s26 + $0x1e0] sm:$0xff] }
 0x1b7   : > { %v1633_v17 = vadd.f32 %v3936_v23, %v1632_v10  ;;  %v1793_v18 = vadd.f32 %v3936_v23, %v1792_v11  ;;  %v3454_v10 = vld [vmem:[%s3572_s26 + $0x3e0] sm:$0xff] }
 0x1b8   : > { %2537 = vst.msk [vmem:[%s3661_s6 + $0x88] sm:$0xf] %vm2502_vm3, %v2472_v7  ;;  %v2281_v15 = vmax.f32 %v1950_v8, %v2110_v9  ;;  %v3422_v9 = vld [vmem:[%s3572_s26 + $0x2e0] sm:$0xff] }
 0x1b9   : > { %3226 = vmatmul.msk.bf16.gmra.mxu0 %vm1141_vm2, %v3356_v5  ;;  %3258 = vmatmul.msk.bf16.gmra.mxu1 %vm1141_vm2, %v3388_v6  ;;  %v2218_v42 = vmax.f32 %v1633_v17, %v1793_v18 }
 0x1ba   : > { %v2345_v16 = vmax.f32 %v2217_v14, %v2281_v15  ;;  %3290 = vmatmul.msk.bf16.gmra.mxu2 %vm1141_vm2, %v3420_v12  ;;  %3322 = vmatmul.msk.bf16.gmra.mxu3 %vm1141_vm2, %v3452_v13 }
 0x1bc   : > { %v2409_v19 = vmax.f32 %v2345_v16, 0.0 }
 0x1bd   : > { %v1952_v20 = vpop.f32.mrf.mxu2  ;;  %v2112_v21 = vpop.f32.mrf.mxu3 }
 0x1be   : > { %v2473_v22 = vpack.c.bf16 %v2409_v19, %v2409_v19  ;;  %v1953_v24 = vadd.f32 %v3936_v23, %v1952_v20  ;;  %v2113_v25 = vadd.f32 %v3936_v23, %v2112_v21  ;;  %v1634_v26 = vpop.f32.mrf.mxu0  ;;  %v1794_v27 = vpop.f32.mrf.mxu1 }
 0x1bf   : > { %v1635_v31 = vadd.f32 %v3936_v23, %v1634_v26  ;;  %v1795_v32 = vadd.f32 %v3936_v23, %v1794_v27 }
 0x1c0   : > { %2538 = vst.msk [vmem:[%s3661_s6 + $0x8c] sm:$0xf] %vm2502_vm3, %v2473_v22  ;;  %v2282_v28 = vmax.f32 %v1953_v24, %v2113_v25 }
 0x1c1   : > { %v2219_v45 = vmax.f32 %v1635_v31, %v1795_v32  ;;  %v3359_v32 = vld [vmem:[%s3572_s26 + $0xe8] sm:$0xff] }
 0x1c2   : > { %v2346_v29 = vmax.f32 %v2218_v42, %v2282_v28 }
 0x1c4   : > { %v2410_v30 = vmax.f32 %v2346_v29, 0.0 }
 0x1c5   : > { %v1954_v33 = vpop.f32.mrf.mxu2  ;;  %v2114_v34 = vpop.f32.mrf.mxu3 }
 0x1c6   : > { %v2474_v37 = vpack.c.bf16 %v2410_v30, %v2410_v30  ;;  %v1955_v38 = vadd.f32 %v3936_v23, %v1954_v33  ;;  %v2115_v39 = vadd.f32 %v3936_v23, %v2114_v34  ;;  %v1637_v40 = vpop.f32.mrf.mxu0  ;;  %v1797_v41 = vpop.f32.mrf.mxu1  ;;  %v3391_v33 = vld [vmem:[%s3572_s26 + $0x1e8] sm:$0xff] }
 0x1c7   : > { %v1638_v48 = vadd.f32 %v3936_v23, %v1637_v40  ;;  %v1798_v49 = vadd.f32 %v3936_v23, %v1797_v41  ;;  %v3455_v40 = vld [vmem:[%s3572_s26 + $0x3e8] sm:$0xff] }
 0x1c8   : > { %2539 = vst.msk [vmem:[%s3661_s6 + $0x90] sm:$0xf] %vm2502_vm3, %v2474_v37  ;;  %v2283_v46 = vmax.f32 %v1955_v38, %v2115_v39  ;;  %v3423_v39 = vld [vmem:[%s3572_s26 + $0x2e8] sm:$0xff] }
 0x1c9   : > { %3227 = vmatmul.msk.bf16.gmra.mxu0 %vm1141_vm2, %v3357_v35  ;;  %3259 = vmatmul.msk.bf16.gmra.mxu1 %vm1141_vm2, %v3389_v36  ;;  %v2220_v54 = vmax.f32 %v1638_v48, %v1798_v49 }
 0x1ca   : > { %v2347_v47 = vmax.f32 %v2219_v45, %v2283_v46  ;;  %3291 = vmatmul.msk.bf16.gmra.mxu2 %vm1141_vm2, %v3421_v43  ;;  %3323 = vmatmul.msk.bf16.gmra.mxu3 %vm1141_vm2, %v3453_v44 }
 0x1cc   : > { %v2411_v50 = vmax.f32 %v2347_v47, 0.0 }
 0x1cd   : > { %v1957_v51 = vpop.f32.mrf.mxu2  ;;  %v2117_v52 = vpop.f32.mrf.mxu3 }
 0x1ce   : > { %v2475_v53 = vpack.c.bf16 %v2411_v50, %v2411_v50  ;;  %v1958_v55 = vadd.f32 %v3936_v23, %v1957_v51  ;;  %v2118_v56 = vadd.f32 %v3936_v23, %v2117_v52  ;;  %v1639_v57 = vpop.f32.mrf.mxu0  ;;  %v1799_v58 = vpop.f32.mrf.mxu1 }
 0x1cf   : > { %v1640_v62 = vadd.f32 %v3936_v23, %v1639_v57  ;;  %v1800_v63 = vadd.f32 %v3936_v23, %v1799_v58 }
 0x1d0   : > { %2540 = vst.msk [vmem:[%s3661_s6 + $0x94] sm:$0xf] %vm2502_vm3, %v2475_v53  ;;  %v2284_v59 = vmax.f32 %v1958_v55, %v2118_v56 }
 0x1d1   : > { %v2221_v11 = vmax.f32 %v1640_v62, %v1800_v63  ;;  %v3360_v63 = vld [vmem:[%s3572_s26 + $0xf0] sm:$0xff] }
 0x1d2   : > { %v2348_v60 = vmax.f32 %v2220_v54, %v2284_v59 }
 0x1d4   : > { %v2412_v61 = vmax.f32 %v2348_v60, 0.0 }
 0x1d5   : > { %v1959_v0 = vpop.f32.mrf.mxu2  ;;  %v2119_v1 = vpop.f32.mrf.mxu3 }
 0x1d6   : > { %v2476_v4 = vpack.c.bf16 %v2412_v61, %v2412_v61  ;;  %v1960_v5 = vadd.f32 %v3936_v23, %v1959_v0  ;;  %v2120_v6 = vadd.f32 %v3936_v23, %v2119_v1  ;;  %v1642_v7 = vpop.f32.mrf.mxu0  ;;  %v1802_v8 = vpop.f32.mrf.mxu1  ;;  %v3392_v0 = vld [vmem:[%s3572_s26 + $0x1f0] sm:$0xff] }
 0x1d7   : > { %v1643_v14 = vadd.f32 %v3936_v23, %v1642_v7  ;;  %v1803_v15 = vadd.f32 %v3936_v23, %v1802_v8  ;;  %v3456_v7 = vld [vmem:[%s3572_s26 + $0x3f0] sm:$0xff] }
 0x1d8   : > { %2541 = vst.msk [vmem:[%s3661_s6 + $0x98] sm:$0xf] %vm2502_vm3, %v2476_v4  ;;  %v2285_v12 = vmax.f32 %v1960_v5, %v2120_v6  ;;  %v3424_v6 = vld [vmem:[%s3572_s26 + $0x2f0] sm:$0xff] }
 0x1d9   : > { %3228 = vmatmul.msk.bf16.gmra.mxu0 %vm1141_vm2, %v3358_v2  ;;  %3260 = vmatmul.msk.bf16.gmra.mxu1 %vm1141_vm2, %v3390_v3  ;;  %v2222_v20 = vmax.f32 %v1643_v14, %v1803_v15 }
 0x1da   : > { %v2349_v13 = vmax.f32 %v2221_v11, %v2285_v12  ;;  %3292 = vmatmul.msk.bf16.gmra.mxu2 %vm1141_vm2, %v3422_v9  ;;  %3324 = vmatmul.msk.bf16.gmra.mxu3 %vm1141_vm2, %v3454_v10 }
 0x1dc   : > { %v2413_v16 = vmax.f32 %v2349_v13, 0.0 }
 0x1dd   : > { %v1962_v17 = vpop.f32.mrf.mxu2  ;;  %v2122_v18 = vpop.f32.mrf.mxu3 }
 0x1de   : > { %v2477_v19 = vpack.c.bf16 %v2413_v16, %v2413_v16  ;;  %v1963_v21 = vadd.f32 %v3936_v23, %v1962_v17  ;;  %v2123_v22 = vadd.f32 %v3936_v23, %v2122_v18  ;;  %v1644_v42 = vpop.f32.mrf.mxu0  ;;  %v1804_v24 = vpop.f32.mrf.mxu1 }
 0x1df   : > { %v1645_v28 = vadd.f32 %v3936_v23, %v1644_v42  ;;  %v1805_v29 = vadd.f32 %v3936_v23, %v1804_v24 }
 0x1e0   : > { %2542 = vst.msk [vmem:[%s3661_s6 + $0x9c] sm:$0xf] %vm2502_vm3, %v2477_v19  ;;  %v2286_v25 = vmax.f32 %v1963_v21, %v2123_v22 }
 0x1e1   : > { %v2223_v41 = vmax.f32 %v1645_v28, %v1805_v29  ;;  %v3361_v29 = vld [vmem:[%s3572_s26 + $0xf8] sm:$0xff] }
 0x1e2   : > { %v2350_v26 = vmax.f32 %v2222_v20, %v2286_v25 }
 0x1e4   : > { %v2414_v27 = vmax.f32 %v2350_v26, 0.0 }
 0x1e5   : > { %v1964_v30 = vpop.f32.mrf.mxu2  ;;  %v2124_v31 = vpop.f32.mrf.mxu3 }
 0x1e6   : > { %v2478_v34 = vpack.c.bf16 %v2414_v27, %v2414_v27  ;;  %v1965_v35 = vadd.f32 %v3936_v23, %v1964_v30  ;;  %v2125_v36 = vadd.f32 %v3936_v23, %v2124_v31  ;;  %v1647_v37 = vpop.f32.mrf.mxu0  ;;  %v1807_v38 = vpop.f32.mrf.mxu1  ;;  %v3393_v30 = vld [vmem:[%s3572_s26 + $0x1f8] sm:$0xff] }
 0x1e7   : > { %v1648_v45 = vadd.f32 %v3936_v23, %v1647_v37  ;;  %v1808_v46 = vadd.f32 %v3936_v23, %v1807_v38  ;;  %v3457_v37 = vld [vmem:[%s3572_s26 + $0x3f8] sm:$0xff] }
 0x1e8   : > { %2543 = vst.msk [vmem:[%s3661_s6 + $0xa0] sm:$0xf] %vm2502_vm3, %v2478_v34  ;;  %v2287_v43 = vmax.f32 %v1965_v35, %v2125_v36  ;;  %v3425_v36 = vld [vmem:[%s3572_s26 + $0x2f8] sm:$0xff] }
 0x1e9   : > { %3229 = vmatmul.msk.bf16.gmra.mxu0 %vm1141_vm2, %v3359_v32  ;;  %3261 = vmatmul.msk.bf16.gmra.mxu1 %vm1141_vm2, %v3391_v33  ;;  %v2224_v51 = vmax.f32 %v1648_v45, %v1808_v46 }
 0x1ea   : > { %v2351_v44 = vmax.f32 %v2223_v41, %v2287_v43  ;;  %3293 = vmatmul.msk.bf16.gmra.mxu2 %vm1141_vm2, %v3423_v39  ;;  %3325 = vmatmul.msk.bf16.gmra.mxu3 %vm1141_vm2, %v3455_v40 }
 0x1ec   : > { %v2415_v47 = vmax.f32 %v2351_v44, 0.0 }
 0x1ed   : > { %v1967_v48 = vpop.f32.mrf.mxu2  ;;  %v2127_v49 = vpop.f32.mrf.mxu3 }
 0x1ee   : > { %v2479_v50 = vpack.c.bf16 %v2415_v47, %v2415_v47  ;;  %v1968_v52 = vadd.f32 %v3936_v23, %v1967_v48  ;;  %v2128_v53 = vadd.f32 %v3936_v23, %v2127_v49  ;;  %v1649_v54 = vpop.f32.mrf.mxu0  ;;  %v1809_v55 = vpop.f32.mrf.mxu1 }
 0x1ef   : > { %v1650_v59 = vadd.f32 %v3936_v23, %v1649_v54  ;;  %v1810_v60 = vadd.f32 %v3936_v23, %v1809_v55 }
 0x1f0   : > { %2544 = vst.msk [vmem:[%s3661_s6 + $0xa4] sm:$0xf] %vm2502_vm3, %v2479_v50  ;;  %v2288_v56 = vmax.f32 %v1968_v52, %v2128_v53 }
 0x1f1   : > { %v2225_v8 = vmax.f32 %v1650_v59, %v1810_v60 }
 0x1f2   : > { %v2352_v57 = vmax.f32 %v2224_v51, %v2288_v56 }
 0x1f4   : > { %v2416_v58 = vmax.f32 %v2352_v57, 0.0 }
 0x1f5   : > { %v1969_v61 = vpop.f32.mrf.mxu2  ;;  %v2129_v62 = vpop.f32.mrf.mxu3 }
 0x1f6   : > { %v2480_v1 = vpack.c.bf16 %v2416_v58, %v2416_v58  ;;  %v1970_v2 = vadd.f32 %v3936_v23, %v1969_v61  ;;  %v2130_v3 = vadd.f32 %v3936_v23, %v2129_v62  ;;  %v1652_v4 = vpop.f32.mrf.mxu0  ;;  %v1812_v5 = vpop.f32.mrf.mxu1 }
 0x1f7   : > { %v1653_v11 = vadd.f32 %v3936_v23, %v1652_v4  ;;  %v1813_v12 = vadd.f32 %v3936_v23, %v1812_v5 }
 0x1f8   : > { %2545 = vst.msk [vmem:[%s3661_s6 + $0xa8] sm:$0xf] %vm2502_vm3, %v2480_v1  ;;  %v2289_v9 = vmax.f32 %v1970_v2, %v2130_v3 }
 0x1f9   : > { %3230 = vmatmul.msk.bf16.gmra.mxu0 %vm1141_vm2, %v3360_v63  ;;  %3262 = vmatmul.msk.bf16.gmra.mxu1 %vm1141_vm2, %v3392_v0  ;;  %v2226_v17 = vmax.f32 %v1653_v11, %v1813_v12 }
 0x1fa   : > { %v2353_v10 = vmax.f32 %v2225_v8, %v2289_v9  ;;  %3294 = vmatmul.msk.bf16.gmra.mxu2 %vm1141_vm2, %v3424_v6  ;;  %3326 = vmatmul.msk.bf16.gmra.mxu3 %vm1141_vm2, %v3456_v7 }
 0x1fc   : > { %v2417_v13 = vmax.f32 %v2353_v10, 0.0 }
 0x1fd   : > { %v1972_v14 = vpop.f32.mrf.mxu2  ;;  %v2132_v15 = vpop.f32.mrf.mxu3 }
 0x1fe   : > { %v2481_v16 = vpack.c.bf16 %v2417_v13, %v2417_v13  ;;  %v1973_v18 = vadd.f32 %v3936_v23, %v1972_v14  ;;  %v2133_v19 = vadd.f32 %v3936_v23, %v2132_v15  ;;  %v1654_v20 = vpop.f32.mrf.mxu0  ;;  %v1814_v21 = vpop.f32.mrf.mxu1 }
 0x1ff   : > { %v1655_v25 = vadd.f32 %v3936_v23, %v1654_v20  ;;  %v1815_v26 = vadd.f32 %v3936_v23, %v1814_v21 }
 0x200   : > { %2546 = vst.msk [vmem:[%s3661_s6 + $0xac] sm:$0xf] %vm2502_vm3, %v2481_v16  ;;  %v2290_v22 = vmax.f32 %v1973_v18, %v2133_v19 }
 0x201   : > { %v2227_v38 = vmax.f32 %v1655_v25, %v1815_v26 }
 0x202   : > { %v2354_v42 = vmax.f32 %v2226_v17, %v2290_v22 }
 0x204   : > { %v2418_v24 = vmax.f32 %v2354_v42, 0.0 }
 0x205   : > { %v1974_v27 = vpop.f32.mrf.mxu2  ;;  %v2134_v28 = vpop.f32.mrf.mxu3 }
 0x206   : > { %v2482_v31 = vpack.c.bf16 %v2418_v24, %v2418_v24  ;;  %v1975_v32 = vadd.f32 %v3936_v23, %v1974_v27  ;;  %v2135_v33 = vadd.f32 %v3936_v23, %v2134_v28  ;;  %v1657_v34 = vpop.f32.mrf.mxu0  ;;  %v1817_v35 = vpop.f32.mrf.mxu1 }
 0x207   : > { %v1658_v41 = vadd.f32 %v3936_v23, %v1657_v34  ;;  %v1818_v43 = vadd.f32 %v3936_v23, %v1817_v35 }
 0x208   : > { %2547 = vst.msk [vmem:[%s3661_s6 + $0xb0] sm:$0xf] %vm2502_vm3, %v2482_v31  ;;  %v2291_v39 = vmax.f32 %v1975_v32, %v2135_v33 }
 0x209   : > { %3231 = vmatmul.msk.bf16.gmra.mxu0 %vm1141_vm2, %v3361_v29  ;;  %3263 = vmatmul.msk.bf16.gmra.mxu1 %vm1141_vm2, %v3393_v30  ;;  %v2228_v48 = vmax.f32 %v1658_v41, %v1818_v43 }
 0x20a   : > { %v2355_v40 = vmax.f32 %v2227_v38, %v2291_v39  ;;  %3295 = vmatmul.msk.bf16.gmra.mxu2 %vm1141_vm2, %v3425_v36  ;;  %3327 = vmatmul.msk.bf16.gmra.mxu3 %vm1141_vm2, %v3457_v37 }
 0x20c   : > { %v2419_v44 = vmax.f32 %v2355_v40, 0.0 }
 0x20d   : > { %v1977_v45 = vpop.f32.mrf.mxu2  ;;  %v2137_v46 = vpop.f32.mrf.mxu3 }
 0x20e   : > { %v2483_v47 = vpack.c.bf16 %v2419_v44, %v2419_v44  ;;  %v1978_v49 = vadd.f32 %v3936_v23, %v1977_v45  ;;  %v2138_v50 = vadd.f32 %v3936_v23, %v2137_v46  ;;  %v1659_v51 = vpop.f32.mrf.mxu0  ;;  %v1819_v52 = vpop.f32.mrf.mxu1 }
 0x20f   : > { %v1660_v56 = vadd.f32 %v3936_v23, %v1659_v51  ;;  %v1820_v57 = vadd.f32 %v3936_v23, %v1819_v52 }
 0x210   : > { %2548 = vst.msk [vmem:[%s3661_s6 + $0xb4] sm:$0xf] %vm2502_vm3, %v2483_v47  ;;  %v2292_v53 = vmax.f32 %v1978_v49, %v2138_v50 }
 0x211   : > { %v2229_v1 = vmax.f32 %v1660_v56, %v1820_v57 }
 0x212   : > { %v2356_v54 = vmax.f32 %v2228_v48, %v2292_v53 }
 0x214   : > { %v2420_v55 = vmax.f32 %v2356_v54, 0.0 }
 0x215   : > { %v1979_v58 = vpop.f32.mrf.mxu2  ;;  %v2139_v59 = vpop.f32.mrf.mxu3 }
 0x216   : > { %v2484_v60 = vpack.c.bf16 %v2420_v55, %v2420_v55  ;;  %v1980_v61 = vadd.f32 %v3936_v23, %v1979_v58  ;;  %v2140_v62 = vadd.f32 %v3936_v23, %v2139_v59  ;;  %v1662_v63 = vpop.f32.mrf.mxu0  ;;  %v1822_v0 = vpop.f32.mrf.mxu1 }
 0x217   : > { %v1663_v4 = vadd.f32 %v3936_v23, %v1662_v63  ;;  %v1823_v5 = vadd.f32 %v3936_v23, %v1822_v0 }
 0x218   : > { %2549 = vst.msk [vmem:[%s3661_s6 + $0xb8] sm:$0xf] %vm2502_vm3, %v2484_v60  ;;  %v2293_v2 = vmax.f32 %v1980_v61, %v2140_v62 }
 0x219   : > { %v2230_v10 = vmax.f32 %v1663_v4, %v1823_v5 }
 0x21a   : > { %v2357_v3 = vmax.f32 %v2229_v1, %v2293_v2 }
 0x21c   : > { %v2421_v6 = vmax.f32 %v2357_v3, 0.0 }
 0x21d   : > { %v1982_v7 = vpop.f32.mrf.mxu2  ;;  %v2142_v8 = vpop.f32.mrf.mxu3 }
 0x21e   : > { %v2485_v9 = vpack.c.bf16 %v2421_v6, %v2421_v6  ;;  %v1983_v11 = vadd.f32 %v3936_v23, %v1982_v7  ;;  %v2143_v12 = vadd.f32 %v3936_v23, %v2142_v8  ;;  %v1664_v13 = vpop.f32.mrf.mxu0  ;;  %v1824_v14 = vpop.f32.mrf.mxu1 }
 0x21f   : > { %v1665_v18 = vadd.f32 %v3936_v23, %v1664_v13  ;;  %v1825_v19 = vadd.f32 %v3936_v23, %v1824_v14 }
 0x220   : > { %2550 = vst.msk [vmem:[%s3661_s6 + $0xbc] sm:$0xf] %vm2502_vm3, %v2485_v9  ;;  %v2294_v15 = vmax.f32 %v1983_v11, %v2143_v12 }
 0x221   : > { %v2231_v27 = vmax.f32 %v1665_v18, %v1825_v19 }
 0x222   : > { %v2358_v16 = vmax.f32 %v2230_v10, %v2294_v15 }
 0x224   : > { %v2422_v17 = vmax.f32 %v2358_v16, 0.0 }
 0x225   : > { %v1984_v20 = vpop.f32.mrf.mxu2  ;;  %v2144_v21 = vpop.f32.mrf.mxu3 }
 0x226   : > { %v2486_v22 = vpack.c.bf16 %v2422_v17, %v2422_v17  ;;  %v1985_v42 = vadd.f32 %v3936_v23, %v1984_v20  ;;  %v2145_v24 = vadd.f32 %v3936_v23, %v2144_v21  ;;  %v1667_v25 = vpop.f32.mrf.mxu0  ;;  %v1827_v26 = vpop.f32.mrf.mxu1 }
 0x227   : > { %v1668_v30 = vadd.f32 %v3936_v23, %v1667_v25  ;;  %v1828_v31 = vadd.f32 %v3936_v23, %v1827_v26 }
 0x228   : > { %2551 = vst.msk [vmem:[%s3661_s6 + $0xc0] sm:$0xf] %vm2502_vm3, %v2486_v22  ;;  %v2295_v28 = vmax.f32 %v1985_v42, %v2145_v24 }
 0x229   : > { %v2232_v36 = vmax.f32 %v1668_v30, %v1828_v31 }
 0x22a   : > { %v2359_v29 = vmax.f32 %v2231_v27, %v2295_v28 }
 0x22c   : > { %v2423_v32 = vmax.f32 %v2359_v29, 0.0 }
 0x22d   : > { %v1987_v33 = vpop.f32.mrf.mxu2  ;;  %v2147_v34 = vpop.f32.mrf.mxu3 }
 0x22e   : > { %v2487_v35 = vpack.c.bf16 %v2423_v32, %v2423_v32  ;;  %v1988_v37 = vadd.f32 %v3936_v23, %v1987_v33  ;;  %v2148_v38 = vadd.f32 %v3936_v23, %v2147_v34  ;;  %v1669_v39 = vpop.f32.mrf.mxu0  ;;  %v1829_v40 = vpop.f32.mrf.mxu1 }
 0x22f   : > { %v1670_v45 = vadd.f32 %v3936_v23, %v1669_v39  ;;  %v1830_v46 = vadd.f32 %v3936_v23, %v1829_v40 }
 0x230   : > { %2552 = vst.msk [vmem:[%s3661_s6 + $0xc4] sm:$0xf] %vm2502_vm3, %v2487_v35  ;;  %v2296_v41 = vmax.f32 %v1988_v37, %v2148_v38 }
 0x231   : > { %v2233_v54 = vmax.f32 %v1670_v45, %v1830_v46 }
 0x232   : > { %v2360_v43 = vmax.f32 %v2232_v36, %v2296_v41 }
 0x234   : > { %v2424_v44 = vmax.f32 %v2360_v43, 0.0 }
 0x235   : > { %v1989_v47 = vpop.f32.mrf.mxu2  ;;  %v2149_v48 = vpop.f32.mrf.mxu3 }
 0x236   : > { %v2488_v49 = vpack.c.bf16 %v2424_v44, %v2424_v44  ;;  %v1990_v50 = vadd.f32 %v3936_v23, %v1989_v47  ;;  %v2150_v51 = vadd.f32 %v3936_v23, %v2149_v48  ;;  %v1672_v52 = vpop.f32.mrf.mxu0  ;;  %v1832_v53 = vpop.f32.mrf.mxu1 }
 0x237   : > { %v1673_v57 = vadd.f32 %v3936_v23, %v1672_v52  ;;  %v1833_v58 = vadd.f32 %v3936_v23, %v1832_v53 }
 0x238   : > { %2553 = vst.msk [vmem:[%s3661_s6 + $0xc8] sm:$0xf] %vm2502_vm3, %v2488_v49  ;;  %v2297_v55 = vmax.f32 %v1990_v50, %v2150_v51 }
 0x239   : > { %v2234_v63 = vmax.f32 %v1673_v57, %v1833_v58 }
 0x23a   : > { %v2361_v56 = vmax.f32 %v2233_v54, %v2297_v55 }
 0x23c   : > { %v2425_v59 = vmax.f32 %v2361_v56, 0.0 }
 0x23d   : > { %v1992_v60 = vpop.f32.mrf.mxu2  ;;  %v2152_v61 = vpop.f32.mrf.mxu3 }
 0x23e   : > { %v2489_v62 = vpack.c.bf16 %v2425_v59, %v2425_v59  ;;  %v1993_v0 = vadd.f32 %v3936_v23, %v1992_v60  ;;  %v2153_v1 = vadd.f32 %v3936_v23, %v2152_v61  ;;  %v1674_v2 = vpop.f32.mrf.mxu0  ;;  %v1834_v3 = vpop.f32.mrf.mxu1 }
 0x23f   : > { %v1675_v7 = vadd.f32 %v3936_v23, %v1674_v2  ;;  %v1835_v8 = vadd.f32 %v3936_v23, %v1834_v3 }
 0x240   : > { %2554 = vst.msk [vmem:[%s3661_s6 + $0xcc] sm:$0xf] %vm2502_vm3, %v2489_v62  ;;  %v2298_v4 = vmax.f32 %v1993_v0, %v2153_v1 }
 0x241   : > { %v2235_v16 = vmax.f32 %v1675_v7, %v1835_v8 }
 0x242   : > { %v2362_v5 = vmax.f32 %v2234_v63, %v2298_v4 }
 0x244   : > { %v2426_v6 = vmax.f32 %v2362_v5, 0.0 }
 0x245   : > { %v1994_v9 = vpop.f32.mrf.mxu2  ;;  %v2154_v10 = vpop.f32.mrf.mxu3 }
 0x246   : > { %v2490_v11 = vpack.c.bf16 %v2426_v6, %v2426_v6  ;;  %v1995_v12 = vadd.f32 %v3936_v23, %v1994_v9  ;;  %v2155_v13 = vadd.f32 %v3936_v23, %v2154_v10  ;;  %v1677_v14 = vpop.f32.mrf.mxu0  ;;  %v1837_v15 = vpop.f32.mrf.mxu1 }
 0x247   : > { %v1678_v19 = vadd.f32 %v3936_v23, %v1677_v14  ;;  %v1838_v20 = vadd.f32 %v3936_v23, %v1837_v15 }
 0x248   : > { %2555 = vst.msk [vmem:[%s3661_s6 + $0xd0] sm:$0xf] %vm2502_vm3, %v2490_v11  ;;  %v2299_v17 = vmax.f32 %v1995_v12, %v2155_v13 }
 0x249   : > { %v2236_v25 = vmax.f32 %v1678_v19, %v1838_v20 }
 0x24a   : > { %v2363_v18 = vmax.f32 %v2235_v16, %v2299_v17 }
 0x24c   : > { %v2427_v21 = vmax.f32 %v2363_v18, 0.0 }
 0x24d   : > { %v1997_v22 = vpop.f32.mrf.mxu2  ;;  %v2157_v42 = vpop.f32.mrf.mxu3 }
 0x24e   : > { %v2491_v24 = vpack.c.bf16 %v2427_v21, %v2427_v21  ;;  %v1998_v26 = vadd.f32 %v3936_v23, %v1997_v22  ;;  %v2158_v27 = vadd.f32 %v3936_v23, %v2157_v42  ;;  %v1679_v28 = vpop.f32.mrf.mxu0  ;;  %v1839_v29 = vpop.f32.mrf.mxu1 }
 0x24f   : > { %v1680_v33 = vadd.f32 %v3936_v23, %v1679_v28  ;;  %v1840_v34 = vadd.f32 %v3936_v23, %v1839_v29 }
 0x250   : > { %2556 = vst.msk [vmem:[%s3661_s6 + $0xd4] sm:$0xf] %vm2502_vm3, %v2491_v24  ;;  %v2300_v30 = vmax.f32 %v1998_v26, %v2158_v27  ;;  %v3493_v27 = vld [vmem:[%s4226_s2] ss:$0 sm:$0xff] }
 0x251   : > { %v2237_v43 = vmax.f32 %v1680_v33, %v1840_v34 }
 0x252   : > { %v2364_v31 = vmax.f32 %v2236_v25, %v2300_v30 }
 0x254   : > { %v2428_v32 = vmax.f32 %v2364_v31, 0.0 }
 0x255   : > { %v1999_v35 = vpop.f32.mrf.mxu2  ;;  %v2159_v36 = vpop.f32.mrf.mxu3 }
 0x256   : > { %v2492_v37 = vpack.c.bf16 %v2428_v32, %v2428_v32  ;;  %v2000_v38 = vadd.f32 %v3936_v23, %v1999_v35  ;;  %v2160_v39 = vadd.f32 %v3936_v23, %v2159_v36  ;;  %v1682_v40 = vpop.f32.mrf.mxu0  ;;  %v1842_v41 = vpop.f32.mrf.mxu1 }
 0x257   : > { %v1683_v46 = vadd.f32 %v3936_v23, %v1682_v40  ;;  %v1843_v47 = vadd.f32 %v3936_v23, %v1842_v41 }
 0x258   : > { %2557 = vst.msk [vmem:[%s3661_s6 + $0xd8] sm:$0xf] %vm2502_vm3, %v2492_v37  ;;  %v2301_v44 = vmax.f32 %v2000_v38, %v2160_v39 }
 0x259   : > { %v2238_v52 = vmax.f32 %v1683_v46, %v1843_v47 }
 0x25a   : > { %v2365_v45 = vmax.f32 %v2237_v43, %v2301_v44 }
 0x25c   : > { %v2429_v48 = vmax.f32 %v2365_v45, 0.0 }
 0x25d   : > { %v2002_v49 = vpop.f32.mrf.mxu2  ;;  %v2162_v50 = vpop.f32.mrf.mxu3 }
 0x25e   : > { %v2493_v51 = vpack.c.bf16 %v2429_v48, %v2429_v48  ;;  %v2003_v53 = vadd.f32 %v3936_v23, %v2002_v49  ;;  %v2163_v54 = vadd.f32 %v3936_v23, %v2162_v50  ;;  %v1684_v55 = vpop.f32.mrf.mxu0  ;;  %v1844_v56 = vpop.f32.mrf.mxu1 }
 0x25f   : > { %v1685_v60 = vadd.f32 %v3936_v23, %v1684_v55  ;;  %v1845_v61 = vadd.f32 %v3936_v23, %v1844_v56 }
 0x260   : > { %2558 = vst.msk [vmem:[%s3661_s6 + $0xdc] sm:$0xf] %vm2502_vm3, %v2493_v51  ;;  %v2302_v57 = vmax.f32 %v2003_v53, %v2163_v54 }
 0x261   : > { %v2239_v5 = vmax.f32 %v1685_v60, %v1845_v61 }
 0x262   : > { %v2366_v58 = vmax.f32 %v2238_v52, %v2302_v57 }
 0x264   : > { %v2430_v59 = vmax.f32 %v2366_v58, 0.0 }
 0x265   : > { %v2004_v62 = vpop.f32.mrf.mxu2  ;;  %v2164_v63 = vpop.f32.mrf.mxu3 }
 0x266   : > { %v2494_v0 = vpack.c.bf16 %v2430_v59, %v2430_v59  ;;  %v2005_v1 = vadd.f32 %v3936_v23, %v2004_v62  ;;  %v2165_v2 = vadd.f32 %v3936_v23, %v2164_v63  ;;  %v1687_v3 = vpop.f32.mrf.mxu0  ;;  %v1847_v4 = vpop.f32.mrf.mxu1 }
 0x267   : > { %v1688_v8 = vadd.f32 %v3936_v23, %v1687_v3  ;;  %v1848_v9 = vadd.f32 %v3936_v23, %v1847_v4 }
 0x268   : > { %2559 = vst.msk [vmem:[%s3661_s6 + $0xe0] sm:$0xf] %vm2502_vm3, %v2494_v0  ;;  %v2303_v6 = vmax.f32 %v2005_v1, %v2165_v2 }
 0x269   : > { %v2240_v14 = vmax.f32 %v1688_v8, %v1848_v9 }
 0x26a   : > { %v2367_v7 = vmax.f32 %v2239_v5, %v2303_v6 }
 0x26c   : > { %v2431_v10 = vmax.f32 %v2367_v7, 0.0 }
 0x26d   : > { %v2007_v11 = vpop.f32.mrf.mxu2  ;;  %v2167_v12 = vpop.f32.mrf.mxu3 }
 0x26e   : > { %v2495_v13 = vpack.c.bf16 %v2431_v10, %v2431_v10  ;;  %v2008_v15 = vadd.f32 %v3936_v23, %v2007_v11  ;;  %v2168_v16 = vadd.f32 %v3936_v23, %v2167_v12  ;;  %v1689_v17 = vpop.f32.mrf.mxu0  ;;  %v1849_v18 = vpop.f32.mrf.mxu1 }
 0x26f   : > { %v1690_v22 = vadd.f32 %v3936_v23, %v1689_v17  ;;  %v1850_v42 = vadd.f32 %v3936_v23, %v1849_v18 }
 0x270   : > { %2560 = vst.msk [vmem:[%s3661_s6 + $0xe4] sm:$0xf] %vm2502_vm3, %v2495_v13  ;;  %v2304_v19 = vmax.f32 %v2008_v15, %v2168_v16 }
 0x271   : > { %v2241_v32 = vmax.f32 %v1690_v22, %v1850_v42 }
 0x272   : > { %v2368_v20 = vmax.f32 %v2240_v14, %v2304_v19 }
 0x274   : > { %v2432_v21 = vmax.f32 %v2368_v20, 0.0 }
 0x275   : > { %v2009_v24 = vpop.f32.mrf.mxu2  ;;  %v2169_v25 = vpop.f32.mrf.mxu3 }
 0x276   : > { %v2496_v26 = vpack.c.bf16 %v2432_v21, %v2432_v21  ;;  %v2010_v28 = vadd.f32 %v3493_v27, %v2009_v24  ;;  %v2170_v29 = vadd.f32 %v3493_v27, %v2169_v25  ;;  %v1692_v30 = vpop.f32.mrf.mxu0  ;;  %v1852_v31 = vpop.f32.mrf.mxu1 }
 0x277   : > { %v1693_v35 = vadd.f32 %v3493_v27, %v1692_v30  ;;  %v1853_v36 = vadd.f32 %v3493_v27, %v1852_v31 }
 0x278   : > { %2561 = vst.msk [vmem:[%s3661_s6 + $0xe8] sm:$0xf] %vm2502_vm3, %v2496_v26  ;;  %v2305_v33 = vmax.f32 %v2010_v28, %v2170_v29 }
 0x279   : > { %v2242_v40 = vmax.f32 %v1693_v35, %v1853_v36 }
 0x27a   : > { %v2369_v34 = vmax.f32 %v2241_v32, %v2305_v33 }
 0x27c   : > { %v2433_v23 = vmax.f32 %v2369_v34, 0.0 }
 0x27d   : > { %v2012_v37 = vpop.f32.mrf.mxu2  ;;  %v2172_v38 = vpop.f32.mrf.mxu3 }
 0x27e   : > { %v2497_v39 = vpack.c.bf16 %v2433_v23, %v2433_v23  ;;  %v2013_v41 = vadd.f32 %v3493_v27, %v2012_v37  ;;  %v2173_v43 = vadd.f32 %v3493_v27, %v2172_v38  ;;  %v1694_v44 = vpop.f32.mrf.mxu0  ;;  %v1854_v45 = vpop.f32.mrf.mxu1 }
 0x27f   : > { %v1695_v49 = vadd.f32 %v3493_v27, %v1694_v44  ;;  %v1855_v50 = vadd.f32 %v3493_v27, %v1854_v45 }
 0x280   : > { %2562 = vst.msk [vmem:[%s3661_s6 + $0xec] sm:$0xf] %vm2502_vm3, %v2497_v39  ;;  %v2306_v46 = vmax.f32 %v2013_v41, %v2173_v43 }
 0x281   : > { %v2243_v58 = vmax.f32 %v1695_v49, %v1855_v50 }
 0x282   : > { %v2370_v47 = vmax.f32 %v2242_v40, %v2306_v46 }
 0x284   : > { %v2434_v48 = vmax.f32 %v2370_v47, 0.0 }
 0x285   : > { %v2014_v51 = vpop.f32.mrf.mxu2  ;;  %v2174_v52 = vpop.f32.mrf.mxu3 }
 0x286   : > { %v2498_v53 = vpack.c.bf16 %v2434_v48, %v2434_v48  ;;  %v2015_v54 = vadd.f32 %v3493_v27, %v2014_v51  ;;  %v2175_v55 = vadd.f32 %v3493_v27, %v2174_v52  ;;  %v1697_v56 = vpop.f32.mrf.mxu0  ;;  %v1857_v57 = vpop.f32.mrf.mxu1 }
 0x287   : > { %v1698_v61 = vadd.f32 %v3493_v27, %v1697_v56  ;;  %v1858_v62 = vadd.f32 %v3493_v27, %v1857_v57 }
 0x288   : > { %2563 = vst.msk [vmem:[%s3661_s6 + $0xf0] sm:$0xf] %vm2502_vm3, %v2498_v53  ;;  %v2307_v59 = vmax.f32 %v2015_v54, %v2175_v55 }
 0x289   : > { %v2244_v3 = vmax.f32 %v1698_v61, %v1858_v62 }
 0x28a   : > { %v2371_v60 = vmax.f32 %v2243_v58, %v2307_v59 }
 0x28c   : > { %v2435_v63 = vmax.f32 %v2371_v60, 0.0 }
 0x28d   : > { %v2017_v0 = vpop.f32.mrf.mxu2  ;;  %v2177_v1 = vpop.f32.mrf.mxu3 }
 0x28e   : > { %v2499_v2 = vpack.c.bf16 %v2435_v63, %v2435_v63  ;;  %v2018_v4 = vadd.f32 %v3493_v27, %v2017_v0  ;;  %v2178_v5 = vadd.f32 %v3493_v27, %v2177_v1  ;;  %v1699_v7 = vpop.f32.mrf.mxu0  ;;  %v1859_v8 = vpop.f32.mrf.mxu1 }
 0x28f   : > { %v1700_v11 = vadd.f32 %v3493_v27, %v1699_v7  ;;  %v1860_v12 = vadd.f32 %v3493_v27, %v1859_v8 }
 0x290   : > { %2564 = vst.msk [vmem:[%s3661_s6 + $0xf4] sm:$0xf] %vm2502_vm3, %v2499_v2  ;;  %v2308_v6 = vmax.f32 %v2018_v4, %v2178_v5 }
 0x291   : > { %v2245_v18 = vmax.f32 %v1700_v11, %v1860_v12 }
 0x292   : > { %v2372_v9 = vmax.f32 %v2244_v3, %v2308_v6 }
 0x294   : > { %v2436_v10 = vmax.f32 %v2372_v9, 0.0 }
 0x295   : > { %v2019_v13 = vpop.f32.mrf.mxu2  ;;  %v2179_v14 = vpop.f32.mrf.mxu3 }
 0x296   : > { %v2500_v15 = vpack.c.bf16 %v2436_v10, %v2436_v10  ;;  %v2020_v16 = vadd.f32 %v3493_v27, %v2019_v13  ;;  %v2180_v17 = vadd.f32 %v3493_v27, %v2179_v14 }
 0x298   : > { %2565 = vst.msk [vmem:[%s3661_s6 + $0xf8] sm:$0xf] %vm2502_vm3, %v2500_v15  ;;  %v2309_v19 = vmax.f32 %v2020_v16, %v2180_v17 }
 0x29a   : > { %v2373_v20 = vmax.f32 %v2245_v18, %v2309_v19 }
 0x29c   : > { %v2437_v21 = vmax.f32 %v2373_v20, 0.0 }
 0x29e   : > { %v2501_v22 = vpack.c.bf16 %v2437_v21, %v2437_v21 }
 0x2a0   : > { %2566 = vst.msk [vmem:[%s3661_s6 + $0xfc] sm:$0xf] %vm2502_vm3, %v2501_v22 }
 0x2a1 PF: > { %s13_s14 = sadd.s32 1, %s3516_s14   ;;  %s4228_s12 = smov %s3512_s13 }
 0x2a2   : > { %p10_p6 = scmp.ge.s32.totalorder %s13_s14, 6   ;;  %s4229_s13 = smov %s4231_s15 }
 0x2a4   :  { %12 = sbr.rel (!%p10_p6) target bundleno = 2 (0x2), region = 68 }

// kernel: cnn_forward.7
= control target key start
LH: loop header
LB: loop body
LE: loop exit
PB: predicated region body
PF: predicated region fallthrough
CT: control target
= control target key end

     0   :  { %s2387_s12 = smov 0   ;;  %s2389_s13 = smov 0   ;;  %s2945_s0 = inlined_call_operand.vmem [shape: bf16[512,576], index: 0, kind: input, shape index: {}]   ;;  %s2946_s1 = inlined_call_operand.vmem [shape: bf16[576,128], index: 1, kind: input, shape index: {}]   ;;  %s2947_s2 = inlined_call_operand.vmem [shape: f32[1,128], index: 2, kind: input, shape index: {}]   ;;  %s2948_s3 = inlined_call_operand.vmem [shape: bf16[128,128], index: 3, kind: output, shape index: {}]  }
   0x1   :  { %s2391_s14 = smov 0  }
   0x2 LB: > { %s25_s15 = sadd.s32 1, %s2361_s13  ;;  %p1667_p0 = scmp.ge.s32.totalorder %s2365_s14, 1  ;;  %s2365_s14 = sphi %s2391_s14, %s13_s14   ;;  %s2361_s13 = sphi %s2389_s13, %s2950_s13   ;;  %s2357_s12 = sphi %s2387_s12, %s2949_s12  }
   0x3   : > { %p27_p1 = scmp.ge.s32.totalorder %s25_s15, 2  ;;  %p170_p2 = scmp.lt.s32.totalorder %s2365_s14, 3 }
   0x5   : > { %s2952_s15 = smov (%p27_p1, %s25_s15), 0  ;;  %p171_p3 = pnand %p1667_p0, %p170_p2 }
   0x6   : > { %s1668_s22 = sshll.u32 (!%p171_p3), %s2357_s12, 5 }
   0x7   : > { %174 = sbr.rel (%p171_p3) target bundleno = 503 (0x1f7), region = 32  ;;  %p206_p4 = scmp.lt.s32.totalorder (!%p171_p3), %s1668_s22, 63 }
   0xc   : > { %v2241_v0 = vld [vmem:[%s2946_s1 + $0x38] sm:$0xff]  ;;  %v2240_v1 = vld [vmem:[%s2946_s1 + $0x30] sm:$0xff]  ;;  %v2239_v2 = vld [vmem:[%s2946_s1 + $0x28] sm:$0xff]  ;;  %s2954_s22 = smov (!%p206_p4, %s1668_s22), 63  ;;  %vm1017_vm0 = vcmask 523264  }
   0xd   : > { %2293 = vmatpush.bf16.msra.mxu1 %v2241_v0  ;;  %2294 = vmatpush.bf16.msra.mxu2 %v2241_v0  ;;  %v2238_v3 = vld [vmem:[%s2946_s1 + $0x20] sm:$0xff]  ;;  %v2237_v4 = vld [vmem:[%s2946_s1 + $0x18] sm:$0xff]  ;;  %v2236_v5 = vld [vmem:[%s2946_s1 + $0x10] sm:$0xff]  ;;  %s2317_s29 = smul.u32 20, %s2954_s22 }
   0xe   : > { %2295 = vmatpush.bf16.msra.mxu3 %v2241_v0  ;;  %1066 = vmatpush.bf16.msra.mxu0 %v2241_v0  ;;  %v2235_v6 = vld [vmem:[%s2946_s1 + $0x8] sm:$0xff]  ;;  %v2234_v7 = vld [vmem:[%s2946_s1] sm:$0xff]  ;;  %v2257_v16 = vld [vmem:[%s2946_s1 + $0xb8] sm:$0xff] }
   0xf   : > { %s2432_s7 = scalar_lea.vmem %s2945_s0, %s2317_s29  ;;  %v2265_v17 = vld [vmem:[%s2946_s1 + $0xf8] sm:$0xff]  ;;  %v2256_v24 = vld [vmem:[%s2946_s1 + $0xb0] sm:$0xff]  ;;  %v2255_v28 = vld [vmem:[%s2946_s1 + $0xa8] sm:$0xff] }
  0x10   : > { %v1754_v8 = vld [vmem:[%s2432_s7 + $0xa0] sm:$0xf]  ;;  %v2176_v9 = vld [vmem:[%s2432_s7 + $0xb0] sm:$0xf0]  ;;  %v2249_v22 = vld [vmem:[%s2946_s1 + $0x78] sm:$0xff] }
  0x11   : > { %2296 = vmatpush.bf16.msra.mxu1 %v2240_v1  ;;  %2297 = vmatpush.bf16.msra.mxu2 %v2240_v1  ;;  %v1834_v10 = vld [vmem:[%s2432_s7 + $0x140] sm:$0xf]  ;;  %v2196_v11 = vld [vmem:[%s2432_s7 + $0x150] sm:$0xf0]  ;;  %v1755_v18 = vor.u32 %v2176_v9, %v1754_v8  ;;  %v2269_v23 = vld [vmem:[%s2946_s1 + $0x118] sm:$0xff] }
  0x12   : > { %2298 = vmatpush.bf16.msra.mxu3 %v2240_v1  ;;  %1067 = vmatpush.bf16.msra.mxu0 %v2240_v1  ;;  %v1914_v12 = vld [vmem:[%s2432_s7 + $0x1e0] sm:$0xf]  ;;  %v2216_v13 = vld [vmem:[%s2432_s7 + $0x1f0] sm:$0xf0]  ;;  %v1835_v19 = vor.u32 %v2196_v11, %v1834_v10  ;;  %v2263_v29 = vld [vmem:[%s2946_s1 + $0xe8] sm:$0xff] }
  0x13   : > { %v1674_v14 = vld [vmem:[%s2432_s7] sm:$0xf]  ;;  %v2156_v15 = vld [vmem:[%s2432_s7 + $0x10] sm:$0xf0]  ;;  %v1915_v20 = vor.u32 %v2216_v13, %v1914_v12  ;;  %v2247_v30 = vld [vmem:[%s2946_s1 + $0x68] sm:$0xff] }
  0x14   : > { %v1675_v21 = vor.u32 %v2156_v15, %v1674_v14  ;;  %v2264_v25 = vld [vmem:[%s2946_s1 + $0xf0] sm:$0xff]  ;;  %v2267_v31 = vld [vmem:[%s2946_s1 + $0x108] sm:$0xff]  ;;  %v2254_v32 = vld [vmem:[%s2946_s1 + $0xa0] sm:$0xff] }
  0x15   : > { %2299 = vmatpush.bf16.msra.mxu1 %v2239_v2  ;;  %2300 = vmatpush.bf16.msra.mxu2 %v2239_v2  ;;  %v2248_v26 = vld [vmem:[%s2946_s1 + $0x70] sm:$0xff]  ;;  %v2262_v33 = vld [vmem:[%s2946_s1 + $0xe0] sm:$0xff]  ;;  %v1774_v34 = vld [vmem:[%s2432_s7 + $0xc8] sm:$0xf] }
  0x16   : > { %2301 = vmatpush.bf16.msra.mxu3 %v2239_v2  ;;  %1068 = vmatpush.bf16.msra.mxu0 %v2239_v2  ;;  %v2268_v27 = vld [vmem:[%s2946_s1 + $0x110] sm:$0xff]  ;;  %v2181_v35 = vld [vmem:[%s2432_s7 + $0xd8] sm:$0xf0]  ;;  %v1854_v36 = vld [vmem:[%s2432_s7 + $0x168] sm:$0xf] }
  0x17   : > { %v2201_v37 = vld [vmem:[%s2432_s7 + $0x178] sm:$0xf0]  ;;  %v1934_v38 = vld [vmem:[%s2432_s7 + $0x208] sm:$0xf]  ;;  %v2246_v42 = vld [vmem:[%s2946_s1 + $0x60] sm:$0xff]  ;;  %v1775_v45 = vor.u32 %v2181_v35, %v1774_v34 }
  0x18   : > { %v2221_v39 = vld [vmem:[%s2432_s7 + $0x218] sm:$0xf0]  ;;  %v1694_v40 = vld [vmem:[%s2432_s7 + $0x28] sm:$0xf]  ;;  %v1855_v46 = vor.u32 %v2201_v37, %v1854_v36  ;;  %v2252_v50 = vld [vmem:[%s2946_s1 + $0x90] sm:$0xff] }
  0x19   : > { %2302 = vmatpush.bf16.msra.mxu1 %v2238_v3  ;;  %2303 = vmatpush.bf16.msra.mxu2 %v2238_v3  ;;  %v2161_v41 = vld [vmem:[%s2432_s7 + $0x38] sm:$0xf0]  ;;  %v1935_v47 = vor.u32 %v2221_v39, %v1934_v38  ;;  %v2260_v51 = vld [vmem:[%s2946_s1 + $0xd0] sm:$0xff]  ;;  %v2266_v53 = vld [vmem:[%s2946_s1 + $0x100] sm:$0xff] }
  0x1a   : > { %2304 = vmatpush.bf16.msra.mxu3 %v2238_v3  ;;  %1069 = vmatpush.bf16.msra.mxu0 %v2238_v3  ;;  %v2253_v43 = vld [vmem:[%s2946_s1 + $0x98] sm:$0xff]  ;;  %v1695_v48 = vor.u32 %v2161_v41, %v1694_v40  ;;  %v2244_v52 = vld [vmem:[%s2946_s1 + $0x50] sm:$0xff]  ;;  %v2251_v54 = vld [vmem:[%s2946_s1 + $0x88] sm:$0xff] }
  0x1b   : > { %v2261_v44 = vld [vmem:[%s2946_s1 + $0xd8] sm:$0xff]  ;;  %v2259_v55 = vld [vmem:[%s2946_s1 + $0xc8] sm:$0xff]  ;;  %v2250_v57 = vld [vmem:[%s2946_s1 + $0x80] sm:$0xff] }
  0x1c   : > { %v2245_v49 = vld [vmem:[%s2946_s1 + $0x58] sm:$0xff]  ;;  %v2243_v56 = vld [vmem:[%s2946_s1 + $0x48] sm:$0xff]  ;;  %v2258_v58 = vld [vmem:[%s2946_s1 + $0xc0] sm:$0xff] }
  0x1d   : > { %2305 = vmatpush.bf16.msra.mxu1 %v2237_v4  ;;  %2306 = vmatpush.bf16.msra.mxu2 %v2237_v4  ;;  %v1794_v59 = vld [vmem:[%s2432_s7 + $0xf0] sm:$0xf]  ;;  %v2186_v60 = vld [vmem:[%s2432_s7 + $0x100] sm:$0xf0]  ;;  %v1814_v8 = vld [vmem:[%s2432_s7 + $0x118] sm:$0xf] }
  0x1e   : > { %2307 = vmatpush.bf16.msra.mxu3 %v2237_v4  ;;  %1070 = vmatpush.bf16.msra.mxu0 %v2237_v4  ;;  %v1874_v61 = vld [vmem:[%s2432_s7 + $0x190] sm:$0xf]  ;;  %v2206_v62 = vld [vmem:[%s2432_s7 + $0x1a0] sm:$0xf0]  ;;  %v1795_v4 = vor.u32 %v2186_v60, %v1794_v59  ;;  %v2191_v9 = vld [vmem:[%s2432_s7 + $0x128] sm:$0xf0] }
  0x1f   : > { %v1954_v63 = vld [vmem:[%s2432_s7 + $0x230] sm:$0xf]  ;;  %v2226_v0 = vld [vmem:[%s2432_s7 + $0x240] sm:$0xf0]  ;;  %v1894_v10 = vld [vmem:[%s2432_s7 + $0x1b8] sm:$0xf] }
  0x20   : > { %v1714_v1 = vld [vmem:[%s2432_s7 + $0x50] sm:$0xf]  ;;  %v2166_v2 = vld [vmem:[%s2432_s7 + $0x60] sm:$0xf0]  ;;  %v2211_v11 = vld [vmem:[%s2432_s7 + $0x1c8] sm:$0xf0] }
  0x21   : > { %2308 = vmatpush.bf16.msra.mxu1 %v2236_v5  ;;  %2309 = vmatpush.bf16.msra.mxu2 %v2236_v5  ;;  %v2242_v3 = vld [vmem:[%s2946_s1 + $0x40] sm:$0xff]  ;;  %v1974_v12 = vld [vmem:[%s2432_s7 + $0x258] sm:$0xf]  ;;  %v2231_v13 = vld [vmem:[%s2432_s7 + $0x268] sm:$0xf0] }
  0x22   : > { %2310 = vmatpush.bf16.msra.mxu3 %v2236_v5  ;;  %1071 = vmatpush.bf16.msra.mxu0 %v2236_v5  ;;  %v1875_v5 = vor.u32 %v2206_v62, %v1874_v61  ;;  %v1734_v14 = vld [vmem:[%s2432_s7 + $0x78] sm:$0xf]  ;;  %v2171_v15 = vld [vmem:[%s2432_s7 + $0x88] sm:$0xf0]  ;;  %v1702_v34 = vld [vmem:[%s2432_s7 + $0x30] sm:$0xf] }
  0x23   : > { %v2162_v35 = vld [vmem:[%s2432_s7 + $0x40] sm:$0xf0]  ;;  %v2160_v36 = vld [vmem:[%s2432_s7 + $0x34] sm:$0xf]  ;;  %v1704_v37 = vld [vmem:[%s2432_s7 + $0x44] sm:$0xf0] }
  0x24   : > { %v1710_v38 = vld [vmem:[%s2432_s7 + $0x38] sm:$0xf]  ;;  %v2163_v39 = vld [vmem:[%s2432_s7 + $0x48] sm:$0xf0]  ;;  %v1703_v41 = vor.u32 %v2162_v35, %v1702_v34  ;;  %v2172_v59 = vld [vmem:[%s2432_s7 + $0x90] sm:$0xf0] }
  0x25   : > { %2311 = vmatpush.bf16.msra.mxu1 %v2235_v6  ;;  %2312 = vmatpush.bf16.msra.mxu2 %v2235_v6  ;;  %v2170_v60 = vld [vmem:[%s2432_s7 + $0x84] sm:$0xf]  ;;  %v1744_v61 = vld [vmem:[%s2432_s7 + $0x94] sm:$0xf0]  ;;  %v1750_v62 = vld [vmem:[%s2432_s7 + $0x88] sm:$0xf] }
  0x26   : > { %2313 = vmatpush.bf16.msra.mxu3 %v2235_v6  ;;  %1072 = vmatpush.bf16.msra.mxu0 %v2235_v6  ;;  %v1955_v6 = vor.u32 %v2226_v0, %v1954_v63  ;;  %v2173_v63 = vld [vmem:[%s2432_s7 + $0x98] sm:$0xf0] }
  0x29   : > { %2314 = vmatpush.bf16.msra.mxu1 %v2234_v7  ;;  %2315 = vmatpush.bf16.msra.mxu2 %v2234_v7 }
  0x2a   : > { %2316 = vmatpush.bf16.msra.mxu3 %v2234_v7  ;;  %1073 = vmatpush.bf16.msra.mxu0 %v2234_v7  ;;  %v1715_v7 = vor.u32 %v2166_v2, %v1714_v1  ;;  %v1747_v2 = vor.u32 %v2170_v60, %v1744_v61 }
  0x2c   : > { %1094 = vmatmul.bf16.vlgmr.msra.gmra.mxu1 %v1755_v18  ;;  %1114 = vmatmul.bf16.vlgmr.msra.gmra.mxu2 %v1835_v19  ;;  %v1975_v18 = vor.u32 %v2231_v13, %v1974_v12  ;;  %v1735_v19 = vor.u32 %v2171_v15, %v1734_v14 }
  0x2d   : > { %1244 = vmatpush.bf16.msrb.mxu2 %v2257_v16  ;;  %1134 = vmatmul.bf16.vlgmr.msra.gmra.mxu3 %v1915_v20  ;;  %v1815_v16 = vor.u32 %v2191_v9, %v1814_v8  ;;  %v2154_v20 = vld [vmem:[%s2432_s7 + $0x4] sm:$0xf]  ;;  %v2175_v8 = vld [vmem:[%s2432_s7 + $0xac] sm:$0xf]  ;;  %v1764_v9 = vld [vmem:[%s2432_s7 + $0xbc] sm:$0xf0] }
  0x2e   : > { %1333 = vmatpush.bf16.msrb.mxu3 %v2265_v17  ;;  %1074 = vmatmul.bf16.vlgmr.msra.gmra.mxu0 %v1675_v21  ;;  %v1895_v17 = vor.u32 %v2211_v11, %v1894_v10  ;;  %v1676_v21 = vld [vmem:[%s2432_s7 + $0x14] sm:$0xf0]  ;;  %v1770_v10 = vld [vmem:[%s2432_s7 + $0xb0] sm:$0xf]  ;;  %v2178_v11 = vld [vmem:[%s2432_s7 + $0xc0] sm:$0xf0]  ;;  %v1767_v15 = vor.u32 %v2175_v8, %v1764_v9 }
  0x2f   : > { %1155 = vmatpush.bf16.msrb.mxu1 %v2249_v22  ;;  %1426 = vmatpush.bf16.msrb.mxu0 %v2269_v23  ;;  %v1682_v22 = vld [vmem:[%s2432_s7 + $0x8] sm:$0xf]  ;;  %v2157_v23 = vld [vmem:[%s2432_s7 + $0x18] sm:$0xf0] }
  0x31   : > { %1245 = vmatpush.bf16.msrb.mxu2 %v2256_v24  ;;  %v2155_v24 = vld [vmem:[%s2432_s7 + $0xc] sm:$0xf] }
  0x32   : > { %1334 = vmatpush.bf16.msrb.mxu3 %v2264_v25  ;;  %v1684_v25 = vld [vmem:[%s2432_s7 + $0x1c] sm:$0xf0] }
  0x33   : > { %1156 = vmatpush.bf16.msrb.mxu1 %v2248_v26  ;;  %1427 = vmatpush.bf16.msrb.mxu0 %v2268_v27  ;;  %v1690_v26 = vld [vmem:[%s2432_s7 + $0x10] sm:$0xf]  ;;  %v2158_v27 = vld [vmem:[%s2432_s7 + $0x20] sm:$0xf0] }
  0x35   : > { %1246 = vmatpush.bf16.msrb.mxu2 %v2255_v28  ;;  %v1679_v28 = vor.u32 %v2154_v20, %v1676_v21 }
  0x36   : > { %1335 = vmatpush.bf16.msrb.mxu3 %v2263_v29  ;;  %v1683_v29 = vor.u32 %v2157_v23, %v1682_v22  ;;  %v2179_v22 = vld [vmem:[%s2432_s7 + $0xcc] sm:$0xf]  ;;  %v1776_v23 = vld [vmem:[%s2432_s7 + $0xdc] sm:$0xf0] }
  0x37   : > { %1157 = vmatpush.bf16.msrb.mxu1 %v2247_v30  ;;  %1428 = vmatpush.bf16.msrb.mxu0 %v2267_v31  ;;  %v1687_v30 = vor.u32 %v2155_v24, %v1684_v25  ;;  %v1691_v31 = vor.u32 %v2158_v27, %v1690_v26  ;;  %v1782_v24 = vld [vmem:[%s2432_s7 + $0xd0] sm:$0xf]  ;;  %v2182_v25 = vld [vmem:[%s2432_s7 + $0xe0] sm:$0xf0]  ;;  %v2180_v26 = vld [vmem:[%s2432_s7 + $0xd4] sm:$0xf] }
  0x38   : > { %v1784_v27 = vld [vmem:[%s2432_s7 + $0xe4] sm:$0xf0] }
  0x39   : > { %1247 = vmatpush.bf16.msrb.mxu2 %v2254_v32  ;;  %v2159_v32 = vld [vmem:[%s2432_s7 + $0x2c] sm:$0xf]  ;;  %v1787_v35 = vor.u32 %v2180_v26, %v1784_v27  ;;  %v1836_v26 = vld [vmem:[%s2432_s7 + $0x154] sm:$0xf0]  ;;  %v1842_v27 = vld [vmem:[%s2432_s7 + $0x148] sm:$0xf] }
  0x3a   : > { %1336 = vmatpush.bf16.msrb.mxu3 %v2262_v33  ;;  %v1696_v33 = vld [vmem:[%s2432_s7 + $0x3c] sm:$0xf0] }
  0x3b   : > { %1158 = vmatpush.bf16.msrb.mxu1 %v2246_v42  ;;  %1429 = vmatpush.bf16.msrb.mxu0 %v2266_v53  ;;  %v1699_v40 = vor.u32 %v2159_v32, %v1696_v33  ;;  %v1707_v42 = vor.u32 %v2160_v36, %v1704_v37  ;;  %v1779_v32 = vor.u32 %v2179_v22, %v1776_v23 }
  0x3c   : > { %1099 = vmatmul.bf16.gmra.mxu1 %v1775_v45  ;;  %1119 = vmatmul.bf16.gmra.mxu2 %v1855_v46  ;;  %v1716_v45 = vld [vmem:[%s2432_s7 + $0x64] sm:$0xf0]  ;;  %v1722_v46 = vld [vmem:[%s2432_s7 + $0x58] sm:$0xf]  ;;  %v1783_v33 = vor.u32 %v2182_v25, %v1782_v24  ;;  %v2688_v24 = vld [vmem:[%s2947_s2] ss:$0 sm:$0xff] }
  0x3d   : > { %1248 = vmatpush.bf16.msrb.mxu2 %v2253_v43  ;;  %1139 = vmatmul.bf16.gmra.mxu3 %v1935_v47  ;;  %v1711_v43 = vor.u32 %v2163_v39, %v1710_v38  ;;  %v2167_v47 = vld [vmem:[%s2432_s7 + $0x68] sm:$0xf0]  ;;  %v2194_v25 = vld [vmem:[%s2432_s7 + $0x144] sm:$0xf] }
  0x3e   : > { %1337 = vmatpush.bf16.msrb.mxu3 %v2261_v44  ;;  %1079 = vmatmul.bf16.gmra.mxu0 %v1695_v48  ;;  %v2164_v44 = vld [vmem:[%s2432_s7 + $0x54] sm:$0xf]  ;;  %v2165_v48 = vld [vmem:[%s2432_s7 + $0x5c] sm:$0xf]  ;;  %v1723_v53 = vor.u32 %v2167_v47, %v1722_v46  ;;  %v1804_v47 = vld [vmem:[%s2432_s7 + $0x10c] sm:$0xf0] }
  0x3f   : > { %1159 = vmatpush.bf16.msrb.mxu1 %v2245_v49  ;;  %v1724_v49 = vld [vmem:[%s2432_s7 + $0x6c] sm:$0xf0]  ;;  %v2185_v46 = vld [vmem:[%s2432_s7 + $0xfc] sm:$0xf] }
  0x41   : > { %1249 = vmatpush.bf16.msrb.mxu2 %v2252_v50  ;;  %v1730_v50 = vld [vmem:[%s2432_s7 + $0x60] sm:$0xf] }
  0x42   : > { %1338 = vmatpush.bf16.msrb.mxu3 %v2260_v51  ;;  %v2168_v51 = vld [vmem:[%s2432_s7 + $0x70] sm:$0xf0] }
  0x43   : > { %1160 = vmatpush.bf16.msrb.mxu1 %v2244_v52  ;;  %v1719_v52 = vor.u32 %v2164_v44, %v1716_v45  ;;  %v1802_v44 = vld [vmem:[%s2432_s7 + $0xf8] sm:$0xf]  ;;  %v2187_v45 = vld [vmem:[%s2432_s7 + $0x108] sm:$0xf0] }
  0x45   : > { %1250 = vmatpush.bf16.msrb.mxu2 %v2251_v54  ;;  %v1727_v54 = vor.u32 %v2165_v48, %v1724_v49  ;;  %v1810_v48 = vld [vmem:[%s2432_s7 + $0x100] sm:$0xf]  ;;  %v2188_v49 = vld [vmem:[%s2432_s7 + $0x110] sm:$0xf0] }
  0x46   : > { %1339 = vmatpush.bf16.msrb.mxu3 %v2259_v55  ;;  %v1731_v55 = vor.u32 %v2168_v51, %v1730_v50 }
  0x47   : > { %1161 = vmatpush.bf16.msrb.mxu1 %v2243_v56  ;;  %v2169_v56 = vld [vmem:[%s2432_s7 + $0x7c] sm:$0xf] }
  0x49   : > { %1251 = vmatpush.bf16.msrb.mxu2 %v2250_v57  ;;  %v1736_v57 = vld [vmem:[%s2432_s7 + $0x8c] sm:$0xf0] }
  0x4a   : > { %1340 = vmatpush.bf16.msrb.mxu3 %v2258_v58  ;;  %v1742_v58 = vld [vmem:[%s2432_s7 + $0x80] sm:$0xf]  ;;  %v1739_v0 = vor.u32 %v2169_v56, %v1736_v57  ;;  %v1811_v56 = vor.u32 %v2188_v49, %v1810_v48 }
  0x4b   : > { %1162 = vmatpush.bf16.msrb.mxu1 %v2242_v3  ;;  %v1743_v1 = vor.u32 %v2172_v59, %v1742_v58  ;;  %v1751_v3 = vor.u32 %v2173_v63, %v1750_v62  ;;  %v2189_v62 = vld [vmem:[%s2432_s7 + $0x11c] sm:$0xf]  ;;  %v1816_v63 = vld [vmem:[%s2432_s7 + $0x12c] sm:$0xf0] }
  0x4c   : > { %1104 = vmatmul.bf16.gmra.mxu1 %v1795_v4  ;;  %1124 = vmatmul.bf16.gmra.mxu2 %v1875_v5  ;;  %v2174_v4 = vld [vmem:[%s2432_s7 + $0xa4] sm:$0xf]  ;;  %v1756_v5 = vld [vmem:[%s2432_s7 + $0xb4] sm:$0xf0]  ;;  %v1819_v8 = vor.u32 %v2189_v62, %v1816_v63 }
  0x4d   : > { %1144 = vmatmul.bf16.gmra.mxu3 %v1955_v6  ;;  %v1762_v6 = vld [vmem:[%s2432_s7 + $0xa8] sm:$0xf]  ;;  %v1759_v12 = vor.u32 %v2174_v4, %v1756_v5  ;;  %v2193_v5 = vld [vmem:[%s2432_s7 + $0x138] sm:$0xf0] }
  0x4e   : > { %1084 = vmatmul.bf16.gmra.mxu0 %v1715_v7  ;;  %v2177_v7 = vld [vmem:[%s2432_s7 + $0xb8] sm:$0xf0]  ;;  %v1830_v4 = vld [vmem:[%s2432_s7 + $0x128] sm:$0xf] }
  0x4f   : > { %v1763_v13 = vor.u32 %v2177_v7, %v1762_v6 }
  0x5c   : > { %1109 = vmatmul.bf16.gmra.mxu1 %v1815_v16  ;;  %1129 = vmatmul.bf16.gmra.mxu2 %v1895_v17  ;;  %v1771_v16 = vor.u32 %v2178_v11, %v1770_v10 }
  0x5d   : > { %1149 = vmatmul.bf16.gmra.mxu3 %v1975_v18 }
  0x5e   : > { %1089 = vmatmul.bf16.gmra.mxu0 %v1735_v19 }
  0x6c   : > { %1163 = vmatmul.bf16.vlgmr.msrb.gmra.mxu1 %v1679_v28  ;;  %1252 = vmatmul.bf16.vlgmr.msrb.gmra.mxu2 %v1683_v29  ;;  %v1790_v28 = vld [vmem:[%s2432_s7 + $0xd8] sm:$0xf]  ;;  %v2183_v29 = vld [vmem:[%s2432_s7 + $0xe8] sm:$0xf0] }
  0x6d   : > { %1341 = vmatmul.bf16.vlgmr.msrb.gmra.mxu3 %v1687_v30  ;;  %v1791_v36 = vor.u32 %v2183_v29, %v1790_v28  ;;  %v2197_v28 = vld [vmem:[%s2432_s7 + $0x158] sm:$0xf0]  ;;  %v2195_v29 = vld [vmem:[%s2432_s7 + $0x14c] sm:$0xf] }
  0x6e   : > { %2136 = vmatmul.msk.bf16.vlgmr.msrb.gmra.mxu0 %vm1017_vm0, %v1691_v31 }
  0x7c   : > { %1168 = vmatmul.bf16.gmra.mxu1 %v1699_v40  ;;  %1257 = vmatmul.bf16.gmra.mxu2 %v1703_v41 }
  0x7d   : > { %1346 = vmatmul.bf16.gmra.mxu3 %v1707_v42  ;;  %v2184_v42 = vld [vmem:[%s2432_s7 + $0xf4] sm:$0xf] }
  0x7e   : > { %2137 = vmatmul.msk.bf16.gmra.mxu0 %vm1017_vm0, %v1711_v43  ;;  %v1796_v43 = vld [vmem:[%s2432_s7 + $0x104] sm:$0xf0] }
  0x8c   : > { %1173 = vmatmul.bf16.gmra.mxu1 %v1719_v52  ;;  %1262 = vmatmul.bf16.gmra.mxu2 %v1723_v53  ;;  %v1799_v52 = vor.u32 %v2184_v42, %v1796_v43  ;;  %v1803_v53 = vor.u32 %v2187_v45, %v1802_v44  ;;  %v1839_v44 = vor.u32 %v2194_v25, %v1836_v26  ;;  %v2203_v25 = vld [vmem:[%s2432_s7 + $0x188] sm:$0xf0] }
  0x8d   : > { %1351 = vmatmul.bf16.gmra.mxu3 %v1727_v54  ;;  %v1843_v45 = vor.u32 %v2197_v28, %v1842_v27 }
  0x8e   : > { %2138 = vmatmul.msk.bf16.gmra.mxu0 %vm1017_vm0, %v1731_v55  ;;  %v1807_v55 = vor.u32 %v2185_v46, %v1804_v47 }
  0x9c   : > { %1178 = vmatmul.bf16.gmra.mxu1 %v1739_v0  ;;  %1267 = vmatmul.bf16.gmra.mxu2 %v1743_v1  ;;  %v1822_v0 = vld [vmem:[%s2432_s7 + $0x120] sm:$0xf]  ;;  %v2192_v1 = vld [vmem:[%s2432_s7 + $0x130] sm:$0xf0] }
  0x9d   : > { %1356 = vmatmul.bf16.gmra.mxu3 %v1747_v2  ;;  %v2190_v2 = vld [vmem:[%s2432_s7 + $0x124] sm:$0xf]  ;;  %v1823_v9 = vor.u32 %v2192_v1, %v1822_v0 }
  0x9e   : > { %2139 = vmatmul.msk.bf16.gmra.mxu0 %vm1017_vm0, %v1751_v3  ;;  %v1824_v3 = vld [vmem:[%s2432_s7 + $0x134] sm:$0xf0] }
  0x9f   : > { %v1827_v11 = vor.u32 %v2190_v2, %v1824_v3  ;;  %v2199_v3 = vld [vmem:[%s2432_s7 + $0x16c] sm:$0xf] }
  0xa9   : > { %v2597_v14 = vpop.f32.mrf.mxu1 }
  0xab   : > { %v2599_v17 = vpop.f32.mrf.mxu0 }
  0xac   : > { %1183 = vmatmul.bf16.gmra.mxu1 %v1759_v12  ;;  %1272 = vmatmul.bf16.gmra.mxu2 %v1763_v13  ;;  %v1831_v12 = vor.u32 %v2193_v5, %v1830_v4  ;;  %v1076_v42 = vadd.f32 %v2688_v24, %v2599_v17  ;;  %v1856_v4 = vld [vmem:[%s2432_s7 + $0x17c] sm:$0xf0]  ;;  %v1862_v5 = vld [vmem:[%s2432_s7 + $0x170] sm:$0xf] }
  0xad   : > { %1361 = vmatmul.bf16.gmra.mxu3 %v1767_v15 }
  0xae   : > { %2140 = vmatmul.msk.bf16.gmra.mxu0 %vm1017_vm0, %v1771_v16 }
  0xaf   : > { %v2602_v18 = vpop.f32.mrf.mxu2 }
  0xb0   : > { %v2604_v19 = vpop.f32.mrf.mxu3 }
  0xb1   : > { %v2606_v20 = vpop.f32.mrf.mxu1 }
  0xb3   : > { %v2608_v21 = vpop.f32.mrf.mxu0 }
  0xb7   : > { %v2618_v30 = vpop.f32.mrf.mxu2 }
  0xb8   : > { %v2620_v31 = vpop.f32.mrf.mxu3 }
  0xb9   : > { %v2622_v34 = vpop.f32.mrf.mxu1 }
  0xbb   : > { %v2624_v37 = vpop.f32.mrf.mxu0 }
  0xbc   : > { %1188 = vmatmul.bf16.gmra.mxu1 %v1779_v32  ;;  %1277 = vmatmul.bf16.gmra.mxu2 %v1783_v33  ;;  %v1844_v32 = vld [vmem:[%s2432_s7 + $0x15c] sm:$0xf0]  ;;  %v1850_v33 = vld [vmem:[%s2432_s7 + $0x150] sm:$0xf] }
  0xbd   : > { %1366 = vmatmul.bf16.gmra.mxu3 %v1787_v35  ;;  %v2198_v35 = vld [vmem:[%s2432_s7 + $0x160] sm:$0xf0]  ;;  %v1847_v47 = vor.u32 %v2195_v29, %v1844_v32  ;;  %v1859_v29 = vor.u32 %v2199_v3, %v1856_v4  ;;  %v2207_v3 = vld [vmem:[%s2432_s7 + $0x1a8] sm:$0xf0]  ;;  %v2205_v4 = vld [vmem:[%s2432_s7 + $0x19c] sm:$0xf] }
  0xbe   : > { %2141 = vmatmul.msk.bf16.gmra.mxu0 %vm1017_vm0, %v1791_v36  ;;  %v1851_v48 = vor.u32 %v2198_v35, %v1850_v33 }
  0xbf   : > { %v2627_v38 = vpop.f32.mrf.mxu2 }
  0xc0   : > { %v2629_v39 = vpop.f32.mrf.mxu3 }
  0xc1   : > { %v2631_v40 = vpop.f32.mrf.mxu1 }
  0xc3   : > { %v2633_v41 = vpop.f32.mrf.mxu0 }
  0xc7   : > { %v2643_v50 = vpop.f32.mrf.mxu2 }
  0xc8   : > { %v2645_v51 = vpop.f32.mrf.mxu3 }
  0xc9   : > { %v2647_v54 = vpop.f32.mrf.mxu1 }
  0xcb   : > { %v2649_v57 = vpop.f32.mrf.mxu0 }
  0xcc   : > { %1193 = vmatmul.bf16.gmra.mxu1 %v1799_v52  ;;  %1282 = vmatmul.bf16.gmra.mxu2 %v1803_v53  ;;  %v1078_v53 = vadd.f32 %v2688_v24, %v2608_v21  ;;  %v1081_v21 = vadd.f32 %v2688_v24, %v2624_v37 }
  0xcd   : > { %1371 = vmatmul.bf16.gmra.mxu3 %v1807_v55 }
  0xce   : > { %2142 = vmatmul.msk.bf16.gmra.mxu0 %vm1017_vm0, %v1811_v56 }
  0xcf   : > { %v2652_v58 = vpop.f32.mrf.mxu2 }
  0xd0   : > { %v2654_v59 = vpop.f32.mrf.mxu3 }
  0xd1   : > { %v2656_v60 = vpop.f32.mrf.mxu1 }
  0xd3   : > { %v2658_v61 = vpop.f32.mrf.mxu0 }
  0xd7   : > { %v2668_v6 = vpop.f32.mrf.mxu2 }
  0xd8   : > { %v2670_v7 = vpop.f32.mrf.mxu3 }
  0xd9   : > { %v2672_v10 = vpop.f32.mrf.mxu1 }
  0xdb   : > { %v2674_v13 = vpop.f32.mrf.mxu0 }
  0xdc   : > { %1198 = vmatmul.bf16.gmra.mxu1 %v1819_v8  ;;  %1287 = vmatmul.bf16.gmra.mxu2 %v1823_v9  ;;  %v2202_v8 = vld [vmem:[%s2432_s7 + $0x180] sm:$0xf0]  ;;  %v2200_v9 = vld [vmem:[%s2432_s7 + $0x174] sm:$0xf] }
  0xdd   : > { %1376 = vmatmul.bf16.gmra.mxu3 %v1827_v11  ;;  %v1864_v11 = vld [vmem:[%s2432_s7 + $0x184] sm:$0xf0]  ;;  %v1863_v32 = vor.u32 %v2202_v8, %v1862_v5  ;;  %v1884_v5 = vld [vmem:[%s2432_s7 + $0x1ac] sm:$0xf0]  ;;  %v1890_v8 = vld [vmem:[%s2432_s7 + $0x1a0] sm:$0xf] }
  0xde   : > { %2143 = vmatmul.msk.bf16.gmra.mxu0 %vm1017_vm0, %v1831_v12  ;;  %v1870_v12 = vld [vmem:[%s2432_s7 + $0x178] sm:$0xf]  ;;  %v1867_v35 = vor.u32 %v2200_v9, %v1864_v11  ;;  %v2208_v9 = vld [vmem:[%s2432_s7 + $0x1b0] sm:$0xf0] }
  0xdf   : > { %v2677_v15 = vpop.f32.mrf.mxu2 }
  0xe0   : > { %v2679_v16 = vpop.f32.mrf.mxu3 }
  0xe1   : > { %v2681_v22 = vpop.f32.mrf.mxu1 }
  0xe3   : > { %v2683_v23 = vpop.f32.mrf.mxu0 }
  0xe7   : > { %v2698_v36 = vpop.f32.mrf.mxu2 }
  0xe8   : > { %v2702_v43 = vpop.f32.mrf.mxu3 }
  0xe9   : > { %v1164_v46 = vpop.f32.mrf.mxu1 }
  0xea   : > { %v1165_v49 = vadd.f32 %v1164_v46, %v1076_v42  ;;  %v1871_v42 = vor.u32 %v2203_v25, %v1870_v12 }
  0xeb   : > { %v1431_v52 = vpop.f32.mrf.mxu0 }
  0xec   : > { %1203 = vmatmul.bf16.gmra.mxu1 %v1839_v44  ;;  %1292 = vmatmul.bf16.gmra.mxu2 %v1843_v45 }
  0xed   : > { %1381 = vmatmul.bf16.gmra.mxu3 %v1847_v47 }
  0xee   : > { %2144 = vmatmul.msk.bf16.gmra.mxu0 %vm1017_vm0, %v1851_v48  ;;  %v1083_v48 = vadd.f32 %v2688_v24, %v2633_v41  ;;  %v1086_v41 = vadd.f32 %v2688_v24, %v2649_v57 }
  0xef   : > { %v1253_v17 = vpop.f32.mrf.mxu2 }
  0xf0   : > { %v1254_v55 = vadd.f32 %v1253_v17, %v1165_v49  ;;  %v1342_v56 = vpop.f32.mrf.mxu3 }
  0xf1   : > { %v1166_v62 = vpop.f32.mrf.mxu1 }
  0xf2   : > { %v1343_v63 = vadd.f32 %v1342_v56, %v1254_v55  ;;  %v1167_v0 = vadd.f32 %v1166_v62, %v1078_v53 }
  0xf3   : > { %v1433_v1 = vpop.f32.mrf.mxu0 }
  0xf4   : > { %v2707_v2 = vadd.f32 %v1431_v52, %v1343_v63  ;;  %v2204_v63 = vld [vmem:[%s2432_s7 + $0x194] sm:$0xf] }
  0xf7   : > { %v1255_v26 = vpop.f32.mrf.mxu2 }
  0xf8   : > { %v1256_v27 = vadd.f32 %v1255_v26, %v1167_v0  ;;  %v1344_v28 = vpop.f32.mrf.mxu3  ;;  %v1876_v0 = vld [vmem:[%s2432_s7 + $0x1a4] sm:$0xf0] }
  0xf9   : > { %v1169_v33 = vpop.f32.mrf.mxu1  ;;  %v1879_v26 = vor.u32 %v2204_v63, %v1876_v0  ;;  %v2212_v63 = vld [vmem:[%s2432_s7 + $0x1d0] sm:$0xf0]  ;;  %v2210_v0 = vld [vmem:[%s2432_s7 + $0x1c4] sm:$0xf] }
  0xfa   : > { %v1345_v44 = vadd.f32 %v1344_v28, %v1256_v27  ;;  %v1170_v45 = vadd.f32 %v1169_v33, %v1081_v21  ;;  %v1887_v28 = vor.u32 %v2205_v4, %v1884_v5  ;;  %v2213_v4 = vld [vmem:[%s2432_s7 + $0x1d8] sm:$0xf0] }
  0xfb   : > { %v1436_v46 = vpop.f32.mrf.mxu0 }
  0xfc   : > { %v2719_v47 = vadd.f32 %v1433_v1, %v1345_v44  ;;  %1208 = vmatmul.bf16.gmra.mxu1 %v1859_v29  ;;  %1297 = vmatmul.bf16.gmra.mxu2 %v1863_v32  ;;  %v1882_v1 = vld [vmem:[%s2432_s7 + $0x198] sm:$0xf]  ;;  %v1891_v29 = vor.u32 %v2208_v9, %v1890_v8  ;;  %v1088_v44 = vadd.f32 %v2688_v24, %v2658_v61 }
  0xfd   : > { %1386 = vmatmul.bf16.gmra.mxu3 %v1867_v35  ;;  %v1883_v21 = vor.u32 %v2207_v3, %v1882_v1  ;;  %v1904_v1 = vld [vmem:[%s2432_s7 + $0x1d4] sm:$0xf0]  ;;  %v1910_v3 = vld [vmem:[%s2432_s7 + $0x1c8] sm:$0xf]  ;;  %v1091_v61 = vadd.f32 %v2688_v24, %v2674_v13 }
  0xfe   : > { %2145 = vmatmul.msk.bf16.gmra.mxu0 %vm1017_vm0, %v1871_v42 }
  0xff   : > { %v1258_v37 = vpop.f32.mrf.mxu2 }
 0x100   : > { %v1259_v49 = vadd.f32 %v1258_v37, %v1170_v45  ;;  %v1347_v52 = vpop.f32.mrf.mxu3 }
 0x101   : > { %v1171_v17 = vpop.f32.mrf.mxu1 }
 0x102   : > { %v1348_v53 = vadd.f32 %v1347_v52, %v1259_v49  ;;  %v1172_v55 = vadd.f32 %v1171_v17, %v1083_v48 }
 0x103   : > { %v1438_v56 = vpop.f32.mrf.mxu0 }
 0x104   : > { %v2724_v62 = vadd.f32 %v1436_v46, %v1348_v53  ;;  %v2209_v53 = vld [vmem:[%s2432_s7 + $0x1bc] sm:$0xf] }
 0x107   : > { %v1260_v11 = vpop.f32.mrf.mxu2 }
 0x108   : > { %v1261_v12 = vadd.f32 %v1260_v11, %v1172_v55  ;;  %v1349_v25 = vpop.f32.mrf.mxu3  ;;  %v1896_v55 = vld [vmem:[%s2432_s7 + $0x1cc] sm:$0xf0] }
 0x109   : > { %v1174_v27 = vpop.f32.mrf.mxu1  ;;  %v1899_v11 = vor.u32 %v2209_v53, %v1896_v55  ;;  %v2217_v53 = vld [vmem:[%s2432_s7 + $0x1f8] sm:$0xf0]  ;;  %v2215_v55 = vld [vmem:[%s2432_s7 + $0x1ec] sm:$0xf] }
 0x10a   : > { %v1350_v32 = vadd.f32 %v1349_v25, %v1261_v12  ;;  %v1175_v33 = vadd.f32 %v1174_v27, %v1086_v41  ;;  %v1907_v25 = vor.u32 %v2210_v0, %v1904_v1  ;;  %v2218_v0 = vld [vmem:[%s2432_s7 + $0x200] sm:$0xf0] }
 0x10b   : > { %v1441_v35 = vpop.f32.mrf.mxu0 }
 0x10c   : > { %v2736_v42 = vadd.f32 %v1438_v56, %v1350_v32  ;;  %1213 = vmatmul.bf16.gmra.mxu1 %v1879_v26  ;;  %1302 = vmatmul.bf16.gmra.mxu2 %v1883_v21  ;;  %v1902_v56 = vld [vmem:[%s2432_s7 + $0x1c0] sm:$0xf]  ;;  %v1911_v26 = vor.u32 %v2213_v4, %v1910_v3  ;;  %v1093_v32 = vadd.f32 %v2688_v24, %v2683_v23 }
 0x10d   : > { %1391 = vmatmul.bf16.gmra.mxu3 %v1887_v28  ;;  %v1903_v41 = vor.u32 %v2212_v63, %v1902_v56  ;;  %v1924_v56 = vld [vmem:[%s2432_s7 + $0x1fc] sm:$0xf0]  ;;  %v1930_v63 = vld [vmem:[%s2432_s7 + $0x1f0] sm:$0xf]  ;;  %v1096_v23 = vadd.f32 %v2688_v24, %v2597_v14 }
 0x10e   : > { %2146 = vmatmul.msk.bf16.gmra.mxu0 %vm1017_vm0, %v1891_v29 }
 0x10f   : > { %v1263_v57 = vpop.f32.mrf.mxu2 }
 0x110   : > { %v1264_v45 = vadd.f32 %v1263_v57, %v1175_v33  ;;  %v1352_v46 = vpop.f32.mrf.mxu3 }
 0x111   : > { %v1176_v37 = vpop.f32.mrf.mxu1 }
 0x112   : > { %v1353_v48 = vadd.f32 %v1352_v46, %v1264_v45  ;;  %v1177_v49 = vadd.f32 %v1176_v37, %v1088_v44 }
 0x113   : > { %v1443_v52 = vpop.f32.mrf.mxu0 }
 0x114   : > { %v2741_v17 = vadd.f32 %v1441_v35, %v1353_v48  ;;  %v2214_v48 = vld [vmem:[%s2432_s7 + $0x1e4] sm:$0xf] }
 0x117   : > { %v1265_v5 = vpop.f32.mrf.mxu2 }
 0x118   : > { %v1266_v8 = vadd.f32 %v1265_v5, %v1177_v49  ;;  %v1354_v9 = vpop.f32.mrf.mxu3  ;;  %v1916_v49 = vld [vmem:[%s2432_s7 + $0x1f4] sm:$0xf0] }
 0x119   : > { %v1179_v12 = vpop.f32.mrf.mxu1  ;;  %v1919_v5 = vor.u32 %v2214_v48, %v1916_v49  ;;  %v2222_v48 = vld [vmem:[%s2432_s7 + $0x220] sm:$0xf0]  ;;  %v2220_v49 = vld [vmem:[%s2432_s7 + $0x214] sm:$0xf] }
 0x11a   : > { %v1355_v21 = vadd.f32 %v1354_v9, %v1266_v8  ;;  %v1180_v27 = vadd.f32 %v1179_v12, %v1091_v61  ;;  %v1927_v9 = vor.u32 %v2215_v55, %v1924_v56  ;;  %v1950_v55 = vld [vmem:[%s2432_s7 + $0x218] sm:$0xf] }
 0x11b   : > { %v1446_v28 = vpop.f32.mrf.mxu0 }
 0x11c   : > { %v2753_v29 = vadd.f32 %v1443_v52, %v1355_v21  ;;  %1218 = vmatmul.bf16.gmra.mxu1 %v1899_v11  ;;  %1307 = vmatmul.bf16.gmra.mxu2 %v1903_v41  ;;  %v1922_v52 = vld [vmem:[%s2432_s7 + $0x1e8] sm:$0xf]  ;;  %v1931_v11 = vor.u32 %v2218_v0, %v1930_v63  ;;  %v1098_v21 = vadd.f32 %v2688_v24, %v2606_v20  ;;  %v2223_v20 = vld [vmem:[%s2432_s7 + $0x228] sm:$0xf0] }
 0x11d   : > { %1396 = vmatmul.bf16.gmra.mxu3 %v1907_v25  ;;  %v1923_v61 = vor.u32 %v2217_v53, %v1922_v52  ;;  %v1944_v53 = vld [vmem:[%s2432_s7 + $0x224] sm:$0xf0]  ;;  %v1101_v63 = vadd.f32 %v2688_v24, %v2622_v34 }
 0x11e   : > { %2147 = vmatmul.msk.bf16.gmra.mxu0 %vm1017_vm0, %v1911_v26 }
 0x11f   : > { %v1268_v13 = vpop.f32.mrf.mxu2 }
 0x120   : > { %v1269_v33 = vadd.f32 %v1268_v13, %v1180_v27  ;;  %v1357_v35 = vpop.f32.mrf.mxu3 }
 0x121   : > { %v1181_v57 = vpop.f32.mrf.mxu1 }
 0x122   : > { %v1358_v44 = vadd.f32 %v1357_v35, %v1269_v33  ;;  %v1182_v45 = vadd.f32 %v1181_v57, %v1093_v32 }
 0x123   : > { %v1448_v46 = vpop.f32.mrf.mxu0 }
 0x124   : > { %v2758_v37 = vadd.f32 %v1446_v28, %v1358_v44  ;;  %v2219_v44 = vld [vmem:[%s2432_s7 + $0x20c] sm:$0xf] }
 0x127   : > { %v1270_v1 = vpop.f32.mrf.mxu2 }
 0x128   : > { %v1271_v3 = vadd.f32 %v1270_v1, %v1182_v45  ;;  %v1359_v4 = vpop.f32.mrf.mxu3  ;;  %v1936_v45 = vld [vmem:[%s2432_s7 + $0x21c] sm:$0xf0] }
 0x129   : > { %v1184_v8 = vpop.f32.mrf.mxu1 }
 0x12a   : > { %v1360_v41 = vadd.f32 %v1359_v4, %v1271_v3  ;;  %v1185_v12 = vadd.f32 %v1184_v8, %v1096_v23  ;;  %v1939_v23 = vor.u32 %v2219_v44, %v1936_v45  ;;  %v1956_v44 = vld [vmem:[%s2432_s7 + $0x244] sm:$0xf0]  ;;  %v1962_v45 = vld [vmem:[%s2432_s7 + $0x238] sm:$0xf] }
 0x12b   : > { %v1451_v25 = vpop.f32.mrf.mxu0 }
 0x12c   : > { %v2770_v26 = vadd.f32 %v1448_v46, %v1360_v41  ;;  %1223 = vmatmul.bf16.gmra.mxu1 %v1919_v5  ;;  %1312 = vmatmul.bf16.gmra.mxu2 %v1923_v61  ;;  %v1942_v46 = vld [vmem:[%s2432_s7 + $0x210] sm:$0xf]  ;;  %v1947_v5 = vor.u32 %v2220_v49, %v1944_v53  ;;  %v1951_v61 = vor.u32 %v2223_v20, %v1950_v55  ;;  %v1970_v55 = vld [vmem:[%s2432_s7 + $0x240] sm:$0xf] }
 0x12d   : > { %1401 = vmatmul.bf16.gmra.mxu3 %v1927_v9  ;;  %v1943_v3 = vor.u32 %v2222_v48, %v1942_v46  ;;  %v2227_v46 = vld [vmem:[%s2432_s7 + $0x248] sm:$0xf0]  ;;  %v2225_v48 = vld [vmem:[%s2432_s7 + $0x23c] sm:$0xf]  ;;  %v1964_v53 = vld [vmem:[%s2432_s7 + $0x24c] sm:$0xf0] }
 0x12e   : > { %2148 = vmatmul.msk.bf16.gmra.mxu0 %vm1017_vm0, %v1931_v11 }
 0x12f   : > { %v1273_v14 = vpop.f32.mrf.mxu2 }
 0x130   : > { %v1274_v27 = vadd.f32 %v1273_v14, %v1185_v12  ;;  %v1362_v28 = vpop.f32.mrf.mxu3 }
 0x131   : > { %v1186_v13 = vpop.f32.mrf.mxu1 }
 0x132   : > { %v1363_v32 = vadd.f32 %v1362_v28, %v1274_v27  ;;  %v1187_v33 = vadd.f32 %v1186_v13, %v1098_v21 }
 0x133   : > { %v1453_v35 = vpop.f32.mrf.mxu0 }
 0x134   : > { %v2775_v57 = vadd.f32 %v1451_v25, %v1363_v32  ;;  %v1103_v25 = vadd.f32 %v2688_v24, %v2631_v40  ;;  %v2228_v40 = vld [vmem:[%s2432_s7 + $0x250] sm:$0xf0] }
 0x136   : > { %v1511_v52 = vmax.f32 %v2707_v2, %v2775_v57 }
 0x137   : > { %v1275_v56 = vpop.f32.mrf.mxu2 }
 0x138   : > { %v1276_v0 = vadd.f32 %v1275_v56, %v1187_v33  ;;  %v1364_v1 = vpop.f32.mrf.mxu3  ;;  %v1106_v56 = vadd.f32 %v2688_v24, %v2647_v54 }
 0x139   : > { %v1189_v4 = vpop.f32.mrf.mxu1 }
 0x13a   : > { %v1365_v8 = vadd.f32 %v1364_v1, %v1276_v0  ;;  %v1190_v9 = vadd.f32 %v1189_v4, %v1101_v63  ;;  %v1967_v4 = vor.u32 %v2225_v48, %v1964_v53  ;;  %v2232_v48 = vld [vmem:[%s2432_s7 + $0x270] sm:$0xf0]  ;;  %v2230_v53 = vld [vmem:[%s2432_s7 + $0x264] sm:$0xf] }
 0x13b   : > { %v1456_v11 = vpop.f32.mrf.mxu0 }
 0x13c   : > { %v2789_v41 = vadd.f32 %v1453_v35, %v1365_v8  ;;  %1228 = vmatmul.bf16.gmra.mxu1 %v1939_v23  ;;  %1317 = vmatmul.bf16.gmra.mxu2 %v1943_v3  ;;  %v2224_v35 = vld [vmem:[%s2432_s7 + $0x234] sm:$0xf]  ;;  %v1963_v23 = vor.u32 %v2227_v46, %v1962_v45  ;;  %v1976_v45 = vld [vmem:[%s2432_s7 + $0x26c] sm:$0xf0]  ;;  %v1982_v46 = vld [vmem:[%s2432_s7 + $0x260] sm:$0xf] }
 0x13d   : > { %1406 = vmatmul.bf16.gmra.mxu3 %v1947_v5  ;;  %v1959_v1 = vor.u32 %v2224_v35, %v1956_v44  ;;  %v1971_v5 = vor.u32 %v2228_v40, %v1970_v55  ;;  %v2229_v44 = vld [vmem:[%s2432_s7 + $0x25c] sm:$0xf]  ;;  %v1984_v40 = vld [vmem:[%s2432_s7 + $0x274] sm:$0xf0] }
 0x13e   : > { %2149 = vmatmul.msk.bf16.gmra.mxu0 %vm1017_vm0, %v1951_v61  ;;  %v1512_v34 = vmax.f32 %v2719_v47, %v2789_v41 }
 0x13f   : > { %v1278_v12 = vpop.f32.mrf.mxu2 }
 0x140   : > { %v1279_v14 = vadd.f32 %v1278_v12, %v1190_v9  ;;  %v1367_v21 = vpop.f32.mrf.mxu3 }
 0x141   : > { %v1191_v27 = vpop.f32.mrf.mxu1 }
 0x142   : > { %v1368_v28 = vadd.f32 %v1367_v21, %v1279_v14  ;;  %v1192_v13 = vadd.f32 %v1191_v27, %v1103_v25  ;;  %v1108_v25 = vadd.f32 %v2688_v24, %v2656_v60  ;;  %v2233_v60 = vld [vmem:[%s2432_s7 + $0x278] sm:$0xf0] }
 0x143   : > { %v1458_v32 = vpop.f32.mrf.mxu0 }
 0x144   : > { %v2796_v33 = vadd.f32 %v1456_v11, %v1368_v28 }
 0x146   : > { %v1513_v49 = vmax.f32 %v2724_v62, %v2796_v33 }
 0x147   : > { %v1280_v20 = vpop.f32.mrf.mxu2 }
 0x148   : > { %v1281_v63 = vadd.f32 %v1280_v20, %v1192_v13  ;;  %v1369_v0 = vpop.f32.mrf.mxu3  ;;  %v1990_v20 = vld [vmem:[%s2432_s7 + $0x268] sm:$0xf]  ;;  %s1670_s7 = sshll.u32 %s2357_s12, 3 }
 0x149   : > { %v1194_v3 = vpop.f32.mrf.mxu1  ;;  %p220_p5 = scmp.lt.s32.totalorder %s1670_s7, 15 }
 0x14a   : > { %v1370_v61 = vadd.f32 %v1369_v0, %v1281_v63  ;;  %v1195_v8 = vadd.f32 %v1194_v3, %v1106_v56  ;;  %v1111_v63 = vadd.f32 %v2688_v24, %v2672_v10  ;;  %v1983_v3 = vor.u32 %v2232_v48, %v1982_v46 }
 0x14b   : > { %v1461_v9 = vpop.f32.mrf.mxu0  ;;  %s2956_s7 = smov (!%p220_p5, %s1670_s7), 15 }
 0x14c   : > { %v2810_v11 = vadd.f32 %v1458_v32, %v1370_v61  ;;  %1233 = vmatmul.bf16.gmra.mxu1 %v1959_v1  ;;  %1322 = vmatmul.bf16.gmra.mxu2 %v1963_v23  ;;  %v1979_v23 = vor.u32 %v2229_v44, %v1976_v45  ;;  %v1991_v61 = vor.u32 %v2233_v60, %v1990_v20  ;;  %s1671_s12 = sshll.u32 %s2956_s7, 2 }
 0x14d   : > { %1411 = vmatmul.bf16.gmra.mxu3 %v1967_v4  ;;  %s2896_s30 = scalar_lea.vmem %s2948_s3, %s1671_s12 }
 0x14e   : > { %2150 = vmatmul.msk.bf16.gmra.mxu0 %vm1017_vm0, %v1971_v5  ;;  %v1514_v54 = vmax.f32 %v2736_v42, %v2810_v11  ;;  %v1987_v5 = vor.u32 %v2230_v53, %v1984_v40  ;;  %v1116_v40 = vadd.f32 %v2688_v24, %v2602_v18 }
 0x14f   : > { %v1283_v12 = vpop.f32.mrf.mxu2 }
 0x150   : > { %v1284_v14 = vadd.f32 %v1283_v12, %v1195_v8  ;;  %v1372_v21 = vpop.f32.mrf.mxu3 }
 0x151   : > { %v1196_v27 = vpop.f32.mrf.mxu1 }
 0x152   : > { %v1373_v28 = vadd.f32 %v1372_v21, %v1284_v14  ;;  %v1197_v13 = vadd.f32 %v1196_v27, %v1108_v25  ;;  %v1113_v21 = vadd.f32 %v2688_v24, %v2681_v22 }
 0x153   : > { %v1463_v32 = vpop.f32.mrf.mxu0 }
 0x154   : > { %v2817_v35 = vadd.f32 %v1461_v9, %v1373_v28 }
 0x156   : > { %v1515_v55 = vmax.f32 %v2741_v17, %v2817_v35 }
 0x157   : > { %v1285_v56 = vpop.f32.mrf.mxu2 }
 0x158   : > { %v1286_v0 = vadd.f32 %v1285_v56, %v1197_v13  ;;  %v1374_v1 = vpop.f32.mrf.mxu3 }
 0x159   : > { %v1199_v4 = vpop.f32.mrf.mxu1 }
 0x15a   : > { %v1375_v8 = vadd.f32 %v1374_v1, %v1286_v0  ;;  %v1200_v9 = vadd.f32 %v1199_v4, %v1111_v63  ;;  %v1118_v4 = vadd.f32 %v2688_v24, %v2618_v30 }
 0x15b   : > { %v1466_v12 = vpop.f32.mrf.mxu0 }
 0x15c   : > { %v2831_v25 = vadd.f32 %v1463_v32, %v1375_v8  ;;  %1238 = vmatmul.bf16.gmra.mxu1 %v1979_v23  ;;  %1327 = vmatmul.bf16.gmra.mxu2 %v1983_v3 }
 0x15d   : > { %1416 = vmatmul.bf16.gmra.mxu3 %v1987_v5 }
 0x15e   : > { %2151 = vmatmul.msk.bf16.gmra.mxu0 %vm1017_vm0, %v1991_v61  ;;  %v1516_v10 = vmax.f32 %v2753_v29, %v2831_v25 }
 0x15f   : > { %v1288_v14 = vpop.f32.mrf.mxu2 }
 0x160   : > { %v1289_v27 = vadd.f32 %v1288_v14, %v1200_v9  ;;  %v1377_v28 = vpop.f32.mrf.mxu3 }
 0x161   : > { %v1201_v13 = vpop.f32.mrf.mxu1 }
 0x162   : > { %v1378_v44 = vadd.f32 %v1377_v28, %v1289_v27  ;;  %v1202_v45 = vadd.f32 %v1201_v13, %v1113_v21  ;;  %v1121_v27 = vadd.f32 %v2688_v24, %v2627_v38 }
 0x163   : > { %v1468_v46 = vpop.f32.mrf.mxu0 }
 0x164   : > { %v2838_v32 = vadd.f32 %v1466_v12, %v1378_v44 }
 0x166   : > { %v1517_v48 = vmax.f32 %v2758_v37, %v2838_v32 }
 0x167   : > { %v1290_v53 = vpop.f32.mrf.mxu2 }
 0x168   : > { %v1291_v20 = vadd.f32 %v1290_v53, %v1202_v45  ;;  %v1379_v60 = vpop.f32.mrf.mxu3 }
 0x169   : > { %v1204_v56 = vpop.f32.mrf.mxu1 }
 0x16a   : > { %v1380_v63 = vadd.f32 %v1379_v60, %v1291_v20  ;;  %v1205_v22 = vadd.f32 %v1204_v56, %v1116_v40  ;;  %v1123_v20 = vadd.f32 %v2688_v24, %v2643_v50 }
 0x16b   : > { %v1471_v0 = vpop.f32.mrf.mxu0 }
 0x16c   : > { %v2844_v1 = vadd.f32 %v1468_v46, %v1380_v63 }
 0x16e   : > { %v1518_v23 = vmax.f32 %v2770_v26, %v2844_v1 }
 0x16f   : > { %v1293_v3 = vpop.f32.mrf.mxu2 }
 0x170   : > { %v1294_v5 = vadd.f32 %v1293_v3, %v1205_v22  ;;  %v1382_v61 = vpop.f32.mrf.mxu3 }
 0x171   : > { %v1206_v8 = vpop.f32.mrf.mxu1 }
 0x172   : > { %v1383_v9 = vadd.f32 %v1382_v61, %v1294_v5  ;;  %v1207_v18 = vadd.f32 %v1206_v8, %v1118_v4  ;;  %v1126_v5 = vadd.f32 %v2688_v24, %v2652_v58 }
 0x173   : > { %v1473_v12 = vpop.f32.mrf.mxu0 }
 0x174   : > { %v2850_v14 = vadd.f32 %v1471_v0, %v1383_v9 }
 0x177   : > { %v1295_v21 = vpop.f32.mrf.mxu2 }
 0x178   : > { %v1296_v28 = vadd.f32 %v1295_v21, %v1207_v18  ;;  %v1384_v13 = vpop.f32.mrf.mxu3 }
 0x179   : > { %v1209_v44 = vpop.f32.mrf.mxu1 }
 0x17a   : > { %v1385_v45 = vadd.f32 %v1384_v13, %v1296_v28  ;;  %v1210_v46 = vadd.f32 %v1209_v44, %v1121_v27  ;;  %v1128_v28 = vadd.f32 %v2688_v24, %v2668_v6 }
 0x17b   : > { %v1476_v53 = vpop.f32.mrf.mxu0 }
 0x17c   : > { %v2854_v40 = vadd.f32 %v1473_v12, %v1385_v45 }
 0x17f   : > { %v1298_v30 = vpop.f32.mrf.mxu2 }
 0x180   : > { %v1299_v60 = vadd.f32 %v1298_v30, %v1210_v46  ;;  %v1387_v56 = vpop.f32.mrf.mxu3 }
 0x181   : > { %v1211_v63 = vpop.f32.mrf.mxu1 }
 0x182   : > { %v1388_v22 = vadd.f32 %v1387_v56, %v1299_v60  ;;  %v1212_v0 = vadd.f32 %v1211_v63, %v1123_v20  ;;  %v1131_v60 = vadd.f32 %v2688_v24, %v2677_v15 }
 0x183   : > { %v1478_v3 = vpop.f32.mrf.mxu0 }
 0x184   : > { %v2858_v4 = vadd.f32 %v1476_v53, %v1388_v22 }
 0x187   : > { %v1300_v38 = vpop.f32.mrf.mxu2 }
 0x188   : > { %v1301_v61 = vadd.f32 %v1300_v38, %v1212_v0  ;;  %v1389_v8 = vpop.f32.mrf.mxu3 }
 0x189   : > { %v1214_v9 = vpop.f32.mrf.mxu1 }
 0x18a   : > { %v1390_v18 = vadd.f32 %v1389_v8, %v1301_v61  ;;  %v1215_v12 = vadd.f32 %v1214_v9, %v1126_v5  ;;  %v1133_v61 = vadd.f32 %v2688_v24, %v2698_v36 }
 0x18b   : > { %v1481_v21 = vpop.f32.mrf.mxu0 }
 0x18c   : > { %v2862_v27 = vadd.f32 %v1478_v3, %v1390_v18 }
 0x18f   : > { %v1303_v50 = vpop.f32.mrf.mxu2 }
 0x190   : > { %v1304_v13 = vadd.f32 %v1303_v50, %v1215_v12  ;;  %v1392_v44 = vpop.f32.mrf.mxu3 }
 0x191   : > { %v1216_v45 = vpop.f32.mrf.mxu1 }
 0x192   : > { %v1393_v46 = vadd.f32 %v1392_v44, %v1304_v13  ;;  %v1217_v53 = vadd.f32 %v1216_v45, %v1128_v28 }
 0x193   : > { %v1483_v30 = vpop.f32.mrf.mxu0 }
 0x194   : > { %v2866_v20 = vadd.f32 %v1481_v21, %v1393_v46 }
 0x197   : > { %v1305_v58 = vpop.f32.mrf.mxu2 }
 0x198   : > { %v1306_v56 = vadd.f32 %v1305_v58, %v1217_v53  ;;  %v1394_v63 = vpop.f32.mrf.mxu3 }
 0x199   : > { %v1219_v22 = vpop.f32.mrf.mxu1 }
 0x19a   : > { %v1395_v0 = vadd.f32 %v1394_v63, %v1306_v56  ;;  %v1220_v3 = vadd.f32 %v1219_v22, %v1131_v60 }
 0x19b   : > { %v1486_v38 = vpop.f32.mrf.mxu0 }
 0x19c   : > { %v2870_v5 = vadd.f32 %v1483_v30, %v1395_v0  ;;  %v1136_v30 = vadd.f32 %v2688_v24, %v2604_v19 }
 0x19f   : > { %v1308_v6 = vpop.f32.mrf.mxu2 }
 0x1a0   : > { %v1309_v8 = vadd.f32 %v1308_v6, %v1220_v3  ;;  %v1397_v9 = vpop.f32.mrf.mxu3 }
 0x1a1   : > { %v1221_v18 = vpop.f32.mrf.mxu1 }
 0x1a2   : > { %v1398_v12 = vadd.f32 %v1397_v9, %v1309_v8  ;;  %v1222_v21 = vadd.f32 %v1221_v18, %v1133_v61 }
 0x1a3   : > { %v1488_v50 = vpop.f32.mrf.mxu0 }
 0x1a4   : > { %v2874_v28 = vadd.f32 %v1486_v38, %v1398_v12  ;;  %v1138_v38 = vadd.f32 %v2688_v24, %v2620_v31 }
 0x1a7   : > { %v1310_v15 = vpop.f32.mrf.mxu2 }
 0x1a8   : > { %v1311_v13 = vadd.f32 %v1310_v15, %v1222_v21  ;;  %v1399_v44 = vpop.f32.mrf.mxu3 }
 0x1a9   : > { %v1224_v45 = vpop.f32.mrf.mxu1 }
 0x1aa   : > { %v1400_v46 = vadd.f32 %v1399_v44, %v1311_v13  ;;  %v1225_v36 = vadd.f32 %v1224_v45, %v1136_v30  ;;  %v1141_v13 = vadd.f32 %v2688_v24, %v2629_v39 }
 0x1ab   : > { %v1491_v53 = vpop.f32.mrf.mxu0 }
 0x1ac   : > { %v2878_v58 = vadd.f32 %v1488_v50, %v1400_v46 }
 0x1af   : > { %v1313_v60 = vpop.f32.mrf.mxu2 }
 0x1b0   : > { %v1314_v56 = vadd.f32 %v1313_v60, %v1225_v36  ;;  %v1402_v63 = vpop.f32.mrf.mxu3 }
 0x1b1   : > { %v1226_v22 = vpop.f32.mrf.mxu1 }
 0x1b2   : > { %v1403_v0 = vadd.f32 %v1402_v63, %v1314_v56  ;;  %v1227_v8 = vadd.f32 %v1226_v22, %v1138_v38 }
 0x1b3   : > { %v1493_v3 = vpop.f32.mrf.mxu0 }
 0x1b4   : > { %v1492_v6 = vadd.f32 %v1491_v53, %v1403_v0 }
 0x1b6   : > { %v1519_v61 = vmax.f32 %v2850_v14, %v1492_v6  ;;  %v1146_v6 = vadd.f32 %v2688_v24, %v2654_v59  ;;  %v1148_v59 = vadd.f32 %v2688_v24, %v2670_v7 }
 0x1b7   : > { %v1315_v9 = vpop.f32.mrf.mxu2 }
 0x1b8   : > { %v1527_v19 = vmax.f32 %v1511_v52, %v1519_v61  ;;  %v1316_v18 = vadd.f32 %v1315_v9, %v1227_v8  ;;  %v1404_v12 = vpop.f32.mrf.mxu3 }
 0x1b9   : > { %v1229_v21 = vpop.f32.mrf.mxu1 }
 0x1ba   : > { %v1405_v50 = vadd.f32 %v1404_v12, %v1316_v18  ;;  %v1230_v14 = vadd.f32 %v1229_v21, %v1141_v13  ;;  %v1535_v53 = vmax.f32 %v1527_v19, 0.0 }
 0x1bb   : > { %v1496_v15 = vpop.f32.mrf.mxu0 }
 0x1bc   : > { %v1494_v31 = vadd.f32 %v1493_v3, %v1405_v50 }
 0x1be   : > { %v1520_v44 = vmax.f32 %v2854_v40, %v1494_v31  ;;  %v1143_v40 = vadd.f32 %v2688_v24, %v2645_v51 }
 0x1bf   : > { %v1318_v45 = vpop.f32.mrf.mxu2 }
 0x1c0   : > { %v1528_v2 = vmax.f32 %v1512_v34, %v1520_v44  ;;  %v1319_v57 = vadd.f32 %v1318_v45, %v1230_v14  ;;  %v1407_v52 = vpop.f32.mrf.mxu3 }
 0x1c1   : > { %v1231_v46 = vpop.f32.mrf.mxu1 }
 0x1c2   : > { %v1536_v30 = vmax.f32 %v1528_v2, 0.0  ;;  %v1408_v36 = vadd.f32 %v1407_v52, %v1319_v57  ;;  %v1232_v41 = vadd.f32 %v1231_v46, %v1143_v40  ;;  %v1151_v2 = vadd.f32 %v2688_v24, %v2679_v16 }
 0x1c3   : > { %v1498_v39 = vpop.f32.mrf.mxu0  ;;  %v1153_v16 = vadd.f32 %v2688_v24, %v2702_v43 }
 0x1c4   : > { %v2273_v60 = vpack.c.bf16 %v1536_v30, %v1535_v53  ;;  %v1497_v56 = vadd.f32 %v1496_v15, %v1408_v36 }
 0x1c6   : > { %2274 = vst [vmem:[%s2896_s30] sm:$0xff] %v2273_v60   ;;  %v1521_v47 = vmax.f32 %v2858_v4, %v1497_v56 }
 0x1c7   : > { %v1320_v34 = vpop.f32.mrf.mxu2 }
 0x1c8   : > { %v1529_v63 = vmax.f32 %v1513_v49, %v1521_v47  ;;  %v1321_v22 = vadd.f32 %v1320_v34, %v1232_v41  ;;  %v1409_v0 = vpop.f32.mrf.mxu3 }
 0x1c9   : > { %v1234_v3 = vpop.f32.mrf.mxu1 }
 0x1ca   : > { %v1410_v38 = vadd.f32 %v1409_v0, %v1321_v22  ;;  %v1235_v9 = vadd.f32 %v1234_v3, %v1146_v6  ;;  %v1537_v18 = vmax.f32 %v1529_v63, 0.0 }
 0x1cb   : > { %v1501_v61 = vpop.f32.mrf.mxu0 }
 0x1cc   : > { %v1499_v51 = vadd.f32 %v1498_v39, %v1410_v38 }
 0x1ce   : > { %v1522_v8 = vmax.f32 %v2862_v27, %v1499_v51 }
 0x1cf   : > { %v1323_v4 = vpop.f32.mrf.mxu2 }
 0x1d0   : > { %v1530_v19 = vmax.f32 %v1514_v54, %v1522_v8  ;;  %v1324_v62 = vadd.f32 %v1323_v4, %v1235_v9  ;;  %v1412_v33 = vpop.f32.mrf.mxu3 }
 0x1d1   : > { %v1236_v49 = vpop.f32.mrf.mxu1 }
 0x1d2   : > { %v1538_v12 = vmax.f32 %v1530_v19, 0.0  ;;  %v1413_v21 = vadd.f32 %v1412_v33, %v1324_v62  ;;  %v1237_v13 = vadd.f32 %v1236_v49, %v1148_v59 }
 0x1d3   : > { %v1503_v31 = vpop.f32.mrf.mxu0 }
 0x1d4   : > { %v2278_v50 = vpack.c.bf16 %v1538_v12, %v1537_v18  ;;  %v1502_v15 = vadd.f32 %v1501_v61, %v1413_v21 }
 0x1d6   : > { %2290 = vst [vmem:[%s2896_s30 + $0x8] sm:$0xff] %v2278_v50   ;;  %v1523_v27 = vmax.f32 %v2866_v20, %v1502_v15 }
 0x1d7   : > { %v1325_v44 = vpop.f32.mrf.mxu2 }
 0x1d8   : > { %v1531_v42 = vmax.f32 %v1515_v55, %v1523_v27  ;;  %v1326_v11 = vadd.f32 %v1325_v44, %v1237_v13  ;;  %v1414_v54 = vpop.f32.mrf.mxu3 }
 0x1d9   : > { %v1239_v14 = vpop.f32.mrf.mxu1 }
 0x1da   : > { %v1415_v45 = vadd.f32 %v1414_v54, %v1326_v11  ;;  %v1240_v52 = vadd.f32 %v1239_v14, %v1151_v2  ;;  %v1539_v55 = vmax.f32 %v1531_v42, 0.0 }
 0x1db   : > { %v1506_v35 = vpop.f32.mrf.mxu0 }
 0x1dc   : > { %v1504_v7 = vadd.f32 %v1503_v31, %v1415_v45 }
 0x1de   : > { %v1524_v57 = vmax.f32 %v2870_v5, %v1504_v7 }
 0x1df   : > { %v1328_v20 = vpop.f32.mrf.mxu2 }
 0x1e0   : > { %v1532_v46 = vmax.f32 %v1516_v10, %v1524_v57  ;;  %v1329_v53 = vadd.f32 %v1328_v20, %v1240_v52  ;;  %v1417_v17 = vpop.f32.mrf.mxu3 }
 0x1e1   : > { %v1241_v39 = vpop.f32.mrf.mxu1 }
 0x1e2   : > { %v1540_v30 = vmax.f32 %v1532_v46, 0.0  ;;  %v1418_v36 = vadd.f32 %v1417_v17, %v1329_v53  ;;  %v1242_v56 = vadd.f32 %v1241_v39, %v1153_v16 }
 0x1e3   : > { %v1508_v34 = vpop.f32.mrf.mxu0 }
 0x1e4   : > { %v2283_v40 = vpack.c.bf16 %v1540_v30, %v1539_v55  ;;  %v1507_v60 = vadd.f32 %v1506_v35, %v1418_v36 }
 0x1e6   : > { %2291 = vst [vmem:[%s2896_s30 + $0x10] sm:$0xff] %v2283_v40   ;;  %v1525_v5 = vmax.f32 %v2874_v28, %v1507_v60 }
 0x1e7   : > { %v1330_v47 = vpop.f32.mrf.mxu2 }
 0x1e8   : > { %v1533_v29 = vmax.f32 %v1517_v48, %v1525_v5  ;;  %v1331_v25 = vadd.f32 %v1330_v47, %v1242_v56  ;;  %v1419_v10 = vpop.f32.mrf.mxu3 }
 0x1ea   : > { %v1420_v41 = vadd.f32 %v1419_v10, %v1331_v25  ;;  %v1541_v43 = vmax.f32 %v1533_v29, 0.0 }
 0x1ec   : > { %v1509_v63 = vadd.f32 %v1508_v34, %v1420_v41 }
 0x1ee   : > { %v1526_v22 = vmax.f32 %v2878_v58, %v1509_v63 }
 0x1f0   : > { %v1534_v24 = vmax.f32 %v1518_v23, %v1526_v22 }
 0x1f2   : > { %v1542_v0 = vmax.f32 %v1534_v24, 0.0 }
 0x1f4   : > { %v2288_v28 = vpack.c.bf16 %v1542_v0, %v1541_v43 }
 0x1f6   : > { %2292 = vst [vmem:[%s2896_s30 + $0x18] sm:$0xff] %v2288_v28  }
 0x1f7 PF: > { %s13_s14 = sadd.s32 1, %s2365_s14   ;;  %s2949_s12 = smov %s2361_s13 }
 0x1f8   : > { %p10_p6 = scmp.ge.s32.totalorder %s13_s14, 4   ;;  %s2950_s13 = smov %s2952_s15 }
 0x1fa   :  { %12 = sbr.rel (!%p10_p6) target bundleno = 2 (0x2), region = 68 }

// kernel: cnn_forward.8
= control target key start
LH: loop header
LB: loop body
LE: loop exit
PB: predicated region body
PF: predicated region fallthrough
CT: control target
= control target key end

     0   :  { %s2449_s12 = smov 0   ;;  %s2451_s13 = smov 0   ;;  %s3012_s0 = inlined_call_operand.vmem [shape: bf16[32,1152], index: 0, kind: input, shape index: {}]   ;;  %s3013_s1 = inlined_call_operand.vmem [shape: bf16[1152,256], index: 1, kind: input, shape index: {}]   ;;  %s3014_s2 = inlined_call_operand.vmem [shape: f32[1,256], index: 2, kind: input, shape index: {}]   ;;  %s3015_s3 = inlined_call_operand.vmem [shape: bf16[32,256], index: 3, kind: output, shape index: {}]  }
   0x1   :  { %s2453_s14 = smov 0   ;;  %s2455_s15 = smov 0  }
   0x2   :  { %s2457_s16 = smov 0  }
   0x3 LB: > { %s22_s17 = sadd.s32 1, %s2423_s15  ;;  %s1865_s18 = sadd.s32 4294967295, %s2427_s16   ;;  %s2427_s16 = sphi %s2457_s16, %s13_s16   ;;  %s2423_s15 = sphi %s2455_s15, %s3020_s15   ;;  %s2419_s14 = sphi %s2453_s14, %s3019_s14   ;;  %s2415_s13 = sphi %s2451_s13, %s3018_s13   ;;  %s2411_s12 = sphi %s2449_s12, %s3017_s12  }
   0x4   : > { %p23_p0 = scmp.ge.s32.totalorder %s22_s17, 2  ;;  %p65_p1 = scmp.ne.s32.totalorder %s2415_s13, %s2411_s12 }
   0x5   : > { %p66_p2 = scmp.eq.s32.totalorder %s2427_s16, 0  ;;  %p123_p4 = scmp.eq.s32.totalorder %s1865_s18, 1 }
   0x6   : > { %s3022_s17 = smov (%p23_p0, %s22_s17), 0  ;;  %s58_s20 = sadd.s32 1, %s2415_s13 }
   0x7   : > { %p67_p3 = por %p66_p2, %p65_p1  ;;  %s55_s19 = ssub.s32 %s2423_s15, %s3022_s17 }
   0x8   : > { %p56_p5 = scmp.eq.s32.totalorder %s55_s19, 0  ;;  %p2484_p6 = por %p123_p4, %p65_p1 }
   0x9   : > { %p1869_p7 = scmp.ge.s32.totalorder %s2427_s16, 2 }
   0xa   : > { %s2489_s22 = scalar_select %p56_p5, %s2415_s13, %s58_s20  }
   0xb   : > { %155 = sbr.rel (%p1869_p7) target bundleno = 165 (0xa5), region = 20 }
  0x10   : > { %158 = sbr.rel (!%p67_p3) target bundleno = 165 (0xa5), region = 24  ;;  %s160_s23 = sand.u32 (%p67_p3), 1, %s2415_s13  }
  0x11   : > { %s1870_s24 = sshll.u32 (%p67_p3), %s2423_s15, 2  ;;  %s2346_s25 = smul.u32 (%p67_p3), 576, %s160_s23 }
  0x12   : > { %s2497_s28 = scalar_lea.vmem (%p67_p3), %s3013_s1, %s1870_s24 }
  0x13   : > { %v181_v0 = vld [vmem:[%s2497_s28] sm:$0xf] (%p67_p3)  ;;  %v183_v1 = vld [vmem:[%s2497_s28 + $0x8] sm:$0xf] (%p67_p3)  ;;  %v185_v2 = vld [vmem:[%s2497_s28 + $0x10] sm:$0xf] (%p67_p3) }
  0x14   : > { %s2502_s29 = scalar_lea.vmem (%p67_p3), [#allocation2], %s2346_s25  ;;  %v187_v3 = vld [vmem:[%s2497_s28 + $0x18] sm:$0xf] (%p67_p3)  ;;  %v189_v4 = vld [vmem:[%s2497_s28 + $0x20] sm:$0xf] (%p67_p3) }
  0x15   : > { %182 = vst [vmem:[%s2502_s29] sm:$0xf] %v181_v0  ;;  %v191_v5 = vld [vmem:[%s2497_s28 + $0x28] sm:$0xf]  ;;  %v193_v6 = vld [vmem:[%s2497_s28 + $0x30] sm:$0xf] }
  0x16   : > { %184 = vst [vmem:[%s2502_s29 + $0x4] sm:$0xf] %v183_v1  ;;  %v195_v7 = vld [vmem:[%s2497_s28 + $0x38] sm:$0xf]  ;;  %v197_v8 = vld [vmem:[%s2497_s28 + $0x40] sm:$0xf] }
  0x17   : > { %186 = vst [vmem:[%s2502_s29 + $0x8] sm:$0xf] %v185_v2  ;;  %v199_v9 = vld [vmem:[%s2497_s28 + $0x48] sm:$0xf]  ;;  %v201_v10 = vld [vmem:[%s2497_s28 + $0x50] sm:$0xf] }
  0x18   : > { %188 = vst [vmem:[%s2502_s29 + $0xc] sm:$0xf] %v187_v3  ;;  %v203_v11 = vld [vmem:[%s2497_s28 + $0x58] sm:$0xf]  ;;  %v205_v12 = vld [vmem:[%s2497_s28 + $0x60] sm:$0xf] }
  0x19   : > { %190 = vst [vmem:[%s2502_s29 + $0x10] sm:$0xf] %v189_v4  ;;  %v207_v13 = vld [vmem:[%s2497_s28 + $0x68] sm:$0xf]  ;;  %v209_v14 = vld [vmem:[%s2497_s28 + $0x70] sm:$0xf] }
  0x1a   : > { %192 = vst [vmem:[%s2502_s29 + $0x14] sm:$0xf] %v191_v5  ;;  %v211_v15 = vld [vmem:[%s2497_s28 + $0x78] sm:$0xf]  ;;  %v213_v16 = vld [vmem:[%s2497_s28 + $0x80] sm:$0xf] }
  0x1b   : > { %194 = vst [vmem:[%s2502_s29 + $0x18] sm:$0xf] %v193_v6  ;;  %v215_v17 = vld [vmem:[%s2497_s28 + $0x88] sm:$0xf]  ;;  %v217_v18 = vld [vmem:[%s2497_s28 + $0x90] sm:$0xf] }
  0x1c   : > { %196 = vst [vmem:[%s2502_s29 + $0x1c] sm:$0xf] %v195_v7  ;;  %v219_v19 = vld [vmem:[%s2497_s28 + $0x98] sm:$0xf]  ;;  %v221_v20 = vld [vmem:[%s2497_s28 + $0xa0] sm:$0xf] }
  0x1d   : > { %198 = vst [vmem:[%s2502_s29 + $0x20] sm:$0xf] %v197_v8  ;;  %v223_v21 = vld [vmem:[%s2497_s28 + $0xa8] sm:$0xf]  ;;  %v225_v22 = vld [vmem:[%s2497_s28 + $0xb0] sm:$0xf] }
  0x1e   : > { %200 = vst [vmem:[%s2502_s29 + $0x24] sm:$0xf] %v199_v9  ;;  %v227_v23 = vld [vmem:[%s2497_s28 + $0xb8] sm:$0xf]  ;;  %v229_v24 = vld [vmem:[%s2497_s28 + $0xc0] sm:$0xf] }
  0x1f   : > { %202 = vst [vmem:[%s2502_s29 + $0x28] sm:$0xf] %v201_v10  ;;  %v231_v25 = vld [vmem:[%s2497_s28 + $0xc8] sm:$0xf]  ;;  %v233_v26 = vld [vmem:[%s2497_s28 + $0xd0] sm:$0xf] }
  0x20   : > { %204 = vst [vmem:[%s2502_s29 + $0x2c] sm:$0xf] %v203_v11  ;;  %v235_v27 = vld [vmem:[%s2497_s28 + $0xd8] sm:$0xf]  ;;  %v237_v28 = vld [vmem:[%s2497_s28 + $0xe0] sm:$0xf] }
  0x21   : > { %206 = vst [vmem:[%s2502_s29 + $0x30] sm:$0xf] %v205_v12  ;;  %v239_v29 = vld [vmem:[%s2497_s28 + $0xe8] sm:$0xf]  ;;  %v241_v30 = vld [vmem:[%s2497_s28 + $0xf0] sm:$0xf] }
  0x22   : > { %208 = vst [vmem:[%s2502_s29 + $0x34] sm:$0xf] %v207_v13  ;;  %v243_v31 = vld [vmem:[%s2497_s28 + $0xf8] sm:$0xf]  ;;  %v245_v32 = vld [vmem:[%s2497_s28 + $0x100] sm:$0xf] }
  0x23   : > { %210 = vst [vmem:[%s2502_s29 + $0x38] sm:$0xf] %v209_v14  ;;  %v247_v33 = vld [vmem:[%s2497_s28 + $0x108] sm:$0xf]  ;;  %v249_v34 = vld [vmem:[%s2497_s28 + $0x110] sm:$0xf] }
  0x24   : > { %212 = vst [vmem:[%s2502_s29 + $0x3c] sm:$0xf] %v211_v15  ;;  %v251_v35 = vld [vmem:[%s2497_s28 + $0x118] sm:$0xf]  ;;  %v253_v36 = vld [vmem:[%s2497_s28 + $0x120] sm:$0xf] }
  0x25   : > { %214 = vst [vmem:[%s2502_s29 + $0x40] sm:$0xf] %v213_v16  ;;  %v255_v37 = vld [vmem:[%s2497_s28 + $0x128] sm:$0xf]  ;;  %v257_v38 = vld [vmem:[%s2497_s28 + $0x130] sm:$0xf] }
  0x26   : > { %216 = vst [vmem:[%s2502_s29 + $0x44] sm:$0xf] %v215_v17  ;;  %v259_v39 = vld [vmem:[%s2497_s28 + $0x138] sm:$0xf]  ;;  %v261_v40 = vld [vmem:[%s2497_s28 + $0x140] sm:$0xf] }
  0x27   : > { %218 = vst [vmem:[%s2502_s29 + $0x48] sm:$0xf] %v217_v18  ;;  %v263_v41 = vld [vmem:[%s2497_s28 + $0x148] sm:$0xf]  ;;  %v265_v42 = vld [vmem:[%s2497_s28 + $0x150] sm:$0xf] }
  0x28   : > { %220 = vst [vmem:[%s2502_s29 + $0x4c] sm:$0xf] %v219_v19  ;;  %v267_v43 = vld [vmem:[%s2497_s28 + $0x158] sm:$0xf]  ;;  %v269_v44 = vld [vmem:[%s2497_s28 + $0x160] sm:$0xf] }
  0x29   : > { %222 = vst [vmem:[%s2502_s29 + $0x50] sm:$0xf] %v221_v20  ;;  %v271_v45 = vld [vmem:[%s2497_s28 + $0x168] sm:$0xf]  ;;  %v273_v46 = vld [vmem:[%s2497_s28 + $0x170] sm:$0xf] }
  0x2a   : > { %224 = vst [vmem:[%s2502_s29 + $0x54] sm:$0xf] %v223_v21  ;;  %v275_v47 = vld [vmem:[%s2497_s28 + $0x178] sm:$0xf]  ;;  %v277_v48 = vld [vmem:[%s2497_s28 + $0x180] sm:$0xf] }
  0x2b   : > { %226 = vst [vmem:[%s2502_s29 + $0x58] sm:$0xf] %v225_v22  ;;  %v279_v49 = vld [vmem:[%s2497_s28 + $0x188] sm:$0xf]  ;;  %v281_v50 = vld [vmem:[%s2497_s28 + $0x190] sm:$0xf] }
  0x2c   : > { %228 = vst [vmem:[%s2502_s29 + $0x5c] sm:$0xf] %v227_v23  ;;  %v283_v51 = vld [vmem:[%s2497_s28 + $0x198] sm:$0xf]  ;;  %v285_v52 = vld [vmem:[%s2497_s28 + $0x1a0] sm:$0xf] }
  0x2d   : > { %230 = vst [vmem:[%s2502_s29 + $0x60] sm:$0xf] %v229_v24  ;;  %v287_v53 = vld [vmem:[%s2497_s28 + $0x1a8] sm:$0xf]  ;;  %v289_v54 = vld [vmem:[%s2497_s28 + $0x1b0] sm:$0xf] }
  0x2e   : > { %232 = vst [vmem:[%s2502_s29 + $0x64] sm:$0xf] %v231_v25  ;;  %v291_v55 = vld [vmem:[%s2497_s28 + $0x1b8] sm:$0xf]  ;;  %v293_v56 = vld [vmem:[%s2497_s28 + $0x1c0] sm:$0xf] }
  0x2f   : > { %234 = vst [vmem:[%s2502_s29 + $0x68] sm:$0xf] %v233_v26  ;;  %v295_v57 = vld [vmem:[%s2497_s28 + $0x1c8] sm:$0xf]  ;;  %v297_v58 = vld [vmem:[%s2497_s28 + $0x1d0] sm:$0xf] }
  0x30   : > { %236 = vst [vmem:[%s2502_s29 + $0x6c] sm:$0xf] %v235_v27  ;;  %v299_v59 = vld [vmem:[%s2497_s28 + $0x1d8] sm:$0xf]  ;;  %v301_v60 = vld [vmem:[%s2497_s28 + $0x1e0] sm:$0xf] }
  0x31   : > { %238 = vst [vmem:[%s2502_s29 + $0x70] sm:$0xf] %v237_v28  ;;  %v303_v61 = vld [vmem:[%s2497_s28 + $0x1e8] sm:$0xf]  ;;  %v305_v62 = vld [vmem:[%s2497_s28 + $0x1f0] sm:$0xf] }
  0x32   : > { %240 = vst [vmem:[%s2502_s29 + $0x74] sm:$0xf] %v239_v29  ;;  %v307_v63 = vld [vmem:[%s2497_s28 + $0x1f8] sm:$0xf]  ;;  %v309_v0 = vld [vmem:[%s2497_s28 + $0x200] sm:$0xf] }
  0x33   : > { %242 = vst [vmem:[%s2502_s29 + $0x78] sm:$0xf] %v241_v30  ;;  %v311_v1 = vld [vmem:[%s2497_s28 + $0x208] sm:$0xf]  ;;  %v313_v2 = vld [vmem:[%s2497_s28 + $0x210] sm:$0xf] }
  0x34   : > { %244 = vst [vmem:[%s2502_s29 + $0x7c] sm:$0xf] %v243_v31  ;;  %v315_v3 = vld [vmem:[%s2497_s28 + $0x218] sm:$0xf]  ;;  %v317_v4 = vld [vmem:[%s2497_s28 + $0x220] sm:$0xf] }
  0x35   : > { %246 = vst [vmem:[%s2502_s29 + $0x80] sm:$0xf] %v245_v32  ;;  %v319_v5 = vld [vmem:[%s2497_s28 + $0x228] sm:$0xf]  ;;  %v321_v6 = vld [vmem:[%s2497_s28 + $0x230] sm:$0xf] }
  0x36   : > { %248 = vst [vmem:[%s2502_s29 + $0x84] sm:$0xf] %v247_v33  ;;  %v323_v7 = vld [vmem:[%s2497_s28 + $0x238] sm:$0xf]  ;;  %v325_v8 = vld [vmem:[%s2497_s28 + $0x240] sm:$0xf] }
  0x37   : > { %250 = vst [vmem:[%s2502_s29 + $0x88] sm:$0xf] %v249_v34  ;;  %v327_v9 = vld [vmem:[%s2497_s28 + $0x248] sm:$0xf]  ;;  %v329_v10 = vld [vmem:[%s2497_s28 + $0x250] sm:$0xf] }
  0x38   : > { %252 = vst [vmem:[%s2502_s29 + $0x8c] sm:$0xf] %v251_v35  ;;  %v331_v11 = vld [vmem:[%s2497_s28 + $0x258] sm:$0xf]  ;;  %v333_v12 = vld [vmem:[%s2497_s28 + $0x260] sm:$0xf] }
  0x39   : > { %254 = vst [vmem:[%s2502_s29 + $0x90] sm:$0xf] %v253_v36  ;;  %v335_v13 = vld [vmem:[%s2497_s28 + $0x268] sm:$0xf]  ;;  %v337_v14 = vld [vmem:[%s2497_s28 + $0x270] sm:$0xf] }
  0x3a   : > { %256 = vst [vmem:[%s2502_s29 + $0x94] sm:$0xf] %v255_v37  ;;  %v339_v15 = vld [vmem:[%s2497_s28 + $0x278] sm:$0xf]  ;;  %v341_v16 = vld [vmem:[%s2497_s28 + $0x280] sm:$0xf] }
  0x3b   : > { %258 = vst [vmem:[%s2502_s29 + $0x98] sm:$0xf] %v257_v38  ;;  %v343_v17 = vld [vmem:[%s2497_s28 + $0x288] sm:$0xf]  ;;  %v345_v18 = vld [vmem:[%s2497_s28 + $0x290] sm:$0xf] }
  0x3c   : > { %260 = vst [vmem:[%s2502_s29 + $0x9c] sm:$0xf] %v259_v39  ;;  %v347_v19 = vld [vmem:[%s2497_s28 + $0x298] sm:$0xf]  ;;  %v349_v20 = vld [vmem:[%s2497_s28 + $0x2a0] sm:$0xf] }
  0x3d   : > { %262 = vst [vmem:[%s2502_s29 + $0xa0] sm:$0xf] %v261_v40  ;;  %v351_v21 = vld [vmem:[%s2497_s28 + $0x2a8] sm:$0xf]  ;;  %v353_v22 = vld [vmem:[%s2497_s28 + $0x2b0] sm:$0xf] }
  0x3e   : > { %264 = vst [vmem:[%s2502_s29 + $0xa4] sm:$0xf] %v263_v41  ;;  %v355_v23 = vld [vmem:[%s2497_s28 + $0x2b8] sm:$0xf]  ;;  %v357_v24 = vld [vmem:[%s2497_s28 + $0x2c0] sm:$0xf] }
  0x3f   : > { %266 = vst [vmem:[%s2502_s29 + $0xa8] sm:$0xf] %v265_v42  ;;  %v359_v25 = vld [vmem:[%s2497_s28 + $0x2c8] sm:$0xf]  ;;  %v361_v26 = vld [vmem:[%s2497_s28 + $0x2d0] sm:$0xf] }
  0x40   : > { %268 = vst [vmem:[%s2502_s29 + $0xac] sm:$0xf] %v267_v43  ;;  %v363_v27 = vld [vmem:[%s2497_s28 + $0x2d8] sm:$0xf]  ;;  %v365_v28 = vld [vmem:[%s2497_s28 + $0x2e0] sm:$0xf] }
  0x41   : > { %270 = vst [vmem:[%s2502_s29 + $0xb0] sm:$0xf] %v269_v44  ;;  %v367_v29 = vld [vmem:[%s2497_s28 + $0x2e8] sm:$0xf]  ;;  %v369_v30 = vld [vmem:[%s2497_s28 + $0x2f0] sm:$0xf] }
  0x42   : > { %272 = vst [vmem:[%s2502_s29 + $0xb4] sm:$0xf] %v271_v45  ;;  %v371_v31 = vld [vmem:[%s2497_s28 + $0x2f8] sm:$0xf]  ;;  %v373_v32 = vld [vmem:[%s2497_s28 + $0x300] sm:$0xf] }
  0x43   : > { %274 = vst [vmem:[%s2502_s29 + $0xb8] sm:$0xf] %v273_v46  ;;  %v375_v33 = vld [vmem:[%s2497_s28 + $0x308] sm:$0xf]  ;;  %v377_v34 = vld [vmem:[%s2497_s28 + $0x310] sm:$0xf] }
  0x44   : > { %276 = vst [vmem:[%s2502_s29 + $0xbc] sm:$0xf] %v275_v47  ;;  %v379_v35 = vld [vmem:[%s2497_s28 + $0x318] sm:$0xf]  ;;  %v381_v36 = vld [vmem:[%s2497_s28 + $0x320] sm:$0xf] }
  0x45   : > { %278 = vst [vmem:[%s2502_s29 + $0xc0] sm:$0xf] %v277_v48  ;;  %v383_v37 = vld [vmem:[%s2497_s28 + $0x328] sm:$0xf]  ;;  %v385_v38 = vld [vmem:[%s2497_s28 + $0x330] sm:$0xf] }
  0x46   : > { %280 = vst [vmem:[%s2502_s29 + $0xc4] sm:$0xf] %v279_v49  ;;  %v387_v39 = vld [vmem:[%s2497_s28 + $0x338] sm:$0xf]  ;;  %v389_v40 = vld [vmem:[%s2497_s28 + $0x340] sm:$0xf] }
  0x47   : > { %282 = vst [vmem:[%s2502_s29 + $0xc8] sm:$0xf] %v281_v50  ;;  %v391_v41 = vld [vmem:[%s2497_s28 + $0x348] sm:$0xf]  ;;  %v393_v42 = vld [vmem:[%s2497_s28 + $0x350] sm:$0xf] }
  0x48   : > { %284 = vst [vmem:[%s2502_s29 + $0xcc] sm:$0xf] %v283_v51  ;;  %v395_v43 = vld [vmem:[%s2497_s28 + $0x358] sm:$0xf]  ;;  %v397_v44 = vld [vmem:[%s2497_s28 + $0x360] sm:$0xf] }
  0x49   : > { %286 = vst [vmem:[%s2502_s29 + $0xd0] sm:$0xf] %v285_v52  ;;  %v399_v45 = vld [vmem:[%s2497_s28 + $0x368] sm:$0xf]  ;;  %v401_v46 = vld [vmem:[%s2497_s28 + $0x370] sm:$0xf] }
  0x4a   : > { %288 = vst [vmem:[%s2502_s29 + $0xd4] sm:$0xf] %v287_v53  ;;  %v403_v47 = vld [vmem:[%s2497_s28 + $0x378] sm:$0xf]  ;;  %v405_v48 = vld [vmem:[%s2497_s28 + $0x380] sm:$0xf] }
  0x4b   : > { %290 = vst [vmem:[%s2502_s29 + $0xd8] sm:$0xf] %v289_v54  ;;  %v407_v49 = vld [vmem:[%s2497_s28 + $0x388] sm:$0xf]  ;;  %v409_v50 = vld [vmem:[%s2497_s28 + $0x390] sm:$0xf] }
  0x4c   : > { %292 = vst [vmem:[%s2502_s29 + $0xdc] sm:$0xf] %v291_v55  ;;  %v411_v51 = vld [vmem:[%s2497_s28 + $0x398] sm:$0xf]  ;;  %v413_v52 = vld [vmem:[%s2497_s28 + $0x3a0] sm:$0xf] }
  0x4d   : > { %294 = vst [vmem:[%s2502_s29 + $0xe0] sm:$0xf] %v293_v56  ;;  %v415_v53 = vld [vmem:[%s2497_s28 + $0x3a8] sm:$0xf]  ;;  %v417_v54 = vld [vmem:[%s2497_s28 + $0x3b0] sm:$0xf] }
  0x4e   : > { %296 = vst [vmem:[%s2502_s29 + $0xe4] sm:$0xf] %v295_v57  ;;  %v419_v55 = vld [vmem:[%s2497_s28 + $0x3b8] sm:$0xf]  ;;  %v421_v56 = vld [vmem:[%s2497_s28 + $0x3c0] sm:$0xf] }
  0x4f   : > { %298 = vst [vmem:[%s2502_s29 + $0xe8] sm:$0xf] %v297_v58  ;;  %v423_v57 = vld [vmem:[%s2497_s28 + $0x3c8] sm:$0xf]  ;;  %v425_v58 = vld [vmem:[%s2497_s28 + $0x3d0] sm:$0xf] }
  0x50   : > { %300 = vst [vmem:[%s2502_s29 + $0xec] sm:$0xf] %v299_v59  ;;  %v427_v59 = vld [vmem:[%s2497_s28 + $0x3d8] sm:$0xf] }
  0x51   : > { %302 = vst [vmem:[%s2502_s29 + $0xf0] sm:$0xf] %v301_v60  ;;  %v429_v60 = vld [vmem:[%s2497_s28 + $0x3e0] sm:$0xf] }
  0x52   : > { %304 = vst [vmem:[%s2502_s29 + $0xf4] sm:$0xf] %v303_v61  ;;  %v431_v61 = vld [vmem:[%s2497_s28 + $0x3e8] sm:$0xf] }
  0x53   : > { %306 = vst [vmem:[%s2502_s29 + $0xf8] sm:$0xf] %v305_v62  ;;  %v433_v62 = vld [vmem:[%s2497_s28 + $0x3f0] sm:$0xf] }
  0x54   : > { %308 = vst [vmem:[%s2502_s29 + $0xfc] sm:$0xf] %v307_v63  ;;  %v435_v63 = vld [vmem:[%s2497_s28 + $0x3f8] sm:$0xf] }
  0x55   : > { %310 = vst [vmem:[%s2502_s29 + $0x100] sm:$0xf] %v309_v0  ;;  %v437_v0 = vld [vmem:[%s2497_s28 + $0x400] sm:$0xf] }
  0x56   : > { %312 = vst [vmem:[%s2502_s29 + $0x104] sm:$0xf] %v311_v1  ;;  %v439_v1 = vld [vmem:[%s2497_s28 + $0x408] sm:$0xf] }
  0x57   : > { %314 = vst [vmem:[%s2502_s29 + $0x108] sm:$0xf] %v313_v2  ;;  %v441_v2 = vld [vmem:[%s2497_s28 + $0x410] sm:$0xf] }
  0x58   : > { %316 = vst [vmem:[%s2502_s29 + $0x10c] sm:$0xf] %v315_v3  ;;  %v443_v3 = vld [vmem:[%s2497_s28 + $0x418] sm:$0xf] }
  0x59   : > { %318 = vst [vmem:[%s2502_s29 + $0x110] sm:$0xf] %v317_v4  ;;  %v445_v4 = vld [vmem:[%s2497_s28 + $0x420] sm:$0xf] }
  0x5a   : > { %320 = vst [vmem:[%s2502_s29 + $0x114] sm:$0xf] %v319_v5  ;;  %v447_v5 = vld [vmem:[%s2497_s28 + $0x428] sm:$0xf] }
  0x5b   : > { %322 = vst [vmem:[%s2502_s29 + $0x118] sm:$0xf] %v321_v6  ;;  %v449_v6 = vld [vmem:[%s2497_s28 + $0x430] sm:$0xf] }
  0x5c   : > { %324 = vst [vmem:[%s2502_s29 + $0x11c] sm:$0xf] %v323_v7  ;;  %v451_v7 = vld [vmem:[%s2497_s28 + $0x438] sm:$0xf] }
  0x5d   : > { %326 = vst [vmem:[%s2502_s29 + $0x120] sm:$0xf] %v325_v8  ;;  %v453_v8 = vld [vmem:[%s2497_s28 + $0x440] sm:$0xf] }
  0x5e   : > { %328 = vst [vmem:[%s2502_s29 + $0x124] sm:$0xf] %v327_v9  ;;  %v455_v9 = vld [vmem:[%s2497_s28 + $0x448] sm:$0xf] }
  0x5f   : > { %330 = vst [vmem:[%s2502_s29 + $0x128] sm:$0xf] %v329_v10  ;;  %v457_v10 = vld [vmem:[%s2497_s28 + $0x450] sm:$0xf] }
  0x60   : > { %332 = vst [vmem:[%s2502_s29 + $0x12c] sm:$0xf] %v331_v11  ;;  %v459_v11 = vld [vmem:[%s2497_s28 + $0x458] sm:$0xf] }
  0x61   : > { %334 = vst [vmem:[%s2502_s29 + $0x130] sm:$0xf] %v333_v12  ;;  %v461_v12 = vld [vmem:[%s2497_s28 + $0x460] sm:$0xf] }
  0x62   : > { %336 = vst [vmem:[%s2502_s29 + $0x134] sm:$0xf] %v335_v13  ;;  %v463_v13 = vld [vmem:[%s2497_s28 + $0x468] sm:$0xf] }
  0x63   : > { %338 = vst [vmem:[%s2502_s29 + $0x138] sm:$0xf] %v337_v14  ;;  %v465_v14 = vld [vmem:[%s2497_s28 + $0x470] sm:$0xf] }
  0x64   : > { %340 = vst [vmem:[%s2502_s29 + $0x13c] sm:$0xf] %v339_v15  ;;  %v467_v15 = vld [vmem:[%s2497_s28 + $0x478] sm:$0xf] }
  0x65   : > { %342 = vst [vmem:[%s2502_s29 + $0x140] sm:$0xf] %v341_v16 }
  0x66   : > { %344 = vst [vmem:[%s2502_s29 + $0x144] sm:$0xf] %v343_v17 }
  0x67   : > { %346 = vst [vmem:[%s2502_s29 + $0x148] sm:$0xf] %v345_v18 }
  0x68   : > { %348 = vst [vmem:[%s2502_s29 + $0x14c] sm:$0xf] %v347_v19 }
  0x69   : > { %350 = vst [vmem:[%s2502_s29 + $0x150] sm:$0xf] %v349_v20 }
  0x6a   : > { %352 = vst [vmem:[%s2502_s29 + $0x154] sm:$0xf] %v351_v21 }
  0x6b   : > { %354 = vst [vmem:[%s2502_s29 + $0x158] sm:$0xf] %v353_v22 }
  0x6c   : > { %356 = vst [vmem:[%s2502_s29 + $0x15c] sm:$0xf] %v355_v23 }
  0x6d   : > { %358 = vst [vmem:[%s2502_s29 + $0x160] sm:$0xf] %v357_v24 }
  0x6e   : > { %360 = vst [vmem:[%s2502_s29 + $0x164] sm:$0xf] %v359_v25 }
  0x6f   : > { %362 = vst [vmem:[%s2502_s29 + $0x168] sm:$0xf] %v361_v26 }
  0x70   : > { %364 = vst [vmem:[%s2502_s29 + $0x16c] sm:$0xf] %v363_v27 }
  0x71   : > { %366 = vst [vmem:[%s2502_s29 + $0x170] sm:$0xf] %v365_v28 }
  0x72   : > { %368 = vst [vmem:[%s2502_s29 + $0x174] sm:$0xf] %v367_v29 }
  0x73   : > { %370 = vst [vmem:[%s2502_s29 + $0x178] sm:$0xf] %v369_v30 }
  0x74   : > { %372 = vst [vmem:[%s2502_s29 + $0x17c] sm:$0xf] %v371_v31 }
  0x75   : > { %374 = vst [vmem:[%s2502_s29 + $0x180] sm:$0xf] %v373_v32 }
  0x76   : > { %376 = vst [vmem:[%s2502_s29 + $0x184] sm:$0xf] %v375_v33 }
  0x77   : > { %378 = vst [vmem:[%s2502_s29 + $0x188] sm:$0xf] %v377_v34 }
  0x78   : > { %380 = vst [vmem:[%s2502_s29 + $0x18c] sm:$0xf] %v379_v35 }
  0x79   : > { %382 = vst [vmem:[%s2502_s29 + $0x190] sm:$0xf] %v381_v36 }
  0x7a   : > { %384 = vst [vmem:[%s2502_s29 + $0x194] sm:$0xf] %v383_v37 }
  0x7b   : > { %386 = vst [vmem:[%s2502_s29 + $0x198] sm:$0xf] %v385_v38 }
  0x7c   : > { %388 = vst [vmem:[%s2502_s29 + $0x19c] sm:$0xf] %v387_v39 }
  0x7d   : > { %390 = vst [vmem:[%s2502_s29 + $0x1a0] sm:$0xf] %v389_v40 }
  0x7e   : > { %392 = vst [vmem:[%s2502_s29 + $0x1a4] sm:$0xf] %v391_v41 }
  0x7f   : > { %394 = vst [vmem:[%s2502_s29 + $0x1a8] sm:$0xf] %v393_v42 }
  0x80   : > { %396 = vst [vmem:[%s2502_s29 + $0x1ac] sm:$0xf] %v395_v43 }
  0x81   : > { %398 = vst [vmem:[%s2502_s29 + $0x1b0] sm:$0xf] %v397_v44 }
  0x82   : > { %400 = vst [vmem:[%s2502_s29 + $0x1b4] sm:$0xf] %v399_v45 }
  0x83   : > { %402 = vst [vmem:[%s2502_s29 + $0x1b8] sm:$0xf] %v401_v46 }
  0x84   : > { %404 = vst [vmem:[%s2502_s29 + $0x1bc] sm:$0xf] %v403_v47 }
  0x85   : > { %406 = vst [vmem:[%s2502_s29 + $0x1c0] sm:$0xf] %v405_v48 }
  0x86   : > { %408 = vst [vmem:[%s2502_s29 + $0x1c4] sm:$0xf] %v407_v49 }
  0x87   : > { %410 = vst [vmem:[%s2502_s29 + $0x1c8] sm:$0xf] %v409_v50 }
  0x88   : > { %412 = vst [vmem:[%s2502_s29 + $0x1cc] sm:$0xf] %v411_v51 }
  0x89   : > { %414 = vst [vmem:[%s2502_s29 + $0x1d0] sm:$0xf] %v413_v52 }
  0x8a   : > { %416 = vst [vmem:[%s2502_s29 + $0x1d4] sm:$0xf] %v415_v53 }
  0x8b   : > { %418 = vst [vmem:[%s2502_s29 + $0x1d8] sm:$0xf] %v417_v54 }
  0x8c   : > { %420 = vst [vmem:[%s2502_s29 + $0x1dc] sm:$0xf] %v419_v55 }
  0x8d   : > { %422 = vst [vmem:[%s2502_s29 + $0x1e0] sm:$0xf] %v421_v56 }
  0x8e   : > { %424 = vst [vmem:[%s2502_s29 + $0x1e4] sm:$0xf] %v423_v57 }
  0x8f   : > { %426 = vst [vmem:[%s2502_s29 + $0x1e8] sm:$0xf] %v425_v58 }
  0x90   : > { %428 = vst [vmem:[%s2502_s29 + $0x1ec] sm:$0xf] %v427_v59 }
  0x91   : > { %430 = vst [vmem:[%s2502_s29 + $0x1f0] sm:$0xf] %v429_v60 }
  0x92   : > { %432 = vst [vmem:[%s2502_s29 + $0x1f4] sm:$0xf] %v431_v61 }
  0x93   : > { %434 = vst [vmem:[%s2502_s29 + $0x1f8] sm:$0xf] %v433_v62 }
  0x94   : > { %436 = vst [vmem:[%s2502_s29 + $0x1fc] sm:$0xf] %v435_v63 }
  0x95   : > { %438 = vst [vmem:[%s2502_s29 + $0x200] sm:$0xf] %v437_v0 }
  0x96   : > { %440 = vst [vmem:[%s2502_s29 + $0x204] sm:$0xf] %v439_v1 }
  0x97   : > { %442 = vst [vmem:[%s2502_s29 + $0x208] sm:$0xf] %v441_v2 }
  0x98   : > { %444 = vst [vmem:[%s2502_s29 + $0x20c] sm:$0xf] %v443_v3 }
  0x99   : > { %446 = vst [vmem:[%s2502_s29 + $0x210] sm:$0xf] %v445_v4 }
  0x9a   : > { %448 = vst [vmem:[%s2502_s29 + $0x214] sm:$0xf] %v447_v5 }
  0x9b   : > { %450 = vst [vmem:[%s2502_s29 + $0x218] sm:$0xf] %v449_v6 }
  0x9c   : > { %452 = vst [vmem:[%s2502_s29 + $0x21c] sm:$0xf] %v451_v7 }
  0x9d   : > { %454 = vst [vmem:[%s2502_s29 + $0x220] sm:$0xf] %v453_v8 }
  0x9e   : > { %456 = vst [vmem:[%s2502_s29 + $0x224] sm:$0xf] %v455_v9 }
  0x9f   : > { %458 = vst [vmem:[%s2502_s29 + $0x228] sm:$0xf] %v457_v10 }
  0xa0   : > { %460 = vst [vmem:[%s2502_s29 + $0x22c] sm:$0xf] %v459_v11 }
  0xa1   : > { %462 = vst [vmem:[%s2502_s29 + $0x230] sm:$0xf] %v461_v12 }
  0xa2   : > { %464 = vst [vmem:[%s2502_s29 + $0x234] sm:$0xf] %v463_v13 }
  0xa3   : > { %466 = vst [vmem:[%s2502_s29 + $0x238] sm:$0xf] %v465_v14 }
  0xa4   : > { %468 = vst [vmem:[%s2502_s29 + $0x23c] sm:$0xf] %v467_v15 }
  0xa5 PF: > { %p1871_p8 = scmp.ge.s32.totalorder %s2427_s16, 1  ;;  %p785_p9 = scmp.lt.s32.totalorder %s2427_s16, 3 }
  0xa7   : > { %p786_p10 = pnand %p1871_p8, %p785_p9 }
  0xa8   : > { %s792_s30 = sand.u32 (!%p786_p10), 1, %s2411_s12   ;;  %p830_p11 = scmp.lt.s32.totalorder (!%p786_p10), %s2419_s14, 1 }
  0xa9   : > { %789 = sbr.rel (%p786_p10) target bundleno = 422 (0x1a6), region = 69 }
  0xaa   : > { %s2347_s4 = smul.u32 (!%p786_p10), 576, %s792_s30 }
  0xac   : > { %s2794_s5 = scalar_lea.vmem (!%p786_p10), [#allocation2], %s2347_s4 }
  0xae   : > { %v2262_v16 = vld [vmem:[%s2794_s5 + $0x38] sm:$0xff]  ;;  %v2261_v20 = vld [vmem:[%s2794_s5 + $0x30] sm:$0xff]  ;;  %v2260_v24 = vld [vmem:[%s2794_s5 + $0x28] sm:$0xff]  ;;  %s2820_s6 = scalar_select %p830_p11, %s2419_s14, 1 }
  0xaf   : > { %v2270_v17 = vld [vmem:[%s2794_s5 + $0x78] sm:$0xff]  ;;  %1526 = vmatpush.bf16.msra.mxu0 %v2262_v16  ;;  %v2269_v21 = vld [vmem:[%s2794_s5 + $0x70] sm:$0xff]  ;;  %v2268_v25 = vld [vmem:[%s2794_s5 + $0x68] sm:$0xff]  ;;  %s2234_s7 = sshll.u32 (%p2484_p6), %s2419_s14, 2 }
  0xb0   : > { %v2278_v18 = vld [vmem:[%s2794_s5 + $0xb8] sm:$0xff]  ;;  %1545 = vmatpush.bf16.msra.mxu1 %v2270_v17  ;;  %v2277_v22 = vld [vmem:[%s2794_s5 + $0xb0] sm:$0xff]  ;;  %v2276_v26 = vld [vmem:[%s2794_s5 + $0xa8] sm:$0xff]  ;;  %s832_s9 = scalar_lea.vmem %s3014_s2, %s2820_s6  ;;  %s1872_s6 = sshll.u32 %s792_s30, 4 }
  0xb1   : > { %v2286_v19 = vld [vmem:[%s2794_s5 + $0xf8] sm:$0xff]  ;;  %1564 = vmatpush.bf16.msra.mxu2 %v2278_v18  ;;  %v2285_v23 = vld [vmem:[%s2794_s5 + $0xf0] sm:$0xff]  ;;  %v2284_v27 = vld [vmem:[%s2794_s5 + $0xe8] sm:$0xff]  ;;  %s1720_s8 = scalar_lea.vmem (%p2484_p6), %s3015_s3, %s2234_s7 }
  0xb2   : > { %1583 = vmatpush.bf16.msra.mxu3 %v2286_v19  ;;  %v2259_v28 = vld [vmem:[%s2794_s5 + $0x20] sm:$0xff]  ;;  %v2258_v32 = vld [vmem:[%s2794_s5 + $0x18] sm:$0xff]  ;;  %v2257_v36 = vld [vmem:[%s2794_s5 + $0x10] sm:$0xff] }
  0xb3   : > { %1527 = vmatpush.bf16.msra.mxu0 %v2261_v20  ;;  %v2267_v29 = vld [vmem:[%s2794_s5 + $0x60] sm:$0xff]  ;;  %v2266_v33 = vld [vmem:[%s2794_s5 + $0x58] sm:$0xff]  ;;  %v2265_v37 = vld [vmem:[%s2794_s5 + $0x50] sm:$0xff] }
  0xb4   : > { %1546 = vmatpush.bf16.msra.mxu1 %v2269_v21  ;;  %v2275_v30 = vld [vmem:[%s2794_s5 + $0xa0] sm:$0xff]  ;;  %v2274_v34 = vld [vmem:[%s2794_s5 + $0x98] sm:$0xff]  ;;  %v2273_v38 = vld [vmem:[%s2794_s5 + $0x90] sm:$0xff] }
  0xb5   : > { %1565 = vmatpush.bf16.msra.mxu2 %v2277_v22  ;;  %v2283_v31 = vld [vmem:[%s2794_s5 + $0xe0] sm:$0xff]  ;;  %v2282_v35 = vld [vmem:[%s2794_s5 + $0xd8] sm:$0xff]  ;;  %v2281_v39 = vld [vmem:[%s2794_s5 + $0xd0] sm:$0xff] }
  0xb6   : > { %1584 = vmatpush.bf16.msra.mxu3 %v2285_v23  ;;  %v2256_v40 = vld [vmem:[%s2794_s5 + $0x8] sm:$0xff]  ;;  %v2255_v44 = vld [vmem:[%s2794_s5] sm:$0xff]  ;;  %v1885_v55 = vld [vmem:[%s3012_s0 + $0x2c] sm:$0xf0] }
  0xb7   : > { %1528 = vmatpush.bf16.msra.mxu0 %v2260_v24  ;;  %v2264_v41 = vld [vmem:[%s2794_s5 + $0x48] sm:$0xff]  ;;  %v1875_v45 = vld [vmem:[%s3012_s0] sm:$0xf]  ;;  %v2241_v46 = vld [vmem:[%s3012_s0 + $0x20] sm:$0xf0] }
  0xb8   : > { %1547 = vmatpush.bf16.msra.mxu1 %v2268_v25  ;;  %v2272_v42 = vld [vmem:[%s2794_s5 + $0x88] sm:$0xff]  ;;  %v2263_v47 = vld [vmem:[%s2794_s5 + $0x40] sm:$0xff]  ;;  %v2294_v56 = vld [vmem:[%s2794_s5 + $0x138] sm:$0xff]  ;;  %v1876_v58 = vor.u32 %v2241_v46, %v1875_v45 }
  0xb9   : > { %1566 = vmatpush.bf16.msra.mxu2 %v2276_v26  ;;  %v2280_v43 = vld [vmem:[%s2794_s5 + $0xc8] sm:$0xff]  ;;  %v2271_v48 = vld [vmem:[%s2794_s5 + $0x80] sm:$0xff]  ;;  %v2302_v57 = vld [vmem:[%s2794_s5 + $0x178] sm:$0xff] }
  0xba   : > { %1585 = vmatpush.bf16.msra.mxu3 %v2284_v27  ;;  %v2279_v49 = vld [vmem:[%s2794_s5 + $0xc0] sm:$0xff]  ;;  %v1877_v51 = vld [vmem:[%s3012_s0 + $0x24] sm:$0xf0]  ;;  %v2242_v53 = vld [vmem:[%s3012_s0 + $0x28] sm:$0xf0] }
  0xbb   : > { %1529 = vmatpush.bf16.msra.mxu0 %v2259_v28  ;;  %v2237_v50 = vld [vmem:[%s3012_s0 + $0x4] sm:$0xf]  ;;  %v1883_v52 = vld [vmem:[%s3012_s0 + $0x8] sm:$0xf]  ;;  %v2238_v54 = vld [vmem:[%s3012_s0 + $0xc] sm:$0xf] }
  0xbc   : > { %1548 = vmatpush.bf16.msra.mxu1 %v2267_v29  ;;  %v1880_v59 = vor.u32 %v2237_v50, %v1877_v51  ;;  %v1884_v60 = vor.u32 %v2242_v53, %v1883_v52  ;;  %v1888_v61 = vor.u32 %v2238_v54, %v1885_v55  ;;  %v2310_v62 = vld [vmem:[%s2794_s5 + $0x1b8] sm:$0xff]  ;;  %v2293_v0 = vld [vmem:[%s2794_s5 + $0x130] sm:$0xff]  ;;  %v2292_v4 = vld [vmem:[%s2794_s5 + $0x128] sm:$0xff] }
  0xbd   : > { %1567 = vmatpush.bf16.msra.mxu2 %v2275_v30  ;;  %v2318_v63 = vld [vmem:[%s2794_s5 + $0x1f8] sm:$0xff]  ;;  %v2301_v1 = vld [vmem:[%s2794_s5 + $0x170] sm:$0xff]  ;;  %v2300_v5 = vld [vmem:[%s2794_s5 + $0x168] sm:$0xff] }
  0xbe   : > { %1586 = vmatpush.bf16.msra.mxu3 %v2283_v31  ;;  %v2309_v2 = vld [vmem:[%s2794_s5 + $0x1b0] sm:$0xff]  ;;  %v2308_v6 = vld [vmem:[%s2794_s5 + $0x1a8] sm:$0xff]  ;;  %v2291_v8 = vld [vmem:[%s2794_s5 + $0x120] sm:$0xff] }
  0xbf   : > { %1530 = vmatpush.bf16.msra.mxu0 %v2258_v32  ;;  %v2317_v3 = vld [vmem:[%s2794_s5 + $0x1f0] sm:$0xff]  ;;  %v2316_v7 = vld [vmem:[%s2794_s5 + $0x1e8] sm:$0xff]  ;;  %v2299_v9 = vld [vmem:[%s2794_s5 + $0x160] sm:$0xff] }
  0xc0   : > { %1549 = vmatpush.bf16.msra.mxu1 %v2266_v33  ;;  %v2307_v10 = vld [vmem:[%s2794_s5 + $0x1a0] sm:$0xff]  ;;  %v1911_v12 = vld [vmem:[%s3012_s0 + $0x48] sm:$0xf]  ;;  %v2250_v13 = vld [vmem:[%s3012_s0 + $0x68] sm:$0xf0] }
  0xc1   : > { %1568 = vmatpush.bf16.msra.mxu2 %v2274_v34  ;;  %v2315_v11 = vld [vmem:[%s2794_s5 + $0x1e0] sm:$0xff]  ;;  %v2246_v14 = vld [vmem:[%s3012_s0 + $0x4c] sm:$0xf]  ;;  %v1913_v15 = vld [vmem:[%s3012_s0 + $0x6c] sm:$0xf0]  ;;  %v1912_v22 = vor.u32 %v2250_v13, %v1911_v12 }
  0xc2   : > { %1587 = vmatpush.bf16.msra.mxu3 %v2282_v35  ;;  %v1919_v16 = vld [vmem:[%s3012_s0 + $0x50] sm:$0xf]  ;;  %v2251_v17 = vld [vmem:[%s3012_s0 + $0x70] sm:$0xf0]  ;;  %v1921_v19 = vld [vmem:[%s3012_s0 + $0x74] sm:$0xf0]  ;;  %v1916_v23 = vor.u32 %v2246_v14, %v1913_v15 }
  0xc3   : > { %1531 = vmatpush.bf16.msra.mxu0 %v2257_v36  ;;  %v2247_v18 = vld [vmem:[%s3012_s0 + $0x54] sm:$0xf]  ;;  %v2290_v20 = vld [vmem:[%s2794_s5 + $0x118] sm:$0xff]  ;;  %v1920_v24 = vor.u32 %v2251_v17, %v1919_v16  ;;  %v2288_v32 = vld [vmem:[%s2794_s5 + $0x108] sm:$0xff] }
  0xc4   : > { %1550 = vmatpush.bf16.msra.mxu1 %v2265_v37  ;;  %v2298_v21 = vld [vmem:[%s2794_s5 + $0x158] sm:$0xff]  ;;  %v1924_v25 = vor.u32 %v2247_v18, %v1921_v19  ;;  %v2289_v28 = vld [vmem:[%s2794_s5 + $0x110] sm:$0xff]  ;;  %v2296_v33 = vld [vmem:[%s2794_s5 + $0x148] sm:$0xff] }
  0xc5   : > { %1569 = vmatpush.bf16.msra.mxu2 %v2273_v38  ;;  %v2306_v26 = vld [vmem:[%s2794_s5 + $0x198] sm:$0xff]  ;;  %v2297_v29 = vld [vmem:[%s2794_s5 + $0x150] sm:$0xff]  ;;  %v2304_v34 = vld [vmem:[%s2794_s5 + $0x188] sm:$0xff] }
  0xc6   : > { %1588 = vmatpush.bf16.msra.mxu3 %v2281_v39  ;;  %v2314_v27 = vld [vmem:[%s2794_s5 + $0x1d8] sm:$0xff]  ;;  %v2305_v30 = vld [vmem:[%s2794_s5 + $0x190] sm:$0xff]  ;;  %v2312_v35 = vld [vmem:[%s2794_s5 + $0x1c8] sm:$0xff] }
  0xc7   : > { %1532 = vmatpush.bf16.msra.mxu0 %v2256_v40  ;;  %v2313_v31 = vld [vmem:[%s2794_s5 + $0x1d0] sm:$0xff]  ;;  %v2287_v36 = vld [vmem:[%s2794_s5 + $0x100] sm:$0xff]  ;;  %v1899_v45 = vld [vmem:[%s3012_s0 + $0x18] sm:$0xf] }
  0xc8   : > { %1551 = vmatpush.bf16.msra.mxu1 %v2264_v41  ;;  %v2295_v37 = vld [vmem:[%s2794_s5 + $0x140] sm:$0xff]  ;;  %v1891_v40 = vld [vmem:[%s3012_s0 + $0x10] sm:$0xf]  ;;  %v2243_v41 = vld [vmem:[%s3012_s0 + $0x30] sm:$0xf0] }
  0xc9   : > { %1570 = vmatpush.bf16.msra.mxu2 %v2272_v42  ;;  %v2303_v38 = vld [vmem:[%s2794_s5 + $0x180] sm:$0xff]  ;;  %v2326_v42 = vld [vmem:[%s2794_s5 + $0x238] sm:$0xff]  ;;  %v2325_v53 = vld [vmem:[%s2794_s5 + $0x230] sm:$0xff] }
  0xca   : > { %1589 = vmatpush.bf16.msra.mxu3 %v2280_v43  ;;  %v2311_v39 = vld [vmem:[%s2794_s5 + $0x1c0] sm:$0xff]  ;;  %v2239_v43 = vld [vmem:[%s3012_s0 + $0x14] sm:$0xf]  ;;  %v2244_v46 = vld [vmem:[%s3012_s0 + $0x38] sm:$0xf0] }
  0xcb   : > { %1533 = vmatpush.bf16.msra.mxu0 %v2255_v44  ;;  %v1893_v44 = vld [vmem:[%s3012_s0 + $0x34] sm:$0xf0]  ;;  %v1900_v51 = vor.u32 %v2244_v46, %v1899_v45  ;;  %v2324_v54 = vld [vmem:[%s2794_s5 + $0x228] sm:$0xff]  ;;  %v2323_v55 = vld [vmem:[%s2794_s5 + $0x220] sm:$0xff] }
  0xcc   : > { %1552 = vmatpush.bf16.msra.mxu1 %v2263_v47  ;;  %v2240_v47 = vld [vmem:[%s3012_s0 + $0x1c] sm:$0xf]  ;;  %v1896_v50 = vor.u32 %v2239_v43, %v1893_v44 }
  0xcd   : > { %1571 = vmatpush.bf16.msra.mxu2 %v2271_v48  ;;  %v1901_v48 = vld [vmem:[%s3012_s0 + $0x3c] sm:$0xf0] }
  0xce   : > { %1590 = vmatpush.bf16.msra.mxu3 %v2279_v49  ;;  %1534 = vmatmul.bf16.vlgmr.msra.gmra.mxu0 %v1876_v58  ;;  %v1892_v49 = vor.u32 %v2243_v41, %v1891_v40  ;;  %v1904_v52 = vor.u32 %v2240_v47, %v1901_v48  ;;  %v2248_v58 = vld [vmem:[%s3012_s0 + $0x5c] sm:$0xf] }
  0xcf   : > { %1602 = vmatpush.bf16.msrb.mxu0 %v2294_v56  ;;  %1553 = vmatmul.bf16.vlgmr.msra.gmra.mxu1 %v1880_v59  ;;  %v1927_v56 = vld [vmem:[%s3012_s0 + $0x58] sm:$0xf]  ;;  %v1929_v59 = vld [vmem:[%s3012_s0 + $0x7c] sm:$0xf0] }
  0xd0   : > { %1621 = vmatpush.bf16.msrb.mxu1 %v2302_v57  ;;  %1572 = vmatmul.bf16.vlgmr.msra.gmra.mxu2 %v1884_v60  ;;  %v2252_v57 = vld [vmem:[%s3012_s0 + $0x78] sm:$0xf0]  ;;  %v1935_v60 = vld [vmem:[%s3012_s0 + $0x60] sm:$0xf] }
  0xd1   : > { %1591 = vmatmul.bf16.vlgmr.msra.gmra.mxu3 %v1888_v61  ;;  %1640 = vmatpush.bf16.msrb.mxu2 %v2310_v62  ;;  %v2253_v61 = vld [vmem:[%s3012_s0 + $0x80] sm:$0xf0] }
  0xd2   : > { %1659 = vmatpush.bf16.msrb.mxu3 %v2318_v63  ;;  %v2249_v62 = vld [vmem:[%s3012_s0 + $0x64] sm:$0xf]  ;;  %v1937_v63 = vld [vmem:[%s3012_s0 + $0x84] sm:$0xf0] }
  0xd3   : > { %1603 = vmatpush.bf16.msrb.mxu0 %v2293_v0  ;;  %v2322_v0 = vld [vmem:[%s2794_s5 + $0x218] sm:$0xff] }
  0xd4   : > { %1622 = vmatpush.bf16.msrb.mxu1 %v2301_v1  ;;  %v1928_v1 = vor.u32 %v2252_v57, %v1927_v56 }
  0xd5   : > { %1641 = vmatpush.bf16.msrb.mxu2 %v2309_v2  ;;  %v1932_v2 = vor.u32 %v2248_v58, %v1929_v59 }
  0xd6   : > { %1660 = vmatpush.bf16.msrb.mxu3 %v2317_v3  ;;  %v1936_v3 = vor.u32 %v2253_v61, %v1935_v60 }
  0xd7   : > { %1604 = vmatpush.bf16.msrb.mxu0 %v2292_v4  ;;  %v1940_v4 = vor.u32 %v2249_v62, %v1937_v63 }
  0xd8   : > { %1623 = vmatpush.bf16.msrb.mxu1 %v2300_v5  ;;  %v2321_v5 = vld [vmem:[%s2794_s5 + $0x210] sm:$0xff] }
  0xd9   : > { %1642 = vmatpush.bf16.msrb.mxu2 %v2308_v6  ;;  %v2320_v6 = vld [vmem:[%s2794_s5 + $0x208] sm:$0xff] }
  0xda   : > { %1661 = vmatpush.bf16.msrb.mxu3 %v2316_v7  ;;  %v2319_v7 = vld [vmem:[%s2794_s5 + $0x200] sm:$0xff] }
  0xdb   : > { %1605 = vmatpush.bf16.msrb.mxu0 %v2291_v8  ;;  %v1907_v8 = vld [vmem:[%s3012_s0 + $0x20] sm:$0xf] }
  0xdc   : > { %1624 = vmatpush.bf16.msrb.mxu1 %v2299_v9  ;;  %v2245_v9 = vld [vmem:[%s3012_s0 + $0x40] sm:$0xf0] }
  0xdd   : > { %1643 = vmatpush.bf16.msrb.mxu2 %v2307_v10  ;;  %v1943_v10 = vld [vmem:[%s3012_s0 + $0x68] sm:$0xf]  ;;  %v1908_v12 = vor.u32 %v2245_v9, %v1907_v8 }
  0xde   : > { %1662 = vmatpush.bf16.msrb.mxu3 %v2315_v11  ;;  %1539 = vmatmul.bf16.gmra.mxu0 %v1912_v22  ;;  %v2254_v11 = vld [vmem:[%s3012_s0 + $0x88] sm:$0xf0] }
  0xdf   : > { %1606 = vmatpush.bf16.msrb.mxu0 %v2290_v20  ;;  %1558 = vmatmul.bf16.gmra.mxu1 %v1916_v23  ;;  %v1944_v13 = vor.u32 %v2254_v11, %v1943_v10 }
  0xe0   : > { %1625 = vmatpush.bf16.msrb.mxu1 %v2298_v21  ;;  %1577 = vmatmul.bf16.gmra.mxu2 %v1920_v24 }
  0xe1   : > { %1596 = vmatmul.bf16.gmra.mxu3 %v1924_v25  ;;  %1644 = vmatpush.bf16.msrb.mxu2 %v2306_v26 }
  0xe2   : > { %1663 = vmatpush.bf16.msrb.mxu3 %v2314_v27 }
  0xe3   : > { %1607 = vmatpush.bf16.msrb.mxu0 %v2289_v28 }
  0xe4   : > { %1626 = vmatpush.bf16.msrb.mxu1 %v2297_v29 }
  0xe5   : > { %1645 = vmatpush.bf16.msrb.mxu2 %v2305_v30 }
  0xe6   : > { %1664 = vmatpush.bf16.msrb.mxu3 %v2313_v31 }
  0xe7   : > { %1608 = vmatpush.bf16.msrb.mxu0 %v2288_v32 }
  0xe8   : > { %1627 = vmatpush.bf16.msrb.mxu1 %v2296_v33 }
  0xe9   : > { %1646 = vmatpush.bf16.msrb.mxu2 %v2304_v34 }
  0xea   : > { %1665 = vmatpush.bf16.msrb.mxu3 %v2312_v35 }
  0xeb   : > { %1609 = vmatpush.bf16.msrb.mxu0 %v2287_v36  ;;  %v2388_v36 = vld [vmem:[%s832_s9] ss:$0 sm:$0xff]  ;;  %s822_s9 = scalar_lea.vmem [#allocation3], %s1872_s6 }
  0xec   : > { %1628 = vmatpush.bf16.msrb.mxu1 %v2295_v37 }
  0xed   : > { %1647 = vmatpush.bf16.msrb.mxu2 %v2303_v38 }
  0xee   : > { %1666 = vmatpush.bf16.msrb.mxu3 %v2311_v39  ;;  %1610 = vmatmul.bf16.vlgmr.msrb.gmra.mxu0 %v1892_v49 }
  0xef   : > { %1678 = vmatpush.bf16.msra.mxu0 %v2326_v42  ;;  %1629 = vmatmul.bf16.vlgmr.msrb.gmra.mxu1 %v1896_v50 }
  0xf0   : > { %2338 = vmatpush.bf16.msra.mxu1 %v2326_v42  ;;  %1648 = vmatmul.bf16.vlgmr.msrb.gmra.mxu2 %v1900_v51 }
  0xf1   : > { %1667 = vmatmul.bf16.vlgmr.msrb.gmra.mxu3 %v1904_v52 }
  0xf3   : > { %1679 = vmatpush.bf16.msra.mxu0 %v2325_v53 }
  0xf4   : > { %2339 = vmatpush.bf16.msra.mxu1 %v2325_v53 }
  0xf7   : > { %1680 = vmatpush.bf16.msra.mxu0 %v2324_v54 }
  0xf8   : > { %2340 = vmatpush.bf16.msra.mxu1 %v2324_v54 }
  0xfb   : > { %1681 = vmatpush.bf16.msra.mxu0 %v2323_v55 }
  0xfc   : > { %2341 = vmatpush.bf16.msra.mxu1 %v2323_v55 }
  0xfe   : > { %1615 = vmatmul.bf16.gmra.mxu0 %v1928_v1 }
  0xff   : > { %1682 = vmatpush.bf16.msra.mxu0 %v2322_v0  ;;  %1634 = vmatmul.bf16.gmra.mxu1 %v1932_v2 }
 0x100   : > { %2342 = vmatpush.bf16.msra.mxu1 %v2322_v0  ;;  %1653 = vmatmul.bf16.gmra.mxu2 %v1936_v3 }
 0x101   : > { %1672 = vmatmul.bf16.gmra.mxu3 %v1940_v4 }
 0x103   : > { %1683 = vmatpush.bf16.msra.mxu0 %v2321_v5 }
 0x104   : > { %2343 = vmatpush.bf16.msra.mxu1 %v2321_v5 }
 0x107   : > { %1684 = vmatpush.bf16.msra.mxu0 %v2320_v6 }
 0x108   : > { %2344 = vmatpush.bf16.msra.mxu1 %v2320_v6 }
 0x10b   : > { %1685 = vmatpush.bf16.msra.mxu0 %v2319_v7 }
 0x10c   : > { %2345 = vmatpush.bf16.msra.mxu1 %v2319_v7 }
 0x10e   : > { %1686 = vmatmul.bf16.vlgmr.msra.gmra.mxu0 %v1908_v12 }
 0x10f   : > { %1691 = vmatmul.bf16.vlgmr.msra.gmra.mxu1 %v1944_v13 }
 0x14b   : > { %v1535_v14 = vpop.f32.mrf.mxu0 }
 0x14c   : > { %v1554_v15 = vpop.f32.mrf.mxu1  ;;  %v1536_v37 = vadd.f32 %v2388_v36, %v1535_v14 }
 0x14e   : > { %v1555_v45 = vadd.f32 %v1554_v15, %v1536_v37 }
 0x153   : > { %v1573_v16 = vpop.f32.mrf.mxu2  ;;  %v1537_v18 = vpop.f32.mrf.mxu0 }
 0x154   : > { %v1592_v17 = vpop.f32.mrf.mxu3  ;;  %v1556_v19 = vpop.f32.mrf.mxu1  ;;  %v1538_v42 = vadd.f32 %v2388_v36, %v1537_v18  ;;  %v1574_v47 = vadd.f32 %v1573_v16, %v1555_v45 }
 0x156   : > { %v1557_v48 = vadd.f32 %v1556_v19, %v1538_v42  ;;  %v1593_v56 = vadd.f32 %v1592_v17, %v1574_v47 }
 0x15b   : > { %v1575_v20 = vpop.f32.mrf.mxu2  ;;  %v1540_v22 = vpop.f32.mrf.mxu0 }
 0x15c   : > { %v1594_v21 = vpop.f32.mrf.mxu3  ;;  %v1559_v23 = vpop.f32.mrf.mxu1  ;;  %v1541_v38 = vadd.f32 %v2388_v36, %v1540_v22  ;;  %v1576_v51 = vadd.f32 %v1575_v20, %v1557_v48 }
 0x15e   : > { %v1560_v46 = vadd.f32 %v1559_v23, %v1541_v38  ;;  %v1595_v58 = vadd.f32 %v1594_v21, %v1576_v51 }
 0x163   : > { %v1578_v24 = vpop.f32.mrf.mxu2  ;;  %v1542_v26 = vpop.f32.mrf.mxu0 }
 0x164   : > { %v1597_v25 = vpop.f32.mrf.mxu3  ;;  %v1561_v27 = vpop.f32.mrf.mxu1  ;;  %v1543_v43 = vadd.f32 %v2388_v36, %v1542_v26  ;;  %v1579_v49 = vadd.f32 %v1578_v24, %v1560_v46 }
 0x166   : > { %v1562_v50 = vadd.f32 %v1561_v27, %v1543_v43  ;;  %v1598_v57 = vadd.f32 %v1597_v25, %v1579_v49 }
 0x16b   : > { %v1580_v28 = vpop.f32.mrf.mxu2  ;;  %v1611_v30 = vpop.f32.mrf.mxu0 }
 0x16c   : > { %v1599_v29 = vpop.f32.mrf.mxu3  ;;  %v1630_v31 = vpop.f32.mrf.mxu1  ;;  %v1581_v52 = vadd.f32 %v1580_v28, %v1562_v50  ;;  %v1612_v60 = vadd.f32 %v1611_v30, %v1593_v56 }
 0x16e   : > { %v1600_v59 = vadd.f32 %v1599_v29, %v1581_v52  ;;  %v1631_v1 = vadd.f32 %v1630_v31, %v1612_v60 }
 0x173   : > { %v1649_v32 = vpop.f32.mrf.mxu2  ;;  %v1613_v34 = vpop.f32.mrf.mxu0 }
 0x174   : > { %v1668_v33 = vpop.f32.mrf.mxu3  ;;  %v1632_v35 = vpop.f32.mrf.mxu1  ;;  %v1614_v63 = vadd.f32 %v1613_v34, %v1595_v58  ;;  %v1650_v6 = vadd.f32 %v1649_v32, %v1631_v1 }
 0x176   : > { %v1633_v7 = vadd.f32 %v1632_v35, %v1614_v63  ;;  %v1669_v12 = vadd.f32 %v1668_v33, %v1650_v6 }
 0x17b   : > { %v1651_v39 = vpop.f32.mrf.mxu2  ;;  %v1616_v40 = vpop.f32.mrf.mxu0 }
 0x17c   : > { %v1635_v41 = vpop.f32.mrf.mxu1  ;;  %v1670_v44 = vpop.f32.mrf.mxu3  ;;  %v1617_v61 = vadd.f32 %v1616_v40, %v1598_v57  ;;  %v1652_v10 = vadd.f32 %v1651_v39, %v1633_v7 }
 0x17e   : > { %v1636_v2 = vadd.f32 %v1635_v41, %v1617_v61  ;;  %v1671_v15 = vadd.f32 %v1670_v44, %v1652_v10 }
 0x183   : > { %v1654_v53 = vpop.f32.mrf.mxu2  ;;  %v1618_v54 = vpop.f32.mrf.mxu0 }
 0x184   : > { %v1637_v55 = vpop.f32.mrf.mxu1  ;;  %v1673_v62 = vpop.f32.mrf.mxu3  ;;  %v1619_v0 = vadd.f32 %v1618_v54, %v1600_v59  ;;  %v1655_v8 = vadd.f32 %v1654_v53, %v1636_v2 }
 0x186   : > { %v1638_v9 = vadd.f32 %v1637_v55, %v1619_v0  ;;  %v1674_v13 = vadd.f32 %v1673_v62, %v1655_v8 }
 0x18b   : > { %v1656_v3 = vpop.f32.mrf.mxu2  ;;  %v1687_v4 = vpop.f32.mrf.mxu0 }
 0x18c   : > { %v1692_v5 = vpop.f32.mrf.mxu1  ;;  %v1657_v11 = vadd.f32 %v1656_v3, %v1638_v9  ;;  %v1675_v14 = vpop.f32.mrf.mxu3  ;;  %v1688_v17 = vadd.f32 %v1687_v4, %v1669_v12 }
 0x18d   : > { %v1693_v18 = vadd.f32 %v1692_v5, %v1674_v13 }
 0x18e   : > { %v1676_v16 = vadd.f32 %v1675_v14, %v1657_v11  ;;  %v1697_v23 = vmax.f32 %v1688_v17, 0.0 }
 0x18f   : > { %v1699_v24 = vmax.f32 %v1693_v18, 0.0 }
 0x193   : > { %v1689_v19 = vpop.f32.mrf.mxu0 }
 0x194   : > { %v1694_v20 = vpop.f32.mrf.mxu1  ;;  %v1690_v21 = vadd.f32 %v1689_v19, %v1671_v15 }
 0x195   : > { %v1695_v22 = vadd.f32 %v1694_v20, %v1676_v16 }
 0x196   : > { %v1698_v25 = vmax.f32 %v1690_v21, 0.0 }
 0x197   : > { %v1700_v26 = vmax.f32 %v1695_v22, 0.0  ;;  %1715 = sbr.rel (!%p2484_p6) target bundleno = 422 (0x1a6), region = 77 }
 0x198   : > { %v2330_v27 = vpack.c.bf16 %v1698_v25, %v1697_v23 }
 0x199   : > { %v2335_v28 = vpack.c.bf16 %v1700_v26, %v1699_v24 }
 0x19a   : > { %2331 = vst [vmem:[%s822_s9] sm:$0xff] %v2330_v27  }
 0x19b   : > { %2337 = vst [vmem:[%s822_s9 + $0x8] sm:$0xff] %v2335_v28  }
 0x1a1   : > { %v1737_v29 = vld [vmem:[%s822_s9] sm:$0xf]  ;;  %v1739_v30 = vld [vmem:[%s822_s9 + $0x4] sm:$0xf] }
 0x1a2   : > { %v1741_v31 = vld [vmem:[%s822_s9 + $0x8] sm:$0xf]  ;;  %1738 = vst [vmem:[%s1720_s8] sm:$0xf] %v1737_v29  ;;  %v1743_v32 = vld [vmem:[%s822_s9 + $0xc] sm:$0xf] }
 0x1a3   : > { %1740 = vst [vmem:[%s1720_s8 + $0x8] sm:$0xf] %v1739_v30 }
 0x1a4   : > { %1742 = vst [vmem:[%s1720_s8 + $0x10] sm:$0xf] %v1741_v31 }
 0x1a5   : > { %1744 = vst [vmem:[%s1720_s8 + $0x18] sm:$0xf] %v1743_v32 }
 0x1a6 PF: > { %s13_s16 = sadd.s32 1, %s2427_s16   ;;  %s3017_s12 = smov %s2415_s13 }
 0x1a7   : > { %p10_p12 = scmp.ge.s32.totalorder %s13_s16, 4   ;;  %s3018_s13 = smov %s2489_s22 }
 0x1a8   : > { %s3019_s14 = smov %s2423_s15  ;;  %s3020_s15 = smov %s3022_s17 }
 0x1a9   :  { %12 = sbr.rel (!%p10_p12) target bundleno = 3 (0x3), region = 155 }

// kernel: cnn_forward.10
= control target key start
LH: loop header
LB: loop body
LE: loop exit
PB: predicated region body
PF: predicated region fallthrough
CT: control target
= control target key end

     0   :  { %s2645_s12 = smov 0   ;;  %s2647_s13 = smov 0   ;;  %s3270_s0 = inlined_call_operand.vmem [shape: bf16[2,1024], index: 0, kind: input, shape index: {}]   ;;  %s3271_s1 = inlined_call_operand.vmem [shape: bf16[1024,512], index: 1, kind: input, shape index: {}]   ;;  %s3272_s2 = inlined_call_operand.vmem [shape: f32[1,512], index: 2, kind: input, shape index: {}]   ;;  %s3273_s3 = inlined_call_operand.vmem [shape: bf16[2,512], index: 3, kind: output, shape index: {}]  }
   0x1   :  { %s2649_s14 = smov 0   ;;  %s2651_s15 = smov 0  }
   0x2   :  { %s2653_s16 = smov 0  }
   0x3 LB: > { %s22_s17 = sadd.s32 1, %s2619_s15  ;;  %p65_p1 = scmp.ne.s32.totalorder %s2611_s13, %s2607_s12  ;;  %s2623_s16 = sphi %s2653_s16, %s13_s16   ;;  %s2619_s15 = sphi %s2651_s15, %s3277_s15   ;;  %s2615_s14 = sphi %s2649_s14, %s3276_s14   ;;  %s2611_s13 = sphi %s2647_s13, %s3275_s13   ;;  %s2607_s12 = sphi %s2645_s12, %s3274_s12  }
   0x4   : > { %p23_p0 = scmp.ge.s32.totalorder %s22_s17, 2  ;;  %p66_p2 = scmp.eq.s32.totalorder %s2623_s16, 0 }
   0x5   : > { %s58_s19 = sadd.s32 1, %s2611_s13  ;;  %p1894_p5 = scmp.ge.s32.totalorder %s2623_s16, 2 }
   0x6   : > { %s3279_s17 = smov (%p23_p0, %s22_s17), 0  ;;  %p67_p3 = por %p66_p2, %p65_p1 }
   0x7   : > { %s55_s18 = ssub.s32 %s2619_s15, %s3279_s17  ;;  %152 = sbr.rel (%p1894_p5) target bundleno = 144 (0x90), region = 20 }
   0x8   : > { %p56_p4 = scmp.eq.s32.totalorder %s55_s18, 0 }
   0xa   : > { %s2680_s20 = scalar_select %p56_p4, %s2611_s13, %s58_s19  }
   0xc   : > { %155 = sbr.rel (!%p67_p3) target bundleno = 144 (0x90), region = 24  ;;  %s157_s21 = sand.u32 (%p67_p3), 1, %s2611_s13  }
   0xd   : > { %s2416_s22 = sshll.u32 (%p67_p3), %s2619_s15, 3  ;;  %s1895_s23 = sshll.u32 (%p67_p3), %s157_s21, 10 }
   0xe   : > { %s2688_s26 = scalar_lea.vmem (%p67_p3), %s3271_s1, %s2416_s22  ;;  %s2693_s27 = scalar_lea.vmem (%p67_p3), [#allocation2], %s1895_s23 }
   0xf   : > { %v445_v0 = vld [vmem:[%s2688_s26] sm:$0xff] (%p67_p3)  ;;  %v447_v1 = vld [vmem:[%s2688_s26 + $0x10] sm:$0xff] (%p67_p3) }
  0x10   : > { %v449_v2 = vld [vmem:[%s2688_s26 + $0x20] sm:$0xff] (%p67_p3)  ;;  %446 = vst [vmem:[%s2693_s27] sm:$0xff] (%p67_p3), %v445_v0  ;;  %v451_v3 = vld [vmem:[%s2688_s26 + $0x30] sm:$0xff] (%p67_p3) }
  0x11   : > { %448 = vst [vmem:[%s2693_s27 + $0x8] sm:$0xff] %v447_v1  ;;  %v453_v4 = vld [vmem:[%s2688_s26 + $0x40] sm:$0xff]  ;;  %v455_v5 = vld [vmem:[%s2688_s26 + $0x50] sm:$0xff] }
  0x12   : > { %450 = vst [vmem:[%s2693_s27 + $0x10] sm:$0xff] %v449_v2  ;;  %v457_v6 = vld [vmem:[%s2688_s26 + $0x60] sm:$0xff]  ;;  %v459_v7 = vld [vmem:[%s2688_s26 + $0x70] sm:$0xff] }
  0x13   : > { %452 = vst [vmem:[%s2693_s27 + $0x18] sm:$0xff] %v451_v3  ;;  %v461_v8 = vld [vmem:[%s2688_s26 + $0x80] sm:$0xff]  ;;  %v463_v9 = vld [vmem:[%s2688_s26 + $0x90] sm:$0xff] }
  0x14   : > { %454 = vst [vmem:[%s2693_s27 + $0x20] sm:$0xff] %v453_v4  ;;  %v465_v10 = vld [vmem:[%s2688_s26 + $0xa0] sm:$0xff]  ;;  %v467_v11 = vld [vmem:[%s2688_s26 + $0xb0] sm:$0xff] }
  0x15   : > { %456 = vst [vmem:[%s2693_s27 + $0x28] sm:$0xff] %v455_v5  ;;  %v469_v12 = vld [vmem:[%s2688_s26 + $0xc0] sm:$0xff]  ;;  %v471_v13 = vld [vmem:[%s2688_s26 + $0xd0] sm:$0xff] }
  0x16   : > { %458 = vst [vmem:[%s2693_s27 + $0x30] sm:$0xff] %v457_v6  ;;  %v473_v14 = vld [vmem:[%s2688_s26 + $0xe0] sm:$0xff]  ;;  %v475_v15 = vld [vmem:[%s2688_s26 + $0xf0] sm:$0xff] }
  0x17   : > { %460 = vst [vmem:[%s2693_s27 + $0x38] sm:$0xff] %v459_v7  ;;  %v477_v16 = vld [vmem:[%s2688_s26 + $0x100] sm:$0xff]  ;;  %v479_v17 = vld [vmem:[%s2688_s26 + $0x110] sm:$0xff] }
  0x18   : > { %462 = vst [vmem:[%s2693_s27 + $0x40] sm:$0xff] %v461_v8  ;;  %v481_v18 = vld [vmem:[%s2688_s26 + $0x120] sm:$0xff]  ;;  %v483_v19 = vld [vmem:[%s2688_s26 + $0x130] sm:$0xff] }
  0x19   : > { %464 = vst [vmem:[%s2693_s27 + $0x48] sm:$0xff] %v463_v9  ;;  %v485_v20 = vld [vmem:[%s2688_s26 + $0x140] sm:$0xff]  ;;  %v487_v21 = vld [vmem:[%s2688_s26 + $0x150] sm:$0xff] }
  0x1a   : > { %466 = vst [vmem:[%s2693_s27 + $0x50] sm:$0xff] %v465_v10  ;;  %v489_v22 = vld [vmem:[%s2688_s26 + $0x160] sm:$0xff]  ;;  %v491_v23 = vld [vmem:[%s2688_s26 + $0x170] sm:$0xff] }
  0x1b   : > { %468 = vst [vmem:[%s2693_s27 + $0x58] sm:$0xff] %v467_v11  ;;  %v493_v24 = vld [vmem:[%s2688_s26 + $0x180] sm:$0xff]  ;;  %v495_v25 = vld [vmem:[%s2688_s26 + $0x190] sm:$0xff] }
  0x1c   : > { %470 = vst [vmem:[%s2693_s27 + $0x60] sm:$0xff] %v469_v12  ;;  %v497_v26 = vld [vmem:[%s2688_s26 + $0x1a0] sm:$0xff]  ;;  %v499_v27 = vld [vmem:[%s2688_s26 + $0x1b0] sm:$0xff] }
  0x1d   : > { %472 = vst [vmem:[%s2693_s27 + $0x68] sm:$0xff] %v471_v13  ;;  %v501_v28 = vld [vmem:[%s2688_s26 + $0x1c0] sm:$0xff]  ;;  %v503_v29 = vld [vmem:[%s2688_s26 + $0x1d0] sm:$0xff] }
  0x1e   : > { %474 = vst [vmem:[%s2693_s27 + $0x70] sm:$0xff] %v473_v14  ;;  %v505_v30 = vld [vmem:[%s2688_s26 + $0x1e0] sm:$0xff]  ;;  %v507_v31 = vld [vmem:[%s2688_s26 + $0x1f0] sm:$0xff] }
  0x1f   : > { %476 = vst [vmem:[%s2693_s27 + $0x78] sm:$0xff] %v475_v15  ;;  %v509_v32 = vld [vmem:[%s2688_s26 + $0x200] sm:$0xff]  ;;  %v511_v33 = vld [vmem:[%s2688_s26 + $0x210] sm:$0xff] }
  0x20   : > { %478 = vst [vmem:[%s2693_s27 + $0x80] sm:$0xff] %v477_v16  ;;  %v513_v34 = vld [vmem:[%s2688_s26 + $0x220] sm:$0xff]  ;;  %v515_v35 = vld [vmem:[%s2688_s26 + $0x230] sm:$0xff] }
  0x21   : > { %480 = vst [vmem:[%s2693_s27 + $0x88] sm:$0xff] %v479_v17  ;;  %v517_v36 = vld [vmem:[%s2688_s26 + $0x240] sm:$0xff]  ;;  %v519_v37 = vld [vmem:[%s2688_s26 + $0x250] sm:$0xff] }
  0x22   : > { %482 = vst [vmem:[%s2693_s27 + $0x90] sm:$0xff] %v481_v18  ;;  %v521_v38 = vld [vmem:[%s2688_s26 + $0x260] sm:$0xff]  ;;  %v523_v39 = vld [vmem:[%s2688_s26 + $0x270] sm:$0xff] }
  0x23   : > { %484 = vst [vmem:[%s2693_s27 + $0x98] sm:$0xff] %v483_v19  ;;  %v525_v40 = vld [vmem:[%s2688_s26 + $0x280] sm:$0xff]  ;;  %v527_v41 = vld [vmem:[%s2688_s26 + $0x290] sm:$0xff] }
  0x24   : > { %486 = vst [vmem:[%s2693_s27 + $0xa0] sm:$0xff] %v485_v20  ;;  %v529_v42 = vld [vmem:[%s2688_s26 + $0x2a0] sm:$0xff]  ;;  %v531_v43 = vld [vmem:[%s2688_s26 + $0x2b0] sm:$0xff] }
  0x25   : > { %488 = vst [vmem:[%s2693_s27 + $0xa8] sm:$0xff] %v487_v21  ;;  %v533_v44 = vld [vmem:[%s2688_s26 + $0x2c0] sm:$0xff]  ;;  %v535_v45 = vld [vmem:[%s2688_s26 + $0x2d0] sm:$0xff] }
  0x26   : > { %490 = vst [vmem:[%s2693_s27 + $0xb0] sm:$0xff] %v489_v22  ;;  %v537_v46 = vld [vmem:[%s2688_s26 + $0x2e0] sm:$0xff]  ;;  %v539_v47 = vld [vmem:[%s2688_s26 + $0x2f0] sm:$0xff] }
  0x27   : > { %492 = vst [vmem:[%s2693_s27 + $0xb8] sm:$0xff] %v491_v23  ;;  %v541_v48 = vld [vmem:[%s2688_s26 + $0x300] sm:$0xff]  ;;  %v543_v49 = vld [vmem:[%s2688_s26 + $0x310] sm:$0xff] }
  0x28   : > { %494 = vst [vmem:[%s2693_s27 + $0xc0] sm:$0xff] %v493_v24  ;;  %v545_v50 = vld [vmem:[%s2688_s26 + $0x320] sm:$0xff]  ;;  %v547_v51 = vld [vmem:[%s2688_s26 + $0x330] sm:$0xff] }
  0x29   : > { %496 = vst [vmem:[%s2693_s27 + $0xc8] sm:$0xff] %v495_v25  ;;  %v549_v52 = vld [vmem:[%s2688_s26 + $0x340] sm:$0xff]  ;;  %v551_v53 = vld [vmem:[%s2688_s26 + $0x350] sm:$0xff] }
  0x2a   : > { %498 = vst [vmem:[%s2693_s27 + $0xd0] sm:$0xff] %v497_v26  ;;  %v553_v54 = vld [vmem:[%s2688_s26 + $0x360] sm:$0xff]  ;;  %v555_v55 = vld [vmem:[%s2688_s26 + $0x370] sm:$0xff] }
  0x2b   : > { %500 = vst [vmem:[%s2693_s27 + $0xd8] sm:$0xff] %v499_v27  ;;  %v557_v56 = vld [vmem:[%s2688_s26 + $0x380] sm:$0xff]  ;;  %v559_v57 = vld [vmem:[%s2688_s26 + $0x390] sm:$0xff] }
  0x2c   : > { %502 = vst [vmem:[%s2693_s27 + $0xe0] sm:$0xff] %v501_v28  ;;  %v561_v58 = vld [vmem:[%s2688_s26 + $0x3a0] sm:$0xff]  ;;  %v563_v59 = vld [vmem:[%s2688_s26 + $0x3b0] sm:$0xff] }
  0x2d   : > { %504 = vst [vmem:[%s2693_s27 + $0xe8] sm:$0xff] %v503_v29  ;;  %v565_v60 = vld [vmem:[%s2688_s26 + $0x3c0] sm:$0xff]  ;;  %v567_v61 = vld [vmem:[%s2688_s26 + $0x3d0] sm:$0xff] }
  0x2e   : > { %506 = vst [vmem:[%s2693_s27 + $0xf0] sm:$0xff] %v505_v30  ;;  %v569_v62 = vld [vmem:[%s2688_s26 + $0x3e0] sm:$0xff]  ;;  %v571_v63 = vld [vmem:[%s2688_s26 + $0x3f0] sm:$0xff] }
  0x2f   : > { %508 = vst [vmem:[%s2693_s27 + $0xf8] sm:$0xff] %v507_v31  ;;  %v573_v0 = vld [vmem:[%s2688_s26 + $0x400] sm:$0xff]  ;;  %v575_v1 = vld [vmem:[%s2688_s26 + $0x410] sm:$0xff] }
  0x30   : > { %510 = vst [vmem:[%s2693_s27 + $0x100] sm:$0xff] %v509_v32  ;;  %v577_v2 = vld [vmem:[%s2688_s26 + $0x420] sm:$0xff]  ;;  %v579_v3 = vld [vmem:[%s2688_s26 + $0x430] sm:$0xff] }
  0x31   : > { %512 = vst [vmem:[%s2693_s27 + $0x108] sm:$0xff] %v511_v33  ;;  %v581_v4 = vld [vmem:[%s2688_s26 + $0x440] sm:$0xff]  ;;  %v583_v5 = vld [vmem:[%s2688_s26 + $0x450] sm:$0xff] }
  0x32   : > { %514 = vst [vmem:[%s2693_s27 + $0x110] sm:$0xff] %v513_v34  ;;  %v585_v6 = vld [vmem:[%s2688_s26 + $0x460] sm:$0xff]  ;;  %v587_v7 = vld [vmem:[%s2688_s26 + $0x470] sm:$0xff] }
  0x33   : > { %516 = vst [vmem:[%s2693_s27 + $0x118] sm:$0xff] %v515_v35  ;;  %v589_v8 = vld [vmem:[%s2688_s26 + $0x480] sm:$0xff]  ;;  %v591_v9 = vld [vmem:[%s2688_s26 + $0x490] sm:$0xff] }
  0x34   : > { %518 = vst [vmem:[%s2693_s27 + $0x120] sm:$0xff] %v517_v36  ;;  %v593_v10 = vld [vmem:[%s2688_s26 + $0x4a0] sm:$0xff]  ;;  %v595_v11 = vld [vmem:[%s2688_s26 + $0x4b0] sm:$0xff] }
  0x35   : > { %520 = vst [vmem:[%s2693_s27 + $0x128] sm:$0xff] %v519_v37  ;;  %v597_v12 = vld [vmem:[%s2688_s26 + $0x4c0] sm:$0xff]  ;;  %v599_v13 = vld [vmem:[%s2688_s26 + $0x4d0] sm:$0xff] }
  0x36   : > { %522 = vst [vmem:[%s2693_s27 + $0x130] sm:$0xff] %v521_v38  ;;  %v601_v14 = vld [vmem:[%s2688_s26 + $0x4e0] sm:$0xff]  ;;  %v603_v15 = vld [vmem:[%s2688_s26 + $0x4f0] sm:$0xff] }
  0x37   : > { %524 = vst [vmem:[%s2693_s27 + $0x138] sm:$0xff] %v523_v39  ;;  %v605_v16 = vld [vmem:[%s2688_s26 + $0x500] sm:$0xff]  ;;  %v607_v17 = vld [vmem:[%s2688_s26 + $0x510] sm:$0xff] }
  0x38   : > { %526 = vst [vmem:[%s2693_s27 + $0x140] sm:$0xff] %v525_v40  ;;  %v609_v18 = vld [vmem:[%s2688_s26 + $0x520] sm:$0xff]  ;;  %v611_v19 = vld [vmem:[%s2688_s26 + $0x530] sm:$0xff] }
  0x39   : > { %528 = vst [vmem:[%s2693_s27 + $0x148] sm:$0xff] %v527_v41  ;;  %v613_v20 = vld [vmem:[%s2688_s26 + $0x540] sm:$0xff]  ;;  %v615_v21 = vld [vmem:[%s2688_s26 + $0x550] sm:$0xff] }
  0x3a   : > { %530 = vst [vmem:[%s2693_s27 + $0x150] sm:$0xff] %v529_v42  ;;  %v617_v22 = vld [vmem:[%s2688_s26 + $0x560] sm:$0xff]  ;;  %v619_v23 = vld [vmem:[%s2688_s26 + $0x570] sm:$0xff] }
  0x3b   : > { %532 = vst [vmem:[%s2693_s27 + $0x158] sm:$0xff] %v531_v43  ;;  %v621_v24 = vld [vmem:[%s2688_s26 + $0x580] sm:$0xff]  ;;  %v623_v25 = vld [vmem:[%s2688_s26 + $0x590] sm:$0xff] }
  0x3c   : > { %534 = vst [vmem:[%s2693_s27 + $0x160] sm:$0xff] %v533_v44  ;;  %v625_v26 = vld [vmem:[%s2688_s26 + $0x5a0] sm:$0xff]  ;;  %v627_v27 = vld [vmem:[%s2688_s26 + $0x5b0] sm:$0xff] }
  0x3d   : > { %536 = vst [vmem:[%s2693_s27 + $0x168] sm:$0xff] %v535_v45  ;;  %v629_v28 = vld [vmem:[%s2688_s26 + $0x5c0] sm:$0xff]  ;;  %v631_v29 = vld [vmem:[%s2688_s26 + $0x5d0] sm:$0xff] }
  0x3e   : > { %538 = vst [vmem:[%s2693_s27 + $0x170] sm:$0xff] %v537_v46  ;;  %v633_v30 = vld [vmem:[%s2688_s26 + $0x5e0] sm:$0xff]  ;;  %v635_v31 = vld [vmem:[%s2688_s26 + $0x5f0] sm:$0xff] }
  0x3f   : > { %540 = vst [vmem:[%s2693_s27 + $0x178] sm:$0xff] %v539_v47  ;;  %v637_v32 = vld [vmem:[%s2688_s26 + $0x600] sm:$0xff]  ;;  %v639_v33 = vld [vmem:[%s2688_s26 + $0x610] sm:$0xff] }
  0x40   : > { %542 = vst [vmem:[%s2693_s27 + $0x180] sm:$0xff] %v541_v48  ;;  %v641_v34 = vld [vmem:[%s2688_s26 + $0x620] sm:$0xff]  ;;  %v643_v35 = vld [vmem:[%s2688_s26 + $0x630] sm:$0xff] }
  0x41   : > { %544 = vst [vmem:[%s2693_s27 + $0x188] sm:$0xff] %v543_v49  ;;  %v645_v36 = vld [vmem:[%s2688_s26 + $0x640] sm:$0xff]  ;;  %v647_v37 = vld [vmem:[%s2688_s26 + $0x650] sm:$0xff] }
  0x42   : > { %546 = vst [vmem:[%s2693_s27 + $0x190] sm:$0xff] %v545_v50  ;;  %v649_v38 = vld [vmem:[%s2688_s26 + $0x660] sm:$0xff]  ;;  %v651_v39 = vld [vmem:[%s2688_s26 + $0x670] sm:$0xff] }
  0x43   : > { %548 = vst [vmem:[%s2693_s27 + $0x198] sm:$0xff] %v547_v51  ;;  %v653_v40 = vld [vmem:[%s2688_s26 + $0x680] sm:$0xff]  ;;  %v655_v41 = vld [vmem:[%s2688_s26 + $0x690] sm:$0xff] }
  0x44   : > { %550 = vst [vmem:[%s2693_s27 + $0x1a0] sm:$0xff] %v549_v52  ;;  %v657_v42 = vld [vmem:[%s2688_s26 + $0x6a0] sm:$0xff]  ;;  %v659_v43 = vld [vmem:[%s2688_s26 + $0x6b0] sm:$0xff] }
  0x45   : > { %552 = vst [vmem:[%s2693_s27 + $0x1a8] sm:$0xff] %v551_v53  ;;  %v661_v44 = vld [vmem:[%s2688_s26 + $0x6c0] sm:$0xff]  ;;  %v663_v45 = vld [vmem:[%s2688_s26 + $0x6d0] sm:$0xff] }
  0x46   : > { %554 = vst [vmem:[%s2693_s27 + $0x1b0] sm:$0xff] %v553_v54  ;;  %v665_v46 = vld [vmem:[%s2688_s26 + $0x6e0] sm:$0xff]  ;;  %v667_v47 = vld [vmem:[%s2688_s26 + $0x6f0] sm:$0xff] }
  0x47   : > { %556 = vst [vmem:[%s2693_s27 + $0x1b8] sm:$0xff] %v555_v55  ;;  %v669_v48 = vld [vmem:[%s2688_s26 + $0x700] sm:$0xff]  ;;  %v671_v49 = vld [vmem:[%s2688_s26 + $0x710] sm:$0xff] }
  0x48   : > { %558 = vst [vmem:[%s2693_s27 + $0x1c0] sm:$0xff] %v557_v56  ;;  %v673_v50 = vld [vmem:[%s2688_s26 + $0x720] sm:$0xff]  ;;  %v675_v51 = vld [vmem:[%s2688_s26 + $0x730] sm:$0xff] }
  0x49   : > { %560 = vst [vmem:[%s2693_s27 + $0x1c8] sm:$0xff] %v559_v57  ;;  %v677_v52 = vld [vmem:[%s2688_s26 + $0x740] sm:$0xff]  ;;  %v679_v53 = vld [vmem:[%s2688_s26 + $0x750] sm:$0xff] }
  0x4a   : > { %562 = vst [vmem:[%s2693_s27 + $0x1d0] sm:$0xff] %v561_v58  ;;  %v681_v54 = vld [vmem:[%s2688_s26 + $0x760] sm:$0xff]  ;;  %v683_v55 = vld [vmem:[%s2688_s26 + $0x770] sm:$0xff] }
  0x4b   : > { %564 = vst [vmem:[%s2693_s27 + $0x1d8] sm:$0xff] %v563_v59  ;;  %v685_v56 = vld [vmem:[%s2688_s26 + $0x780] sm:$0xff]  ;;  %v687_v57 = vld [vmem:[%s2688_s26 + $0x790] sm:$0xff] }
  0x4c   : > { %566 = vst [vmem:[%s2693_s27 + $0x1e0] sm:$0xff] %v565_v60  ;;  %v689_v58 = vld [vmem:[%s2688_s26 + $0x7a0] sm:$0xff]  ;;  %v691_v59 = vld [vmem:[%s2688_s26 + $0x7b0] sm:$0xff] }
  0x4d   : > { %568 = vst [vmem:[%s2693_s27 + $0x1e8] sm:$0xff] %v567_v61  ;;  %v693_v60 = vld [vmem:[%s2688_s26 + $0x7c0] sm:$0xff]  ;;  %v695_v61 = vld [vmem:[%s2688_s26 + $0x7d0] sm:$0xff] }
  0x4e   : > { %570 = vst [vmem:[%s2693_s27 + $0x1f0] sm:$0xff] %v569_v62  ;;  %v697_v62 = vld [vmem:[%s2688_s26 + $0x7e0] sm:$0xff] }
  0x4f   : > { %572 = vst [vmem:[%s2693_s27 + $0x1f8] sm:$0xff] %v571_v63  ;;  %v699_v63 = vld [vmem:[%s2688_s26 + $0x7f0] sm:$0xff] }
  0x50   : > { %574 = vst [vmem:[%s2693_s27 + $0x200] sm:$0xff] %v573_v0 }
  0x51   : > { %576 = vst [vmem:[%s2693_s27 + $0x208] sm:$0xff] %v575_v1 }
  0x52   : > { %578 = vst [vmem:[%s2693_s27 + $0x210] sm:$0xff] %v577_v2 }
  0x53   : > { %580 = vst [vmem:[%s2693_s27 + $0x218] sm:$0xff] %v579_v3 }
  0x54   : > { %582 = vst [vmem:[%s2693_s27 + $0x220] sm:$0xff] %v581_v4 }
  0x55   : > { %584 = vst [vmem:[%s2693_s27 + $0x228] sm:$0xff] %v583_v5 }
  0x56   : > { %586 = vst [vmem:[%s2693_s27 + $0x230] sm:$0xff] %v585_v6 }
  0x57   : > { %588 = vst [vmem:[%s2693_s27 + $0x238] sm:$0xff] %v587_v7 }
  0x58   : > { %590 = vst [vmem:[%s2693_s27 + $0x240] sm:$0xff] %v589_v8 }
  0x59   : > { %592 = vst [vmem:[%s2693_s27 + $0x248] sm:$0xff] %v591_v9 }
  0x5a   : > { %594 = vst [vmem:[%s2693_s27 + $0x250] sm:$0xff] %v593_v10 }
  0x5b   : > { %596 = vst [vmem:[%s2693_s27 + $0x258] sm:$0xff] %v595_v11 }
  0x5c   : > { %598 = vst [vmem:[%s2693_s27 + $0x260] sm:$0xff] %v597_v12 }
  0x5d   : > { %600 = vst [vmem:[%s2693_s27 + $0x268] sm:$0xff] %v599_v13 }
  0x5e   : > { %602 = vst [vmem:[%s2693_s27 + $0x270] sm:$0xff] %v601_v14 }
  0x5f   : > { %604 = vst [vmem:[%s2693_s27 + $0x278] sm:$0xff] %v603_v15 }
  0x60   : > { %606 = vst [vmem:[%s2693_s27 + $0x280] sm:$0xff] %v605_v16 }
  0x61   : > { %608 = vst [vmem:[%s2693_s27 + $0x288] sm:$0xff] %v607_v17 }
  0x62   : > { %610 = vst [vmem:[%s2693_s27 + $0x290] sm:$0xff] %v609_v18 }
  0x63   : > { %612 = vst [vmem:[%s2693_s27 + $0x298] sm:$0xff] %v611_v19 }
  0x64   : > { %614 = vst [vmem:[%s2693_s27 + $0x2a0] sm:$0xff] %v613_v20 }
  0x65   : > { %616 = vst [vmem:[%s2693_s27 + $0x2a8] sm:$0xff] %v615_v21 }
  0x66   : > { %618 = vst [vmem:[%s2693_s27 + $0x2b0] sm:$0xff] %v617_v22 }
  0x67   : > { %620 = vst [vmem:[%s2693_s27 + $0x2b8] sm:$0xff] %v619_v23 }
  0x68   : > { %622 = vst [vmem:[%s2693_s27 + $0x2c0] sm:$0xff] %v621_v24 }
  0x69   : > { %624 = vst [vmem:[%s2693_s27 + $0x2c8] sm:$0xff] %v623_v25 }
  0x6a   : > { %626 = vst [vmem:[%s2693_s27 + $0x2d0] sm:$0xff] %v625_v26 }
  0x6b   : > { %628 = vst [vmem:[%s2693_s27 + $0x2d8] sm:$0xff] %v627_v27 }
  0x6c   : > { %630 = vst [vmem:[%s2693_s27 + $0x2e0] sm:$0xff] %v629_v28 }
  0x6d   : > { %632 = vst [vmem:[%s2693_s27 + $0x2e8] sm:$0xff] %v631_v29 }
  0x6e   : > { %634 = vst [vmem:[%s2693_s27 + $0x2f0] sm:$0xff] %v633_v30 }
  0x6f   : > { %636 = vst [vmem:[%s2693_s27 + $0x2f8] sm:$0xff] %v635_v31 }
  0x70   : > { %638 = vst [vmem:[%s2693_s27 + $0x300] sm:$0xff] %v637_v32 }
  0x71   : > { %640 = vst [vmem:[%s2693_s27 + $0x308] sm:$0xff] %v639_v33 }
  0x72   : > { %642 = vst [vmem:[%s2693_s27 + $0x310] sm:$0xff] %v641_v34 }
  0x73   : > { %644 = vst [vmem:[%s2693_s27 + $0x318] sm:$0xff] %v643_v35 }
  0x74   : > { %646 = vst [vmem:[%s2693_s27 + $0x320] sm:$0xff] %v645_v36 }
  0x75   : > { %648 = vst [vmem:[%s2693_s27 + $0x328] sm:$0xff] %v647_v37 }
  0x76   : > { %650 = vst [vmem:[%s2693_s27 + $0x330] sm:$0xff] %v649_v38 }
  0x77   : > { %652 = vst [vmem:[%s2693_s27 + $0x338] sm:$0xff] %v651_v39 }
  0x78   : > { %654 = vst [vmem:[%s2693_s27 + $0x340] sm:$0xff] %v653_v40 }
  0x79   : > { %656 = vst [vmem:[%s2693_s27 + $0x348] sm:$0xff] %v655_v41 }
  0x7a   : > { %658 = vst [vmem:[%s2693_s27 + $0x350] sm:$0xff] %v657_v42 }
  0x7b   : > { %660 = vst [vmem:[%s2693_s27 + $0x358] sm:$0xff] %v659_v43 }
  0x7c   : > { %662 = vst [vmem:[%s2693_s27 + $0x360] sm:$0xff] %v661_v44 }
  0x7d   : > { %664 = vst [vmem:[%s2693_s27 + $0x368] sm:$0xff] %v663_v45 }
  0x7e   : > { %666 = vst [vmem:[%s2693_s27 + $0x370] sm:$0xff] %v665_v46 }
  0x7f   : > { %668 = vst [vmem:[%s2693_s27 + $0x378] sm:$0xff] %v667_v47 }
  0x80   : > { %670 = vst [vmem:[%s2693_s27 + $0x380] sm:$0xff] %v669_v48 }
  0x81   : > { %672 = vst [vmem:[%s2693_s27 + $0x388] sm:$0xff] %v671_v49 }
  0x82   : > { %674 = vst [vmem:[%s2693_s27 + $0x390] sm:$0xff] %v673_v50 }
  0x83   : > { %676 = vst [vmem:[%s2693_s27 + $0x398] sm:$0xff] %v675_v51 }
  0x84   : > { %678 = vst [vmem:[%s2693_s27 + $0x3a0] sm:$0xff] %v677_v52 }
  0x85   : > { %680 = vst [vmem:[%s2693_s27 + $0x3a8] sm:$0xff] %v679_v53 }
  0x86   : > { %682 = vst [vmem:[%s2693_s27 + $0x3b0] sm:$0xff] %v681_v54 }
  0x87   : > { %684 = vst [vmem:[%s2693_s27 + $0x3b8] sm:$0xff] %v683_v55 }
  0x88   : > { %686 = vst [vmem:[%s2693_s27 + $0x3c0] sm:$0xff] %v685_v56 }
  0x89   : > { %688 = vst [vmem:[%s2693_s27 + $0x3c8] sm:$0xff] %v687_v57 }
  0x8a   : > { %690 = vst [vmem:[%s2693_s27 + $0x3d0] sm:$0xff] %v689_v58 }
  0x8b   : > { %692 = vst [vmem:[%s2693_s27 + $0x3d8] sm:$0xff] %v691_v59 }
  0x8c   : > { %694 = vst [vmem:[%s2693_s27 + $0x3e0] sm:$0xff] %v693_v60 }
  0x8d   : > { %696 = vst [vmem:[%s2693_s27 + $0x3e8] sm:$0xff] %v695_v61 }
  0x8e   : > { %698 = vst [vmem:[%s2693_s27 + $0x3f0] sm:$0xff] %v697_v62 }
  0x8f   : > { %700 = vst [vmem:[%s2693_s27 + $0x3f8] sm:$0xff] %v699_v63 }
  0x90 PF: > { %p1898_p6 = scmp.ge.s32.totalorder %s2623_s16, 1  ;;  %p713_p7 = scmp.lt.s32.totalorder %s2623_s16, 3 }
  0x92   : > { %p714_p8 = pnand %p1898_p6, %p713_p7 }
  0x93   : > { %s720_s28 = sand.u32 (!%p714_p8), 1, %s2607_s12   ;;  %s1900_s6 = sshll.u32 (!%p714_p8), %s2615_s14, 1 }
  0x94   : > { %717 = sbr.rel (%p714_p8) target bundleno = 429 (0x1ad), region = 66  ;;  %s1899_s29 = sshll.u32 (!%p714_p8), %s720_s28, 10 }
  0x95   : > { %s2951_s30 = scalar_lea.vmem (!%p714_p8), [#allocation2], %s1899_s29  ;;  %p760_p9 = scmp.lt.s32.totalorder (!%p714_p8), %s1900_s6, 3 }
  0x99   : > { %v1960_v0 = vld [vmem:[%s2951_s30 + $0x70] sm:$0xf]  ;;  %v2432_v1 = vld [vmem:[%s2951_s30 + $0x74] sm:$0xf0]  ;;  %v1952_v11 = vld [vmem:[%s2951_s30 + $0x60] sm:$0xf] }
  0x9a   : > { %v2024_v2 = vld [vmem:[%s2951_s30 + $0xf0] sm:$0xf]  ;;  %v1961_v3 = vor.u32 %v2432_v1, %v1960_v0  ;;  %v2448_v4 = vld [vmem:[%s2951_s30 + $0xf4] sm:$0xf0]  ;;  %v2430_v13 = vld [vmem:[%s2951_s30 + $0x64] sm:$0xf0] }
  0x9b   : > { %v2088_v5 = vld [vmem:[%s2951_s30 + $0x170] sm:$0xf]  ;;  %v2464_v6 = vld [vmem:[%s2951_s30 + $0x174] sm:$0xf0]  ;;  %v2025_v7 = vor.u32 %v2448_v4, %v2024_v2  ;;  %v2016_v14 = vld [vmem:[%s2951_s30 + $0xe0] sm:$0xf]  ;;  %v1953_v16 = vor.u32 %v2430_v13, %v1952_v11 }
  0x9c   : > { %v2089_v8 = vor.u32 %v2464_v6, %v2088_v5  ;;  %v2152_v9 = vld [vmem:[%s2951_s30 + $0x1f0] sm:$0xf]  ;;  %v2480_v10 = vld [vmem:[%s2951_s30 + $0x1f4] sm:$0xf0]  ;;  %1566 = vmatpush.bf16.msra.mxu0 %v1961_v3  ;;  %v2446_v15 = vld [vmem:[%s2951_s30 + $0xe4] sm:$0xf0] }
  0x9d   : > { %v2153_v12 = vor.u32 %v2480_v10, %v2152_v9  ;;  %1579 = vmatpush.bf16.msra.mxu1 %v2025_v7  ;;  %v2017_v17 = vor.u32 %v2446_v15, %v2016_v14  ;;  %v2080_v18 = vld [vmem:[%s2951_s30 + $0x160] sm:$0xf]  ;;  %v2462_v19 = vld [vmem:[%s2951_s30 + $0x164] sm:$0xf0]  ;;  %v1944_v23 = vld [vmem:[%s2951_s30 + $0x50] sm:$0xf] }
  0x9e   : > { %1592 = vmatpush.bf16.msra.mxu2 %v2089_v8  ;;  %v2144_v20 = vld [vmem:[%s2951_s30 + $0x1e0] sm:$0xf]  ;;  %v2081_v21 = vor.u32 %v2462_v19, %v2080_v18  ;;  %v2478_v22 = vld [vmem:[%s2951_s30 + $0x1e4] sm:$0xf0]  ;;  %v2428_v24 = vld [vmem:[%s2951_s30 + $0x54] sm:$0xf0] }
  0x9f   : > { %1605 = vmatpush.bf16.msra.mxu3 %v2153_v12  ;;  %v2145_v25 = vor.u32 %v2478_v22, %v2144_v20  ;;  %v2008_v26 = vld [vmem:[%s2951_s30 + $0xd0] sm:$0xf]  ;;  %v2444_v27 = vld [vmem:[%s2951_s30 + $0xd4] sm:$0xf0]  ;;  %v1945_v29 = vor.u32 %v2428_v24, %v1944_v23  ;;  %v1936_v35 = vld [vmem:[%s2951_s30 + $0x40] sm:$0xf] }
  0xa0   : > { %v2072_v28 = vld [vmem:[%s2951_s30 + $0x150] sm:$0xf]  ;;  %1567 = vmatpush.bf16.msra.mxu0 %v1953_v16  ;;  %v2460_v30 = vld [vmem:[%s2951_s30 + $0x154] sm:$0xf0]  ;;  %v2009_v33 = vor.u32 %v2444_v27, %v2008_v26  ;;  %v2426_v36 = vld [vmem:[%s2951_s30 + $0x44] sm:$0xf0] }
  0xa1   : > { %v2136_v31 = vld [vmem:[%s2951_s30 + $0x1d0] sm:$0xf]  ;;  %v2476_v32 = vld [vmem:[%s2951_s30 + $0x1d4] sm:$0xf0]  ;;  %1580 = vmatpush.bf16.msra.mxu1 %v2017_v17  ;;  %v2073_v34 = vor.u32 %v2460_v30, %v2072_v28  ;;  %v2000_v37 = vld [vmem:[%s2951_s30 + $0xc0] sm:$0xf]  ;;  %v1937_v44 = vor.u32 %v2426_v36, %v1936_v35 }
  0xa2   : > { %1593 = vmatpush.bf16.msra.mxu2 %v2081_v21  ;;  %v2137_v38 = vor.u32 %v2476_v32, %v2136_v31  ;;  %v2442_v39 = vld [vmem:[%s2951_s30 + $0xc4] sm:$0xf0]  ;;  %v2064_v40 = vld [vmem:[%s2951_s30 + $0x140] sm:$0xf]  ;;  %v1928_v47 = vld [vmem:[%s2951_s30 + $0x30] sm:$0xf] }
  0xa3   : > { %1606 = vmatpush.bf16.msra.mxu3 %v2145_v25  ;;  %v2458_v41 = vld [vmem:[%s2951_s30 + $0x144] sm:$0xf0]  ;;  %v2128_v42 = vld [vmem:[%s2951_s30 + $0x1c0] sm:$0xf]  ;;  %v2001_v45 = vor.u32 %v2442_v39, %v2000_v37  ;;  %v2424_v48 = vld [vmem:[%s2951_s30 + $0x34] sm:$0xf0] }
  0xa4   : > { %v2474_v43 = vld [vmem:[%s2951_s30 + $0x1c4] sm:$0xf0]  ;;  %1568 = vmatpush.bf16.msra.mxu0 %v1945_v29  ;;  %v2065_v46 = vor.u32 %v2458_v41, %v2064_v40  ;;  %v1992_v49 = vld [vmem:[%s2951_s30 + $0xb0] sm:$0xf]  ;;  %v2440_v51 = vld [vmem:[%s2951_s30 + $0xb4] sm:$0xf0]  ;;  %v1929_v56 = vor.u32 %v2424_v48, %v1928_v47 }
  0xa5   : > { %1581 = vmatpush.bf16.msra.mxu1 %v2009_v33  ;;  %v2129_v50 = vor.u32 %v2474_v43, %v2128_v42  ;;  %v2056_v52 = vld [vmem:[%s2951_s30 + $0x130] sm:$0xf]  ;;  %v2456_v53 = vld [vmem:[%s2951_s30 + $0x134] sm:$0xf0]  ;;  %v1993_v57 = vor.u32 %v2440_v51, %v1992_v49  ;;  %v1920_v59 = vld [vmem:[%s2951_s30 + $0x20] sm:$0xf] }
  0xa6   : > { %1594 = vmatpush.bf16.msra.mxu2 %v2073_v34  ;;  %v2120_v54 = vld [vmem:[%s2951_s30 + $0x1b0] sm:$0xf]  ;;  %v2472_v55 = vld [vmem:[%s2951_s30 + $0x1b4] sm:$0xf0]  ;;  %v2057_v58 = vor.u32 %v2456_v53, %v2056_v52  ;;  %v2422_v60 = vld [vmem:[%s2951_s30 + $0x24] sm:$0xf0] }
  0xa7   : > { %1607 = vmatpush.bf16.msra.mxu3 %v2137_v38  ;;  %v1984_v61 = vld [vmem:[%s2951_s30 + $0xa0] sm:$0xf]  ;;  %v2121_v62 = vor.u32 %v2472_v55, %v2120_v54  ;;  %v2438_v63 = vld [vmem:[%s2951_s30 + $0xa4] sm:$0xf0]  ;;  %v1921_v4 = vor.u32 %v2422_v60, %v1920_v59  ;;  %v1912_v7 = vld [vmem:[%s2951_s30 + $0x10] sm:$0xf] }
  0xa8   : > { %1569 = vmatpush.bf16.msra.mxu0 %v1937_v44  ;;  %v2048_v0 = vld [vmem:[%s2951_s30 + $0x120] sm:$0xf]  ;;  %v2454_v1 = vld [vmem:[%s2951_s30 + $0x124] sm:$0xf0]  ;;  %v1985_v5 = vor.u32 %v2438_v63, %v1984_v61  ;;  %v2420_v8 = vld [vmem:[%s2951_s30 + $0x14] sm:$0xf0] }
  0xa9   : > { %1582 = vmatpush.bf16.msra.mxu1 %v2001_v45  ;;  %v2112_v2 = vld [vmem:[%s2951_s30 + $0x1a0] sm:$0xf]  ;;  %v2470_v3 = vld [vmem:[%s2951_s30 + $0x1a4] sm:$0xf0]  ;;  %v2049_v6 = vor.u32 %v2454_v1, %v2048_v0  ;;  %v1976_v9 = vld [vmem:[%s2951_s30 + $0x90] sm:$0xf]  ;;  %v1913_v16 = vor.u32 %v2420_v8, %v1912_v7 }
  0xaa   : > { %1595 = vmatpush.bf16.msra.mxu2 %v2065_v46  ;;  %v2113_v10 = vor.u32 %v2470_v3, %v2112_v2  ;;  %v2436_v11 = vld [vmem:[%s2951_s30 + $0x94] sm:$0xf0]  ;;  %v2040_v12 = vld [vmem:[%s2951_s30 + $0x110] sm:$0xf]  ;;  %v1904_v17 = vld [vmem:[%s2951_s30] sm:$0xf] }
  0xab   : > { %1608 = vmatpush.bf16.msra.mxu3 %v2129_v50  ;;  %v2452_v13 = vld [vmem:[%s2951_s30 + $0x114] sm:$0xf0]  ;;  %v2104_v14 = vld [vmem:[%s2951_s30 + $0x190] sm:$0xf]  ;;  %v2418_v18 = vld [vmem:[%s2951_s30 + $0x4] sm:$0xf0]  ;;  %v1977_v19 = vor.u32 %v2436_v11, %v1976_v9 }
  0xac   : > { %1570 = vmatpush.bf16.msra.mxu0 %v1929_v56  ;;  %v2468_v15 = vld [vmem:[%s2951_s30 + $0x194] sm:$0xf0]  ;;  %v2041_v20 = vor.u32 %v2452_v13, %v2040_v12  ;;  %v1968_v21 = vld [vmem:[%s2951_s30 + $0x80] sm:$0xf]  ;;  %v2434_v22 = vld [vmem:[%s2951_s30 + $0x84] sm:$0xf0]  ;;  %v1905_v31 = vor.u32 %v2418_v18, %v1904_v17 }
  0xad   : > { %1583 = vmatpush.bf16.msra.mxu1 %v1993_v57  ;;  %v2032_v23 = vld [vmem:[%s2951_s30 + $0x100] sm:$0xf]  ;;  %v2105_v24 = vor.u32 %v2468_v15, %v2104_v14  ;;  %v2450_v25 = vld [vmem:[%s2951_s30 + $0x104] sm:$0xf0]  ;;  %v2216_v28 = vld [vmem:[%s2951_s30 + $0x270] sm:$0xf]  ;;  %v1969_v35 = vor.u32 %v2434_v22, %v1968_v21 }
  0xae   : > { %1596 = vmatpush.bf16.msra.mxu2 %v2057_v58  ;;  %v2096_v26 = vld [vmem:[%s2951_s30 + $0x180] sm:$0xf]  ;;  %v2466_v27 = vld [vmem:[%s2951_s30 + $0x184] sm:$0xf0]  ;;  %v2496_v29 = vld [vmem:[%s2951_s30 + $0x274] sm:$0xf0]  ;;  %v2033_v36 = vor.u32 %v2450_v25, %v2032_v23 }
  0xaf   : > { %1609 = vmatpush.bf16.msra.mxu3 %v2121_v62  ;;  %v2280_v30 = vld [vmem:[%s2951_s30 + $0x2f0] sm:$0xf]  ;;  %v2512_v32 = vld [vmem:[%s2951_s30 + $0x2f4] sm:$0xf0]  ;;  %v2097_v39 = vor.u32 %v2466_v27, %v2096_v26  ;;  %v2217_v40 = vor.u32 %v2496_v29, %v2216_v28  ;;  %v2208_v43 = vld [vmem:[%s2951_s30 + $0x260] sm:$0xf] }
  0xb0   : > { %1571 = vmatpush.bf16.msra.mxu0 %v1921_v4  ;;  %v2344_v33 = vld [vmem:[%s2951_s30 + $0x370] sm:$0xf]  ;;  %v2528_v34 = vld [vmem:[%s2951_s30 + $0x374] sm:$0xf0]  ;;  %v2281_v41 = vor.u32 %v2512_v32, %v2280_v30  ;;  %v2494_v44 = vld [vmem:[%s2951_s30 + $0x264] sm:$0xf0] }
  0xb1   : > { %1584 = vmatpush.bf16.msra.mxu1 %v1985_v5  ;;  %v2408_v37 = vld [vmem:[%s2951_s30 + $0x3f0] sm:$0xf]  ;;  %v2544_v38 = vld [vmem:[%s2951_s30 + $0x3f4] sm:$0xf0]  ;;  %v2345_v42 = vor.u32 %v2528_v34, %v2344_v33  ;;  %v2272_v45 = vld [vmem:[%s2951_s30 + $0x2e0] sm:$0xf]  ;;  %v2209_v52 = vor.u32 %v2494_v44, %v2208_v43 }
  0xb2   : > { %1597 = vmatpush.bf16.msra.mxu2 %v2049_v6  ;;  %v2409_v46 = vor.u32 %v2544_v38, %v2408_v37  ;;  %v2510_v47 = vld [vmem:[%s2951_s30 + $0x2e4] sm:$0xf0]  ;;  %v2336_v48 = vld [vmem:[%s2951_s30 + $0x360] sm:$0xf]  ;;  %v2200_v55 = vld [vmem:[%s2951_s30 + $0x250] sm:$0xf] }
  0xb3   : > { %1610 = vmatpush.bf16.msra.mxu3 %v2113_v10  ;;  %v2526_v49 = vld [vmem:[%s2951_s30 + $0x364] sm:$0xf0]  ;;  %v2400_v50 = vld [vmem:[%s2951_s30 + $0x3e0] sm:$0xf]  ;;  %v2273_v53 = vor.u32 %v2510_v47, %v2272_v45  ;;  %v2492_v56 = vld [vmem:[%s2951_s30 + $0x254] sm:$0xf0] }
  0xb4   : > { %1572 = vmatpush.bf16.msra.mxu0 %v1913_v16  ;;  %v2542_v51 = vld [vmem:[%s2951_s30 + $0x3e4] sm:$0xf0]  ;;  %v2337_v54 = vor.u32 %v2526_v49, %v2336_v48  ;;  %v2264_v57 = vld [vmem:[%s2951_s30 + $0x2d0] sm:$0xf]  ;;  %v2508_v59 = vld [vmem:[%s2951_s30 + $0x2d4] sm:$0xf0]  ;;  %v2201_v0 = vor.u32 %v2492_v56, %v2200_v55 }
  0xb5   : > { %1585 = vmatpush.bf16.msra.mxu1 %v1977_v19  ;;  %v2401_v58 = vor.u32 %v2542_v51, %v2400_v50  ;;  %v2328_v60 = vld [vmem:[%s2951_s30 + $0x350] sm:$0xf]  ;;  %v2524_v61 = vld [vmem:[%s2951_s30 + $0x354] sm:$0xf0]  ;;  %v2192_v1 = vld [vmem:[%s2951_s30 + $0x240] sm:$0xf]  ;;  %v2265_v3 = vor.u32 %v2508_v59, %v2264_v57 }
  0xb6   : > { %1598 = vmatpush.bf16.msra.mxu2 %v2041_v20  ;;  %v2392_v62 = vld [vmem:[%s2951_s30 + $0x3d0] sm:$0xf]  ;;  %v2540_v63 = vld [vmem:[%s2951_s30 + $0x3d4] sm:$0xf0]  ;;  %v2329_v4 = vor.u32 %v2524_v61, %v2328_v60  ;;  %v2490_v5 = vld [vmem:[%s2951_s30 + $0x244] sm:$0xf0] }
  0xb7   : > { %1611 = vmatpush.bf16.msra.mxu3 %v2105_v24  ;;  %v773_v2 = vld [vmem:[%s3270_s0] sm:$0xff]  ;;  %v2256_v6 = vld [vmem:[%s2951_s30 + $0x2c0] sm:$0xf]  ;;  %v2393_v7 = vor.u32 %v2540_v63, %v2392_v62  ;;  %v2506_v8 = vld [vmem:[%s2951_s30 + $0x2c4] sm:$0xf0]  ;;  %v2193_v13 = vor.u32 %v2490_v5, %v2192_v1  ;;  %s3281_s6 = smov (!%p760_p9, %s1900_s6), 3 }
  0xb8   : > { %1573 = vmatpush.bf16.msra.mxu0 %v1905_v31  ;;  %909 = vst [vmem:[#allocation1] ss:$9 sm:$0xff] %v773_v2  ;;  %v2320_v9 = vld [vmem:[%s2951_s30 + $0x340] sm:$0xf]  ;;  %v2522_v10 = vld [vmem:[%s2951_s30 + $0x344] sm:$0xf0]  ;;  %v2257_v14 = vor.u32 %v2506_v8, %v2256_v6  ;;  %s762_s9 = scalar_lea.vmem %s3272_s2, %s3281_s6  ;;  %s771_s12 = scalar_lea.vmem %s3273_s3, %s3281_s6 }
  0xb9   : > { %1586 = vmatpush.bf16.msra.mxu1 %v1969_v35  ;;  %v2384_v11 = vld [vmem:[%s2951_s30 + $0x3c0] sm:$0xf]  ;;  %v2538_v12 = vld [vmem:[%s2951_s30 + $0x3c4] sm:$0xf0]  ;;  %v2321_v15 = vor.u32 %v2522_v10, %v2320_v9  ;;  %v2184_v16 = vld [vmem:[%s2951_s30 + $0x230] sm:$0xf] }
  0xba   : > { %1599 = vmatpush.bf16.msra.mxu2 %v2033_v36  ;;  %v2488_v17 = vld [vmem:[%s2951_s30 + $0x234] sm:$0xf0]  ;;  %v2248_v18 = vld [vmem:[%s2951_s30 + $0x2b0] sm:$0xf]  ;;  %v2385_v19 = vor.u32 %v2538_v12, %v2384_v11  ;;  %v2176_v25 = vld [vmem:[%s2951_s30 + $0x220] sm:$0xf] }
  0xbb   : > { %1612 = vmatpush.bf16.msra.mxu3 %v2097_v39  ;;  %v2504_v20 = vld [vmem:[%s2951_s30 + $0x2b4] sm:$0xf0]  ;;  %v2312_v21 = vld [vmem:[%s2951_s30 + $0x330] sm:$0xf]  ;;  %v2185_v26 = vor.u32 %v2488_v17, %v2184_v16  ;;  %v2486_v32 = vld [vmem:[%s2951_s30 + $0x224] sm:$0xf0] }
  0xbc   : > { %1618 = vmatpush.bf16.msrb.mxu0 %v2217_v40  ;;  %v2520_v22 = vld [vmem:[%s2951_s30 + $0x334] sm:$0xf0]  ;;  %v2376_v23 = vld [vmem:[%s2951_s30 + $0x3b0] sm:$0xf]  ;;  %v2249_v30 = vor.u32 %v2504_v20, %v2248_v18  ;;  %v2240_v33 = vld [vmem:[%s2951_s30 + $0x2a0] sm:$0xf] }
  0xbd   : > { %1631 = vmatpush.bf16.msrb.mxu1 %v2281_v41  ;;  %v2536_v24 = vld [vmem:[%s2951_s30 + $0x3b4] sm:$0xf0]  ;;  %v2313_v31 = vor.u32 %v2520_v22, %v2312_v21  ;;  %v2502_v36 = vld [vmem:[%s2951_s30 + $0x2a4] sm:$0xf0]  ;;  %v2304_v37 = vld [vmem:[%s2951_s30 + $0x320] sm:$0xf]  ;;  %v2177_v41 = vor.u32 %v2486_v32, %v2176_v25 }
  0xbe   : > { %1644 = vmatpush.bf16.msrb.mxu2 %v2345_v42  ;;  %v2377_v35 = vor.u32 %v2536_v24, %v2376_v23  ;;  %v2518_v38 = vld [vmem:[%s2951_s30 + $0x324] sm:$0xf0]  ;;  %v2368_v39 = vld [vmem:[%s2951_s30 + $0x3a0] sm:$0xf]  ;;  %v2241_v42 = vor.u32 %v2502_v36, %v2240_v33  ;;  %v2168_v44 = vld [vmem:[%s2951_s30 + $0x210] sm:$0xf] }
  0xbf   : > { %1657 = vmatpush.bf16.msrb.mxu3 %v2409_v46  ;;  %v3061_v27 = vld [vmem:[#allocation1 + $0x12] sm:$0xff]  ;;  %v3063_v28 = vld [vmem:[#allocation1] sm:$0xff]  ;;  %v3069_v34 = vld [vmem:[#allocation1 + $0x9] sm:$0xff]  ;;  %v2305_v43 = vor.u32 %v2518_v38, %v2304_v37  ;;  %vm1779_vm0 = vcmask 1040384  }
  0xc0   : > { %1619 = vmatpush.bf16.msrb.mxu0 %v2209_v52  ;;  %v3065_v29 = vld [vmem:[#allocation1 + $0x1b] sm:$0xff]  ;;  %1600 = vmatmul.bf16.vlgmr.msra.gmra.mxu2 %v3061_v27  ;;  %v2534_v40 = vld [vmem:[%s2951_s30 + $0x3a4] sm:$0xf0]  ;;  %v2288_v60 = vld [vmem:[%s2951_s30 + $0x300] sm:$0xf] }
  0xc1   : > { %1632 = vmatpush.bf16.msrb.mxu1 %v2273_v53  ;;  %1574 = vmatmul.bf16.vlgmr.msra.gmra.mxu0 %v3063_v28  ;;  %v2484_v45 = vld [vmem:[%s2951_s30 + $0x214] sm:$0xf0]  ;;  %v2232_v46 = vld [vmem:[%s2951_s30 + $0x290] sm:$0xf]  ;;  %v2369_v47 = vor.u32 %v2534_v40, %v2368_v39  ;;  %v2482_v55 = vld [vmem:[%s2951_s30 + $0x204] sm:$0xf0] }
  0xc2   : > { %1645 = vmatpush.bf16.msrb.mxu2 %v2337_v54  ;;  %1613 = vmatmul.bf16.vlgmr.msra.gmra.mxu3 %v3065_v29  ;;  %v2500_v48 = vld [vmem:[%s2951_s30 + $0x294] sm:$0xf0]  ;;  %v2296_v49 = vld [vmem:[%s2951_s30 + $0x310] sm:$0xf]  ;;  %v2169_v53 = vor.u32 %v2484_v45, %v2168_v44  ;;  %v2160_v54 = vld [vmem:[%s2951_s30 + $0x200] sm:$0xf] }
  0xc3   : > { %1658 = vmatpush.bf16.msrb.mxu3 %v2401_v58  ;;  %1587 = vmatmul.bf16.vlgmr.msra.gmra.mxu1 %v3069_v34  ;;  %v2516_v50 = vld [vmem:[%s2951_s30 + $0x314] sm:$0xf0]  ;;  %v2360_v51 = vld [vmem:[%s2951_s30 + $0x390] sm:$0xf]  ;;  %v2233_v56 = vor.u32 %v2500_v48, %v2232_v46  ;;  %v2224_v58 = vld [vmem:[%s2951_s30 + $0x280] sm:$0xf] }
  0xc4   : > { %1620 = vmatpush.bf16.msrb.mxu0 %v2201_v0  ;;  %v2532_v52 = vld [vmem:[%s2951_s30 + $0x394] sm:$0xf0]  ;;  %v2297_v57 = vor.u32 %v2516_v50, %v2296_v49  ;;  %v2498_v59 = vld [vmem:[%s2951_s30 + $0x284] sm:$0xf0]  ;;  %v2352_v63 = vld [vmem:[%s2951_s30 + $0x380] sm:$0xf] }
  0xc5   : > { %1633 = vmatpush.bf16.msrb.mxu1 %v2265_v3  ;;  %v2361_v61 = vor.u32 %v2532_v52, %v2360_v51  ;;  %v2514_v62 = vld [vmem:[%s2951_s30 + $0x304] sm:$0xf0]  ;;  %v2431_v1 = vld [vmem:[%s2951_s30 + $0x74] sm:$0xf]  ;;  %v1962_v2 = vld [vmem:[%s2951_s30 + $0x78] sm:$0xf0]  ;;  %v2225_v8 = vor.u32 %v2498_v59, %v2224_v58 }
  0xc6   : > { %1646 = vmatpush.bf16.msrb.mxu2 %v2329_v4  ;;  %v2530_v0 = vld [vmem:[%s2951_s30 + $0x384] sm:$0xf0]  ;;  %v2447_v3 = vld [vmem:[%s2951_s30 + $0xf4] sm:$0xf]  ;;  %v2161_v4 = vor.u32 %v2482_v55, %v2160_v54  ;;  %v2026_v5 = vld [vmem:[%s2951_s30 + $0xf8] sm:$0xf0]  ;;  %v2289_v9 = vor.u32 %v2514_v62, %v2288_v60 }
  0xc7   : > { %1659 = vmatpush.bf16.msrb.mxu3 %v2393_v7  ;;  %v2463_v6 = vld [vmem:[%s2951_s30 + $0x174] sm:$0xf]  ;;  %v2090_v7 = vld [vmem:[%s2951_s30 + $0x178] sm:$0xf0]  ;;  %v2353_v12 = vor.u32 %v2530_v0, %v2352_v63  ;;  %v2429_v16 = vld [vmem:[%s2951_s30 + $0x64] sm:$0xf] }
  0xc8   : > { %1621 = vmatpush.bf16.msrb.mxu0 %v2193_v13  ;;  %v2479_v10 = vld [vmem:[%s2951_s30 + $0x1f4] sm:$0xf]  ;;  %v2154_v11 = vld [vmem:[%s2951_s30 + $0x1f8] sm:$0xf0]  ;;  %v1965_v13 = vor.u32 %v2431_v1, %v1962_v2  ;;  %v1954_v17 = vld [vmem:[%s2951_s30 + $0x68] sm:$0xf0] }
  0xc9   : > { %1634 = vmatpush.bf16.msrb.mxu1 %v2257_v14  ;;  %v2029_v14 = vor.u32 %v2447_v3, %v2026_v5  ;;  %v2445_v18 = vld [vmem:[%s2951_s30 + $0xe4] sm:$0xf]  ;;  %v2018_v20 = vld [vmem:[%s2951_s30 + $0xe8] sm:$0xf0]  ;;  %v3117_v32 = vld [vmem:[#allocation1 + $0x3f] sm:$0xff] }
  0xca   : > { %1647 = vmatpush.bf16.msrb.mxu2 %v2321_v15  ;;  %v2093_v15 = vor.u32 %v2463_v6, %v2090_v7  ;;  %v2461_v21 = vld [vmem:[%s2951_s30 + $0x164] sm:$0xf]  ;;  %v2082_v22 = vld [vmem:[%s2951_s30 + $0x168] sm:$0xf0]  ;;  %v2021_v33 = vor.u32 %v2445_v18, %v2018_v20  ;;  %v1946_v36 = vld [vmem:[%s2951_s30 + $0x58] sm:$0xf0] }
  0xcb   : > { %1660 = vmatpush.bf16.msrb.mxu3 %v2385_v19  ;;  %v2157_v19 = vor.u32 %v2479_v10, %v2154_v11  ;;  %v2477_v23 = vld [vmem:[%s2951_s30 + $0x1e4] sm:$0xf]  ;;  %v2146_v24 = vld [vmem:[%s2951_s30 + $0x1e8] sm:$0xf0]  ;;  %v2443_v37 = vld [vmem:[%s2951_s30 + $0xd4] sm:$0xf] }
  0xcc   : > { %1622 = vmatpush.bf16.msrb.mxu0 %v2185_v26  ;;  %v3112_v25 = vld [vmem:[#allocation1 + $0x36] sm:$0xff]  ;;  %v1957_v26 = vor.u32 %v2429_v16, %v1954_v17  ;;  %v3121_v38 = vld [vmem:[#allocation1 + $0x2d] sm:$0xff]  ;;  %v2149_v39 = vor.u32 %v2477_v23, %v2146_v24  ;;  %v2010_v40 = vld [vmem:[%s2951_s30 + $0xd8] sm:$0xf0] }
  0xcd   : > { %1635 = vmatpush.bf16.msrb.mxu1 %v2249_v30  ;;  %v2427_v30 = vld [vmem:[%s2951_s30 + $0x54] sm:$0xf]  ;;  %v2138_v44 = vld [vmem:[%s2951_s30 + $0x1d8] sm:$0xf0]  ;;  %v2013_v46 = vor.u32 %v2443_v37, %v2010_v40  ;;  %v2425_v48 = vld [vmem:[%s2951_s30 + $0x44] sm:$0xf] }
  0xce   : > { %1648 = vmatpush.bf16.msrb.mxu2 %v2313_v31  ;;  %v3115_v31 = vld [vmem:[#allocation1 + $0x24] sm:$0xff]  ;;  %v1949_v45 = vor.u32 %v2427_v30, %v1946_v36  ;;  %v1938_v49 = vld [vmem:[%s2951_s30 + $0x48] sm:$0xf0]  ;;  %v2441_v50 = vld [vmem:[%s2951_s30 + $0xc4] sm:$0xf] }
  0xcf   : > { %1661 = vmatpush.bf16.msrb.mxu3 %v2377_v35  ;;  %v2085_v35 = vor.u32 %v2461_v21, %v2082_v22  ;;  %v2002_v52 = vld [vmem:[%s2951_s30 + $0xc8] sm:$0xf0]  ;;  %v2473_v55 = vld [vmem:[%s2951_s30 + $0x1c4] sm:$0xf]  ;;  %v2423_v60 = vld [vmem:[%s2951_s30 + $0x34] sm:$0xf] }
  0xd0   : > { %1623 = vmatpush.bf16.msrb.mxu0 %v2177_v41  ;;  %v2459_v41 = vld [vmem:[%s2951_s30 + $0x154] sm:$0xf]  ;;  %v2066_v54 = vld [vmem:[%s2951_s30 + $0x148] sm:$0xf0]  ;;  %v2005_v58 = vor.u32 %v2441_v50, %v2002_v52  ;;  %v1994_v0 = vld [vmem:[%s2951_s30 + $0xb8] sm:$0xf0] }
  0xd1   : > { %1636 = vmatpush.bf16.msrb.mxu1 %v2241_v42  ;;  %v2074_v42 = vld [vmem:[%s2951_s30 + $0x158] sm:$0xf0]  ;;  %v2439_v62 = vld [vmem:[%s2951_s30 + $0xb4] sm:$0xf]  ;;  %v2437_v10 = vld [vmem:[%s2951_s30 + $0xa4] sm:$0xf] }
  0xd2   : > { %1649 = vmatpush.bf16.msrb.mxu2 %v2305_v43  ;;  %v2475_v43 = vld [vmem:[%s2951_s30 + $0x1d4] sm:$0xf]  ;;  %v2058_v2 = vld [vmem:[%s2951_s30 + $0x138] sm:$0xf0]  ;;  %v1997_v6 = vor.u32 %v2439_v62, %v1994_v0  ;;  %v2114_v16 = vld [vmem:[%s2951_s30 + $0x1a8] sm:$0xf0] }
  0xd3   : > { %1662 = vmatpush.bf16.msrb.mxu3 %v2369_v47  ;;  %v2077_v47 = vor.u32 %v2459_v41, %v2074_v42  ;;  %v2141_v51 = vor.u32 %v2475_v43, %v2138_v44  ;;  %v2455_v1 = vld [vmem:[%s2951_s30 + $0x134] sm:$0xf]  ;;  %v1914_v21 = vld [vmem:[%s2951_s30 + $0x18] sm:$0xf0]  ;;  %v2417_v37 = vld [vmem:[%s2951_s30 + $0x4] sm:$0xf] }
  0xd4   : > { %1624 = vmatpush.bf16.msrb.mxu0 %v2169_v53  ;;  %v2457_v53 = vld [vmem:[%s2951_s30 + $0x144] sm:$0xf]  ;;  %v2471_v3 = vld [vmem:[%s2951_s30 + $0x1b4] sm:$0xf]  ;;  %v2061_v7 = vor.u32 %v2455_v1, %v2058_v2  ;;  %v1978_v24 = vld [vmem:[%s2951_s30 + $0x98] sm:$0xf0] }
  0xd5   : > { %1637 = vmatpush.bf16.msrb.mxu1 %v2233_v56  ;;  %v2130_v56 = vld [vmem:[%s2951_s30 + $0x1c8] sm:$0xf0]  ;;  %v2069_v59 = vor.u32 %v2457_v53, %v2066_v54  ;;  %v2419_v20 = vld [vmem:[%s2951_s30 + $0x14] sm:$0xf]  ;;  %v2042_v30 = vld [vmem:[%s2951_s30 + $0x118] sm:$0xf0] }
  0xd6   : > { %1650 = vmatpush.bf16.msrb.mxu2 %v2297_v57  ;;  %v1941_v57 = vor.u32 %v2425_v48, %v1938_v49  ;;  %v2133_v63 = vor.u32 %v2473_v55, %v2130_v56  ;;  %v2435_v22 = vld [vmem:[%s2951_s30 + $0x94] sm:$0xf]  ;;  %v1917_v36 = vor.u32 %v2419_v20, %v1914_v21  ;;  %v2433_v42 = vld [vmem:[%s2951_s30 + $0x84] sm:$0xf]  ;;  %v1970_v43 = vld [vmem:[%s2951_s30 + $0x88] sm:$0xf0] }
  0xd7   : > { %1663 = vmatpush.bf16.msrb.mxu3 %v2361_v61  ;;  %v1930_v61 = vld [vmem:[%s2951_s30 + $0x38] sm:$0xf0]  ;;  %v1981_v40 = vor.u32 %v2435_v22, %v1978_v24  ;;  %v2449_v44 = vld [vmem:[%s2951_s30 + $0x104] sm:$0xf]  ;;  %v2098_v48 = vld [vmem:[%s2951_s30 + $0x188] sm:$0xf0]  ;;  %v1973_v56 = vor.u32 %v2433_v42, %v1970_v43 }
  0xd8   : > { %1625 = vmatpush.bf16.msrb.mxu0 %v2161_v4  ;;  %v2122_v4 = vld [vmem:[%s2951_s30 + $0x1b8] sm:$0xf0]  ;;  %v1933_v5 = vor.u32 %v2423_v60, %v1930_v61  ;;  %v2495_v49 = vld [vmem:[%s2951_s30 + $0x274] sm:$0xf]  ;;  %v2493_v0 = vld [vmem:[%s2951_s30 + $0x264] sm:$0xf] }
  0xd9   : > { %1638 = vmatpush.bf16.msrb.mxu1 %v2225_v8  ;;  %v2421_v8 = vld [vmem:[%s2951_s30 + $0x24] sm:$0xf]  ;;  %v2125_v11 = vor.u32 %v2471_v3, %v2122_v4  ;;  %v2218_v50 = vld [vmem:[%s2951_s30 + $0x278] sm:$0xf0]  ;;  %v2527_v54 = vld [vmem:[%s2951_s30 + $0x374] sm:$0xf] }
  0xda   : > { %1651 = vmatpush.bf16.msrb.mxu2 %v2289_v9  ;;  %v1922_v9 = vld [vmem:[%s2951_s30 + $0x28] sm:$0xf0]  ;;  %v2282_v53 = vld [vmem:[%s2951_s30 + $0x2f8] sm:$0xf0]  ;;  %v2221_v61 = vor.u32 %v2495_v49, %v2218_v50  ;;  %v2509_v2 = vld [vmem:[%s2951_s30 + $0x2e4] sm:$0xf] }
  0xdb   : > { %1664 = vmatpush.bf16.msrb.mxu3 %v2353_v12  ;;  %1626 = vmatmul.bf16.vlgmr.msrb.gmra.mxu0 %v3115_v31  ;;  %v1986_v12 = vld [vmem:[%s2951_s30 + $0xa8] sm:$0xf0]  ;;  %v1925_v17 = vor.u32 %v2421_v8, %v1922_v9  ;;  %v2346_v55 = vld [vmem:[%s2951_s30 + $0x378] sm:$0xf0]  ;;  %v2503_v42 = vld [vmem:[%s2951_s30 + $0x2b4] sm:$0xf] }
  0xdc   : > { %1670 = vmatpush.bf16.msra.mxu0 %v1965_v13  ;;  %1639 = vmatmul.bf16.vlgmr.msrb.gmra.mxu1 %v3121_v38  ;;  %v2453_v13 = vld [vmem:[%s2951_s30 + $0x124] sm:$0xf]  ;;  %v1989_v18 = vor.u32 %v2437_v10, %v1986_v12  ;;  %v2210_v1 = vld [vmem:[%s2951_s30 + $0x268] sm:$0xf0]  ;;  %v2491_v12 = vld [vmem:[%s2951_s30 + $0x254] sm:$0xf] }
  0xdd   : > { %1683 = vmatpush.bf16.msra.mxu1 %v2029_v14  ;;  %1652 = vmatmul.bf16.vlgmr.msrb.gmra.mxu2 %v3112_v25  ;;  %v2050_v14 = vld [vmem:[%s2951_s30 + $0x128] sm:$0xf0]  ;;  %v2213_v9 = vor.u32 %v2493_v0, %v2210_v1  ;;  %v2394_v20 = vld [vmem:[%s2951_s30 + $0x3d8] sm:$0xf0]  ;;  %v2483_v0 = vld [vmem:[%s2951_s30 + $0x214] sm:$0xf] }
  0xde   : > { %1696 = vmatpush.bf16.msra.mxu2 %v2093_v15  ;;  %1665 = vmatmul.bf16.vlgmr.msrb.gmra.mxu3 %v3117_v32  ;;  %v2469_v15 = vld [vmem:[%s2951_s30 + $0x1a4] sm:$0xf]  ;;  %v2274_v4 = vld [vmem:[%s2951_s30 + $0x2e8] sm:$0xf0]  ;;  %v2170_v1 = vld [vmem:[%s2951_s30 + $0x218] sm:$0xf0] }
  0xdf   : > { %1709 = vmatpush.bf16.msra.mxu3 %v2157_v19  ;;  %v2053_v19 = vor.u32 %v2453_v13, %v2050_v14  ;;  %v2117_v23 = vor.u32 %v2469_v15, %v2114_v16  ;;  %v2402_v8 = vld [vmem:[%s2951_s30 + $0x3e8] sm:$0xf0]  ;;  %v2277_v10 = vor.u32 %v2509_v2, %v2274_v4  ;;  %v2202_v13 = vld [vmem:[%s2951_s30 + $0x258] sm:$0xf0]  ;;  %v2507_v14 = vld [vmem:[%s2951_s30 + $0x2d4] sm:$0xf] }
  0xe0   : > { %1671 = vmatpush.bf16.msra.mxu0 %v1957_v26  ;;  %v2451_v26 = vld [vmem:[%s2951_s30 + $0x114] sm:$0xf]  ;;  %v2266_v16 = vld [vmem:[%s2951_s30 + $0x2d8] sm:$0xf0]  ;;  %v2205_v21 = vor.u32 %v2491_v12, %v2202_v13  ;;  %v2194_v24 = vld [vmem:[%s2951_s30 + $0x248] sm:$0xf0] }
  0xe1   : > { %1684 = vmatpush.bf16.msra.mxu1 %v2021_v33  ;;  %v2467_v33 = vld [vmem:[%s2951_s30 + $0x194] sm:$0xf]  ;;  %v2045_v41 = vor.u32 %v2451_v26, %v2042_v30  ;;  %v2505_v26 = vld [vmem:[%s2951_s30 + $0x2c4] sm:$0xf]  ;;  %v2258_v30 = vld [vmem:[%s2951_s30 + $0x2c8] sm:$0xf0] }
  0xe2   : > { %1697 = vmatpush.bf16.msra.mxu2 %v2085_v35  ;;  %v2106_v35 = vld [vmem:[%s2951_s30 + $0x198] sm:$0xf0]  ;;  %v2499_v2 = vld [vmem:[%s2951_s30 + $0x294] sm:$0xf]  ;;  %v2481_v12 = vld [vmem:[%s2951_s30 + $0x204] sm:$0xf] }
  0xe3   : > { %1710 = vmatpush.bf16.msra.mxu3 %v2149_v39  ;;  %v1906_v39 = vld [vmem:[%s2951_s30 + $0x8] sm:$0xf0]  ;;  %v2234_v4 = vld [vmem:[%s2951_s30 + $0x298] sm:$0xf0] }
  0xe4   : > { %1672 = vmatpush.bf16.msra.mxu0 %v1949_v45  ;;  %v2109_v45 = vor.u32 %v2467_v33, %v2106_v35  ;;  %v1909_v52 = vor.u32 %v2417_v37, %v1906_v39  ;;  %v2322_v33 = vld [vmem:[%s2951_s30 + $0x348] sm:$0xf0]  ;;  %v2537_v35 = vld [vmem:[%s2951_s30 + $0x3c4] sm:$0xf]  ;;  %v2261_v37 = vor.u32 %v2505_v26, %v2258_v30 }
  0xe5   : > { %1685 = vmatpush.bf16.msra.mxu1 %v2013_v46  ;;  %v2034_v46 = vld [vmem:[%s2951_s30 + $0x108] sm:$0xf0] }
  0xe6   : > { %1698 = vmatpush.bf16.msra.mxu2 %v2077_v47  ;;  %v2465_v47 = vld [vmem:[%s2951_s30 + $0x184] sm:$0xf]  ;;  %v2162_v13 = vld [vmem:[%s2951_s30 + $0x208] sm:$0xf0] }
  0xe7   : > { %1711 = vmatpush.bf16.msra.mxu3 %v2141_v51  ;;  %v2511_v51 = vld [vmem:[%s2951_s30 + $0x2f4] sm:$0xf]  ;;  %v2101_v60 = vor.u32 %v2465_v47, %v2098_v48  ;;  %v2378_v48 = vld [vmem:[%s2951_s30 + $0x3b8] sm:$0xf0] }
  0xe8   : > { %1673 = vmatpush.bf16.msra.mxu0 %v1941_v57  ;;  %v2037_v57 = vor.u32 %v2449_v44, %v2034_v46  ;;  %v2285_v62 = vor.u32 %v2511_v51, %v2282_v53  ;;  %v2250_v44 = vld [vmem:[%s2951_s30 + $0x2b8] sm:$0xf0]  ;;  %v2535_v47 = vld [vmem:[%s2951_s30 + $0x3b4] sm:$0xf]  ;;  %v2178_v53 = vld [vmem:[%s2951_s30 + $0x228] sm:$0xf0] }
  0xe9   : > { %1686 = vmatpush.bf16.msra.mxu1 %v2005_v58  ;;  %v2543_v58 = vld [vmem:[%s2951_s30 + $0x3f4] sm:$0xf]  ;;  %v2314_v46 = vld [vmem:[%s2951_s30 + $0x338] sm:$0xf0]  ;;  %v2253_v50 = vor.u32 %v2503_v42, %v2250_v44 }
  0xea   : > { %1699 = vmatpush.bf16.msra.mxu2 %v2069_v59  ;;  %v2410_v59 = vld [vmem:[%s2951_s30 + $0x3f8] sm:$0xf0] }
  0xeb   : > { %1712 = vmatpush.bf16.msra.mxu3 %v2133_v63  ;;  %v2349_v63 = vor.u32 %v2527_v54, %v2346_v55  ;;  %v2413_v3 = vor.u32 %v2543_v58, %v2410_v59  ;;  %v2501_v54 = vld [vmem:[%s2951_s30 + $0x2a4] sm:$0xf]  ;;  %v2381_v55 = vor.u32 %v2535_v47, %v2378_v48  ;;  %v2306_v58 = vld [vmem:[%s2951_s30 + $0x328] sm:$0xf0] }
  0xec   : > { %1674 = vmatpush.bf16.msra.mxu0 %v1933_v5  ;;  %v2525_v5 = vld [vmem:[%s2951_s30 + $0x364] sm:$0xf] }
  0xed   : > { %1687 = vmatpush.bf16.msra.mxu1 %v1997_v6  ;;  %v2338_v6 = vld [vmem:[%s2951_s30 + $0x368] sm:$0xf0]  ;;  %v2533_v59 = vld [vmem:[%s2951_s30 + $0x3a4] sm:$0xf] }
  0xee   : > { %1700 = vmatpush.bf16.msra.mxu2 %v2061_v7  ;;  %v2541_v7 = vld [vmem:[%s2951_s30 + $0x3e4] sm:$0xf] }
  0xef   : > { %1713 = vmatpush.bf16.msra.mxu3 %v2125_v11  ;;  %v2341_v11 = vor.u32 %v2525_v5, %v2338_v6  ;;  %v2405_v15 = vor.u32 %v2541_v7, %v2402_v8  ;;  %v2515_v5 = vld [vmem:[%s2951_s30 + $0x314] sm:$0xf]  ;;  %v2298_v6 = vld [vmem:[%s2951_s30 + $0x318] sm:$0xf0] }
  0xf0   : > { %1675 = vmatpush.bf16.msra.mxu0 %v1925_v17  ;;  %v2523_v17 = vld [vmem:[%s2951_s30 + $0x354] sm:$0xf]  ;;  %v2362_v8 = vld [vmem:[%s2951_s30 + $0x398] sm:$0xf0] }
  0xf1   : > { %1688 = vmatpush.bf16.msra.mxu1 %v1989_v18  ;;  %v2330_v18 = vld [vmem:[%s2951_s30 + $0x358] sm:$0xf0]  ;;  %v2531_v7 = vld [vmem:[%s2951_s30 + $0x394] sm:$0xf] }
  0xf2   : > { %1701 = vmatpush.bf16.msra.mxu2 %v2053_v19  ;;  %v2539_v19 = vld [vmem:[%s2951_s30 + $0x3d4] sm:$0xf]  ;;  %v2333_v22 = vor.u32 %v2523_v17, %v2330_v18  ;;  %v2513_v17 = vld [vmem:[%s2951_s30 + $0x304] sm:$0xf]  ;;  %v2290_v18 = vld [vmem:[%s2951_s30 + $0x308] sm:$0xf0] }
  0xf3   : > { %1714 = vmatpush.bf16.msra.mxu3 %v2117_v23  ;;  %v2489_v23 = vld [vmem:[%s2951_s30 + $0x244] sm:$0xf] }
  0xf4   : > { %1676 = vmatpush.bf16.msra.mxu0 %v1917_v36  ;;  %v2197_v36 = vor.u32 %v2489_v23, %v2194_v24  ;;  %v902_v24 = vld [vmem:[%s762_s9] sm:$0x3] }
  0xf5   : > { %1689 = vmatpush.bf16.msra.mxu1 %v1981_v40  ;;  %v2487_v40 = vld [vmem:[%s2951_s30 + $0x234] sm:$0xf]  ;;  %v904_v26 = vperm.slane %v902_v24, 0 }
  0xf6   : > { %1702 = vmatpush.bf16.msra.mxu2 %v2045_v41  ;;  %v2186_v41 = vld [vmem:[%s2951_s30 + $0x238] sm:$0xf0] }
  0xf7   : > { %1715 = vmatpush.bf16.msra.mxu3 %v2109_v45  ;;  %v2519_v45 = vld [vmem:[%s2951_s30 + $0x334] sm:$0xf]  ;;  %v2189_v49 = vor.u32 %v2487_v40, %v2186_v41 }
  0xf8   : > { %1677 = vmatpush.bf16.msra.mxu0 %v1909_v52  ;;  %v2317_v51 = vor.u32 %v2519_v45, %v2314_v46  ;;  %v2485_v52 = vld [vmem:[%s2951_s30 + $0x224] sm:$0xf] }
  0xf9   : > { %1690 = vmatpush.bf16.msra.mxu1 %v1973_v56  ;;  %v2242_v56 = vld [vmem:[%s2951_s30 + $0x2a8] sm:$0xf0] }
  0xfa   : > { %1703 = vmatpush.bf16.msra.mxu2 %v2037_v57  ;;  %v2517_v57 = vld [vmem:[%s2951_s30 + $0x324] sm:$0xf] }
  0xfb   : > { %1716 = vmatpush.bf16.msra.mxu3 %v2101_v60  ;;  %1678 = vmatmul.bf16.vlgmr.msra.gmra.mxu0 %v3063_v28  ;;  %v2397_v28 = vor.u32 %v2539_v19, %v2394_v20  ;;  %v2370_v60 = vld [vmem:[%s2951_s30 + $0x3a8] sm:$0xf0]  ;;  %v2529_v19 = vld [vmem:[%s2951_s30 + $0x384] sm:$0xf] }
  0xfc   : > { %1722 = vmatpush.bf16.msrb.mxu0 %v2221_v61  ;;  %1691 = vmatmul.bf16.vlgmr.msra.gmra.mxu1 %v3069_v34  ;;  %v2386_v34 = vld [vmem:[%s2951_s30 + $0x3c8] sm:$0xf0]  ;;  %v2181_v61 = vor.u32 %v2485_v52, %v2178_v53  ;;  %v905_v53 = vperm.slane %v902_v24, 1 }
  0xfd   : > { %1735 = vmatpush.bf16.msrb.mxu1 %v2285_v62  ;;  %1704 = vmatmul.bf16.vlgmr.msra.gmra.mxu2 %v3061_v27  ;;  %v2269_v27 = vor.u32 %v2507_v14, %v2266_v16  ;;  %v2389_v43 = vor.u32 %v2537_v35, %v2386_v34  ;;  %v2245_v62 = vor.u32 %v2501_v54, %v2242_v56  ;;  %v2497_v14 = vld [vmem:[%s2951_s30 + $0x284] sm:$0xf]  ;;  %v2226_v16 = vld [vmem:[%s2951_s30 + $0x288] sm:$0xf0] }
  0xfe   : > { %1748 = vmatpush.bf16.msrb.mxu2 %v2349_v63  ;;  %1717 = vmatmul.bf16.vlgmr.msra.gmra.mxu3 %v3065_v29  ;;  %v2521_v29 = vld [vmem:[%s2951_s30 + $0x344] sm:$0xf]  ;;  %v2309_v63 = vor.u32 %v2517_v57, %v2306_v58  ;;  %v2354_v20 = vld [vmem:[%s2951_s30 + $0x388] sm:$0xf0] }
  0xff   : > { %1761 = vmatpush.bf16.msrb.mxu3 %v2413_v3  ;;  %v2325_v39 = vor.u32 %v2521_v29, %v2322_v33  ;;  %v2373_v3 = vor.u32 %v2533_v59, %v2370_v60  ;;  %v2357_v23 = vor.u32 %v2529_v19, %v2354_v20 }
 0x100   : > { %1723 = vmatpush.bf16.msrb.mxu0 %v2213_v9  ;;  %v2173_v9 = vor.u32 %v2483_v0, %v2170_v1 }
 0x101   : > { %1736 = vmatpush.bf16.msrb.mxu1 %v2277_v10  ;;  %v2237_v10 = vor.u32 %v2499_v2, %v2234_v4 }
 0x102   : > { %1749 = vmatpush.bf16.msrb.mxu2 %v2341_v11  ;;  %v2301_v11 = vor.u32 %v2515_v5, %v2298_v6 }
 0x103   : > { %1762 = vmatpush.bf16.msrb.mxu3 %v2405_v15  ;;  %v2365_v15 = vor.u32 %v2531_v7, %v2362_v8 }
 0x104   : > { %1724 = vmatpush.bf16.msrb.mxu0 %v2205_v21  ;;  %v2165_v21 = vor.u32 %v2481_v12, %v2162_v13 }
 0x105   : > { %1737 = vmatpush.bf16.msrb.mxu1 %v2269_v27  ;;  %v2229_v27 = vor.u32 %v2497_v14, %v2226_v16 }
 0x106   : > { %1750 = vmatpush.bf16.msrb.mxu2 %v2333_v22  ;;  %v2293_v22 = vor.u32 %v2513_v17, %v2290_v18 }
 0x107   : > { %1763 = vmatpush.bf16.msrb.mxu3 %v2397_v28 }
 0x108   : > { %1725 = vmatpush.bf16.msrb.mxu0 %v2197_v36 }
 0x109   : > { %1738 = vmatpush.bf16.msrb.mxu1 %v2261_v37 }
 0x10a   : > { %1751 = vmatpush.bf16.msrb.mxu2 %v2325_v39 }
 0x10b   : > { %1764 = vmatpush.bf16.msrb.mxu3 %v2389_v43 }
 0x10c   : > { %1726 = vmatpush.bf16.msrb.mxu0 %v2189_v49 }
 0x10d   : > { %1739 = vmatpush.bf16.msrb.mxu1 %v2253_v50 }
 0x10e   : > { %1752 = vmatpush.bf16.msrb.mxu2 %v2317_v51 }
 0x10f   : > { %1765 = vmatpush.bf16.msrb.mxu3 %v2381_v55 }
 0x110   : > { %1727 = vmatpush.bf16.msrb.mxu0 %v2181_v61 }
 0x111   : > { %1740 = vmatpush.bf16.msrb.mxu1 %v2245_v62 }
 0x112   : > { %1753 = vmatpush.bf16.msrb.mxu2 %v2309_v63 }
 0x113   : > { %1766 = vmatpush.bf16.msrb.mxu3 %v2373_v3 }
 0x114   : > { %1728 = vmatpush.bf16.msrb.mxu0 %v2173_v9 }
 0x115   : > { %1741 = vmatpush.bf16.msrb.mxu1 %v2237_v10 }
 0x116   : > { %1754 = vmatpush.bf16.msrb.mxu2 %v2301_v11 }
 0x117   : > { %1767 = vmatpush.bf16.msrb.mxu3 %v2365_v15 }
 0x118   : > { %1729 = vmatpush.bf16.msrb.mxu0 %v2165_v21 }
 0x119   : > { %1742 = vmatpush.bf16.msrb.mxu1 %v2229_v27 }
 0x11a   : > { %1755 = vmatpush.bf16.msrb.mxu2 %v2293_v22 }
 0x11b   : > { %1768 = vmatpush.bf16.msrb.mxu3 %v2357_v23  ;;  %1730 = vmatmul.bf16.vlgmr.msrb.gmra.mxu0 %v3115_v31 }
 0x11c   : > { %1743 = vmatmul.bf16.vlgmr.msrb.gmra.mxu1 %v3121_v38 }
 0x11d   : > { %1756 = vmatmul.bf16.vlgmr.msrb.gmra.mxu2 %v3112_v25 }
 0x11e   : > { %1769 = vmatmul.bf16.vlgmr.msrb.gmra.mxu3 %v3117_v32 }
 0x13e   : > { %v1575_v28 = vpop.f32.mrf.mxu0 }
 0x13f   : > { %v1576_v30 = vadd.f32 %v1575_v28, %v904_v26 }
 0x140   : > { %v1588_v31 = vpop.f32.mrf.mxu1 }
 0x141   : > { %v1589_v29 = vadd.f32 %v1588_v31, %v1576_v30 }
 0x143   : > { %v1601_v38 = vpop.f32.mrf.mxu2 }
 0x144   : > { %v1602_v33 = vadd.f32 %v1601_v38, %v1589_v29 }
 0x145   : > { %v1614_v25 = vpop.f32.mrf.mxu3 }
 0x146   : > { %v1615_v35 = vadd.f32 %v1614_v25, %v1602_v33  ;;  %v1577_v32 = vpop.f32.mrf.mxu0 }
 0x148   : > { %v1590_v34 = vpop.f32.mrf.mxu1 }
 0x14b   : > { %v1603_v36 = vpop.f32.mrf.mxu2 }
 0x14d   : > { %v1616_v37 = vpop.f32.mrf.mxu3 }
 0x158   : > { %v1627_v39 = vpop.f32.mrf.mxu0 }
 0x159   : > { %v1640_v40 = vpop.f32.mrf.mxu1  ;;  %v1628_v58 = vadd.f32 %v1627_v39, %v1615_v35 }
 0x15b   : > { %v1641_v60 = vadd.f32 %v1640_v40, %v1628_v58 }
 0x160   : > { %v1653_v41 = vpop.f32.mrf.mxu2  ;;  %v1629_v43 = vpop.f32.mrf.mxu0 }
 0x161   : > { %v1666_v42 = vpop.f32.mrf.mxu3  ;;  %v1642_v44 = vpop.f32.mrf.mxu1  ;;  %v1654_v1 = vadd.f32 %v1653_v41, %v1641_v60 }
 0x163   : > { %v1667_v4 = vadd.f32 %v1666_v42, %v1654_v1 }
 0x165   : > { %v1774_v10 = vmax.f32 %v1667_v4, 0.0 }
 0x168   : > { %v1655_v45 = vpop.f32.mrf.mxu2 }
 0x169   : > { %v1668_v46 = vpop.f32.mrf.mxu3 }
 0x178   : > { %v1679_v47 = vpop.f32.mrf.mxu0 }
 0x179   : > { %v1692_v48 = vpop.f32.mrf.mxu1  ;;  %v1680_v56 = vadd.f32 %v1679_v47, %v905_v53 }
 0x17b   : > { %v1693_v57 = vadd.f32 %v1692_v48, %v1680_v56 }
 0x180   : > { %v1705_v49 = vpop.f32.mrf.mxu2  ;;  %v1681_v51 = vpop.f32.mrf.mxu0 }
 0x181   : > { %v1718_v50 = vpop.f32.mrf.mxu3  ;;  %v1694_v52 = vpop.f32.mrf.mxu1  ;;  %v1706_v59 = vadd.f32 %v1705_v49, %v1693_v57 }
 0x183   : > { %v1719_v61 = vadd.f32 %v1718_v50, %v1706_v59 }
 0x188   : > { %v1707_v54 = vpop.f32.mrf.mxu2 }
 0x189   : > { %v1720_v55 = vpop.f32.mrf.mxu3 }
 0x198   : > { %v1731_v62 = vpop.f32.mrf.mxu0 }
 0x199   : > { %v1744_v63 = vpop.f32.mrf.mxu1  ;;  %v1732_v0 = vadd.f32 %v1731_v62, %v1719_v61 }
 0x19b   : > { %v1745_v2 = vadd.f32 %v1744_v63, %v1732_v0 }
 0x1a0   : > { %v1757_v3 = vpop.f32.mrf.mxu2  ;;  %v1733_v7 = vpop.f32.mrf.mxu0 }
 0x1a1   : > { %v1758_v5 = vadd.f32 %v1757_v3, %v1745_v2  ;;  %v1770_v6 = vpop.f32.mrf.mxu3  ;;  %v1746_v8 = vpop.f32.mrf.mxu1 }
 0x1a3   : > { %v1771_v9 = vadd.f32 %v1770_v6, %v1758_v5 }
 0x1a5   : > { %v1775_v11 = vmax.f32 %v1771_v9, 0.0 }
 0x1a7   : > { %v1776_v12 = vpack.c.bf16 %v1775_v11, %v1774_v10 }
 0x1a8   : > { %v1759_v13 = vpop.f32.mrf.mxu2 }
 0x1a9   : > { %v1778_v14 = vrot.slane %v1776_v12, 3  ;;  %v1772_v15 = vpop.f32.mrf.mxu3 }
 0x1ab   : > { %v1782_v16 = vsel %vm1779_vm0, %v1776_v12, %v1778_v14 }
 0x1ac   : > { %1784 = vst [vmem:[%s771_s12] sm:$0x3] %v1782_v16 }
 0x1ad PF: > { %s13_s16 = sadd.s32 1, %s2623_s16   ;;  %s3274_s12 = smov %s2611_s13 }
 0x1ae   : > { %p10_p10 = scmp.ge.s32.totalorder %s13_s16, 4   ;;  %s3275_s13 = smov %s2680_s20 }
 0x1af   : > { %s3276_s14 = smov %s2619_s15  ;;  %s3277_s15 = smov %s3279_s17 }
 0x1b0   :  { %12 = sbr.rel (!%p10_p10) target bundleno = 3 (0x3), region = 111 }

// kernel: cnn_forward.9
= control target key start
LH: loop header
LB: loop body
LE: loop exit
PB: predicated region body
PF: predicated region fallthrough
CT: control target
= control target key end

     0   :  { %s11188_s12 = smov 0   ;;  %s11190_s13 = smov 0   ;;  %s13463_s0 = inlined_call_operand.vmem [shape: bf16[2,4096], index: 0, kind: input, shape index: {}]   ;;  %s13464_s1 = inlined_call_operand.vmem [shape: bf16[4096,1024], index: 1, kind: input, shape index: {}]   ;;  %s13465_s2 = inlined_call_operand.vmem [shape: f32[1,1024], index: 2, kind: input, shape index: {}]   ;;  %s13466_s3 = inlined_call_operand.vmem [shape: bf16[2,1024], index: 3, kind: output, shape index: {}]  }
   0x1   :  { %s11192_s14 = smov 0   ;;  %s11194_s15 = smov 0  }
   0x2   :  { %s11196_s16 = smov 0  }
   0x3 LB: > { %s22_s17 = sadd.s32 1, %s11162_s15  ;;  %p65_p1 = scmp.ne.s32.totalorder %s11154_s13, %s11150_s12  ;;  %s11166_s16 = sphi %s11196_s16, %s13_s16   ;;  %s11162_s15 = sphi %s11194_s15, %s13471_s15   ;;  %s11158_s14 = sphi %s11192_s14, %s13470_s14   ;;  %s11154_s13 = sphi %s11190_s13, %s13469_s13   ;;  %s11150_s12 = sphi %s11188_s12, %s13468_s12  }
   0x4   : > { %p23_p0 = scmp.ge.s32.totalorder %s22_s17, 4  ;;  %p66_p2 = scmp.eq.s32.totalorder %s11166_s16, 0 }
   0x5   : > { %s58_s19 = sadd.s32 1, %s11154_s13  ;;  %p8508_p5 = scmp.ge.s32.totalorder %s11166_s16, 4 }
   0x6   : > { %s13473_s17 = smov (%p23_p0, %s22_s17), 0  ;;  %p67_p3 = por %p66_p2, %p65_p1 }
   0x7   : > { %s55_s18 = ssub.s32 %s11162_s15, %s13473_s17  ;;  %152 = sbr.rel (%p8508_p5) target bundleno = 528 (0x210), region = 20 }
   0x8   : > { %p56_p4 = scmp.eq.s32.totalorder %s55_s18, 0 }
   0xa   : > { %s11223_s20 = scalar_select %p56_p4, %s11154_s13, %s58_s19  }
   0xc   : > { %155 = sbr.rel (!%p67_p3) target bundleno = 528 (0x210), region = 24  ;;  %s157_s21 = sand.u32 (%p67_p3), 1, %s11154_s13  }
   0xd   : > { %s10566_s22 = sshll.u32 (%p67_p3), %s11162_s15, 3  ;;  %s8509_s23 = sshll.u32 (%p67_p3), %s157_s21, 12 }
   0xe   : > { %s11231_s26 = scalar_lea.vmem (%p67_p3), %s13464_s1, %s10566_s22  ;;  %s11236_s27 = scalar_lea.vmem (%p67_p3), [#allocation2], %s8509_s23 }
   0xf   : > { %v1214_v0 = vld [vmem:[%s11231_s26] sm:$0xff] (%p67_p3) }
  0x10   : > { %v1216_v1 = vld [vmem:[%s11231_s26 + $0x20] sm:$0xff] (%p67_p3)  ;;  %1215 = vst [vmem:[%s11236_s27] sm:$0xff] (%p67_p3), %v1214_v0 }
  0x11   : > { %v1218_v2 = vld [vmem:[%s11231_s26 + $0x40] sm:$0xff]  ;;  %1217 = vst [vmem:[%s11236_s27 + $0x8] sm:$0xff] %v1216_v1 }
  0x12   : > { %v1220_v3 = vld [vmem:[%s11231_s26 + $0x60] sm:$0xff]  ;;  %1219 = vst [vmem:[%s11236_s27 + $0x10] sm:$0xff] %v1218_v2 }
  0x13   : > { %v1222_v4 = vld [vmem:[%s11231_s26 + $0x80] sm:$0xff]  ;;  %1221 = vst [vmem:[%s11236_s27 + $0x18] sm:$0xff] %v1220_v3 }
  0x14   : > { %v1224_v5 = vld [vmem:[%s11231_s26 + $0xa0] sm:$0xff]  ;;  %1223 = vst [vmem:[%s11236_s27 + $0x20] sm:$0xff] %v1222_v4 }
  0x15   : > { %v1226_v6 = vld [vmem:[%s11231_s26 + $0xc0] sm:$0xff]  ;;  %1225 = vst [vmem:[%s11236_s27 + $0x28] sm:$0xff] %v1224_v5 }
  0x16   : > { %v1228_v7 = vld [vmem:[%s11231_s26 + $0xe0] sm:$0xff]  ;;  %1227 = vst [vmem:[%s11236_s27 + $0x30] sm:$0xff] %v1226_v6 }
  0x17   : > { %v1230_v8 = vld [vmem:[%s11231_s26 + $0x100] sm:$0xff]  ;;  %1229 = vst [vmem:[%s11236_s27 + $0x38] sm:$0xff] %v1228_v7 }
  0x18   : > { %v1232_v9 = vld [vmem:[%s11231_s26 + $0x120] sm:$0xff]  ;;  %1231 = vst [vmem:[%s11236_s27 + $0x40] sm:$0xff] %v1230_v8 }
  0x19   : > { %v1234_v10 = vld [vmem:[%s11231_s26 + $0x140] sm:$0xff]  ;;  %1233 = vst [vmem:[%s11236_s27 + $0x48] sm:$0xff] %v1232_v9 }
  0x1a   : > { %v1236_v11 = vld [vmem:[%s11231_s26 + $0x160] sm:$0xff]  ;;  %1235 = vst [vmem:[%s11236_s27 + $0x50] sm:$0xff] %v1234_v10 }
  0x1b   : > { %v1238_v12 = vld [vmem:[%s11231_s26 + $0x180] sm:$0xff]  ;;  %1237 = vst [vmem:[%s11236_s27 + $0x58] sm:$0xff] %v1236_v11 }
  0x1c   : > { %v1240_v13 = vld [vmem:[%s11231_s26 + $0x1a0] sm:$0xff]  ;;  %1239 = vst [vmem:[%s11236_s27 + $0x60] sm:$0xff] %v1238_v12 }
  0x1d   : > { %v1242_v14 = vld [vmem:[%s11231_s26 + $0x1c0] sm:$0xff]  ;;  %1241 = vst [vmem:[%s11236_s27 + $0x68] sm:$0xff] %v1240_v13 }
  0x1e   : > { %v1244_v15 = vld [vmem:[%s11231_s26 + $0x1e0] sm:$0xff]  ;;  %1243 = vst [vmem:[%s11236_s27 + $0x70] sm:$0xff] %v1242_v14 }
  0x1f   : > { %v1246_v16 = vld [vmem:[%s11231_s26 + $0x200] sm:$0xff]  ;;  %1245 = vst [vmem:[%s11236_s27 + $0x78] sm:$0xff] %v1244_v15 }
  0x20   : > { %v1248_v17 = vld [vmem:[%s11231_s26 + $0x220] sm:$0xff]  ;;  %1247 = vst [vmem:[%s11236_s27 + $0x80] sm:$0xff] %v1246_v16 }
  0x21   : > { %v1250_v18 = vld [vmem:[%s11231_s26 + $0x240] sm:$0xff]  ;;  %1249 = vst [vmem:[%s11236_s27 + $0x88] sm:$0xff] %v1248_v17 }
  0x22   : > { %v1252_v19 = vld [vmem:[%s11231_s26 + $0x260] sm:$0xff]  ;;  %1251 = vst [vmem:[%s11236_s27 + $0x90] sm:$0xff] %v1250_v18 }
  0x23   : > { %v1254_v20 = vld [vmem:[%s11231_s26 + $0x280] sm:$0xff]  ;;  %1253 = vst [vmem:[%s11236_s27 + $0x98] sm:$0xff] %v1252_v19 }
  0x24   : > { %v1256_v21 = vld [vmem:[%s11231_s26 + $0x2a0] sm:$0xff]  ;;  %1255 = vst [vmem:[%s11236_s27 + $0xa0] sm:$0xff] %v1254_v20 }
  0x25   : > { %v1258_v22 = vld [vmem:[%s11231_s26 + $0x2c0] sm:$0xff]  ;;  %1257 = vst [vmem:[%s11236_s27 + $0xa8] sm:$0xff] %v1256_v21 }
  0x26   : > { %v1260_v23 = vld [vmem:[%s11231_s26 + $0x2e0] sm:$0xff]  ;;  %1259 = vst [vmem:[%s11236_s27 + $0xb0] sm:$0xff] %v1258_v22 }
  0x27   : > { %v1262_v24 = vld [vmem:[%s11231_s26 + $0x300] sm:$0xff]  ;;  %1261 = vst [vmem:[%s11236_s27 + $0xb8] sm:$0xff] %v1260_v23 }
  0x28   : > { %v1264_v25 = vld [vmem:[%s11231_s26 + $0x320] sm:$0xff]  ;;  %1263 = vst [vmem:[%s11236_s27 + $0xc0] sm:$0xff] %v1262_v24 }
  0x29   : > { %v1266_v26 = vld [vmem:[%s11231_s26 + $0x340] sm:$0xff]  ;;  %1265 = vst [vmem:[%s11236_s27 + $0xc8] sm:$0xff] %v1264_v25 }
  0x2a   : > { %v1268_v27 = vld [vmem:[%s11231_s26 + $0x360] sm:$0xff]  ;;  %1267 = vst [vmem:[%s11236_s27 + $0xd0] sm:$0xff] %v1266_v26 }
  0x2b   : > { %v1270_v28 = vld [vmem:[%s11231_s26 + $0x380] sm:$0xff]  ;;  %1269 = vst [vmem:[%s11236_s27 + $0xd8] sm:$0xff] %v1268_v27 }
  0x2c   : > { %v1272_v29 = vld [vmem:[%s11231_s26 + $0x3a0] sm:$0xff]  ;;  %1271 = vst [vmem:[%s11236_s27 + $0xe0] sm:$0xff] %v1270_v28 }
  0x2d   : > { %v1274_v30 = vld [vmem:[%s11231_s26 + $0x3c0] sm:$0xff]  ;;  %1273 = vst [vmem:[%s11236_s27 + $0xe8] sm:$0xff] %v1272_v29 }
  0x2e   : > { %v1276_v31 = vld [vmem:[%s11231_s26 + $0x3e0] sm:$0xff]  ;;  %1275 = vst [vmem:[%s11236_s27 + $0xf0] sm:$0xff] %v1274_v30 }
  0x2f   : > { %v1278_v32 = vld [vmem:[%s11231_s26 + $0x400] sm:$0xff]  ;;  %1277 = vst [vmem:[%s11236_s27 + $0xf8] sm:$0xff] %v1276_v31 }
  0x30   : > { %v1280_v33 = vld [vmem:[%s11231_s26 + $0x420] sm:$0xff]  ;;  %1279 = vst [vmem:[%s11236_s27 + $0x100] sm:$0xff] %v1278_v32 }
  0x31   : > { %v1282_v34 = vld [vmem:[%s11231_s26 + $0x440] sm:$0xff]  ;;  %1281 = vst [vmem:[%s11236_s27 + $0x108] sm:$0xff] %v1280_v33 }
  0x32   : > { %v1284_v35 = vld [vmem:[%s11231_s26 + $0x460] sm:$0xff]  ;;  %1283 = vst [vmem:[%s11236_s27 + $0x110] sm:$0xff] %v1282_v34 }
  0x33   : > { %v1286_v36 = vld [vmem:[%s11231_s26 + $0x480] sm:$0xff]  ;;  %1285 = vst [vmem:[%s11236_s27 + $0x118] sm:$0xff] %v1284_v35 }
  0x34   : > { %v1288_v37 = vld [vmem:[%s11231_s26 + $0x4a0] sm:$0xff]  ;;  %1287 = vst [vmem:[%s11236_s27 + $0x120] sm:$0xff] %v1286_v36 }
  0x35   : > { %v1290_v38 = vld [vmem:[%s11231_s26 + $0x4c0] sm:$0xff]  ;;  %1289 = vst [vmem:[%s11236_s27 + $0x128] sm:$0xff] %v1288_v37 }
  0x36   : > { %v1292_v39 = vld [vmem:[%s11231_s26 + $0x4e0] sm:$0xff]  ;;  %1291 = vst [vmem:[%s11236_s27 + $0x130] sm:$0xff] %v1290_v38 }
  0x37   : > { %v1294_v40 = vld [vmem:[%s11231_s26 + $0x500] sm:$0xff]  ;;  %1293 = vst [vmem:[%s11236_s27 + $0x138] sm:$0xff] %v1292_v39 }
  0x38   : > { %v1296_v41 = vld [vmem:[%s11231_s26 + $0x520] sm:$0xff]  ;;  %1295 = vst [vmem:[%s11236_s27 + $0x140] sm:$0xff] %v1294_v40 }
  0x39   : > { %v1298_v42 = vld [vmem:[%s11231_s26 + $0x540] sm:$0xff]  ;;  %1297 = vst [vmem:[%s11236_s27 + $0x148] sm:$0xff] %v1296_v41 }
  0x3a   : > { %v1300_v43 = vld [vmem:[%s11231_s26 + $0x560] sm:$0xff]  ;;  %1299 = vst [vmem:[%s11236_s27 + $0x150] sm:$0xff] %v1298_v42 }
  0x3b   : > { %v1302_v44 = vld [vmem:[%s11231_s26 + $0x580] sm:$0xff]  ;;  %1301 = vst [vmem:[%s11236_s27 + $0x158] sm:$0xff] %v1300_v43 }
  0x3c   : > { %v1304_v45 = vld [vmem:[%s11231_s26 + $0x5a0] sm:$0xff]  ;;  %1303 = vst [vmem:[%s11236_s27 + $0x160] sm:$0xff] %v1302_v44 }
  0x3d   : > { %v1306_v46 = vld [vmem:[%s11231_s26 + $0x5c0] sm:$0xff]  ;;  %1305 = vst [vmem:[%s11236_s27 + $0x168] sm:$0xff] %v1304_v45 }
  0x3e   : > { %v1308_v47 = vld [vmem:[%s11231_s26 + $0x5e0] sm:$0xff]  ;;  %1307 = vst [vmem:[%s11236_s27 + $0x170] sm:$0xff] %v1306_v46 }
  0x3f   : > { %v1310_v48 = vld [vmem:[%s11231_s26 + $0x600] sm:$0xff]  ;;  %1309 = vst [vmem:[%s11236_s27 + $0x178] sm:$0xff] %v1308_v47 }
  0x40   : > { %v1312_v49 = vld [vmem:[%s11231_s26 + $0x620] sm:$0xff]  ;;  %1311 = vst [vmem:[%s11236_s27 + $0x180] sm:$0xff] %v1310_v48 }
  0x41   : > { %v1314_v50 = vld [vmem:[%s11231_s26 + $0x640] sm:$0xff]  ;;  %1313 = vst [vmem:[%s11236_s27 + $0x188] sm:$0xff] %v1312_v49 }
  0x42   : > { %v1316_v51 = vld [vmem:[%s11231_s26 + $0x660] sm:$0xff]  ;;  %1315 = vst [vmem:[%s11236_s27 + $0x190] sm:$0xff] %v1314_v50 }
  0x43   : > { %v1318_v52 = vld [vmem:[%s11231_s26 + $0x680] sm:$0xff]  ;;  %1317 = vst [vmem:[%s11236_s27 + $0x198] sm:$0xff] %v1316_v51 }
  0x44   : > { %v1320_v53 = vld [vmem:[%s11231_s26 + $0x6a0] sm:$0xff]  ;;  %1319 = vst [vmem:[%s11236_s27 + $0x1a0] sm:$0xff] %v1318_v52 }
  0x45   : > { %v1322_v54 = vld [vmem:[%s11231_s26 + $0x6c0] sm:$0xff]  ;;  %1321 = vst [vmem:[%s11236_s27 + $0x1a8] sm:$0xff] %v1320_v53 }
  0x46   : > { %v1324_v55 = vld [vmem:[%s11231_s26 + $0x6e0] sm:$0xff]  ;;  %1323 = vst [vmem:[%s11236_s27 + $0x1b0] sm:$0xff] %v1322_v54 }
  0x47   : > { %v1326_v56 = vld [vmem:[%s11231_s26 + $0x700] sm:$0xff]  ;;  %1325 = vst [vmem:[%s11236_s27 + $0x1b8] sm:$0xff] %v1324_v55 }
  0x48   : > { %v1328_v57 = vld [vmem:[%s11231_s26 + $0x720] sm:$0xff]  ;;  %1327 = vst [vmem:[%s11236_s27 + $0x1c0] sm:$0xff] %v1326_v56 }
  0x49   : > { %v1330_v58 = vld [vmem:[%s11231_s26 + $0x740] sm:$0xff]  ;;  %1329 = vst [vmem:[%s11236_s27 + $0x1c8] sm:$0xff] %v1328_v57 }
  0x4a   : > { %v1332_v59 = vld [vmem:[%s11231_s26 + $0x760] sm:$0xff]  ;;  %1331 = vst [vmem:[%s11236_s27 + $0x1d0] sm:$0xff] %v1330_v58 }
  0x4b   : > { %v1334_v60 = vld [vmem:[%s11231_s26 + $0x780] sm:$0xff]  ;;  %1333 = vst [vmem:[%s11236_s27 + $0x1d8] sm:$0xff] %v1332_v59 }
  0x4c   : > { %v1336_v61 = vld [vmem:[%s11231_s26 + $0x7a0] sm:$0xff]  ;;  %1335 = vst [vmem:[%s11236_s27 + $0x1e0] sm:$0xff] %v1334_v60 }
  0x4d   : > { %v1338_v62 = vld [vmem:[%s11231_s26 + $0x7c0] sm:$0xff]  ;;  %1337 = vst [vmem:[%s11236_s27 + $0x1e8] sm:$0xff] %v1336_v61 }
  0x4e   : > { %v1340_v63 = vld [vmem:[%s11231_s26 + $0x7e0] sm:$0xff]  ;;  %1339 = vst [vmem:[%s11236_s27 + $0x1f0] sm:$0xff] %v1338_v62 }
  0x4f   : > { %v1342_v0 = vld [vmem:[%s11231_s26 + $0x800] sm:$0xff]  ;;  %1341 = vst [vmem:[%s11236_s27 + $0x1f8] sm:$0xff] %v1340_v63 }
  0x50   : > { %v1344_v1 = vld [vmem:[%s11231_s26 + $0x820] sm:$0xff]  ;;  %1343 = vst [vmem:[%s11236_s27 + $0x200] sm:$0xff] %v1342_v0 }
  0x51   : > { %v1346_v2 = vld [vmem:[%s11231_s26 + $0x840] sm:$0xff]  ;;  %1345 = vst [vmem:[%s11236_s27 + $0x208] sm:$0xff] %v1344_v1 }
  0x52   : > { %v1348_v3 = vld [vmem:[%s11231_s26 + $0x860] sm:$0xff]  ;;  %1347 = vst [vmem:[%s11236_s27 + $0x210] sm:$0xff] %v1346_v2 }
  0x53   : > { %v1350_v4 = vld [vmem:[%s11231_s26 + $0x880] sm:$0xff]  ;;  %1349 = vst [vmem:[%s11236_s27 + $0x218] sm:$0xff] %v1348_v3 }
  0x54   : > { %v1352_v5 = vld [vmem:[%s11231_s26 + $0x8a0] sm:$0xff]  ;;  %1351 = vst [vmem:[%s11236_s27 + $0x220] sm:$0xff] %v1350_v4 }
  0x55   : > { %v1354_v6 = vld [vmem:[%s11231_s26 + $0x8c0] sm:$0xff]  ;;  %1353 = vst [vmem:[%s11236_s27 + $0x228] sm:$0xff] %v1352_v5 }
  0x56   : > { %v1356_v7 = vld [vmem:[%s11231_s26 + $0x8e0] sm:$0xff]  ;;  %1355 = vst [vmem:[%s11236_s27 + $0x230] sm:$0xff] %v1354_v6 }
  0x57   : > { %v1358_v8 = vld [vmem:[%s11231_s26 + $0x900] sm:$0xff]  ;;  %1357 = vst [vmem:[%s11236_s27 + $0x238] sm:$0xff] %v1356_v7 }
  0x58   : > { %v1360_v9 = vld [vmem:[%s11231_s26 + $0x920] sm:$0xff]  ;;  %1359 = vst [vmem:[%s11236_s27 + $0x240] sm:$0xff] %v1358_v8 }
  0x59   : > { %v1362_v10 = vld [vmem:[%s11231_s26 + $0x940] sm:$0xff]  ;;  %1361 = vst [vmem:[%s11236_s27 + $0x248] sm:$0xff] %v1360_v9 }
  0x5a   : > { %v1364_v11 = vld [vmem:[%s11231_s26 + $0x960] sm:$0xff]  ;;  %1363 = vst [vmem:[%s11236_s27 + $0x250] sm:$0xff] %v1362_v10 }
  0x5b   : > { %v1366_v12 = vld [vmem:[%s11231_s26 + $0x980] sm:$0xff]  ;;  %1365 = vst [vmem:[%s11236_s27 + $0x258] sm:$0xff] %v1364_v11 }
  0x5c   : > { %v1368_v13 = vld [vmem:[%s11231_s26 + $0x9a0] sm:$0xff]  ;;  %1367 = vst [vmem:[%s11236_s27 + $0x260] sm:$0xff] %v1366_v12 }
  0x5d   : > { %v1370_v14 = vld [vmem:[%s11231_s26 + $0x9c0] sm:$0xff]  ;;  %1369 = vst [vmem:[%s11236_s27 + $0x268] sm:$0xff] %v1368_v13 }
  0x5e   : > { %v1372_v15 = vld [vmem:[%s11231_s26 + $0x9e0] sm:$0xff]  ;;  %1371 = vst [vmem:[%s11236_s27 + $0x270] sm:$0xff] %v1370_v14 }
  0x5f   : > { %v1374_v16 = vld [vmem:[%s11231_s26 + $0xa00] sm:$0xff]  ;;  %1373 = vst [vmem:[%s11236_s27 + $0x278] sm:$0xff] %v1372_v15 }
  0x60   : > { %v1376_v17 = vld [vmem:[%s11231_s26 + $0xa20] sm:$0xff]  ;;  %1375 = vst [vmem:[%s11236_s27 + $0x280] sm:$0xff] %v1374_v16 }
  0x61   : > { %v1378_v18 = vld [vmem:[%s11231_s26 + $0xa40] sm:$0xff]  ;;  %1377 = vst [vmem:[%s11236_s27 + $0x288] sm:$0xff] %v1376_v17 }
  0x62   : > { %v1380_v19 = vld [vmem:[%s11231_s26 + $0xa60] sm:$0xff]  ;;  %1379 = vst [vmem:[%s11236_s27 + $0x290] sm:$0xff] %v1378_v18 }
  0x63   : > { %v1382_v20 = vld [vmem:[%s11231_s26 + $0xa80] sm:$0xff]  ;;  %1381 = vst [vmem:[%s11236_s27 + $0x298] sm:$0xff] %v1380_v19 }
  0x64   : > { %v1384_v21 = vld [vmem:[%s11231_s26 + $0xaa0] sm:$0xff]  ;;  %1383 = vst [vmem:[%s11236_s27 + $0x2a0] sm:$0xff] %v1382_v20 }
  0x65   : > { %v1386_v22 = vld [vmem:[%s11231_s26 + $0xac0] sm:$0xff]  ;;  %1385 = vst [vmem:[%s11236_s27 + $0x2a8] sm:$0xff] %v1384_v21 }
  0x66   : > { %v1388_v23 = vld [vmem:[%s11231_s26 + $0xae0] sm:$0xff]  ;;  %1387 = vst [vmem:[%s11236_s27 + $0x2b0] sm:$0xff] %v1386_v22 }
  0x67   : > { %v1390_v24 = vld [vmem:[%s11231_s26 + $0xb00] sm:$0xff]  ;;  %1389 = vst [vmem:[%s11236_s27 + $0x2b8] sm:$0xff] %v1388_v23 }
  0x68   : > { %v1392_v25 = vld [vmem:[%s11231_s26 + $0xb20] sm:$0xff]  ;;  %1391 = vst [vmem:[%s11236_s27 + $0x2c0] sm:$0xff] %v1390_v24 }
  0x69   : > { %v1394_v26 = vld [vmem:[%s11231_s26 + $0xb40] sm:$0xff]  ;;  %1393 = vst [vmem:[%s11236_s27 + $0x2c8] sm:$0xff] %v1392_v25 }
  0x6a   : > { %v1396_v27 = vld [vmem:[%s11231_s26 + $0xb60] sm:$0xff]  ;;  %1395 = vst [vmem:[%s11236_s27 + $0x2d0] sm:$0xff] %v1394_v26 }
  0x6b   : > { %v1398_v28 = vld [vmem:[%s11231_s26 + $0xb80] sm:$0xff]  ;;  %1397 = vst [vmem:[%s11236_s27 + $0x2d8] sm:$0xff] %v1396_v27 }
  0x6c   : > { %v1400_v29 = vld [vmem:[%s11231_s26 + $0xba0] sm:$0xff]  ;;  %1399 = vst [vmem:[%s11236_s27 + $0x2e0] sm:$0xff] %v1398_v28 }
  0x6d   : > { %v1402_v30 = vld [vmem:[%s11231_s26 + $0xbc0] sm:$0xff]  ;;  %1401 = vst [vmem:[%s11236_s27 + $0x2e8] sm:$0xff] %v1400_v29 }
  0x6e   : > { %v1404_v31 = vld [vmem:[%s11231_s26 + $0xbe0] sm:$0xff]  ;;  %1403 = vst [vmem:[%s11236_s27 + $0x2f0] sm:$0xff] %v1402_v30 }
  0x6f   : > { %v1406_v32 = vld [vmem:[%s11231_s26 + $0xc00] sm:$0xff]  ;;  %1405 = vst [vmem:[%s11236_s27 + $0x2f8] sm:$0xff] %v1404_v31 }
  0x70   : > { %v1408_v33 = vld [vmem:[%s11231_s26 + $0xc20] sm:$0xff]  ;;  %1407 = vst [vmem:[%s11236_s27 + $0x300] sm:$0xff] %v1406_v32 }
  0x71   : > { %v1410_v34 = vld [vmem:[%s11231_s26 + $0xc40] sm:$0xff]  ;;  %1409 = vst [vmem:[%s11236_s27 + $0x308] sm:$0xff] %v1408_v33 }
  0x72   : > { %v1412_v35 = vld [vmem:[%s11231_s26 + $0xc60] sm:$0xff]  ;;  %1411 = vst [vmem:[%s11236_s27 + $0x310] sm:$0xff] %v1410_v34 }
  0x73   : > { %v1414_v36 = vld [vmem:[%s11231_s26 + $0xc80] sm:$0xff]  ;;  %1413 = vst [vmem:[%s11236_s27 + $0x318] sm:$0xff] %v1412_v35 }
  0x74   : > { %v1416_v37 = vld [vmem:[%s11231_s26 + $0xca0] sm:$0xff]  ;;  %1415 = vst [vmem:[%s11236_s27 + $0x320] sm:$0xff] %v1414_v36 }
  0x75   : > { %v1418_v38 = vld [vmem:[%s11231_s26 + $0xcc0] sm:$0xff]  ;;  %1417 = vst [vmem:[%s11236_s27 + $0x328] sm:$0xff] %v1416_v37 }
  0x76   : > { %v1420_v39 = vld [vmem:[%s11231_s26 + $0xce0] sm:$0xff]  ;;  %1419 = vst [vmem:[%s11236_s27 + $0x330] sm:$0xff] %v1418_v38 }
  0x77   : > { %v1422_v40 = vld [vmem:[%s11231_s26 + $0xd00] sm:$0xff]  ;;  %1421 = vst [vmem:[%s11236_s27 + $0x338] sm:$0xff] %v1420_v39 }
  0x78   : > { %v1424_v41 = vld [vmem:[%s11231_s26 + $0xd20] sm:$0xff]  ;;  %1423 = vst [vmem:[%s11236_s27 + $0x340] sm:$0xff] %v1422_v40 }
  0x79   : > { %v1426_v42 = vld [vmem:[%s11231_s26 + $0xd40] sm:$0xff]  ;;  %1425 = vst [vmem:[%s11236_s27 + $0x348] sm:$0xff] %v1424_v41 }
  0x7a   : > { %v1428_v43 = vld [vmem:[%s11231_s26 + $0xd60] sm:$0xff]  ;;  %1427 = vst [vmem:[%s11236_s27 + $0x350] sm:$0xff] %v1426_v42 }
  0x7b   : > { %v1430_v44 = vld [vmem:[%s11231_s26 + $0xd80] sm:$0xff]  ;;  %1429 = vst [vmem:[%s11236_s27 + $0x358] sm:$0xff] %v1428_v43 }
  0x7c   : > { %v1432_v45 = vld [vmem:[%s11231_s26 + $0xda0] sm:$0xff]  ;;  %1431 = vst [vmem:[%s11236_s27 + $0x360] sm:$0xff] %v1430_v44 }
  0x7d   : > { %v1434_v46 = vld [vmem:[%s11231_s26 + $0xdc0] sm:$0xff]  ;;  %1433 = vst [vmem:[%s11236_s27 + $0x368] sm:$0xff] %v1432_v45 }
  0x7e   : > { %v1436_v47 = vld [vmem:[%s11231_s26 + $0xde0] sm:$0xff]  ;;  %1435 = vst [vmem:[%s11236_s27 + $0x370] sm:$0xff] %v1434_v46 }
  0x7f   : > { %v1438_v48 = vld [vmem:[%s11231_s26 + $0xe00] sm:$0xff]  ;;  %1437 = vst [vmem:[%s11236_s27 + $0x378] sm:$0xff] %v1436_v47 }
  0x80   : > { %v1440_v49 = vld [vmem:[%s11231_s26 + $0xe20] sm:$0xff]  ;;  %1439 = vst [vmem:[%s11236_s27 + $0x380] sm:$0xff] %v1438_v48 }
  0x81   : > { %v1442_v50 = vld [vmem:[%s11231_s26 + $0xe40] sm:$0xff]  ;;  %1441 = vst [vmem:[%s11236_s27 + $0x388] sm:$0xff] %v1440_v49 }
  0x82   : > { %v1444_v51 = vld [vmem:[%s11231_s26 + $0xe60] sm:$0xff]  ;;  %1443 = vst [vmem:[%s11236_s27 + $0x390] sm:$0xff] %v1442_v50 }
  0x83   : > { %v1446_v52 = vld [vmem:[%s11231_s26 + $0xe80] sm:$0xff]  ;;  %1445 = vst [vmem:[%s11236_s27 + $0x398] sm:$0xff] %v1444_v51 }
  0x84   : > { %v1448_v53 = vld [vmem:[%s11231_s26 + $0xea0] sm:$0xff]  ;;  %1447 = vst [vmem:[%s11236_s27 + $0x3a0] sm:$0xff] %v1446_v52 }
  0x85   : > { %v1450_v54 = vld [vmem:[%s11231_s26 + $0xec0] sm:$0xff]  ;;  %1449 = vst [vmem:[%s11236_s27 + $0x3a8] sm:$0xff] %v1448_v53 }
  0x86   : > { %v1452_v55 = vld [vmem:[%s11231_s26 + $0xee0] sm:$0xff]  ;;  %1451 = vst [vmem:[%s11236_s27 + $0x3b0] sm:$0xff] %v1450_v54 }
  0x87   : > { %v1454_v56 = vld [vmem:[%s11231_s26 + $0xf00] sm:$0xff]  ;;  %1453 = vst [vmem:[%s11236_s27 + $0x3b8] sm:$0xff] %v1452_v55 }
  0x88   : > { %v1456_v57 = vld [vmem:[%s11231_s26 + $0xf20] sm:$0xff]  ;;  %1455 = vst [vmem:[%s11236_s27 + $0x3c0] sm:$0xff] %v1454_v56 }
  0x89   : > { %v1458_v58 = vld [vmem:[%s11231_s26 + $0xf40] sm:$0xff]  ;;  %1457 = vst [vmem:[%s11236_s27 + $0x3c8] sm:$0xff] %v1456_v57 }
  0x8a   : > { %v1460_v59 = vld [vmem:[%s11231_s26 + $0xf60] sm:$0xff]  ;;  %1459 = vst [vmem:[%s11236_s27 + $0x3d0] sm:$0xff] %v1458_v58 }
  0x8b   : > { %v1462_v60 = vld [vmem:[%s11231_s26 + $0xf80] sm:$0xff]  ;;  %1461 = vst [vmem:[%s11236_s27 + $0x3d8] sm:$0xff] %v1460_v59 }
  0x8c   : > { %v1464_v61 = vld [vmem:[%s11231_s26 + $0xfa0] sm:$0xff]  ;;  %1463 = vst [vmem:[%s11236_s27 + $0x3e0] sm:$0xff] %v1462_v60 }
  0x8d   : > { %v1466_v62 = vld [vmem:[%s11231_s26 + $0xfc0] sm:$0xff]  ;;  %1465 = vst [vmem:[%s11236_s27 + $0x3e8] sm:$0xff] %v1464_v61 }
  0x8e   : > { %v1468_v63 = vld [vmem:[%s11231_s26 + $0xfe0] sm:$0xff]  ;;  %1467 = vst [vmem:[%s11236_s27 + $0x3f0] sm:$0xff] %v1466_v62 }
  0x8f   : > { %v1470_v0 = vld [vmem:[%s11231_s26 + $0x1000] sm:$0xff]  ;;  %1469 = vst [vmem:[%s11236_s27 + $0x3f8] sm:$0xff] %v1468_v63 }
  0x90   : > { %v1472_v1 = vld [vmem:[%s11231_s26 + $0x1020] sm:$0xff]  ;;  %1471 = vst [vmem:[%s11236_s27 + $0x400] sm:$0xff] %v1470_v0 }
  0x91   : > { %v1474_v2 = vld [vmem:[%s11231_s26 + $0x1040] sm:$0xff]  ;;  %1473 = vst [vmem:[%s11236_s27 + $0x408] sm:$0xff] %v1472_v1 }
  0x92   : > { %v1476_v3 = vld [vmem:[%s11231_s26 + $0x1060] sm:$0xff]  ;;  %1475 = vst [vmem:[%s11236_s27 + $0x410] sm:$0xff] %v1474_v2 }
  0x93   : > { %v1478_v4 = vld [vmem:[%s11231_s26 + $0x1080] sm:$0xff]  ;;  %1477 = vst [vmem:[%s11236_s27 + $0x418] sm:$0xff] %v1476_v3 }
  0x94   : > { %v1480_v5 = vld [vmem:[%s11231_s26 + $0x10a0] sm:$0xff]  ;;  %1479 = vst [vmem:[%s11236_s27 + $0x420] sm:$0xff] %v1478_v4 }
  0x95   : > { %v1482_v6 = vld [vmem:[%s11231_s26 + $0x10c0] sm:$0xff]  ;;  %1481 = vst [vmem:[%s11236_s27 + $0x428] sm:$0xff] %v1480_v5 }
  0x96   : > { %v1484_v7 = vld [vmem:[%s11231_s26 + $0x10e0] sm:$0xff]  ;;  %1483 = vst [vmem:[%s11236_s27 + $0x430] sm:$0xff] %v1482_v6 }
  0x97   : > { %v1486_v8 = vld [vmem:[%s11231_s26 + $0x1100] sm:$0xff]  ;;  %1485 = vst [vmem:[%s11236_s27 + $0x438] sm:$0xff] %v1484_v7 }
  0x98   : > { %v1488_v9 = vld [vmem:[%s11231_s26 + $0x1120] sm:$0xff]  ;;  %1487 = vst [vmem:[%s11236_s27 + $0x440] sm:$0xff] %v1486_v8 }
  0x99   : > { %v1490_v10 = vld [vmem:[%s11231_s26 + $0x1140] sm:$0xff]  ;;  %1489 = vst [vmem:[%s11236_s27 + $0x448] sm:$0xff] %v1488_v9 }
  0x9a   : > { %v1492_v11 = vld [vmem:[%s11231_s26 + $0x1160] sm:$0xff]  ;;  %1491 = vst [vmem:[%s11236_s27 + $0x450] sm:$0xff] %v1490_v10 }
  0x9b   : > { %v1494_v12 = vld [vmem:[%s11231_s26 + $0x1180] sm:$0xff]  ;;  %1493 = vst [vmem:[%s11236_s27 + $0x458] sm:$0xff] %v1492_v11 }
  0x9c   : > { %v1496_v13 = vld [vmem:[%s11231_s26 + $0x11a0] sm:$0xff]  ;;  %1495 = vst [vmem:[%s11236_s27 + $0x460] sm:$0xff] %v1494_v12 }
  0x9d   : > { %v1498_v14 = vld [vmem:[%s11231_s26 + $0x11c0] sm:$0xff]  ;;  %1497 = vst [vmem:[%s11236_s27 + $0x468] sm:$0xff] %v1496_v13 }
  0x9e   : > { %v1500_v15 = vld [vmem:[%s11231_s26 + $0x11e0] sm:$0xff]  ;;  %1499 = vst [vmem:[%s11236_s27 + $0x470] sm:$0xff] %v1498_v14 }
  0x9f   : > { %v1502_v16 = vld [vmem:[%s11231_s26 + $0x1200] sm:$0xff]  ;;  %1501 = vst [vmem:[%s11236_s27 + $0x478] sm:$0xff] %v1500_v15 }
  0xa0   : > { %v1504_v17 = vld [vmem:[%s11231_s26 + $0x1220] sm:$0xff]  ;;  %1503 = vst [vmem:[%s11236_s27 + $0x480] sm:$0xff] %v1502_v16 }
  0xa1   : > { %v1506_v18 = vld [vmem:[%s11231_s26 + $0x1240] sm:$0xff]  ;;  %1505 = vst [vmem:[%s11236_s27 + $0x488] sm:$0xff] %v1504_v17 }
  0xa2   : > { %v1508_v19 = vld [vmem:[%s11231_s26 + $0x1260] sm:$0xff]  ;;  %1507 = vst [vmem:[%s11236_s27 + $0x490] sm:$0xff] %v1506_v18 }
  0xa3   : > { %v1510_v20 = vld [vmem:[%s11231_s26 + $0x1280] sm:$0xff]  ;;  %1509 = vst [vmem:[%s11236_s27 + $0x498] sm:$0xff] %v1508_v19 }
  0xa4   : > { %v1512_v21 = vld [vmem:[%s11231_s26 + $0x12a0] sm:$0xff]  ;;  %1511 = vst [vmem:[%s11236_s27 + $0x4a0] sm:$0xff] %v1510_v20 }
  0xa5   : > { %v1514_v22 = vld [vmem:[%s11231_s26 + $0x12c0] sm:$0xff]  ;;  %1513 = vst [vmem:[%s11236_s27 + $0x4a8] sm:$0xff] %v1512_v21 }
  0xa6   : > { %v1516_v23 = vld [vmem:[%s11231_s26 + $0x12e0] sm:$0xff]  ;;  %1515 = vst [vmem:[%s11236_s27 + $0x4b0] sm:$0xff] %v1514_v22 }
  0xa7   : > { %v1518_v24 = vld [vmem:[%s11231_s26 + $0x1300] sm:$0xff]  ;;  %1517 = vst [vmem:[%s11236_s27 + $0x4b8] sm:$0xff] %v1516_v23 }
  0xa8   : > { %v1520_v25 = vld [vmem:[%s11231_s26 + $0x1320] sm:$0xff]  ;;  %1519 = vst [vmem:[%s11236_s27 + $0x4c0] sm:$0xff] %v1518_v24 }
  0xa9   : > { %v1522_v26 = vld [vmem:[%s11231_s26 + $0x1340] sm:$0xff]  ;;  %1521 = vst [vmem:[%s11236_s27 + $0x4c8] sm:$0xff] %v1520_v25 }
  0xaa   : > { %v1524_v27 = vld [vmem:[%s11231_s26 + $0x1360] sm:$0xff]  ;;  %1523 = vst [vmem:[%s11236_s27 + $0x4d0] sm:$0xff] %v1522_v26 }
  0xab   : > { %v1526_v28 = vld [vmem:[%s11231_s26 + $0x1380] sm:$0xff]  ;;  %1525 = vst [vmem:[%s11236_s27 + $0x4d8] sm:$0xff] %v1524_v27 }
  0xac   : > { %v1528_v29 = vld [vmem:[%s11231_s26 + $0x13a0] sm:$0xff]  ;;  %1527 = vst [vmem:[%s11236_s27 + $0x4e0] sm:$0xff] %v1526_v28 }
  0xad   : > { %v1530_v30 = vld [vmem:[%s11231_s26 + $0x13c0] sm:$0xff]  ;;  %1529 = vst [vmem:[%s11236_s27 + $0x4e8] sm:$0xff] %v1528_v29 }
  0xae   : > { %v1532_v31 = vld [vmem:[%s11231_s26 + $0x13e0] sm:$0xff]  ;;  %1531 = vst [vmem:[%s11236_s27 + $0x4f0] sm:$0xff] %v1530_v30 }
  0xaf   : > { %v1534_v32 = vld [vmem:[%s11231_s26 + $0x1400] sm:$0xff]  ;;  %1533 = vst [vmem:[%s11236_s27 + $0x4f8] sm:$0xff] %v1532_v31 }
  0xb0   : > { %v1536_v33 = vld [vmem:[%s11231_s26 + $0x1420] sm:$0xff]  ;;  %1535 = vst [vmem:[%s11236_s27 + $0x500] sm:$0xff] %v1534_v32 }
  0xb1   : > { %v1538_v34 = vld [vmem:[%s11231_s26 + $0x1440] sm:$0xff]  ;;  %1537 = vst [vmem:[%s11236_s27 + $0x508] sm:$0xff] %v1536_v33 }
  0xb2   : > { %v1540_v35 = vld [vmem:[%s11231_s26 + $0x1460] sm:$0xff]  ;;  %1539 = vst [vmem:[%s11236_s27 + $0x510] sm:$0xff] %v1538_v34 }
  0xb3   : > { %v1542_v36 = vld [vmem:[%s11231_s26 + $0x1480] sm:$0xff]  ;;  %1541 = vst [vmem:[%s11236_s27 + $0x518] sm:$0xff] %v1540_v35 }
  0xb4   : > { %v1544_v37 = vld [vmem:[%s11231_s26 + $0x14a0] sm:$0xff]  ;;  %1543 = vst [vmem:[%s11236_s27 + $0x520] sm:$0xff] %v1542_v36 }
  0xb5   : > { %v1546_v38 = vld [vmem:[%s11231_s26 + $0x14c0] sm:$0xff]  ;;  %1545 = vst [vmem:[%s11236_s27 + $0x528] sm:$0xff] %v1544_v37 }
  0xb6   : > { %v1548_v39 = vld [vmem:[%s11231_s26 + $0x14e0] sm:$0xff]  ;;  %1547 = vst [vmem:[%s11236_s27 + $0x530] sm:$0xff] %v1546_v38 }
  0xb7   : > { %v1550_v40 = vld [vmem:[%s11231_s26 + $0x1500] sm:$0xff]  ;;  %1549 = vst [vmem:[%s11236_s27 + $0x538] sm:$0xff] %v1548_v39 }
  0xb8   : > { %v1552_v41 = vld [vmem:[%s11231_s26 + $0x1520] sm:$0xff]  ;;  %1551 = vst [vmem:[%s11236_s27 + $0x540] sm:$0xff] %v1550_v40 }
  0xb9   : > { %v1554_v42 = vld [vmem:[%s11231_s26 + $0x1540] sm:$0xff]  ;;  %1553 = vst [vmem:[%s11236_s27 + $0x548] sm:$0xff] %v1552_v41 }
  0xba   : > { %v1556_v43 = vld [vmem:[%s11231_s26 + $0x1560] sm:$0xff]  ;;  %1555 = vst [vmem:[%s11236_s27 + $0x550] sm:$0xff] %v1554_v42 }
  0xbb   : > { %v1558_v44 = vld [vmem:[%s11231_s26 + $0x1580] sm:$0xff]  ;;  %1557 = vst [vmem:[%s11236_s27 + $0x558] sm:$0xff] %v1556_v43 }
  0xbc   : > { %v1560_v45 = vld [vmem:[%s11231_s26 + $0x15a0] sm:$0xff]  ;;  %1559 = vst [vmem:[%s11236_s27 + $0x560] sm:$0xff] %v1558_v44 }
  0xbd   : > { %v1562_v46 = vld [vmem:[%s11231_s26 + $0x15c0] sm:$0xff]  ;;  %1561 = vst [vmem:[%s11236_s27 + $0x568] sm:$0xff] %v1560_v45 }
  0xbe   : > { %v1564_v47 = vld [vmem:[%s11231_s26 + $0x15e0] sm:$0xff]  ;;  %1563 = vst [vmem:[%s11236_s27 + $0x570] sm:$0xff] %v1562_v46 }
  0xbf   : > { %v1566_v48 = vld [vmem:[%s11231_s26 + $0x1600] sm:$0xff]  ;;  %1565 = vst [vmem:[%s11236_s27 + $0x578] sm:$0xff] %v1564_v47 }
  0xc0   : > { %v1568_v49 = vld [vmem:[%s11231_s26 + $0x1620] sm:$0xff]  ;;  %1567 = vst [vmem:[%s11236_s27 + $0x580] sm:$0xff] %v1566_v48 }
  0xc1   : > { %v1570_v50 = vld [vmem:[%s11231_s26 + $0x1640] sm:$0xff]  ;;  %1569 = vst [vmem:[%s11236_s27 + $0x588] sm:$0xff] %v1568_v49 }
  0xc2   : > { %v1572_v51 = vld [vmem:[%s11231_s26 + $0x1660] sm:$0xff]  ;;  %1571 = vst [vmem:[%s11236_s27 + $0x590] sm:$0xff] %v1570_v50 }
  0xc3   : > { %v1574_v52 = vld [vmem:[%s11231_s26 + $0x1680] sm:$0xff]  ;;  %1573 = vst [vmem:[%s11236_s27 + $0x598] sm:$0xff] %v1572_v51 }
  0xc4   : > { %v1576_v53 = vld [vmem:[%s11231_s26 + $0x16a0] sm:$0xff]  ;;  %1575 = vst [vmem:[%s11236_s27 + $0x5a0] sm:$0xff] %v1574_v52 }
  0xc5   : > { %v1578_v54 = vld [vmem:[%s11231_s26 + $0x16c0] sm:$0xff]  ;;  %1577 = vst [vmem:[%s11236_s27 + $0x5a8] sm:$0xff] %v1576_v53 }
  0xc6   : > { %v1580_v55 = vld [vmem:[%s11231_s26 + $0x16e0] sm:$0xff]  ;;  %1579 = vst [vmem:[%s11236_s27 + $0x5b0] sm:$0xff] %v1578_v54 }
  0xc7   : > { %v1582_v56 = vld [vmem:[%s11231_s26 + $0x1700] sm:$0xff]  ;;  %1581 = vst [vmem:[%s11236_s27 + $0x5b8] sm:$0xff] %v1580_v55 }
  0xc8   : > { %v1584_v57 = vld [vmem:[%s11231_s26 + $0x1720] sm:$0xff]  ;;  %1583 = vst [vmem:[%s11236_s27 + $0x5c0] sm:$0xff] %v1582_v56 }
  0xc9   : > { %v1586_v58 = vld [vmem:[%s11231_s26 + $0x1740] sm:$0xff]  ;;  %1585 = vst [vmem:[%s11236_s27 + $0x5c8] sm:$0xff] %v1584_v57 }
  0xca   : > { %v1588_v59 = vld [vmem:[%s11231_s26 + $0x1760] sm:$0xff]  ;;  %1587 = vst [vmem:[%s11236_s27 + $0x5d0] sm:$0xff] %v1586_v58 }
  0xcb   : > { %v1590_v60 = vld [vmem:[%s11231_s26 + $0x1780] sm:$0xff]  ;;  %1589 = vst [vmem:[%s11236_s27 + $0x5d8] sm:$0xff] %v1588_v59 }
  0xcc   : > { %v1592_v61 = vld [vmem:[%s11231_s26 + $0x17a0] sm:$0xff]  ;;  %1591 = vst [vmem:[%s11236_s27 + $0x5e0] sm:$0xff] %v1590_v60 }
  0xcd   : > { %v1594_v62 = vld [vmem:[%s11231_s26 + $0x17c0] sm:$0xff]  ;;  %1593 = vst [vmem:[%s11236_s27 + $0x5e8] sm:$0xff] %v1592_v61 }
  0xce   : > { %v1596_v63 = vld [vmem:[%s11231_s26 + $0x17e0] sm:$0xff]  ;;  %1595 = vst [vmem:[%s11236_s27 + $0x5f0] sm:$0xff] %v1594_v62 }
  0xcf   : > { %v1598_v0 = vld [vmem:[%s11231_s26 + $0x1800] sm:$0xff]  ;;  %1597 = vst [vmem:[%s11236_s27 + $0x5f8] sm:$0xff] %v1596_v63 }
  0xd0   : > { %v1600_v1 = vld [vmem:[%s11231_s26 + $0x1820] sm:$0xff]  ;;  %1599 = vst [vmem:[%s11236_s27 + $0x600] sm:$0xff] %v1598_v0 }
  0xd1   : > { %v1602_v2 = vld [vmem:[%s11231_s26 + $0x1840] sm:$0xff]  ;;  %1601 = vst [vmem:[%s11236_s27 + $0x608] sm:$0xff] %v1600_v1 }
  0xd2   : > { %v1604_v3 = vld [vmem:[%s11231_s26 + $0x1860] sm:$0xff]  ;;  %1603 = vst [vmem:[%s11236_s27 + $0x610] sm:$0xff] %v1602_v2 }
  0xd3   : > { %v1606_v4 = vld [vmem:[%s11231_s26 + $0x1880] sm:$0xff]  ;;  %1605 = vst [vmem:[%s11236_s27 + $0x618] sm:$0xff] %v1604_v3 }
  0xd4   : > { %v1608_v5 = vld [vmem:[%s11231_s26 + $0x18a0] sm:$0xff]  ;;  %1607 = vst [vmem:[%s11236_s27 + $0x620] sm:$0xff] %v1606_v4 }
  0xd5   : > { %v1610_v6 = vld [vmem:[%s11231_s26 + $0x18c0] sm:$0xff]  ;;  %1609 = vst [vmem:[%s11236_s27 + $0x628] sm:$0xff] %v1608_v5 }
  0xd6   : > { %v1612_v7 = vld [vmem:[%s11231_s26 + $0x18e0] sm:$0xff]  ;;  %1611 = vst [vmem:[%s11236_s27 + $0x630] sm:$0xff] %v1610_v6 }
  0xd7   : > { %v1614_v8 = vld [vmem:[%s11231_s26 + $0x1900] sm:$0xff]  ;;  %1613 = vst [vmem:[%s11236_s27 + $0x638] sm:$0xff] %v1612_v7 }
  0xd8   : > { %v1616_v9 = vld [vmem:[%s11231_s26 + $0x1920] sm:$0xff]  ;;  %1615 = vst [vmem:[%s11236_s27 + $0x640] sm:$0xff] %v1614_v8 }
  0xd9   : > { %v1618_v10 = vld [vmem:[%s11231_s26 + $0x1940] sm:$0xff]  ;;  %1617 = vst [vmem:[%s11236_s27 + $0x648] sm:$0xff] %v1616_v9 }
  0xda   : > { %v1620_v11 = vld [vmem:[%s11231_s26 + $0x1960] sm:$0xff]  ;;  %1619 = vst [vmem:[%s11236_s27 + $0x650] sm:$0xff] %v1618_v10 }
  0xdb   : > { %v1622_v12 = vld [vmem:[%s11231_s26 + $0x1980] sm:$0xff]  ;;  %1621 = vst [vmem:[%s11236_s27 + $0x658] sm:$0xff] %v1620_v11 }
  0xdc   : > { %v1624_v13 = vld [vmem:[%s11231_s26 + $0x19a0] sm:$0xff]  ;;  %1623 = vst [vmem:[%s11236_s27 + $0x660] sm:$0xff] %v1622_v12 }
  0xdd   : > { %v1626_v14 = vld [vmem:[%s11231_s26 + $0x19c0] sm:$0xff]  ;;  %1625 = vst [vmem:[%s11236_s27 + $0x668] sm:$0xff] %v1624_v13 }
  0xde   : > { %v1628_v15 = vld [vmem:[%s11231_s26 + $0x19e0] sm:$0xff]  ;;  %1627 = vst [vmem:[%s11236_s27 + $0x670] sm:$0xff] %v1626_v14 }
  0xdf   : > { %v1630_v16 = vld [vmem:[%s11231_s26 + $0x1a00] sm:$0xff]  ;;  %1629 = vst [vmem:[%s11236_s27 + $0x678] sm:$0xff] %v1628_v15 }
  0xe0   : > { %v1632_v17 = vld [vmem:[%s11231_s26 + $0x1a20] sm:$0xff]  ;;  %1631 = vst [vmem:[%s11236_s27 + $0x680] sm:$0xff] %v1630_v16 }
  0xe1   : > { %v1634_v18 = vld [vmem:[%s11231_s26 + $0x1a40] sm:$0xff]  ;;  %1633 = vst [vmem:[%s11236_s27 + $0x688] sm:$0xff] %v1632_v17 }
  0xe2   : > { %v1636_v19 = vld [vmem:[%s11231_s26 + $0x1a60] sm:$0xff]  ;;  %1635 = vst [vmem:[%s11236_s27 + $0x690] sm:$0xff] %v1634_v18 }
  0xe3   : > { %v1638_v20 = vld [vmem:[%s11231_s26 + $0x1a80] sm:$0xff]  ;;  %1637 = vst [vmem:[%s11236_s27 + $0x698] sm:$0xff] %v1636_v19 }
  0xe4   : > { %v1640_v21 = vld [vmem:[%s11231_s26 + $0x1aa0] sm:$0xff]  ;;  %1639 = vst [vmem:[%s11236_s27 + $0x6a0] sm:$0xff] %v1638_v20 }
  0xe5   : > { %v1642_v22 = vld [vmem:[%s11231_s26 + $0x1ac0] sm:$0xff]  ;;  %1641 = vst [vmem:[%s11236_s27 + $0x6a8] sm:$0xff] %v1640_v21 }
  0xe6   : > { %v1644_v23 = vld [vmem:[%s11231_s26 + $0x1ae0] sm:$0xff]  ;;  %1643 = vst [vmem:[%s11236_s27 + $0x6b0] sm:$0xff] %v1642_v22 }
  0xe7   : > { %v1646_v24 = vld [vmem:[%s11231_s26 + $0x1b00] sm:$0xff]  ;;  %1645 = vst [vmem:[%s11236_s27 + $0x6b8] sm:$0xff] %v1644_v23 }
  0xe8   : > { %v1648_v25 = vld [vmem:[%s11231_s26 + $0x1b20] sm:$0xff]  ;;  %1647 = vst [vmem:[%s11236_s27 + $0x6c0] sm:$0xff] %v1646_v24 }
  0xe9   : > { %v1650_v26 = vld [vmem:[%s11231_s26 + $0x1b40] sm:$0xff]  ;;  %1649 = vst [vmem:[%s11236_s27 + $0x6c8] sm:$0xff] %v1648_v25 }
  0xea   : > { %v1652_v27 = vld [vmem:[%s11231_s26 + $0x1b60] sm:$0xff]  ;;  %1651 = vst [vmem:[%s11236_s27 + $0x6d0] sm:$0xff] %v1650_v26 }
  0xeb   : > { %v1654_v28 = vld [vmem:[%s11231_s26 + $0x1b80] sm:$0xff]  ;;  %1653 = vst [vmem:[%s11236_s27 + $0x6d8] sm:$0xff] %v1652_v27 }
  0xec   : > { %v1656_v29 = vld [vmem:[%s11231_s26 + $0x1ba0] sm:$0xff]  ;;  %1655 = vst [vmem:[%s11236_s27 + $0x6e0] sm:$0xff] %v1654_v28 }
  0xed   : > { %v1658_v30 = vld [vmem:[%s11231_s26 + $0x1bc0] sm:$0xff]  ;;  %1657 = vst [vmem:[%s11236_s27 + $0x6e8] sm:$0xff] %v1656_v29 }
  0xee   : > { %v1660_v31 = vld [vmem:[%s11231_s26 + $0x1be0] sm:$0xff]  ;;  %1659 = vst [vmem:[%s11236_s27 + $0x6f0] sm:$0xff] %v1658_v30 }
  0xef   : > { %v1662_v32 = vld [vmem:[%s11231_s26 + $0x1c00] sm:$0xff]  ;;  %1661 = vst [vmem:[%s11236_s27 + $0x6f8] sm:$0xff] %v1660_v31 }
  0xf0   : > { %v1664_v33 = vld [vmem:[%s11231_s26 + $0x1c20] sm:$0xff]  ;;  %1663 = vst [vmem:[%s11236_s27 + $0x700] sm:$0xff] %v1662_v32 }
  0xf1   : > { %v1666_v34 = vld [vmem:[%s11231_s26 + $0x1c40] sm:$0xff]  ;;  %1665 = vst [vmem:[%s11236_s27 + $0x708] sm:$0xff] %v1664_v33 }
  0xf2   : > { %v1668_v35 = vld [vmem:[%s11231_s26 + $0x1c60] sm:$0xff]  ;;  %1667 = vst [vmem:[%s11236_s27 + $0x710] sm:$0xff] %v1666_v34 }
  0xf3   : > { %v1670_v36 = vld [vmem:[%s11231_s26 + $0x1c80] sm:$0xff]  ;;  %1669 = vst [vmem:[%s11236_s27 + $0x718] sm:$0xff] %v1668_v35 }
  0xf4   : > { %v1672_v37 = vld [vmem:[%s11231_s26 + $0x1ca0] sm:$0xff]  ;;  %1671 = vst [vmem:[%s11236_s27 + $0x720] sm:$0xff] %v1670_v36 }
  0xf5   : > { %v1674_v38 = vld [vmem:[%s11231_s26 + $0x1cc0] sm:$0xff]  ;;  %1673 = vst [vmem:[%s11236_s27 + $0x728] sm:$0xff] %v1672_v37 }
  0xf6   : > { %v1676_v39 = vld [vmem:[%s11231_s26 + $0x1ce0] sm:$0xff]  ;;  %1675 = vst [vmem:[%s11236_s27 + $0x730] sm:$0xff] %v1674_v38 }
  0xf7   : > { %v1678_v40 = vld [vmem:[%s11231_s26 + $0x1d00] sm:$0xff]  ;;  %1677 = vst [vmem:[%s11236_s27 + $0x738] sm:$0xff] %v1676_v39 }
  0xf8   : > { %v1680_v41 = vld [vmem:[%s11231_s26 + $0x1d20] sm:$0xff]  ;;  %1679 = vst [vmem:[%s11236_s27 + $0x740] sm:$0xff] %v1678_v40 }
  0xf9   : > { %v1682_v42 = vld [vmem:[%s11231_s26 + $0x1d40] sm:$0xff]  ;;  %1681 = vst [vmem:[%s11236_s27 + $0x748] sm:$0xff] %v1680_v41 }
  0xfa   : > { %v1684_v43 = vld [vmem:[%s11231_s26 + $0x1d60] sm:$0xff]  ;;  %1683 = vst [vmem:[%s11236_s27 + $0x750] sm:$0xff] %v1682_v42 }
  0xfb   : > { %v1686_v44 = vld [vmem:[%s11231_s26 + $0x1d80] sm:$0xff]  ;;  %1685 = vst [vmem:[%s11236_s27 + $0x758] sm:$0xff] %v1684_v43 }
  0xfc   : > { %v1688_v45 = vld [vmem:[%s11231_s26 + $0x1da0] sm:$0xff]  ;;  %1687 = vst [vmem:[%s11236_s27 + $0x760] sm:$0xff] %v1686_v44 }
  0xfd   : > { %v1690_v46 = vld [vmem:[%s11231_s26 + $0x1dc0] sm:$0xff]  ;;  %1689 = vst [vmem:[%s11236_s27 + $0x768] sm:$0xff] %v1688_v45 }
  0xfe   : > { %v1692_v47 = vld [vmem:[%s11231_s26 + $0x1de0] sm:$0xff]  ;;  %1691 = vst [vmem:[%s11236_s27 + $0x770] sm:$0xff] %v1690_v46 }
  0xff   : > { %v1694_v48 = vld [vmem:[%s11231_s26 + $0x1e00] sm:$0xff]  ;;  %1693 = vst [vmem:[%s11236_s27 + $0x778] sm:$0xff] %v1692_v47 }
 0x100   : > { %v1696_v49 = vld [vmem:[%s11231_s26 + $0x1e20] sm:$0xff]  ;;  %1695 = vst [vmem:[%s11236_s27 + $0x780] sm:$0xff] %v1694_v48 }
 0x101   : > { %v1698_v50 = vld [vmem:[%s11231_s26 + $0x1e40] sm:$0xff]  ;;  %1697 = vst [vmem:[%s11236_s27 + $0x788] sm:$0xff] %v1696_v49 }
 0x102   : > { %v1700_v51 = vld [vmem:[%s11231_s26 + $0x1e60] sm:$0xff]  ;;  %1699 = vst [vmem:[%s11236_s27 + $0x790] sm:$0xff] %v1698_v50 }
 0x103   : > { %v1702_v52 = vld [vmem:[%s11231_s26 + $0x1e80] sm:$0xff]  ;;  %1701 = vst [vmem:[%s11236_s27 + $0x798] sm:$0xff] %v1700_v51 }
 0x104   : > { %v1704_v53 = vld [vmem:[%s11231_s26 + $0x1ea0] sm:$0xff]  ;;  %1703 = vst [vmem:[%s11236_s27 + $0x7a0] sm:$0xff] %v1702_v52 }
 0x105   : > { %v1706_v54 = vld [vmem:[%s11231_s26 + $0x1ec0] sm:$0xff]  ;;  %1705 = vst [vmem:[%s11236_s27 + $0x7a8] sm:$0xff] %v1704_v53 }
 0x106   : > { %v1708_v55 = vld [vmem:[%s11231_s26 + $0x1ee0] sm:$0xff]  ;;  %1707 = vst [vmem:[%s11236_s27 + $0x7b0] sm:$0xff] %v1706_v54 }
 0x107   : > { %v1710_v56 = vld [vmem:[%s11231_s26 + $0x1f00] sm:$0xff]  ;;  %1709 = vst [vmem:[%s11236_s27 + $0x7b8] sm:$0xff] %v1708_v55 }
 0x108   : > { %v1712_v57 = vld [vmem:[%s11231_s26 + $0x1f20] sm:$0xff]  ;;  %1711 = vst [vmem:[%s11236_s27 + $0x7c0] sm:$0xff] %v1710_v56 }
 0x109   : > { %v1714_v58 = vld [vmem:[%s11231_s26 + $0x1f40] sm:$0xff]  ;;  %1713 = vst [vmem:[%s11236_s27 + $0x7c8] sm:$0xff] %v1712_v57 }
 0x10a   : > { %v1716_v59 = vld [vmem:[%s11231_s26 + $0x1f60] sm:$0xff]  ;;  %1715 = vst [vmem:[%s11236_s27 + $0x7d0] sm:$0xff] %v1714_v58 }
 0x10b   : > { %v1718_v60 = vld [vmem:[%s11231_s26 + $0x1f80] sm:$0xff]  ;;  %1717 = vst [vmem:[%s11236_s27 + $0x7d8] sm:$0xff] %v1716_v59 }
 0x10c   : > { %v1720_v61 = vld [vmem:[%s11231_s26 + $0x1fa0] sm:$0xff]  ;;  %1719 = vst [vmem:[%s11236_s27 + $0x7e0] sm:$0xff] %v1718_v60 }
 0x10d   : > { %v1722_v62 = vld [vmem:[%s11231_s26 + $0x1fc0] sm:$0xff]  ;;  %1721 = vst [vmem:[%s11236_s27 + $0x7e8] sm:$0xff] %v1720_v61 }
 0x10e   : > { %v1724_v63 = vld [vmem:[%s11231_s26 + $0x1fe0] sm:$0xff]  ;;  %1723 = vst [vmem:[%s11236_s27 + $0x7f0] sm:$0xff] %v1722_v62 }
 0x10f   : > { %v1726_v0 = vld [vmem:[%s11231_s26 + $0x2000] sm:$0xff]  ;;  %1725 = vst [vmem:[%s11236_s27 + $0x7f8] sm:$0xff] %v1724_v63 }
 0x110   : > { %v1728_v1 = vld [vmem:[%s11231_s26 + $0x2020] sm:$0xff]  ;;  %1727 = vst [vmem:[%s11236_s27 + $0x800] sm:$0xff] %v1726_v0 }
 0x111   : > { %v1730_v2 = vld [vmem:[%s11231_s26 + $0x2040] sm:$0xff]  ;;  %1729 = vst [vmem:[%s11236_s27 + $0x808] sm:$0xff] %v1728_v1 }
 0x112   : > { %v1732_v3 = vld [vmem:[%s11231_s26 + $0x2060] sm:$0xff]  ;;  %1731 = vst [vmem:[%s11236_s27 + $0x810] sm:$0xff] %v1730_v2 }
 0x113   : > { %v1734_v4 = vld [vmem:[%s11231_s26 + $0x2080] sm:$0xff]  ;;  %1733 = vst [vmem:[%s11236_s27 + $0x818] sm:$0xff] %v1732_v3 }
 0x114   : > { %v1736_v5 = vld [vmem:[%s11231_s26 + $0x20a0] sm:$0xff]  ;;  %1735 = vst [vmem:[%s11236_s27 + $0x820] sm:$0xff] %v1734_v4 }
 0x115   : > { %v1738_v6 = vld [vmem:[%s11231_s26 + $0x20c0] sm:$0xff]  ;;  %1737 = vst [vmem:[%s11236_s27 + $0x828] sm:$0xff] %v1736_v5 }
 0x116   : > { %v1740_v7 = vld [vmem:[%s11231_s26 + $0x20e0] sm:$0xff]  ;;  %1739 = vst [vmem:[%s11236_s27 + $0x830] sm:$0xff] %v1738_v6 }
 0x117   : > { %v1742_v8 = vld [vmem:[%s11231_s26 + $0x2100] sm:$0xff]  ;;  %1741 = vst [vmem:[%s11236_s27 + $0x838] sm:$0xff] %v1740_v7 }
 0x118   : > { %v1744_v9 = vld [vmem:[%s11231_s26 + $0x2120] sm:$0xff]  ;;  %1743 = vst [vmem:[%s11236_s27 + $0x840] sm:$0xff] %v1742_v8 }
 0x119   : > { %v1746_v10 = vld [vmem:[%s11231_s26 + $0x2140] sm:$0xff]  ;;  %1745 = vst [vmem:[%s11236_s27 + $0x848] sm:$0xff] %v1744_v9 }
 0x11a   : > { %v1748_v11 = vld [vmem:[%s11231_s26 + $0x2160] sm:$0xff]  ;;  %1747 = vst [vmem:[%s11236_s27 + $0x850] sm:$0xff] %v1746_v10 }
 0x11b   : > { %v1750_v12 = vld [vmem:[%s11231_s26 + $0x2180] sm:$0xff]  ;;  %1749 = vst [vmem:[%s11236_s27 + $0x858] sm:$0xff] %v1748_v11 }
 0x11c   : > { %v1752_v13 = vld [vmem:[%s11231_s26 + $0x21a0] sm:$0xff]  ;;  %1751 = vst [vmem:[%s11236_s27 + $0x860] sm:$0xff] %v1750_v12 }
 0x11d   : > { %v1754_v14 = vld [vmem:[%s11231_s26 + $0x21c0] sm:$0xff]  ;;  %1753 = vst [vmem:[%s11236_s27 + $0x868] sm:$0xff] %v1752_v13 }
 0x11e   : > { %v1756_v15 = vld [vmem:[%s11231_s26 + $0x21e0] sm:$0xff]  ;;  %1755 = vst [vmem:[%s11236_s27 + $0x870] sm:$0xff] %v1754_v14 }
 0x11f   : > { %v1758_v16 = vld [vmem:[%s11231_s26 + $0x2200] sm:$0xff]  ;;  %1757 = vst [vmem:[%s11236_s27 + $0x878] sm:$0xff] %v1756_v15 }
 0x120   : > { %v1760_v17 = vld [vmem:[%s11231_s26 + $0x2220] sm:$0xff]  ;;  %1759 = vst [vmem:[%s11236_s27 + $0x880] sm:$0xff] %v1758_v16 }
 0x121   : > { %v1762_v18 = vld [vmem:[%s11231_s26 + $0x2240] sm:$0xff]  ;;  %1761 = vst [vmem:[%s11236_s27 + $0x888] sm:$0xff] %v1760_v17 }
 0x122   : > { %v1764_v19 = vld [vmem:[%s11231_s26 + $0x2260] sm:$0xff]  ;;  %1763 = vst [vmem:[%s11236_s27 + $0x890] sm:$0xff] %v1762_v18 }
 0x123   : > { %v1766_v20 = vld [vmem:[%s11231_s26 + $0x2280] sm:$0xff]  ;;  %1765 = vst [vmem:[%s11236_s27 + $0x898] sm:$0xff] %v1764_v19 }
 0x124   : > { %v1768_v21 = vld [vmem:[%s11231_s26 + $0x22a0] sm:$0xff]  ;;  %1767 = vst [vmem:[%s11236_s27 + $0x8a0] sm:$0xff] %v1766_v20 }
 0x125   : > { %v1770_v22 = vld [vmem:[%s11231_s26 + $0x22c0] sm:$0xff]  ;;  %1769 = vst [vmem:[%s11236_s27 + $0x8a8] sm:$0xff] %v1768_v21 }
 0x126   : > { %v1772_v23 = vld [vmem:[%s11231_s26 + $0x22e0] sm:$0xff]  ;;  %1771 = vst [vmem:[%s11236_s27 + $0x8b0] sm:$0xff] %v1770_v22 }
 0x127   : > { %v1774_v24 = vld [vmem:[%s11231_s26 + $0x2300] sm:$0xff]  ;;  %1773 = vst [vmem:[%s11236_s27 + $0x8b8] sm:$0xff] %v1772_v23 }
 0x128   : > { %v1776_v25 = vld [vmem:[%s11231_s26 + $0x2320] sm:$0xff]  ;;  %1775 = vst [vmem:[%s11236_s27 + $0x8c0] sm:$0xff] %v1774_v24 }
 0x129   : > { %v1778_v26 = vld [vmem:[%s11231_s26 + $0x2340] sm:$0xff]  ;;  %1777 = vst [vmem:[%s11236_s27 + $0x8c8] sm:$0xff] %v1776_v25 }
 0x12a   : > { %v1780_v27 = vld [vmem:[%s11231_s26 + $0x2360] sm:$0xff]  ;;  %1779 = vst [vmem:[%s11236_s27 + $0x8d0] sm:$0xff] %v1778_v26 }
 0x12b   : > { %v1782_v28 = vld [vmem:[%s11231_s26 + $0x2380] sm:$0xff]  ;;  %1781 = vst [vmem:[%s11236_s27 + $0x8d8] sm:$0xff] %v1780_v27 }
 0x12c   : > { %v1784_v29 = vld [vmem:[%s11231_s26 + $0x23a0] sm:$0xff]  ;;  %1783 = vst [vmem:[%s11236_s27 + $0x8e0] sm:$0xff] %v1782_v28 }
 0x12d   : > { %v1786_v30 = vld [vmem:[%s11231_s26 + $0x23c0] sm:$0xff]  ;;  %1785 = vst [vmem:[%s11236_s27 + $0x8e8] sm:$0xff] %v1784_v29 }
 0x12e   : > { %v1788_v31 = vld [vmem:[%s11231_s26 + $0x23e0] sm:$0xff]  ;;  %1787 = vst [vmem:[%s11236_s27 + $0x8f0] sm:$0xff] %v1786_v30 }
 0x12f   : > { %v1790_v32 = vld [vmem:[%s11231_s26 + $0x2400] sm:$0xff]  ;;  %1789 = vst [vmem:[%s11236_s27 + $0x8f8] sm:$0xff] %v1788_v31 }
 0x130   : > { %v1792_v33 = vld [vmem:[%s11231_s26 + $0x2420] sm:$0xff]  ;;  %1791 = vst [vmem:[%s11236_s27 + $0x900] sm:$0xff] %v1790_v32 }
 0x131   : > { %v1794_v34 = vld [vmem:[%s11231_s26 + $0x2440] sm:$0xff]  ;;  %1793 = vst [vmem:[%s11236_s27 + $0x908] sm:$0xff] %v1792_v33 }
 0x132   : > { %v1796_v35 = vld [vmem:[%s11231_s26 + $0x2460] sm:$0xff]  ;;  %1795 = vst [vmem:[%s11236_s27 + $0x910] sm:$0xff] %v1794_v34 }
 0x133   : > { %v1798_v36 = vld [vmem:[%s11231_s26 + $0x2480] sm:$0xff]  ;;  %1797 = vst [vmem:[%s11236_s27 + $0x918] sm:$0xff] %v1796_v35 }
 0x134   : > { %v1800_v37 = vld [vmem:[%s11231_s26 + $0x24a0] sm:$0xff]  ;;  %1799 = vst [vmem:[%s11236_s27 + $0x920] sm:$0xff] %v1798_v36 }
 0x135   : > { %v1802_v38 = vld [vmem:[%s11231_s26 + $0x24c0] sm:$0xff]  ;;  %1801 = vst [vmem:[%s11236_s27 + $0x928] sm:$0xff] %v1800_v37 }
 0x136   : > { %v1804_v39 = vld [vmem:[%s11231_s26 + $0x24e0] sm:$0xff]  ;;  %1803 = vst [vmem:[%s11236_s27 + $0x930] sm:$0xff] %v1802_v38 }
 0x137   : > { %v1806_v40 = vld [vmem:[%s11231_s26 + $0x2500] sm:$0xff]  ;;  %1805 = vst [vmem:[%s11236_s27 + $0x938] sm:$0xff] %v1804_v39 }
 0x138   : > { %v1808_v41 = vld [vmem:[%s11231_s26 + $0x2520] sm:$0xff]  ;;  %1807 = vst [vmem:[%s11236_s27 + $0x940] sm:$0xff] %v1806_v40 }
 0x139   : > { %v1810_v42 = vld [vmem:[%s11231_s26 + $0x2540] sm:$0xff]  ;;  %1809 = vst [vmem:[%s11236_s27 + $0x948] sm:$0xff] %v1808_v41 }
 0x13a   : > { %v1812_v43 = vld [vmem:[%s11231_s26 + $0x2560] sm:$0xff]  ;;  %1811 = vst [vmem:[%s11236_s27 + $0x950] sm:$0xff] %v1810_v42 }
 0x13b   : > { %v1814_v44 = vld [vmem:[%s11231_s26 + $0x2580] sm:$0xff]  ;;  %1813 = vst [vmem:[%s11236_s27 + $0x958] sm:$0xff] %v1812_v43 }
 0x13c   : > { %v1816_v45 = vld [vmem:[%s11231_s26 + $0x25a0] sm:$0xff]  ;;  %1815 = vst [vmem:[%s11236_s27 + $0x960] sm:$0xff] %v1814_v44 }
 0x13d   : > { %v1818_v46 = vld [vmem:[%s11231_s26 + $0x25c0] sm:$0xff]  ;;  %1817 = vst [vmem:[%s11236_s27 + $0x968] sm:$0xff] %v1816_v45 }
 0x13e   : > { %v1820_v47 = vld [vmem:[%s11231_s26 + $0x25e0] sm:$0xff]  ;;  %1819 = vst [vmem:[%s11236_s27 + $0x970] sm:$0xff] %v1818_v46 }
 0x13f   : > { %v1822_v48 = vld [vmem:[%s11231_s26 + $0x2600] sm:$0xff]  ;;  %1821 = vst [vmem:[%s11236_s27 + $0x978] sm:$0xff] %v1820_v47 }
 0x140   : > { %v1824_v49 = vld [vmem:[%s11231_s26 + $0x2620] sm:$0xff]  ;;  %1823 = vst [vmem:[%s11236_s27 + $0x980] sm:$0xff] %v1822_v48 }
 0x141   : > { %v1826_v50 = vld [vmem:[%s11231_s26 + $0x2640] sm:$0xff]  ;;  %1825 = vst [vmem:[%s11236_s27 + $0x988] sm:$0xff] %v1824_v49 }
 0x142   : > { %v1828_v51 = vld [vmem:[%s11231_s26 + $0x2660] sm:$0xff]  ;;  %1827 = vst [vmem:[%s11236_s27 + $0x990] sm:$0xff] %v1826_v50 }
 0x143   : > { %v1830_v52 = vld [vmem:[%s11231_s26 + $0x2680] sm:$0xff]  ;;  %1829 = vst [vmem:[%s11236_s27 + $0x998] sm:$0xff] %v1828_v51 }
 0x144   : > { %v1832_v53 = vld [vmem:[%s11231_s26 + $0x26a0] sm:$0xff]  ;;  %1831 = vst [vmem:[%s11236_s27 + $0x9a0] sm:$0xff] %v1830_v52 }
 0x145   : > { %v1834_v54 = vld [vmem:[%s11231_s26 + $0x26c0] sm:$0xff]  ;;  %1833 = vst [vmem:[%s11236_s27 + $0x9a8] sm:$0xff] %v1832_v53 }
 0x146   : > { %v1836_v55 = vld [vmem:[%s11231_s26 + $0x26e0] sm:$0xff]  ;;  %1835 = vst [vmem:[%s11236_s27 + $0x9b0] sm:$0xff] %v1834_v54 }
 0x147   : > { %v1838_v56 = vld [vmem:[%s11231_s26 + $0x2700] sm:$0xff]  ;;  %1837 = vst [vmem:[%s11236_s27 + $0x9b8] sm:$0xff] %v1836_v55 }
 0x148   : > { %v1840_v57 = vld [vmem:[%s11231_s26 + $0x2720] sm:$0xff]  ;;  %1839 = vst [vmem:[%s11236_s27 + $0x9c0] sm:$0xff] %v1838_v56 }
 0x149   : > { %v1842_v58 = vld [vmem:[%s11231_s26 + $0x2740] sm:$0xff]  ;;  %1841 = vst [vmem:[%s11236_s27 + $0x9c8] sm:$0xff] %v1840_v57 }
 0x14a   : > { %v1844_v59 = vld [vmem:[%s11231_s26 + $0x2760] sm:$0xff]  ;;  %1843 = vst [vmem:[%s11236_s27 + $0x9d0] sm:$0xff] %v1842_v58 }
 0x14b   : > { %v1846_v60 = vld [vmem:[%s11231_s26 + $0x2780] sm:$0xff]  ;;  %1845 = vst [vmem:[%s11236_s27 + $0x9d8] sm:$0xff] %v1844_v59 }
 0x14c   : > { %v1848_v61 = vld [vmem:[%s11231_s26 + $0x27a0] sm:$0xff]  ;;  %1847 = vst [vmem:[%s11236_s27 + $0x9e0] sm:$0xff] %v1846_v60 }
 0x14d   : > { %v1850_v62 = vld [vmem:[%s11231_s26 + $0x27c0] sm:$0xff]  ;;  %1849 = vst [vmem:[%s11236_s27 + $0x9e8] sm:$0xff] %v1848_v61 }
 0x14e   : > { %v1852_v63 = vld [vmem:[%s11231_s26 + $0x27e0] sm:$0xff]  ;;  %1851 = vst [vmem:[%s11236_s27 + $0x9f0] sm:$0xff] %v1850_v62 }
 0x14f   : > { %v1854_v0 = vld [vmem:[%s11231_s26 + $0x2800] sm:$0xff]  ;;  %1853 = vst [vmem:[%s11236_s27 + $0x9f8] sm:$0xff] %v1852_v63 }
 0x150   : > { %v1856_v1 = vld [vmem:[%s11231_s26 + $0x2820] sm:$0xff]  ;;  %1855 = vst [vmem:[%s11236_s27 + $0xa00] sm:$0xff] %v1854_v0 }
 0x151   : > { %v1858_v2 = vld [vmem:[%s11231_s26 + $0x2840] sm:$0xff]  ;;  %1857 = vst [vmem:[%s11236_s27 + $0xa08] sm:$0xff] %v1856_v1 }
 0x152   : > { %v1860_v3 = vld [vmem:[%s11231_s26 + $0x2860] sm:$0xff]  ;;  %1859 = vst [vmem:[%s11236_s27 + $0xa10] sm:$0xff] %v1858_v2 }
 0x153   : > { %v1862_v4 = vld [vmem:[%s11231_s26 + $0x2880] sm:$0xff]  ;;  %1861 = vst [vmem:[%s11236_s27 + $0xa18] sm:$0xff] %v1860_v3 }
 0x154   : > { %v1864_v5 = vld [vmem:[%s11231_s26 + $0x28a0] sm:$0xff]  ;;  %1863 = vst [vmem:[%s11236_s27 + $0xa20] sm:$0xff] %v1862_v4 }
 0x155   : > { %v1866_v6 = vld [vmem:[%s11231_s26 + $0x28c0] sm:$0xff]  ;;  %1865 = vst [vmem:[%s11236_s27 + $0xa28] sm:$0xff] %v1864_v5 }
 0x156   : > { %v1868_v7 = vld [vmem:[%s11231_s26 + $0x28e0] sm:$0xff]  ;;  %1867 = vst [vmem:[%s11236_s27 + $0xa30] sm:$0xff] %v1866_v6 }
 0x157   : > { %v1870_v8 = vld [vmem:[%s11231_s26 + $0x2900] sm:$0xff]  ;;  %1869 = vst [vmem:[%s11236_s27 + $0xa38] sm:$0xff] %v1868_v7 }
 0x158   : > { %v1872_v9 = vld [vmem:[%s11231_s26 + $0x2920] sm:$0xff]  ;;  %1871 = vst [vmem:[%s11236_s27 + $0xa40] sm:$0xff] %v1870_v8 }
 0x159   : > { %v1874_v10 = vld [vmem:[%s11231_s26 + $0x2940] sm:$0xff]  ;;  %1873 = vst [vmem:[%s11236_s27 + $0xa48] sm:$0xff] %v1872_v9 }
 0x15a   : > { %v1876_v11 = vld [vmem:[%s11231_s26 + $0x2960] sm:$0xff]  ;;  %1875 = vst [vmem:[%s11236_s27 + $0xa50] sm:$0xff] %v1874_v10 }
 0x15b   : > { %v1878_v12 = vld [vmem:[%s11231_s26 + $0x2980] sm:$0xff]  ;;  %1877 = vst [vmem:[%s11236_s27 + $0xa58] sm:$0xff] %v1876_v11 }
 0x15c   : > { %v1880_v13 = vld [vmem:[%s11231_s26 + $0x29a0] sm:$0xff]  ;;  %1879 = vst [vmem:[%s11236_s27 + $0xa60] sm:$0xff] %v1878_v12 }
 0x15d   : > { %v1882_v14 = vld [vmem:[%s11231_s26 + $0x29c0] sm:$0xff]  ;;  %1881 = vst [vmem:[%s11236_s27 + $0xa68] sm:$0xff] %v1880_v13 }
 0x15e   : > { %v1884_v15 = vld [vmem:[%s11231_s26 + $0x29e0] sm:$0xff]  ;;  %1883 = vst [vmem:[%s11236_s27 + $0xa70] sm:$0xff] %v1882_v14 }
 0x15f   : > { %v1886_v16 = vld [vmem:[%s11231_s26 + $0x2a00] sm:$0xff]  ;;  %1885 = vst [vmem:[%s11236_s27 + $0xa78] sm:$0xff] %v1884_v15 }
 0x160   : > { %v1888_v17 = vld [vmem:[%s11231_s26 + $0x2a20] sm:$0xff]  ;;  %1887 = vst [vmem:[%s11236_s27 + $0xa80] sm:$0xff] %v1886_v16 }
 0x161   : > { %v1890_v18 = vld [vmem:[%s11231_s26 + $0x2a40] sm:$0xff]  ;;  %1889 = vst [vmem:[%s11236_s27 + $0xa88] sm:$0xff] %v1888_v17 }
 0x162   : > { %v1892_v19 = vld [vmem:[%s11231_s26 + $0x2a60] sm:$0xff]  ;;  %1891 = vst [vmem:[%s11236_s27 + $0xa90] sm:$0xff] %v1890_v18 }
 0x163   : > { %v1894_v20 = vld [vmem:[%s11231_s26 + $0x2a80] sm:$0xff]  ;;  %1893 = vst [vmem:[%s11236_s27 + $0xa98] sm:$0xff] %v1892_v19 }
 0x164   : > { %v1896_v21 = vld [vmem:[%s11231_s26 + $0x2aa0] sm:$0xff]  ;;  %1895 = vst [vmem:[%s11236_s27 + $0xaa0] sm:$0xff] %v1894_v20 }
 0x165   : > { %v1898_v22 = vld [vmem:[%s11231_s26 + $0x2ac0] sm:$0xff]  ;;  %1897 = vst [vmem:[%s11236_s27 + $0xaa8] sm:$0xff] %v1896_v21 }
 0x166   : > { %v1900_v23 = vld [vmem:[%s11231_s26 + $0x2ae0] sm:$0xff]  ;;  %1899 = vst [vmem:[%s11236_s27 + $0xab0] sm:$0xff] %v1898_v22 }
 0x167   : > { %v1902_v24 = vld [vmem:[%s11231_s26 + $0x2b00] sm:$0xff]  ;;  %1901 = vst [vmem:[%s11236_s27 + $0xab8] sm:$0xff] %v1900_v23 }
 0x168   : > { %v1904_v25 = vld [vmem:[%s11231_s26 + $0x2b20] sm:$0xff]  ;;  %1903 = vst [vmem:[%s11236_s27 + $0xac0] sm:$0xff] %v1902_v24 }
 0x169   : > { %v1906_v26 = vld [vmem:[%s11231_s26 + $0x2b40] sm:$0xff]  ;;  %1905 = vst [vmem:[%s11236_s27 + $0xac8] sm:$0xff] %v1904_v25 }
 0x16a   : > { %v1908_v27 = vld [vmem:[%s11231_s26 + $0x2b60] sm:$0xff]  ;;  %1907 = vst [vmem:[%s11236_s27 + $0xad0] sm:$0xff] %v1906_v26 }
 0x16b   : > { %v1910_v28 = vld [vmem:[%s11231_s26 + $0x2b80] sm:$0xff]  ;;  %1909 = vst [vmem:[%s11236_s27 + $0xad8] sm:$0xff] %v1908_v27 }
 0x16c   : > { %v1912_v29 = vld [vmem:[%s11231_s26 + $0x2ba0] sm:$0xff]  ;;  %1911 = vst [vmem:[%s11236_s27 + $0xae0] sm:$0xff] %v1910_v28 }
 0x16d   : > { %v1914_v30 = vld [vmem:[%s11231_s26 + $0x2bc0] sm:$0xff]  ;;  %1913 = vst [vmem:[%s11236_s27 + $0xae8] sm:$0xff] %v1912_v29 }
 0x16e   : > { %v1916_v31 = vld [vmem:[%s11231_s26 + $0x2be0] sm:$0xff]  ;;  %1915 = vst [vmem:[%s11236_s27 + $0xaf0] sm:$0xff] %v1914_v30 }
 0x16f   : > { %v1918_v32 = vld [vmem:[%s11231_s26 + $0x2c00] sm:$0xff]  ;;  %1917 = vst [vmem:[%s11236_s27 + $0xaf8] sm:$0xff] %v1916_v31 }
 0x170   : > { %v1920_v33 = vld [vmem:[%s11231_s26 + $0x2c20] sm:$0xff]  ;;  %1919 = vst [vmem:[%s11236_s27 + $0xb00] sm:$0xff] %v1918_v32 }
 0x171   : > { %v1922_v34 = vld [vmem:[%s11231_s26 + $0x2c40] sm:$0xff]  ;;  %1921 = vst [vmem:[%s11236_s27 + $0xb08] sm:$0xff] %v1920_v33 }
 0x172   : > { %v1924_v35 = vld [vmem:[%s11231_s26 + $0x2c60] sm:$0xff]  ;;  %1923 = vst [vmem:[%s11236_s27 + $0xb10] sm:$0xff] %v1922_v34 }
 0x173   : > { %v1926_v36 = vld [vmem:[%s11231_s26 + $0x2c80] sm:$0xff]  ;;  %1925 = vst [vmem:[%s11236_s27 + $0xb18] sm:$0xff] %v1924_v35 }
 0x174   : > { %v1928_v37 = vld [vmem:[%s11231_s26 + $0x2ca0] sm:$0xff]  ;;  %1927 = vst [vmem:[%s11236_s27 + $0xb20] sm:$0xff] %v1926_v36 }
 0x175   : > { %v1930_v38 = vld [vmem:[%s11231_s26 + $0x2cc0] sm:$0xff]  ;;  %1929 = vst [vmem:[%s11236_s27 + $0xb28] sm:$0xff] %v1928_v37 }
 0x176   : > { %v1932_v39 = vld [vmem:[%s11231_s26 + $0x2ce0] sm:$0xff]  ;;  %1931 = vst [vmem:[%s11236_s27 + $0xb30] sm:$0xff] %v1930_v38 }
 0x177   : > { %v1934_v40 = vld [vmem:[%s11231_s26 + $0x2d00] sm:$0xff]  ;;  %1933 = vst [vmem:[%s11236_s27 + $0xb38] sm:$0xff] %v1932_v39 }
 0x178   : > { %v1936_v41 = vld [vmem:[%s11231_s26 + $0x2d20] sm:$0xff]  ;;  %1935 = vst [vmem:[%s11236_s27 + $0xb40] sm:$0xff] %v1934_v40 }
 0x179   : > { %v1938_v42 = vld [vmem:[%s11231_s26 + $0x2d40] sm:$0xff]  ;;  %1937 = vst [vmem:[%s11236_s27 + $0xb48] sm:$0xff] %v1936_v41 }
 0x17a   : > { %v1940_v43 = vld [vmem:[%s11231_s26 + $0x2d60] sm:$0xff]  ;;  %1939 = vst [vmem:[%s11236_s27 + $0xb50] sm:$0xff] %v1938_v42 }
 0x17b   : > { %v1942_v44 = vld [vmem:[%s11231_s26 + $0x2d80] sm:$0xff]  ;;  %1941 = vst [vmem:[%s11236_s27 + $0xb58] sm:$0xff] %v1940_v43 }
 0x17c   : > { %v1944_v45 = vld [vmem:[%s11231_s26 + $0x2da0] sm:$0xff]  ;;  %1943 = vst [vmem:[%s11236_s27 + $0xb60] sm:$0xff] %v1942_v44 }
 0x17d   : > { %v1946_v46 = vld [vmem:[%s11231_s26 + $0x2dc0] sm:$0xff]  ;;  %1945 = vst [vmem:[%s11236_s27 + $0xb68] sm:$0xff] %v1944_v45 }
 0x17e   : > { %v1948_v47 = vld [vmem:[%s11231_s26 + $0x2de0] sm:$0xff]  ;;  %1947 = vst [vmem:[%s11236_s27 + $0xb70] sm:$0xff] %v1946_v46 }
 0x17f   : > { %v1950_v48 = vld [vmem:[%s11231_s26 + $0x2e00] sm:$0xff]  ;;  %1949 = vst [vmem:[%s11236_s27 + $0xb78] sm:$0xff] %v1948_v47 }
 0x180   : > { %v1952_v49 = vld [vmem:[%s11231_s26 + $0x2e20] sm:$0xff]  ;;  %1951 = vst [vmem:[%s11236_s27 + $0xb80] sm:$0xff] %v1950_v48 }
 0x181   : > { %v1954_v50 = vld [vmem:[%s11231_s26 + $0x2e40] sm:$0xff]  ;;  %1953 = vst [vmem:[%s11236_s27 + $0xb88] sm:$0xff] %v1952_v49 }
 0x182   : > { %v1956_v51 = vld [vmem:[%s11231_s26 + $0x2e60] sm:$0xff]  ;;  %1955 = vst [vmem:[%s11236_s27 + $0xb90] sm:$0xff] %v1954_v50 }
 0x183   : > { %v1958_v52 = vld [vmem:[%s11231_s26 + $0x2e80] sm:$0xff]  ;;  %1957 = vst [vmem:[%s11236_s27 + $0xb98] sm:$0xff] %v1956_v51 }
 0x184   : > { %v1960_v53 = vld [vmem:[%s11231_s26 + $0x2ea0] sm:$0xff]  ;;  %1959 = vst [vmem:[%s11236_s27 + $0xba0] sm:$0xff] %v1958_v52 }
 0x185   : > { %v1962_v54 = vld [vmem:[%s11231_s26 + $0x2ec0] sm:$0xff]  ;;  %1961 = vst [vmem:[%s11236_s27 + $0xba8] sm:$0xff] %v1960_v53 }
 0x186   : > { %v1964_v55 = vld [vmem:[%s11231_s26 + $0x2ee0] sm:$0xff]  ;;  %1963 = vst [vmem:[%s11236_s27 + $0xbb0] sm:$0xff] %v1962_v54 }
 0x187   : > { %v1966_v56 = vld [vmem:[%s11231_s26 + $0x2f00] sm:$0xff]  ;;  %1965 = vst [vmem:[%s11236_s27 + $0xbb8] sm:$0xff] %v1964_v55 }
 0x188   : > { %v1968_v57 = vld [vmem:[%s11231_s26 + $0x2f20] sm:$0xff]  ;;  %1967 = vst [vmem:[%s11236_s27 + $0xbc0] sm:$0xff] %v1966_v56 }
 0x189   : > { %v1970_v58 = vld [vmem:[%s11231_s26 + $0x2f40] sm:$0xff]  ;;  %1969 = vst [vmem:[%s11236_s27 + $0xbc8] sm:$0xff] %v1968_v57 }
 0x18a   : > { %v1972_v59 = vld [vmem:[%s11231_s26 + $0x2f60] sm:$0xff]  ;;  %1971 = vst [vmem:[%s11236_s27 + $0xbd0] sm:$0xff] %v1970_v58 }
 0x18b   : > { %v1974_v60 = vld [vmem:[%s11231_s26 + $0x2f80] sm:$0xff]  ;;  %1973 = vst [vmem:[%s11236_s27 + $0xbd8] sm:$0xff] %v1972_v59 }
 0x18c   : > { %v1976_v61 = vld [vmem:[%s11231_s26 + $0x2fa0] sm:$0xff]  ;;  %1975 = vst [vmem:[%s11236_s27 + $0xbe0] sm:$0xff] %v1974_v60 }
 0x18d   : > { %v1978_v62 = vld [vmem:[%s11231_s26 + $0x2fc0] sm:$0xff]  ;;  %1977 = vst [vmem:[%s11236_s27 + $0xbe8] sm:$0xff] %v1976_v61 }
 0x18e   : > { %v1980_v63 = vld [vmem:[%s11231_s26 + $0x2fe0] sm:$0xff]  ;;  %1979 = vst [vmem:[%s11236_s27 + $0xbf0] sm:$0xff] %v1978_v62 }
 0x18f   : > { %v1982_v0 = vld [vmem:[%s11231_s26 + $0x3000] sm:$0xff]  ;;  %1981 = vst [vmem:[%s11236_s27 + $0xbf8] sm:$0xff] %v1980_v63 }
 0x190   : > { %v1984_v1 = vld [vmem:[%s11231_s26 + $0x3020] sm:$0xff]  ;;  %1983 = vst [vmem:[%s11236_s27 + $0xc00] sm:$0xff] %v1982_v0 }
 0x191   : > { %v1986_v2 = vld [vmem:[%s11231_s26 + $0x3040] sm:$0xff]  ;;  %1985 = vst [vmem:[%s11236_s27 + $0xc08] sm:$0xff] %v1984_v1 }
 0x192   : > { %v1988_v3 = vld [vmem:[%s11231_s26 + $0x3060] sm:$0xff]  ;;  %1987 = vst [vmem:[%s11236_s27 + $0xc10] sm:$0xff] %v1986_v2 }
 0x193   : > { %v1990_v4 = vld [vmem:[%s11231_s26 + $0x3080] sm:$0xff]  ;;  %1989 = vst [vmem:[%s11236_s27 + $0xc18] sm:$0xff] %v1988_v3 }
 0x194   : > { %v1992_v5 = vld [vmem:[%s11231_s26 + $0x30a0] sm:$0xff]  ;;  %1991 = vst [vmem:[%s11236_s27 + $0xc20] sm:$0xff] %v1990_v4 }
 0x195   : > { %v1994_v6 = vld [vmem:[%s11231_s26 + $0x30c0] sm:$0xff]  ;;  %1993 = vst [vmem:[%s11236_s27 + $0xc28] sm:$0xff] %v1992_v5 }
 0x196   : > { %v1996_v7 = vld [vmem:[%s11231_s26 + $0x30e0] sm:$0xff]  ;;  %1995 = vst [vmem:[%s11236_s27 + $0xc30] sm:$0xff] %v1994_v6 }
 0x197   : > { %v1998_v8 = vld [vmem:[%s11231_s26 + $0x3100] sm:$0xff]  ;;  %1997 = vst [vmem:[%s11236_s27 + $0xc38] sm:$0xff] %v1996_v7 }
 0x198   : > { %v2000_v9 = vld [vmem:[%s11231_s26 + $0x3120] sm:$0xff]  ;;  %1999 = vst [vmem:[%s11236_s27 + $0xc40] sm:$0xff] %v1998_v8 }
 0x199   : > { %v2002_v10 = vld [vmem:[%s11231_s26 + $0x3140] sm:$0xff]  ;;  %2001 = vst [vmem:[%s11236_s27 + $0xc48] sm:$0xff] %v2000_v9 }
 0x19a   : > { %v2004_v11 = vld [vmem:[%s11231_s26 + $0x3160] sm:$0xff]  ;;  %2003 = vst [vmem:[%s11236_s27 + $0xc50] sm:$0xff] %v2002_v10 }
 0x19b   : > { %v2006_v12 = vld [vmem:[%s11231_s26 + $0x3180] sm:$0xff]  ;;  %2005 = vst [vmem:[%s11236_s27 + $0xc58] sm:$0xff] %v2004_v11 }
 0x19c   : > { %v2008_v13 = vld [vmem:[%s11231_s26 + $0x31a0] sm:$0xff]  ;;  %2007 = vst [vmem:[%s11236_s27 + $0xc60] sm:$0xff] %v2006_v12 }
 0x19d   : > { %v2010_v14 = vld [vmem:[%s11231_s26 + $0x31c0] sm:$0xff]  ;;  %2009 = vst [vmem:[%s11236_s27 + $0xc68] sm:$0xff] %v2008_v13 }
 0x19e   : > { %v2012_v15 = vld [vmem:[%s11231_s26 + $0x31e0] sm:$0xff]  ;;  %2011 = vst [vmem:[%s11236_s27 + $0xc70] sm:$0xff] %v2010_v14 }
 0x19f   : > { %v2014_v16 = vld [vmem:[%s11231_s26 + $0x3200] sm:$0xff]  ;;  %2013 = vst [vmem:[%s11236_s27 + $0xc78] sm:$0xff] %v2012_v15 }
 0x1a0   : > { %v2016_v17 = vld [vmem:[%s11231_s26 + $0x3220] sm:$0xff]  ;;  %2015 = vst [vmem:[%s11236_s27 + $0xc80] sm:$0xff] %v2014_v16 }
 0x1a1   : > { %v2018_v18 = vld [vmem:[%s11231_s26 + $0x3240] sm:$0xff]  ;;  %2017 = vst [vmem:[%s11236_s27 + $0xc88] sm:$0xff] %v2016_v17 }
 0x1a2   : > { %v2020_v19 = vld [vmem:[%s11231_s26 + $0x3260] sm:$0xff]  ;;  %2019 = vst [vmem:[%s11236_s27 + $0xc90] sm:$0xff] %v2018_v18 }
 0x1a3   : > { %v2022_v20 = vld [vmem:[%s11231_s26 + $0x3280] sm:$0xff]  ;;  %2021 = vst [vmem:[%s11236_s27 + $0xc98] sm:$0xff] %v2020_v19 }
 0x1a4   : > { %v2024_v21 = vld [vmem:[%s11231_s26 + $0x32a0] sm:$0xff]  ;;  %2023 = vst [vmem:[%s11236_s27 + $0xca0] sm:$0xff] %v2022_v20 }
 0x1a5   : > { %v2026_v22 = vld [vmem:[%s11231_s26 + $0x32c0] sm:$0xff]  ;;  %2025 = vst [vmem:[%s11236_s27 + $0xca8] sm:$0xff] %v2024_v21 }
 0x1a6   : > { %v2028_v23 = vld [vmem:[%s11231_s26 + $0x32e0] sm:$0xff]  ;;  %2027 = vst [vmem:[%s11236_s27 + $0xcb0] sm:$0xff] %v2026_v22 }
 0x1a7   : > { %v2030_v24 = vld [vmem:[%s11231_s26 + $0x3300] sm:$0xff]  ;;  %2029 = vst [vmem:[%s11236_s27 + $0xcb8] sm:$0xff] %v2028_v23 }
 0x1a8   : > { %v2032_v25 = vld [vmem:[%s11231_s26 + $0x3320] sm:$0xff]  ;;  %2031 = vst [vmem:[%s11236_s27 + $0xcc0] sm:$0xff] %v2030_v24 }
 0x1a9   : > { %v2034_v26 = vld [vmem:[%s11231_s26 + $0x3340] sm:$0xff]  ;;  %2033 = vst [vmem:[%s11236_s27 + $0xcc8] sm:$0xff] %v2032_v25 }
 0x1aa   : > { %v2036_v27 = vld [vmem:[%s11231_s26 + $0x3360] sm:$0xff]  ;;  %2035 = vst [vmem:[%s11236_s27 + $0xcd0] sm:$0xff] %v2034_v26 }
 0x1ab   : > { %v2038_v28 = vld [vmem:[%s11231_s26 + $0x3380] sm:$0xff]  ;;  %2037 = vst [vmem:[%s11236_s27 + $0xcd8] sm:$0xff] %v2036_v27 }
 0x1ac   : > { %v2040_v29 = vld [vmem:[%s11231_s26 + $0x33a0] sm:$0xff]  ;;  %2039 = vst [vmem:[%s11236_s27 + $0xce0] sm:$0xff] %v2038_v28 }
 0x1ad   : > { %v2042_v30 = vld [vmem:[%s11231_s26 + $0x33c0] sm:$0xff]  ;;  %2041 = vst [vmem:[%s11236_s27 + $0xce8] sm:$0xff] %v2040_v29 }
 0x1ae   : > { %v2044_v31 = vld [vmem:[%s11231_s26 + $0x33e0] sm:$0xff]  ;;  %2043 = vst [vmem:[%s11236_s27 + $0xcf0] sm:$0xff] %v2042_v30 }
 0x1af   : > { %v2046_v32 = vld [vmem:[%s11231_s26 + $0x3400] sm:$0xff]  ;;  %2045 = vst [vmem:[%s11236_s27 + $0xcf8] sm:$0xff] %v2044_v31 }
 0x1b0   : > { %v2048_v33 = vld [vmem:[%s11231_s26 + $0x3420] sm:$0xff]  ;;  %2047 = vst [vmem:[%s11236_s27 + $0xd00] sm:$0xff] %v2046_v32 }
 0x1b1   : > { %v2050_v34 = vld [vmem:[%s11231_s26 + $0x3440] sm:$0xff]  ;;  %2049 = vst [vmem:[%s11236_s27 + $0xd08] sm:$0xff] %v2048_v33 }
 0x1b2   : > { %v2052_v35 = vld [vmem:[%s11231_s26 + $0x3460] sm:$0xff]  ;;  %2051 = vst [vmem:[%s11236_s27 + $0xd10] sm:$0xff] %v2050_v34 }
 0x1b3   : > { %v2054_v36 = vld [vmem:[%s11231_s26 + $0x3480] sm:$0xff]  ;;  %2053 = vst [vmem:[%s11236_s27 + $0xd18] sm:$0xff] %v2052_v35 }
 0x1b4   : > { %v2056_v37 = vld [vmem:[%s11231_s26 + $0x34a0] sm:$0xff]  ;;  %2055 = vst [vmem:[%s11236_s27 + $0xd20] sm:$0xff] %v2054_v36 }
 0x1b5   : > { %v2058_v38 = vld [vmem:[%s11231_s26 + $0x34c0] sm:$0xff]  ;;  %2057 = vst [vmem:[%s11236_s27 + $0xd28] sm:$0xff] %v2056_v37 }
 0x1b6   : > { %v2060_v39 = vld [vmem:[%s11231_s26 + $0x34e0] sm:$0xff]  ;;  %2059 = vst [vmem:[%s11236_s27 + $0xd30] sm:$0xff] %v2058_v38 }
 0x1b7   : > { %v2062_v40 = vld [vmem:[%s11231_s26 + $0x3500] sm:$0xff]  ;;  %2061 = vst [vmem:[%s11236_s27 + $0xd38] sm:$0xff] %v2060_v39 }
 0x1b8   : > { %v2064_v41 = vld [vmem:[%s11231_s26 + $0x3520] sm:$0xff]  ;;  %2063 = vst [vmem:[%s11236_s27 + $0xd40] sm:$0xff] %v2062_v40 }
 0x1b9   : > { %v2066_v42 = vld [vmem:[%s11231_s26 + $0x3540] sm:$0xff]  ;;  %2065 = vst [vmem:[%s11236_s27 + $0xd48] sm:$0xff] %v2064_v41 }
 0x1ba   : > { %v2068_v43 = vld [vmem:[%s11231_s26 + $0x3560] sm:$0xff]  ;;  %2067 = vst [vmem:[%s11236_s27 + $0xd50] sm:$0xff] %v2066_v42 }
 0x1bb   : > { %v2070_v44 = vld [vmem:[%s11231_s26 + $0x3580] sm:$0xff]  ;;  %2069 = vst [vmem:[%s11236_s27 + $0xd58] sm:$0xff] %v2068_v43 }
 0x1bc   : > { %v2072_v45 = vld [vmem:[%s11231_s26 + $0x35a0] sm:$0xff]  ;;  %2071 = vst [vmem:[%s11236_s27 + $0xd60] sm:$0xff] %v2070_v44 }
 0x1bd   : > { %v2074_v46 = vld [vmem:[%s11231_s26 + $0x35c0] sm:$0xff]  ;;  %2073 = vst [vmem:[%s11236_s27 + $0xd68] sm:$0xff] %v2072_v45 }
 0x1be   : > { %v2076_v47 = vld [vmem:[%s11231_s26 + $0x35e0] sm:$0xff]  ;;  %2075 = vst [vmem:[%s11236_s27 + $0xd70] sm:$0xff] %v2074_v46 }
 0x1bf   : > { %v2078_v48 = vld [vmem:[%s11231_s26 + $0x3600] sm:$0xff]  ;;  %2077 = vst [vmem:[%s11236_s27 + $0xd78] sm:$0xff] %v2076_v47 }
 0x1c0   : > { %v2080_v49 = vld [vmem:[%s11231_s26 + $0x3620] sm:$0xff]  ;;  %2079 = vst [vmem:[%s11236_s27 + $0xd80] sm:$0xff] %v2078_v48 }
 0x1c1   : > { %v2082_v50 = vld [vmem:[%s11231_s26 + $0x3640] sm:$0xff]  ;;  %2081 = vst [vmem:[%s11236_s27 + $0xd88] sm:$0xff] %v2080_v49 }
 0x1c2   : > { %v2084_v51 = vld [vmem:[%s11231_s26 + $0x3660] sm:$0xff]  ;;  %2083 = vst [vmem:[%s11236_s27 + $0xd90] sm:$0xff] %v2082_v50 }
 0x1c3   : > { %v2086_v52 = vld [vmem:[%s11231_s26 + $0x3680] sm:$0xff]  ;;  %2085 = vst [vmem:[%s11236_s27 + $0xd98] sm:$0xff] %v2084_v51 }
 0x1c4   : > { %v2088_v53 = vld [vmem:[%s11231_s26 + $0x36a0] sm:$0xff]  ;;  %2087 = vst [vmem:[%s11236_s27 + $0xda0] sm:$0xff] %v2086_v52 }
 0x1c5   : > { %v2090_v54 = vld [vmem:[%s11231_s26 + $0x36c0] sm:$0xff]  ;;  %2089 = vst [vmem:[%s11236_s27 + $0xda8] sm:$0xff] %v2088_v53 }
 0x1c6   : > { %v2092_v55 = vld [vmem:[%s11231_s26 + $0x36e0] sm:$0xff]  ;;  %2091 = vst [vmem:[%s11236_s27 + $0xdb0] sm:$0xff] %v2090_v54 }
 0x1c7   : > { %v2094_v56 = vld [vmem:[%s11231_s26 + $0x3700] sm:$0xff]  ;;  %2093 = vst [vmem:[%s11236_s27 + $0xdb8] sm:$0xff] %v2092_v55 }
 0x1c8   : > { %v2096_v57 = vld [vmem:[%s11231_s26 + $0x3720] sm:$0xff]  ;;  %2095 = vst [vmem:[%s11236_s27 + $0xdc0] sm:$0xff] %v2094_v56 }
 0x1c9   : > { %v2098_v58 = vld [vmem:[%s11231_s26 + $0x3740] sm:$0xff]  ;;  %2097 = vst [vmem:[%s11236_s27 + $0xdc8] sm:$0xff] %v2096_v57 }
 0x1ca   : > { %v2100_v59 = vld [vmem:[%s11231_s26 + $0x3760] sm:$0xff]  ;;  %2099 = vst [vmem:[%s11236_s27 + $0xdd0] sm:$0xff] %v2098_v58 }
 0x1cb   : > { %v2102_v60 = vld [vmem:[%s11231_s26 + $0x3780] sm:$0xff]  ;;  %2101 = vst [vmem:[%s11236_s27 + $0xdd8] sm:$0xff] %v2100_v59 }
 0x1cc   : > { %v2104_v61 = vld [vmem:[%s11231_s26 + $0x37a0] sm:$0xff]  ;;  %2103 = vst [vmem:[%s11236_s27 + $0xde0] sm:$0xff] %v2102_v60 }
 0x1cd   : > { %v2106_v62 = vld [vmem:[%s11231_s26 + $0x37c0] sm:$0xff]  ;;  %2105 = vst [vmem:[%s11236_s27 + $0xde8] sm:$0xff] %v2104_v61 }
 0x1ce   : > { %v2108_v63 = vld [vmem:[%s11231_s26 + $0x37e0] sm:$0xff]  ;;  %2107 = vst [vmem:[%s11236_s27 + $0xdf0] sm:$0xff] %v2106_v62 }
 0x1cf   : > { %v2110_v0 = vld [vmem:[%s11231_s26 + $0x3800] sm:$0xff]  ;;  %2109 = vst [vmem:[%s11236_s27 + $0xdf8] sm:$0xff] %v2108_v63 }
 0x1d0   : > { %v2112_v1 = vld [vmem:[%s11231_s26 + $0x3820] sm:$0xff]  ;;  %2111 = vst [vmem:[%s11236_s27 + $0xe00] sm:$0xff] %v2110_v0 }
 0x1d1   : > { %v2114_v2 = vld [vmem:[%s11231_s26 + $0x3840] sm:$0xff]  ;;  %2113 = vst [vmem:[%s11236_s27 + $0xe08] sm:$0xff] %v2112_v1 }
 0x1d2   : > { %v2116_v3 = vld [vmem:[%s11231_s26 + $0x3860] sm:$0xff]  ;;  %2115 = vst [vmem:[%s11236_s27 + $0xe10] sm:$0xff] %v2114_v2 }
 0x1d3   : > { %v2118_v4 = vld [vmem:[%s11231_s26 + $0x3880] sm:$0xff]  ;;  %2117 = vst [vmem:[%s11236_s27 + $0xe18] sm:$0xff] %v2116_v3 }
 0x1d4   : > { %v2120_v5 = vld [vmem:[%s11231_s26 + $0x38a0] sm:$0xff]  ;;  %2119 = vst [vmem:[%s11236_s27 + $0xe20] sm:$0xff] %v2118_v4 }
 0x1d5   : > { %v2122_v6 = vld [vmem:[%s11231_s26 + $0x38c0] sm:$0xff]  ;;  %2121 = vst [vmem:[%s11236_s27 + $0xe28] sm:$0xff] %v2120_v5 }
 0x1d6   : > { %v2124_v7 = vld [vmem:[%s11231_s26 + $0x38e0] sm:$0xff]  ;;  %2123 = vst [vmem:[%s11236_s27 + $0xe30] sm:$0xff] %v2122_v6 }
 0x1d7   : > { %v2126_v8 = vld [vmem:[%s11231_s26 + $0x3900] sm:$0xff]  ;;  %2125 = vst [vmem:[%s11236_s27 + $0xe38] sm:$0xff] %v2124_v7 }
 0x1d8   : > { %v2128_v9 = vld [vmem:[%s11231_s26 + $0x3920] sm:$0xff]  ;;  %2127 = vst [vmem:[%s11236_s27 + $0xe40] sm:$0xff] %v2126_v8 }
 0x1d9   : > { %v2130_v10 = vld [vmem:[%s11231_s26 + $0x3940] sm:$0xff]  ;;  %2129 = vst [vmem:[%s11236_s27 + $0xe48] sm:$0xff] %v2128_v9 }
 0x1da   : > { %v2132_v11 = vld [vmem:[%s11231_s26 + $0x3960] sm:$0xff]  ;;  %2131 = vst [vmem:[%s11236_s27 + $0xe50] sm:$0xff] %v2130_v10 }
 0x1db   : > { %v2134_v12 = vld [vmem:[%s11231_s26 + $0x3980] sm:$0xff]  ;;  %2133 = vst [vmem:[%s11236_s27 + $0xe58] sm:$0xff] %v2132_v11 }
 0x1dc   : > { %v2136_v13 = vld [vmem:[%s11231_s26 + $0x39a0] sm:$0xff]  ;;  %2135 = vst [vmem:[%s11236_s27 + $0xe60] sm:$0xff] %v2134_v12 }
 0x1dd   : > { %v2138_v14 = vld [vmem:[%s11231_s26 + $0x39c0] sm:$0xff]  ;;  %2137 = vst [vmem:[%s11236_s27 + $0xe68] sm:$0xff] %v2136_v13 }
 0x1de   : > { %v2140_v15 = vld [vmem:[%s11231_s26 + $0x39e0] sm:$0xff]  ;;  %2139 = vst [vmem:[%s11236_s27 + $0xe70] sm:$0xff] %v2138_v14 }
 0x1df   : > { %v2142_v16 = vld [vmem:[%s11231_s26 + $0x3a00] sm:$0xff]  ;;  %2141 = vst [vmem:[%s11236_s27 + $0xe78] sm:$0xff] %v2140_v15 }
 0x1e0   : > { %v2144_v17 = vld [vmem:[%s11231_s26 + $0x3a20] sm:$0xff]  ;;  %2143 = vst [vmem:[%s11236_s27 + $0xe80] sm:$0xff] %v2142_v16 }
 0x1e1   : > { %v2146_v18 = vld [vmem:[%s11231_s26 + $0x3a40] sm:$0xff]  ;;  %2145 = vst [vmem:[%s11236_s27 + $0xe88] sm:$0xff] %v2144_v17 }
 0x1e2   : > { %v2148_v19 = vld [vmem:[%s11231_s26 + $0x3a60] sm:$0xff]  ;;  %2147 = vst [vmem:[%s11236_s27 + $0xe90] sm:$0xff] %v2146_v18 }
 0x1e3   : > { %v2150_v20 = vld [vmem:[%s11231_s26 + $0x3a80] sm:$0xff]  ;;  %2149 = vst [vmem:[%s11236_s27 + $0xe98] sm:$0xff] %v2148_v19 }
 0x1e4   : > { %v2152_v21 = vld [vmem:[%s11231_s26 + $0x3aa0] sm:$0xff]  ;;  %2151 = vst [vmem:[%s11236_s27 + $0xea0] sm:$0xff] %v2150_v20 }
 0x1e5   : > { %v2154_v22 = vld [vmem:[%s11231_s26 + $0x3ac0] sm:$0xff]  ;;  %2153 = vst [vmem:[%s11236_s27 + $0xea8] sm:$0xff] %v2152_v21 }
 0x1e6   : > { %v2156_v23 = vld [vmem:[%s11231_s26 + $0x3ae0] sm:$0xff]  ;;  %2155 = vst [vmem:[%s11236_s27 + $0xeb0] sm:$0xff] %v2154_v22 }
 0x1e7   : > { %v2158_v24 = vld [vmem:[%s11231_s26 + $0x3b00] sm:$0xff]  ;;  %2157 = vst [vmem:[%s11236_s27 + $0xeb8] sm:$0xff] %v2156_v23 }
 0x1e8   : > { %v2160_v25 = vld [vmem:[%s11231_s26 + $0x3b20] sm:$0xff]  ;;  %2159 = vst [vmem:[%s11236_s27 + $0xec0] sm:$0xff] %v2158_v24 }
 0x1e9   : > { %v2162_v26 = vld [vmem:[%s11231_s26 + $0x3b40] sm:$0xff]  ;;  %2161 = vst [vmem:[%s11236_s27 + $0xec8] sm:$0xff] %v2160_v25 }
 0x1ea   : > { %v2164_v27 = vld [vmem:[%s11231_s26 + $0x3b60] sm:$0xff]  ;;  %2163 = vst [vmem:[%s11236_s27 + $0xed0] sm:$0xff] %v2162_v26 }
 0x1eb   : > { %v2166_v28 = vld [vmem:[%s11231_s26 + $0x3b80] sm:$0xff]  ;;  %2165 = vst [vmem:[%s11236_s27 + $0xed8] sm:$0xff] %v2164_v27 }
 0x1ec   : > { %v2168_v29 = vld [vmem:[%s11231_s26 + $0x3ba0] sm:$0xff]  ;;  %2167 = vst [vmem:[%s11236_s27 + $0xee0] sm:$0xff] %v2166_v28 }
 0x1ed   : > { %v2170_v30 = vld [vmem:[%s11231_s26 + $0x3bc0] sm:$0xff]  ;;  %2169 = vst [vmem:[%s11236_s27 + $0xee8] sm:$0xff] %v2168_v29 }
 0x1ee   : > { %v2172_v31 = vld [vmem:[%s11231_s26 + $0x3be0] sm:$0xff]  ;;  %2171 = vst [vmem:[%s11236_s27 + $0xef0] sm:$0xff] %v2170_v30 }
 0x1ef   : > { %v2174_v32 = vld [vmem:[%s11231_s26 + $0x3c00] sm:$0xff]  ;;  %2173 = vst [vmem:[%s11236_s27 + $0xef8] sm:$0xff] %v2172_v31 }
 0x1f0   : > { %v2176_v33 = vld [vmem:[%s11231_s26 + $0x3c20] sm:$0xff]  ;;  %2175 = vst [vmem:[%s11236_s27 + $0xf00] sm:$0xff] %v2174_v32 }
 0x1f1   : > { %v2178_v34 = vld [vmem:[%s11231_s26 + $0x3c40] sm:$0xff]  ;;  %2177 = vst [vmem:[%s11236_s27 + $0xf08] sm:$0xff] %v2176_v33 }
 0x1f2   : > { %v2180_v35 = vld [vmem:[%s11231_s26 + $0x3c60] sm:$0xff]  ;;  %2179 = vst [vmem:[%s11236_s27 + $0xf10] sm:$0xff] %v2178_v34 }
 0x1f3   : > { %v2182_v36 = vld [vmem:[%s11231_s26 + $0x3c80] sm:$0xff]  ;;  %2181 = vst [vmem:[%s11236_s27 + $0xf18] sm:$0xff] %v2180_v35 }
 0x1f4   : > { %v2184_v37 = vld [vmem:[%s11231_s26 + $0x3ca0] sm:$0xff]  ;;  %2183 = vst [vmem:[%s11236_s27 + $0xf20] sm:$0xff] %v2182_v36 }
 0x1f5   : > { %v2186_v38 = vld [vmem:[%s11231_s26 + $0x3cc0] sm:$0xff]  ;;  %2185 = vst [vmem:[%s11236_s27 + $0xf28] sm:$0xff] %v2184_v37 }
 0x1f6   : > { %v2188_v39 = vld [vmem:[%s11231_s26 + $0x3ce0] sm:$0xff]  ;;  %2187 = vst [vmem:[%s11236_s27 + $0xf30] sm:$0xff] %v2186_v38 }
 0x1f7   : > { %v2190_v40 = vld [vmem:[%s11231_s26 + $0x3d00] sm:$0xff]  ;;  %2189 = vst [vmem:[%s11236_s27 + $0xf38] sm:$0xff] %v2188_v39 }
 0x1f8   : > { %v2192_v41 = vld [vmem:[%s11231_s26 + $0x3d20] sm:$0xff]  ;;  %2191 = vst [vmem:[%s11236_s27 + $0xf40] sm:$0xff] %v2190_v40 }
 0x1f9   : > { %v2194_v42 = vld [vmem:[%s11231_s26 + $0x3d40] sm:$0xff]  ;;  %2193 = vst [vmem:[%s11236_s27 + $0xf48] sm:$0xff] %v2192_v41 }
 0x1fa   : > { %v2196_v43 = vld [vmem:[%s11231_s26 + $0x3d60] sm:$0xff]  ;;  %2195 = vst [vmem:[%s11236_s27 + $0xf50] sm:$0xff] %v2194_v42 }
 0x1fb   : > { %v2198_v44 = vld [vmem:[%s11231_s26 + $0x3d80] sm:$0xff]  ;;  %2197 = vst [vmem:[%s11236_s27 + $0xf58] sm:$0xff] %v2196_v43 }
 0x1fc   : > { %v2200_v45 = vld [vmem:[%s11231_s26 + $0x3da0] sm:$0xff]  ;;  %2199 = vst [vmem:[%s11236_s27 + $0xf60] sm:$0xff] %v2198_v44 }
 0x1fd   : > { %v2202_v46 = vld [vmem:[%s11231_s26 + $0x3dc0] sm:$0xff]  ;;  %2201 = vst [vmem:[%s11236_s27 + $0xf68] sm:$0xff] %v2200_v45 }
 0x1fe   : > { %v2204_v47 = vld [vmem:[%s11231_s26 + $0x3de0] sm:$0xff]  ;;  %2203 = vst [vmem:[%s11236_s27 + $0xf70] sm:$0xff] %v2202_v46 }
 0x1ff   : > { %v2206_v48 = vld [vmem:[%s11231_s26 + $0x3e00] sm:$0xff]  ;;  %2205 = vst [vmem:[%s11236_s27 + $0xf78] sm:$0xff] %v2204_v47 }
 0x200   : > { %v2208_v49 = vld [vmem:[%s11231_s26 + $0x3e20] sm:$0xff]  ;;  %2207 = vst [vmem:[%s11236_s27 + $0xf80] sm:$0xff] %v2206_v48 }
 0x201   : > { %v2210_v50 = vld [vmem:[%s11231_s26 + $0x3e40] sm:$0xff]  ;;  %2209 = vst [vmem:[%s11236_s27 + $0xf88] sm:$0xff] %v2208_v49 }
 0x202   : > { %v2212_v51 = vld [vmem:[%s11231_s26 + $0x3e60] sm:$0xff]  ;;  %2211 = vst [vmem:[%s11236_s27 + $0xf90] sm:$0xff] %v2210_v50 }
 0x203   : > { %v2214_v52 = vld [vmem:[%s11231_s26 + $0x3e80] sm:$0xff]  ;;  %2213 = vst [vmem:[%s11236_s27 + $0xf98] sm:$0xff] %v2212_v51 }
 0x204   : > { %v2216_v53 = vld [vmem:[%s11231_s26 + $0x3ea0] sm:$0xff]  ;;  %2215 = vst [vmem:[%s11236_s27 + $0xfa0] sm:$0xff] %v2214_v52 }
 0x205   : > { %v2218_v54 = vld [vmem:[%s11231_s26 + $0x3ec0] sm:$0xff]  ;;  %2217 = vst [vmem:[%s11236_s27 + $0xfa8] sm:$0xff] %v2216_v53 }
 0x206   : > { %v2220_v55 = vld [vmem:[%s11231_s26 + $0x3ee0] sm:$0xff]  ;;  %2219 = vst [vmem:[%s11236_s27 + $0xfb0] sm:$0xff] %v2218_v54 }
 0x207   : > { %v2222_v56 = vld [vmem:[%s11231_s26 + $0x3f00] sm:$0xff]  ;;  %2221 = vst [vmem:[%s11236_s27 + $0xfb8] sm:$0xff] %v2220_v55 }
 0x208   : > { %v2224_v57 = vld [vmem:[%s11231_s26 + $0x3f20] sm:$0xff]  ;;  %2223 = vst [vmem:[%s11236_s27 + $0xfc0] sm:$0xff] %v2222_v56 }
 0x209   : > { %v2226_v58 = vld [vmem:[%s11231_s26 + $0x3f40] sm:$0xff]  ;;  %2225 = vst [vmem:[%s11236_s27 + $0xfc8] sm:$0xff] %v2224_v57 }
 0x20a   : > { %v2228_v59 = vld [vmem:[%s11231_s26 + $0x3f60] sm:$0xff]  ;;  %2227 = vst [vmem:[%s11236_s27 + $0xfd0] sm:$0xff] %v2226_v58 }
 0x20b   : > { %v2230_v60 = vld [vmem:[%s11231_s26 + $0x3f80] sm:$0xff]  ;;  %2229 = vst [vmem:[%s11236_s27 + $0xfd8] sm:$0xff] %v2228_v59 }
 0x20c   : > { %v2232_v61 = vld [vmem:[%s11231_s26 + $0x3fa0] sm:$0xff]  ;;  %2231 = vst [vmem:[%s11236_s27 + $0xfe0] sm:$0xff] %v2230_v60 }
 0x20d   : > { %v2234_v62 = vld [vmem:[%s11231_s26 + $0x3fc0] sm:$0xff]  ;;  %2233 = vst [vmem:[%s11236_s27 + $0xfe8] sm:$0xff] %v2232_v61 }
 0x20e   : > { %v2236_v63 = vld [vmem:[%s11231_s26 + $0x3fe0] sm:$0xff]  ;;  %2235 = vst [vmem:[%s11236_s27 + $0xff0] sm:$0xff] %v2234_v62 }
 0x20f   : > { %2237 = vst [vmem:[%s11236_s27 + $0xff8] sm:$0xff] %v2236_v63 }
 0x210 PF: > { %p8512_p6 = scmp.ge.s32.totalorder %s11166_s16, 1  ;;  %p4333_p7 = scmp.lt.s32.totalorder %s11166_s16, 5 }
 0x212   : > { %p4334_p8 = pnand %p8512_p6, %p4333_p7 }
 0x213   : > { %s4340_s28 = sand.u32 (!%p4334_p8), 1, %s11150_s12   ;;  %s8514_s10 = sshll.u32 (!%p4334_p8), %s11158_s14, 1 }
 0x214   : > { %4337 = sbr.rel (%p4334_p8) target bundleno = 1197 (0x4ad), region = 80  ;;  %s8513_s29 = sshll.u32 (!%p4334_p8), %s4340_s28, 12 }
 0x215   : > { %s12262_s30 = scalar_lea.vmem (!%p4334_p8), [#allocation2], %s8513_s29  ;;  %p12679_p9 = scmp.lt.s32.totalorder (!%p4334_p8), %s8514_s10, 7 }
 0x219   : > { %v8574_v0 = vld [vmem:[%s12262_s30 + $0x70] sm:$0xf]  ;;  %v10582_v1 = vld [vmem:[%s12262_s30 + $0x74] sm:$0xf0]  ;;  %v8566_v11 = vld [vmem:[%s12262_s30 + $0x60] sm:$0xf] }
 0x21a   : > { %v8638_v2 = vld [vmem:[%s12262_s30 + $0xf0] sm:$0xf]  ;;  %v8575_v3 = vor.u32 %v10582_v1, %v8574_v0  ;;  %v10598_v4 = vld [vmem:[%s12262_s30 + $0xf4] sm:$0xf0]  ;;  %v10580_v13 = vld [vmem:[%s12262_s30 + $0x64] sm:$0xf0] }
 0x21b   : > { %v8702_v5 = vld [vmem:[%s12262_s30 + $0x170] sm:$0xf]  ;;  %v10614_v6 = vld [vmem:[%s12262_s30 + $0x174] sm:$0xf0]  ;;  %v8639_v7 = vor.u32 %v10598_v4, %v8638_v2  ;;  %v8630_v14 = vld [vmem:[%s12262_s30 + $0xe0] sm:$0xf]  ;;  %v8567_v16 = vor.u32 %v10580_v13, %v8566_v11 }
 0x21c   : > { %v8703_v8 = vor.u32 %v10614_v6, %v8702_v5  ;;  %v8766_v9 = vld [vmem:[%s12262_s30 + $0x1f0] sm:$0xf]  ;;  %v10630_v10 = vld [vmem:[%s12262_s30 + $0x1f4] sm:$0xf0]  ;;  %7547 = vmatpush.bf16.msra.mxu0 %v8575_v3  ;;  %v10596_v15 = vld [vmem:[%s12262_s30 + $0xe4] sm:$0xf0] }
 0x21d   : > { %v8767_v12 = vor.u32 %v10630_v10, %v8766_v9  ;;  %7560 = vmatpush.bf16.msra.mxu1 %v8639_v7  ;;  %v8631_v17 = vor.u32 %v10596_v15, %v8630_v14  ;;  %v8694_v18 = vld [vmem:[%s12262_s30 + $0x160] sm:$0xf]  ;;  %v10612_v19 = vld [vmem:[%s12262_s30 + $0x164] sm:$0xf0]  ;;  %v8558_v23 = vld [vmem:[%s12262_s30 + $0x50] sm:$0xf] }
 0x21e   : > { %7573 = vmatpush.bf16.msra.mxu2 %v8703_v8  ;;  %v8758_v20 = vld [vmem:[%s12262_s30 + $0x1e0] sm:$0xf]  ;;  %v8695_v21 = vor.u32 %v10612_v19, %v8694_v18  ;;  %v10628_v22 = vld [vmem:[%s12262_s30 + $0x1e4] sm:$0xf0]  ;;  %v10578_v24 = vld [vmem:[%s12262_s30 + $0x54] sm:$0xf0] }
 0x21f   : > { %7586 = vmatpush.bf16.msra.mxu3 %v8767_v12  ;;  %v8759_v25 = vor.u32 %v10628_v22, %v8758_v20  ;;  %v8622_v26 = vld [vmem:[%s12262_s30 + $0xd0] sm:$0xf]  ;;  %v10594_v27 = vld [vmem:[%s12262_s30 + $0xd4] sm:$0xf0]  ;;  %v8559_v29 = vor.u32 %v10578_v24, %v8558_v23  ;;  %v8550_v35 = vld [vmem:[%s12262_s30 + $0x40] sm:$0xf] }
 0x220   : > { %v8686_v28 = vld [vmem:[%s12262_s30 + $0x150] sm:$0xf]  ;;  %7548 = vmatpush.bf16.msra.mxu0 %v8567_v16  ;;  %v10610_v30 = vld [vmem:[%s12262_s30 + $0x154] sm:$0xf0]  ;;  %v8623_v33 = vor.u32 %v10594_v27, %v8622_v26  ;;  %v10576_v36 = vld [vmem:[%s12262_s30 + $0x44] sm:$0xf0] }
 0x221   : > { %v8750_v31 = vld [vmem:[%s12262_s30 + $0x1d0] sm:$0xf]  ;;  %v10626_v32 = vld [vmem:[%s12262_s30 + $0x1d4] sm:$0xf0]  ;;  %7561 = vmatpush.bf16.msra.mxu1 %v8631_v17  ;;  %v8687_v34 = vor.u32 %v10610_v30, %v8686_v28  ;;  %v8614_v37 = vld [vmem:[%s12262_s30 + $0xc0] sm:$0xf]  ;;  %v8551_v44 = vor.u32 %v10576_v36, %v8550_v35 }
 0x222   : > { %7574 = vmatpush.bf16.msra.mxu2 %v8695_v21  ;;  %v8751_v38 = vor.u32 %v10626_v32, %v8750_v31  ;;  %v10592_v39 = vld [vmem:[%s12262_s30 + $0xc4] sm:$0xf0]  ;;  %v8678_v40 = vld [vmem:[%s12262_s30 + $0x140] sm:$0xf]  ;;  %v8542_v47 = vld [vmem:[%s12262_s30 + $0x30] sm:$0xf] }
 0x223   : > { %7587 = vmatpush.bf16.msra.mxu3 %v8759_v25  ;;  %v10608_v41 = vld [vmem:[%s12262_s30 + $0x144] sm:$0xf0]  ;;  %v8742_v42 = vld [vmem:[%s12262_s30 + $0x1c0] sm:$0xf]  ;;  %v8615_v45 = vor.u32 %v10592_v39, %v8614_v37  ;;  %v10574_v48 = vld [vmem:[%s12262_s30 + $0x34] sm:$0xf0] }
 0x224   : > { %v10624_v43 = vld [vmem:[%s12262_s30 + $0x1c4] sm:$0xf0]  ;;  %7549 = vmatpush.bf16.msra.mxu0 %v8559_v29  ;;  %v8679_v46 = vor.u32 %v10608_v41, %v8678_v40  ;;  %v8606_v49 = vld [vmem:[%s12262_s30 + $0xb0] sm:$0xf]  ;;  %v10590_v51 = vld [vmem:[%s12262_s30 + $0xb4] sm:$0xf0]  ;;  %v8543_v56 = vor.u32 %v10574_v48, %v8542_v47 }
 0x225   : > { %7562 = vmatpush.bf16.msra.mxu1 %v8623_v33  ;;  %v8743_v50 = vor.u32 %v10624_v43, %v8742_v42  ;;  %v8670_v52 = vld [vmem:[%s12262_s30 + $0x130] sm:$0xf]  ;;  %v10606_v53 = vld [vmem:[%s12262_s30 + $0x134] sm:$0xf0]  ;;  %v8607_v57 = vor.u32 %v10590_v51, %v8606_v49  ;;  %v8534_v59 = vld [vmem:[%s12262_s30 + $0x20] sm:$0xf] }
 0x226   : > { %7575 = vmatpush.bf16.msra.mxu2 %v8687_v34  ;;  %v8734_v54 = vld [vmem:[%s12262_s30 + $0x1b0] sm:$0xf]  ;;  %v10622_v55 = vld [vmem:[%s12262_s30 + $0x1b4] sm:$0xf0]  ;;  %v8671_v58 = vor.u32 %v10606_v53, %v8670_v52  ;;  %v10572_v60 = vld [vmem:[%s12262_s30 + $0x24] sm:$0xf0] }
 0x227   : > { %7588 = vmatpush.bf16.msra.mxu3 %v8751_v38  ;;  %v8598_v61 = vld [vmem:[%s12262_s30 + $0xa0] sm:$0xf]  ;;  %v8735_v62 = vor.u32 %v10622_v55, %v8734_v54  ;;  %v10588_v63 = vld [vmem:[%s12262_s30 + $0xa4] sm:$0xf0]  ;;  %v8535_v4 = vor.u32 %v10572_v60, %v8534_v59  ;;  %v8526_v7 = vld [vmem:[%s12262_s30 + $0x10] sm:$0xf] }
 0x228   : > { %7550 = vmatpush.bf16.msra.mxu0 %v8551_v44  ;;  %v8662_v0 = vld [vmem:[%s12262_s30 + $0x120] sm:$0xf]  ;;  %v10604_v1 = vld [vmem:[%s12262_s30 + $0x124] sm:$0xf0]  ;;  %v8599_v5 = vor.u32 %v10588_v63, %v8598_v61  ;;  %v10570_v8 = vld [vmem:[%s12262_s30 + $0x14] sm:$0xf0] }
 0x229   : > { %7563 = vmatpush.bf16.msra.mxu1 %v8615_v45  ;;  %v8726_v2 = vld [vmem:[%s12262_s30 + $0x1a0] sm:$0xf]  ;;  %v10620_v3 = vld [vmem:[%s12262_s30 + $0x1a4] sm:$0xf0]  ;;  %v8663_v6 = vor.u32 %v10604_v1, %v8662_v0  ;;  %v8590_v9 = vld [vmem:[%s12262_s30 + $0x90] sm:$0xf]  ;;  %v8527_v16 = vor.u32 %v10570_v8, %v8526_v7 }
 0x22a   : > { %7576 = vmatpush.bf16.msra.mxu2 %v8679_v46  ;;  %v8727_v10 = vor.u32 %v10620_v3, %v8726_v2  ;;  %v10586_v11 = vld [vmem:[%s12262_s30 + $0x94] sm:$0xf0]  ;;  %v8654_v12 = vld [vmem:[%s12262_s30 + $0x110] sm:$0xf]  ;;  %v8518_v17 = vld [vmem:[%s12262_s30] sm:$0xf] }
 0x22b   : > { %7589 = vmatpush.bf16.msra.mxu3 %v8743_v50  ;;  %v10602_v13 = vld [vmem:[%s12262_s30 + $0x114] sm:$0xf0]  ;;  %v8718_v14 = vld [vmem:[%s12262_s30 + $0x190] sm:$0xf]  ;;  %v10568_v18 = vld [vmem:[%s12262_s30 + $0x4] sm:$0xf0]  ;;  %v8591_v19 = vor.u32 %v10586_v11, %v8590_v9 }
 0x22c   : > { %7551 = vmatpush.bf16.msra.mxu0 %v8543_v56  ;;  %v10618_v15 = vld [vmem:[%s12262_s30 + $0x194] sm:$0xf0]  ;;  %v8655_v20 = vor.u32 %v10602_v13, %v8654_v12  ;;  %v8582_v21 = vld [vmem:[%s12262_s30 + $0x80] sm:$0xf]  ;;  %v10584_v22 = vld [vmem:[%s12262_s30 + $0x84] sm:$0xf0]  ;;  %v8519_v31 = vor.u32 %v10568_v18, %v8518_v17 }
 0x22d   : > { %7564 = vmatpush.bf16.msra.mxu1 %v8607_v57  ;;  %v8646_v23 = vld [vmem:[%s12262_s30 + $0x100] sm:$0xf]  ;;  %v8719_v24 = vor.u32 %v10618_v15, %v8718_v14  ;;  %v10600_v25 = vld [vmem:[%s12262_s30 + $0x104] sm:$0xf0]  ;;  %v8830_v28 = vld [vmem:[%s12262_s30 + $0x270] sm:$0xf]  ;;  %v8583_v35 = vor.u32 %v10584_v22, %v8582_v21 }
 0x22e   : > { %7577 = vmatpush.bf16.msra.mxu2 %v8671_v58  ;;  %v8710_v26 = vld [vmem:[%s12262_s30 + $0x180] sm:$0xf]  ;;  %v10616_v27 = vld [vmem:[%s12262_s30 + $0x184] sm:$0xf0]  ;;  %v10646_v29 = vld [vmem:[%s12262_s30 + $0x274] sm:$0xf0]  ;;  %v8647_v36 = vor.u32 %v10600_v25, %v8646_v23 }
 0x22f   : > { %7590 = vmatpush.bf16.msra.mxu3 %v8735_v62  ;;  %v8894_v30 = vld [vmem:[%s12262_s30 + $0x2f0] sm:$0xf]  ;;  %v10662_v32 = vld [vmem:[%s12262_s30 + $0x2f4] sm:$0xf0]  ;;  %v8711_v39 = vor.u32 %v10616_v27, %v8710_v26  ;;  %v8831_v40 = vor.u32 %v10646_v29, %v8830_v28  ;;  %v8822_v43 = vld [vmem:[%s12262_s30 + $0x260] sm:$0xf] }
 0x230   : > { %7552 = vmatpush.bf16.msra.mxu0 %v8535_v4  ;;  %v8958_v33 = vld [vmem:[%s12262_s30 + $0x370] sm:$0xf]  ;;  %v10678_v34 = vld [vmem:[%s12262_s30 + $0x374] sm:$0xf0]  ;;  %v8895_v41 = vor.u32 %v10662_v32, %v8894_v30  ;;  %v10644_v44 = vld [vmem:[%s12262_s30 + $0x264] sm:$0xf0] }
 0x231   : > { %7565 = vmatpush.bf16.msra.mxu1 %v8599_v5  ;;  %v9022_v37 = vld [vmem:[%s12262_s30 + $0x3f0] sm:$0xf]  ;;  %v10694_v38 = vld [vmem:[%s12262_s30 + $0x3f4] sm:$0xf0]  ;;  %v8959_v42 = vor.u32 %v10678_v34, %v8958_v33  ;;  %v8886_v45 = vld [vmem:[%s12262_s30 + $0x2e0] sm:$0xf]  ;;  %v8823_v52 = vor.u32 %v10644_v44, %v8822_v43 }
 0x232   : > { %7578 = vmatpush.bf16.msra.mxu2 %v8663_v6  ;;  %v9023_v46 = vor.u32 %v10694_v38, %v9022_v37  ;;  %v10660_v47 = vld [vmem:[%s12262_s30 + $0x2e4] sm:$0xf0]  ;;  %v8950_v48 = vld [vmem:[%s12262_s30 + $0x360] sm:$0xf]  ;;  %v8814_v55 = vld [vmem:[%s12262_s30 + $0x250] sm:$0xf] }
 0x233   : > { %7591 = vmatpush.bf16.msra.mxu3 %v8727_v10  ;;  %v10676_v49 = vld [vmem:[%s12262_s30 + $0x364] sm:$0xf0]  ;;  %v9014_v50 = vld [vmem:[%s12262_s30 + $0x3e0] sm:$0xf]  ;;  %v8887_v53 = vor.u32 %v10660_v47, %v8886_v45  ;;  %v10642_v56 = vld [vmem:[%s12262_s30 + $0x254] sm:$0xf0] }
 0x234   : > { %7553 = vmatpush.bf16.msra.mxu0 %v8527_v16  ;;  %v10692_v51 = vld [vmem:[%s12262_s30 + $0x3e4] sm:$0xf0]  ;;  %v8951_v54 = vor.u32 %v10676_v49, %v8950_v48  ;;  %v8878_v57 = vld [vmem:[%s12262_s30 + $0x2d0] sm:$0xf]  ;;  %v10658_v59 = vld [vmem:[%s12262_s30 + $0x2d4] sm:$0xf0]  ;;  %v8815_v0 = vor.u32 %v10642_v56, %v8814_v55 }
 0x235   : > { %7566 = vmatpush.bf16.msra.mxu1 %v8591_v19  ;;  %v9015_v58 = vor.u32 %v10692_v51, %v9014_v50  ;;  %v8942_v60 = vld [vmem:[%s12262_s30 + $0x350] sm:$0xf]  ;;  %v10674_v61 = vld [vmem:[%s12262_s30 + $0x354] sm:$0xf0]  ;;  %v8806_v1 = vld [vmem:[%s12262_s30 + $0x240] sm:$0xf]  ;;  %v8879_v3 = vor.u32 %v10658_v59, %v8878_v57 }
 0x236   : > { %7579 = vmatpush.bf16.msra.mxu2 %v8655_v20  ;;  %v9006_v62 = vld [vmem:[%s12262_s30 + $0x3d0] sm:$0xf]  ;;  %v10690_v63 = vld [vmem:[%s12262_s30 + $0x3d4] sm:$0xf0]  ;;  %v8943_v4 = vor.u32 %v10674_v61, %v8942_v60  ;;  %v10640_v5 = vld [vmem:[%s12262_s30 + $0x244] sm:$0xf0] }
 0x237   : > { %7592 = vmatpush.bf16.msra.mxu3 %v8719_v24  ;;  %v4393_v2 = vld [vmem:[%s13463_s0] sm:$0xff]  ;;  %v8870_v6 = vld [vmem:[%s12262_s30 + $0x2c0] sm:$0xf]  ;;  %v9007_v7 = vor.u32 %v10690_v63, %v9006_v62  ;;  %v10656_v8 = vld [vmem:[%s12262_s30 + $0x2c4] sm:$0xf0]  ;;  %v8807_v13 = vor.u32 %v10640_v5, %v8806_v1  ;;  %s13475_s10 = smov (!%p12679_p9, %s8514_s10), 7 }
 0x238   : > { %7554 = vmatpush.bf16.msra.mxu0 %v8519_v31  ;;  %4916 = vst [vmem:[#allocation1] ss:$9 sm:$0xff] %v4393_v2  ;;  %v8934_v9 = vld [vmem:[%s12262_s30 + $0x340] sm:$0xf]  ;;  %v10672_v10 = vld [vmem:[%s12262_s30 + $0x344] sm:$0xf0]  ;;  %v8871_v14 = vor.u32 %v10656_v8, %v8870_v6  ;;  %s12710_s18 = scalar_lea.vmem %s13465_s2, %s13475_s10  ;;  %s4391_s24 = scalar_lea.vmem %s13466_s3, %s13475_s10 }
 0x239   : > { %7567 = vmatpush.bf16.msra.mxu1 %v8583_v35  ;;  %v8998_v11 = vld [vmem:[%s12262_s30 + $0x3c0] sm:$0xf]  ;;  %v10688_v12 = vld [vmem:[%s12262_s30 + $0x3c4] sm:$0xf0]  ;;  %v8935_v15 = vor.u32 %v10672_v10, %v8934_v9  ;;  %v8798_v16 = vld [vmem:[%s12262_s30 + $0x230] sm:$0xf] }
 0x23a   : > { %7580 = vmatpush.bf16.msra.mxu2 %v8647_v36  ;;  %v10638_v17 = vld [vmem:[%s12262_s30 + $0x234] sm:$0xf0]  ;;  %v8862_v18 = vld [vmem:[%s12262_s30 + $0x2b0] sm:$0xf]  ;;  %v8999_v19 = vor.u32 %v10688_v12, %v8998_v11  ;;  %v8790_v25 = vld [vmem:[%s12262_s30 + $0x220] sm:$0xf] }
 0x23b   : > { %7593 = vmatpush.bf16.msra.mxu3 %v8711_v39  ;;  %v10654_v20 = vld [vmem:[%s12262_s30 + $0x2b4] sm:$0xf0]  ;;  %v8926_v21 = vld [vmem:[%s12262_s30 + $0x330] sm:$0xf]  ;;  %v8799_v26 = vor.u32 %v10638_v17, %v8798_v16  ;;  %v10636_v32 = vld [vmem:[%s12262_s30 + $0x224] sm:$0xf0] }
 0x23c   : > { %7599 = vmatpush.bf16.msrb.mxu0 %v8831_v40  ;;  %v10670_v22 = vld [vmem:[%s12262_s30 + $0x334] sm:$0xf0]  ;;  %v8990_v23 = vld [vmem:[%s12262_s30 + $0x3b0] sm:$0xf]  ;;  %v8863_v30 = vor.u32 %v10654_v20, %v8862_v18  ;;  %v8854_v33 = vld [vmem:[%s12262_s30 + $0x2a0] sm:$0xf] }
 0x23d   : > { %7612 = vmatpush.bf16.msrb.mxu1 %v8895_v41  ;;  %v10686_v24 = vld [vmem:[%s12262_s30 + $0x3b4] sm:$0xf0]  ;;  %v8927_v31 = vor.u32 %v10670_v22, %v8926_v21  ;;  %v10652_v36 = vld [vmem:[%s12262_s30 + $0x2a4] sm:$0xf0]  ;;  %v8918_v37 = vld [vmem:[%s12262_s30 + $0x320] sm:$0xf]  ;;  %v8791_v41 = vor.u32 %v10636_v32, %v8790_v25 }
 0x23e   : > { %7625 = vmatpush.bf16.msrb.mxu2 %v8959_v42  ;;  %v8991_v35 = vor.u32 %v10686_v24, %v8990_v23  ;;  %v10668_v38 = vld [vmem:[%s12262_s30 + $0x324] sm:$0xf0]  ;;  %v8982_v39 = vld [vmem:[%s12262_s30 + $0x3a0] sm:$0xf]  ;;  %v8782_v42 = vld [vmem:[%s12262_s30 + $0x210] sm:$0xf]  ;;  %v8855_v43 = vor.u32 %v10652_v36, %v8854_v33 }
 0x23f   : > { %7638 = vmatpush.bf16.msrb.mxu3 %v9023_v46  ;;  %v12372_v27 = vld [vmem:[#allocation1 + $0x12] sm:$0xff]  ;;  %v12374_v28 = vld [vmem:[#allocation1] sm:$0xff]  ;;  %v12380_v34 = vld [vmem:[#allocation1 + $0x9] sm:$0xff]  ;;  %v8919_v44 = vor.u32 %v10668_v38, %v8918_v37  ;;  %vm8384_vm0 = vcmask 1040384  }
 0x240   : > { %7600 = vmatpush.bf16.msrb.mxu0 %v8823_v52  ;;  %v12376_v29 = vld [vmem:[#allocation1 + $0x1b] sm:$0xff]  ;;  %7581 = vmatmul.bf16.vlgmr.msra.gmra.mxu2 %v12372_v27  ;;  %v10684_v40 = vld [vmem:[%s12262_s30 + $0x3a4] sm:$0xf0]  ;;  %v8838_v56 = vld [vmem:[%s12262_s30 + $0x280] sm:$0xf] }
 0x241   : > { %7613 = vmatpush.bf16.msrb.mxu1 %v8887_v53  ;;  %7555 = vmatmul.bf16.vlgmr.msra.gmra.mxu0 %v12374_v28  ;;  %v10634_v45 = vld [vmem:[%s12262_s30 + $0x214] sm:$0xf0]  ;;  %v8846_v46 = vld [vmem:[%s12262_s30 + $0x290] sm:$0xf]  ;;  %v8983_v48 = vor.u32 %v10684_v40, %v8982_v39  ;;  %v8774_v53 = vld [vmem:[%s12262_s30 + $0x200] sm:$0xf] }
 0x242   : > { %7626 = vmatpush.bf16.msrb.mxu2 %v8951_v54  ;;  %7594 = vmatmul.bf16.vlgmr.msra.gmra.mxu3 %v12376_v29  ;;  %v10650_v47 = vld [vmem:[%s12262_s30 + $0x294] sm:$0xf0]  ;;  %v8910_v49 = vld [vmem:[%s12262_s30 + $0x310] sm:$0xf]  ;;  %v10632_v54 = vld [vmem:[%s12262_s30 + $0x204] sm:$0xf0]  ;;  %v8783_v55 = vor.u32 %v10634_v45, %v8782_v42 }
 0x243   : > { %7639 = vmatpush.bf16.msrb.mxu3 %v9015_v58  ;;  %7568 = vmatmul.bf16.vlgmr.msra.gmra.mxu1 %v12380_v34  ;;  %v10666_v50 = vld [vmem:[%s12262_s30 + $0x314] sm:$0xf0]  ;;  %v8974_v51 = vld [vmem:[%s12262_s30 + $0x390] sm:$0xf]  ;;  %v10648_v57 = vld [vmem:[%s12262_s30 + $0x284] sm:$0xf0]  ;;  %v8847_v62 = vor.u32 %v10650_v47, %v8846_v46  ;;  %v8775_v9 = vor.u32 %v10632_v54, %v8774_v53 }
 0x244   : > { %7601 = vmatpush.bf16.msrb.mxu0 %v8815_v0  ;;  %v10682_v52 = vld [vmem:[%s12262_s30 + $0x394] sm:$0xf0]  ;;  %v8902_v58 = vld [vmem:[%s12262_s30 + $0x300] sm:$0xf]  ;;  %v10664_v59 = vld [vmem:[%s12262_s30 + $0x304] sm:$0xf0]  ;;  %v8911_v63 = vor.u32 %v10666_v50, %v8910_v49 }
 0x245   : > { %7614 = vmatpush.bf16.msrb.mxu1 %v8879_v3  ;;  %v12405_v60 = vld [vmem:[#allocation1 + $0x36] sm:$0xff]  ;;  %v4394_v61 = vld [vmem:[%s13463_s0 + $0x8] sm:$0xff]  ;;  %v12412_v1 = vld [vmem:[#allocation1 + $0x3f] sm:$0xff]  ;;  %v8975_v3 = vor.u32 %v10682_v52, %v8974_v51 }
 0x246   : > { %7627 = vmatpush.bf16.msrb.mxu2 %v8943_v4  ;;  %v12410_v0 = vld [vmem:[#allocation1 + $0x24] sm:$0xff]  ;;  %v12414_v2 = vld [vmem:[#allocation1 + $0x2d] sm:$0xff]  ;;  %v9086_v6 = vld [vmem:[%s12262_s30 + $0x470] sm:$0xf] }
 0x247   : > { %7640 = vmatpush.bf16.msrb.mxu3 %v9007_v7  ;;  %v8966_v4 = vld [vmem:[%s12262_s30 + $0x380] sm:$0xf]  ;;  %v10680_v5 = vld [vmem:[%s12262_s30 + $0x384] sm:$0xf0]  ;;  %4926 = vst [vmem:[#allocation1] ss:$9 sm:$0xff] %v4394_v61 }
 0x248   : > { %7602 = vmatpush.bf16.msrb.mxu0 %v8807_v13  ;;  %v10710_v7 = vld [vmem:[%s12262_s30 + $0x474] sm:$0xf0]  ;;  %v9150_v8 = vld [vmem:[%s12262_s30 + $0x4f0] sm:$0xf]  ;;  %v8839_v13 = vor.u32 %v10648_v57, %v8838_v56  ;;  %v8967_v17 = vor.u32 %v10680_v5, %v8966_v4  ;;  %v9078_v21 = vld [vmem:[%s12262_s30 + $0x460] sm:$0xf] }
 0x249   : > { %7615 = vmatpush.bf16.msrb.mxu1 %v8871_v14  ;;  %v10726_v10 = vld [vmem:[%s12262_s30 + $0x4f4] sm:$0xf0]  ;;  %v9214_v11 = vld [vmem:[%s12262_s30 + $0x570] sm:$0xf]  ;;  %v8903_v14 = vor.u32 %v10664_v59, %v8902_v58  ;;  %v9087_v18 = vor.u32 %v10710_v7, %v9086_v6  ;;  %v10708_v22 = vld [vmem:[%s12262_s30 + $0x464] sm:$0xf0] }
 0x24a   : > { %7628 = vmatpush.bf16.msrb.mxu2 %v8935_v15  ;;  %v10742_v12 = vld [vmem:[%s12262_s30 + $0x574] sm:$0xf0]  ;;  %v9278_v15 = vld [vmem:[%s12262_s30 + $0x5f0] sm:$0xf]  ;;  %v9142_v23 = vld [vmem:[%s12262_s30 + $0x4e0] sm:$0xf]  ;;  %v9079_v33 = vor.u32 %v10708_v22, %v9078_v21 }
 0x24b   : > { %7641 = vmatpush.bf16.msrb.mxu3 %v8999_v19  ;;  %v10758_v16 = vld [vmem:[%s12262_s30 + $0x5f4] sm:$0xf0]  ;;  %v9151_v19 = vor.u32 %v10726_v10, %v9150_v8  ;;  %v9215_v20 = vor.u32 %v10742_v12, %v9214_v11  ;;  %v10724_v25 = vld [vmem:[%s12262_s30 + $0x4e4] sm:$0xf0]  ;;  %v9070_v37 = vld [vmem:[%s12262_s30 + $0x450] sm:$0xf] }
 0x24c   : > { %7603 = vmatpush.bf16.msrb.mxu0 %v8799_v26  ;;  %v9279_v24 = vor.u32 %v10758_v16, %v9278_v15  ;;  %v9206_v26 = vld [vmem:[%s12262_s30 + $0x560] sm:$0xf]  ;;  %v10756_v32 = vld [vmem:[%s12262_s30 + $0x5e4] sm:$0xf0]  ;;  %v10706_v38 = vld [vmem:[%s12262_s30 + $0x454] sm:$0xf0] }
 0x24d   : > { %7616 = vmatpush.bf16.msrb.mxu1 %v8863_v30  ;;  %v10740_v30 = vld [vmem:[%s12262_s30 + $0x564] sm:$0xf0]  ;;  %v9134_v39 = vld [vmem:[%s12262_s30 + $0x4d0] sm:$0xf]  ;;  %v10754_v45 = vld [vmem:[%s12262_s30 + $0x5d4] sm:$0xf0]  ;;  %v9071_v46 = vor.u32 %v10706_v38, %v9070_v37 }
 0x24e   : > { %7629 = vmatpush.bf16.msrb.mxu2 %v8927_v31  ;;  %v9270_v31 = vld [vmem:[%s12262_s30 + $0x5e0] sm:$0xf]  ;;  %v9207_v36 = vor.u32 %v10740_v30, %v9206_v26  ;;  %v9198_v42 = vld [vmem:[%s12262_s30 + $0x550] sm:$0xf]  ;;  %v10704_v50 = vld [vmem:[%s12262_s30 + $0x444] sm:$0xf0] }
 0x24f   : > { %7642 = vmatpush.bf16.msrb.mxu3 %v8991_v35  ;;  %v9143_v35 = vor.u32 %v10724_v25, %v9142_v23  ;;  %v9271_v40 = vor.u32 %v10756_v32, %v9270_v31  ;;  %v9062_v49 = vld [vmem:[%s12262_s30 + $0x440] sm:$0xf]  ;;  %v10720_v53 = vld [vmem:[%s12262_s30 + $0x4c4] sm:$0xf0]  ;;  %v10718_v5 = vld [vmem:[%s12262_s30 + $0x4b4] sm:$0xf0] }
 0x250   : > { %7604 = vmatpush.bf16.msrb.mxu0 %v8791_v41  ;;  %v10722_v41 = vld [vmem:[%s12262_s30 + $0x4d4] sm:$0xf0]  ;;  %v9126_v51 = vld [vmem:[%s12262_s30 + $0x4c0] sm:$0xf]  ;;  %v10752_v57 = vld [vmem:[%s12262_s30 + $0x5c4] sm:$0xf0]  ;;  %v9063_v58 = vor.u32 %v10704_v50, %v9062_v49 }
 0x251   : > { %7617 = vmatpush.bf16.msrb.mxu1 %v8855_v43  ;;  %v10738_v43 = vld [vmem:[%s12262_s30 + $0x554] sm:$0xf0]  ;;  %v9135_v47 = vor.u32 %v10722_v41, %v9134_v39  ;;  %v9190_v54 = vld [vmem:[%s12262_s30 + $0x540] sm:$0xf]  ;;  %v9127_v59 = vor.u32 %v10720_v53, %v9126_v51  ;;  %v9182_v6 = vld [vmem:[%s12262_s30 + $0x530] sm:$0xf] }
 0x252   : > { %7630 = vmatpush.bf16.msrb.mxu2 %v8919_v44  ;;  %v9262_v44 = vld [vmem:[%s12262_s30 + $0x5d0] sm:$0xf]  ;;  %v9254_v56 = vld [vmem:[%s12262_s30 + $0x5c0] sm:$0xf]  ;;  %v10734_v7 = vld [vmem:[%s12262_s30 + $0x534] sm:$0xf0] }
 0x253   : > { %7643 = vmatpush.bf16.msrb.mxu3 %v8983_v48  ;;  %v9199_v48 = vor.u32 %v10738_v43, %v9198_v42  ;;  %v9263_v52 = vor.u32 %v10754_v45, %v9262_v44  ;;  %v9255_v4 = vor.u32 %v10752_v57, %v9254_v56  ;;  %v9246_v8 = vld [vmem:[%s12262_s30 + $0x5b0] sm:$0xf]  ;;  %v9183_v12 = vor.u32 %v10734_v7, %v9182_v6  ;;  %v9110_v15 = vld [vmem:[%s12262_s30 + $0x4a0] sm:$0xf]  ;;  %v10748_v21 = vld [vmem:[%s12262_s30 + $0x5a4] sm:$0xf0] }
 0x254   : > { %7605 = vmatpush.bf16.msrb.mxu0 %v8783_v55  ;;  %v10736_v55 = vld [vmem:[%s12262_s30 + $0x544] sm:$0xf0]  ;;  %v9038_v25 = vld [vmem:[%s12262_s30 + $0x410] sm:$0xf]  ;;  %v10698_v26 = vld [vmem:[%s12262_s30 + $0x414] sm:$0xf0] }
 0x255   : > { %7618 = vmatpush.bf16.msrb.mxu1 %v8847_v62  ;;  %v9191_v61 = vor.u32 %v10736_v55, %v9190_v54  ;;  %v9054_v62 = vld [vmem:[%s12262_s30 + $0x430] sm:$0xf]  ;;  %v10714_v32 = vld [vmem:[%s12262_s30 + $0x494] sm:$0xf0]  ;;  %v9039_v38 = vor.u32 %v10698_v26, %v9038_v25  ;;  %v9030_v39 = vld [vmem:[%s12262_s30 + $0x400] sm:$0xf] }
 0x256   : > { %7631 = vmatpush.bf16.msrb.mxu2 %v8911_v63  ;;  %v10702_v63 = vld [vmem:[%s12262_s30 + $0x434] sm:$0xf0]  ;;  %v9102_v30 = vld [vmem:[%s12262_s30 + $0x490] sm:$0xf]  ;;  %v9094_v43 = vld [vmem:[%s12262_s30 + $0x480] sm:$0xf] }
 0x257   : > { %7644 = vmatpush.bf16.msrb.mxu3 %v8975_v3  ;;  %v9118_v3 = vld [vmem:[%s12262_s30 + $0x4b0] sm:$0xf]  ;;  %v9055_v10 = vor.u32 %v10702_v63, %v9054_v62  ;;  %v10746_v37 = vld [vmem:[%s12262_s30 + $0x594] sm:$0xf0]  ;;  %v9103_v41 = vor.u32 %v10714_v32, %v9102_v30  ;;  %v10712_v44 = vld [vmem:[%s12262_s30 + $0x484] sm:$0xf0] }
 0x258   : > { %7606 = vmatpush.bf16.msrb.mxu0 %v8775_v9  ;;  %v10750_v9 = vld [vmem:[%s12262_s30 + $0x5b4] sm:$0xf0]  ;;  %v9119_v11 = vor.u32 %v10718_v5, %v9118_v3  ;;  %v9158_v45 = vld [vmem:[%s12262_s30 + $0x500] sm:$0xf]  ;;  %v10744_v49 = vld [vmem:[%s12262_s30 + $0x584] sm:$0xf0]  ;;  %v9095_v57 = vor.u32 %v10712_v44, %v9094_v43 }
 0x259   : > { %7619 = vmatpush.bf16.msrb.mxu1 %v8839_v13  ;;  %v9046_v13 = vld [vmem:[%s12262_s30 + $0x420] sm:$0xf]  ;;  %v9247_v16 = vor.u32 %v10750_v9, %v9246_v8  ;;  %v9342_v50 = vld [vmem:[%s12262_s30 + $0x670] sm:$0xf]  ;;  %v10774_v51 = vld [vmem:[%s12262_s30 + $0x674] sm:$0xf0] }
 0x25a   : > { %7632 = vmatpush.bf16.msrb.mxu2 %v8903_v14  ;;  %v10700_v14 = vld [vmem:[%s12262_s30 + $0x424] sm:$0xf0]  ;;  %v10790_v54 = vld [vmem:[%s12262_s30 + $0x6f4] sm:$0xf0]  ;;  %v9470_v55 = vld [vmem:[%s12262_s30 + $0x770] sm:$0xf]  ;;  %v9343_v63 = vor.u32 %v10774_v51, %v9342_v50 }
 0x25b   : > { %7645 = vmatpush.bf16.msrb.mxu3 %v8967_v17  ;;  %7607 = vmatmul.bf16.vlgmr.msrb.gmra.mxu0 %v12410_v0  ;;  %v10716_v17 = vld [vmem:[%s12262_s30 + $0x4a4] sm:$0xf0]  ;;  %v9047_v22 = vor.u32 %v10700_v14, %v9046_v13  ;;  %v10806_v56 = vld [vmem:[%s12262_s30 + $0x774] sm:$0xf0]  ;;  %v9334_v5 = vld [vmem:[%s12262_s30 + $0x660] sm:$0xf] }
 0x25c   : > { %7651 = vmatpush.bf16.msra.mxu0 %v9087_v18  ;;  %7620 = vmatmul.bf16.vlgmr.msrb.gmra.mxu1 %v12414_v2  ;;  %v9174_v18 = vld [vmem:[%s12262_s30 + $0x520] sm:$0xf]  ;;  %v9111_v23 = vor.u32 %v10716_v17, %v9110_v15  ;;  %v10772_v6 = vld [vmem:[%s12262_s30 + $0x664] sm:$0xf0]  ;;  %v12508_v17 = vld [vmem:[#allocation1 + $0x1b] sm:$0xff] }
 0x25d   : > { %7664 = vmatpush.bf16.msra.mxu1 %v9151_v19  ;;  %7633 = vmatmul.bf16.vlgmr.msrb.gmra.mxu2 %v12405_v60  ;;  %v10732_v19 = vld [vmem:[%s12262_s30 + $0x524] sm:$0xf0]  ;;  %v9398_v7 = vld [vmem:[%s12262_s30 + $0x6e0] sm:$0xf]  ;;  %v10786_v25 = vld [vmem:[%s12262_s30 + $0x6d4] sm:$0xf0] }
 0x25e   : > { %7677 = vmatpush.bf16.msra.mxu2 %v9215_v20  ;;  %7646 = vmatmul.bf16.vlgmr.msrb.gmra.mxu3 %v12412_v1  ;;  %v9238_v20 = vld [vmem:[%s12262_s30 + $0x5a0] sm:$0xf]  ;;  %v10788_v9 = vld [vmem:[%s12262_s30 + $0x6e4] sm:$0xf0]  ;;  %v9454_v26 = vld [vmem:[%s12262_s30 + $0x750] sm:$0xf] }
 0x25f   : > { %7690 = vmatpush.bf16.msra.mxu3 %v9279_v24  ;;  %v9175_v24 = vor.u32 %v10732_v19, %v9174_v18  ;;  %v9239_v31 = vor.u32 %v10748_v21, %v9238_v20  ;;  %v9526_v13 = vld [vmem:[%s12262_s30 + $0x7e0] sm:$0xf]  ;;  %v10820_v14 = vld [vmem:[%s12262_s30 + $0x7e4] sm:$0xf0]  ;;  %v9335_v18 = vor.u32 %v10772_v6, %v9334_v5  ;;  %v9399_v19 = vor.u32 %v10788_v9, %v9398_v7  ;;  %v9326_v21 = vld [vmem:[%s12262_s30 + $0x650] sm:$0xf] }
 0x260   : > { %7652 = vmatpush.bf16.msra.mxu0 %v9079_v33  ;;  %v9166_v33 = vld [vmem:[%s12262_s30 + $0x510] sm:$0xf]  ;;  %v10802_v30 = vld [vmem:[%s12262_s30 + $0x754] sm:$0xf0]  ;;  %v10800_v43 = vld [vmem:[%s12262_s30 + $0x744] sm:$0xf0] }
 0x261   : > { %7665 = vmatpush.bf16.msra.mxu1 %v9143_v35  ;;  %v10730_v35 = vld [vmem:[%s12262_s30 + $0x514] sm:$0xf0]  ;;  %v12504_v15 = vld [vmem:[#allocation1 + $0x12] sm:$0xff]  ;;  %v9510_v44 = vld [vmem:[%s12262_s30 + $0x7c0] sm:$0xf] }
 0x262   : > { %7678 = vmatpush.bf16.msra.mxu2 %v9207_v36  ;;  %v9230_v36 = vld [vmem:[%s12262_s30 + $0x590] sm:$0xf]  ;;  %v9167_v42 = vor.u32 %v10730_v35, %v9166_v33  ;;  %v10818_v32 = vld [vmem:[%s12262_s30 + $0x7d4] sm:$0xf0]  ;;  %v10780_v5 = vld [vmem:[%s12262_s30 + $0x6a4] sm:$0xf0] }
 0x263   : > { %7691 = vmatpush.bf16.msra.mxu3 %v9271_v40  ;;  %v10696_v40 = vld [vmem:[%s12262_s30 + $0x404] sm:$0xf0]  ;;  %v10766_v50 = vld [vmem:[%s12262_s30 + $0x634] sm:$0xf0]  ;;  %v9374_v51 = vld [vmem:[%s12262_s30 + $0x6b0] sm:$0xf] }
 0x264   : > { %7653 = vmatpush.bf16.msra.mxu0 %v9071_v46  ;;  %v9231_v46 = vor.u32 %v10746_v37, %v9230_v36  ;;  %v9031_v53 = vor.u32 %v10696_v40, %v9030_v39  ;;  %v9455_v36 = vor.u32 %v10802_v30, %v9454_v26  ;;  %v9318_v37 = vld [vmem:[%s12262_s30 + $0x640] sm:$0xf]  ;;  %v10796_v7 = vld [vmem:[%s12262_s30 + $0x724] sm:$0xf0] }
 0x265   : > { %7666 = vmatpush.bf16.msra.mxu1 %v9135_v47  ;;  %v10728_v47 = vld [vmem:[%s12262_s30 + $0x504] sm:$0xf0]  ;;  %v9382_v39 = vld [vmem:[%s12262_s30 + $0x6c0] sm:$0xf] }
 0x266   : > { %7679 = vmatpush.bf16.msra.mxu2 %v9199_v48  ;;  %v9222_v48 = vld [vmem:[%s12262_s30 + $0x580] sm:$0xf]  ;;  %v10812_v9 = vld [vmem:[%s12262_s30 + $0x7a4] sm:$0xf0] }
 0x267   : > { %7692 = vmatpush.bf16.msra.mxu3 %v9263_v52  ;;  %v9406_v52 = vld [vmem:[%s12262_s30 + $0x6f0] sm:$0xf]  ;;  %v9223_v62 = vor.u32 %v10744_v49, %v9222_v48  ;;  %v9430_v6 = vld [vmem:[%s12262_s30 + $0x720] sm:$0xf]  ;;  %v10760_v30 = vld [vmem:[%s12262_s30 + $0x604] sm:$0xf0] }
 0x268   : > { %7654 = vmatpush.bf16.msra.mxu0 %v9063_v58  ;;  %v9159_v58 = vor.u32 %v10728_v47, %v9158_v45  ;;  %v9407_v3 = vor.u32 %v10790_v54, %v9406_v52  ;;  %v10816_v45 = vld [vmem:[%s12262_s30 + $0x7c4] sm:$0xf0]  ;;  %v9310_v49 = vld [vmem:[%s12262_s30 + $0x630] sm:$0xf]  ;;  %v9286_v26 = vld [vmem:[%s12262_s30 + $0x600] sm:$0xf] }
 0x269   : > { %7667 = vmatpush.bf16.msra.mxu1 %v9127_v59  ;;  %v9534_v59 = vld [vmem:[%s12262_s30 + $0x7f0] sm:$0xf]  ;;  %v9511_v52 = vor.u32 %v10816_v45, %v9510_v44  ;;  %v10854_v45 = vld [vmem:[%s12262_s30 + $0x8f4] sm:$0xf0] }
 0x26a   : > { %7680 = vmatpush.bf16.msra.mxu2 %v9191_v61  ;;  %v10822_v61 = vld [vmem:[%s12262_s30 + $0x7f4] sm:$0xf0]  ;;  %v9438_v54 = vld [vmem:[%s12262_s30 + $0x730] sm:$0xf] }
 0x26b   : > { %7693 = vmatpush.bf16.msra.mxu3 %v9255_v4  ;;  %v9471_v4 = vor.u32 %v10806_v56, %v9470_v55  ;;  %v9535_v8 = vor.u32 %v10822_v61, %v9534_v59  ;;  %v10798_v55 = vld [vmem:[%s12262_s30 + $0x734] sm:$0xf0]  ;;  %v9502_v56 = vld [vmem:[%s12262_s30 + $0x7b0] sm:$0xf] }
 0x26c   : > { %7655 = vmatpush.bf16.msra.mxu0 %v9055_v10  ;;  %v9462_v10 = vld [vmem:[%s12262_s30 + $0x760] sm:$0xf]  ;;  %v9439_v61 = vor.u32 %v10798_v55, %v9438_v54  ;;  %v9662_v44 = vld [vmem:[%s12262_s30 + $0x8f0] sm:$0xf] }
 0x26d   : > { %7668 = vmatpush.bf16.msra.mxu1 %v9119_v11  ;;  %v10804_v11 = vld [vmem:[%s12262_s30 + $0x764] sm:$0xf0] }
 0x26e   : > { %7681 = vmatpush.bf16.msra.mxu2 %v9183_v12  ;;  %v12500_v12 = vld [vmem:[#allocation1] sm:$0xff]  ;;  %v9463_v20 = vor.u32 %v10804_v11, %v9462_v10  ;;  %v9294_v11 = vld [vmem:[%s12262_s30 + $0x610] sm:$0xf] }
 0x26f   : > { %7694 = vmatpush.bf16.msra.mxu3 %v9247_v16  ;;  %v12506_v16 = vld [vmem:[#allocation1 + $0x9] sm:$0xff] }
 0x270   : > { %7656 = vmatpush.bf16.msra.mxu0 %v9047_v22  ;;  %v10770_v22 = vld [vmem:[%s12262_s30 + $0x654] sm:$0xf0] }
 0x271   : > { %7669 = vmatpush.bf16.msra.mxu1 %v9111_v23  ;;  %v9390_v23 = vld [vmem:[%s12262_s30 + $0x6d0] sm:$0xf]  ;;  %v9327_v33 = vor.u32 %v10770_v22, %v9326_v21 }
 0x272   : > { %7682 = vmatpush.bf16.msra.mxu2 %v9175_v24  ;;  %v9527_v24 = vor.u32 %v10820_v14, %v9526_v13  ;;  %v9391_v35 = vor.u32 %v10786_v25, %v9390_v23  ;;  %v9431_v14 = vor.u32 %v10796_v7, %v9430_v6  ;;  %v9422_v22 = vld [vmem:[%s12262_s30 + $0x710] sm:$0xf]  ;;  %v10794_v23 = vld [vmem:[%s12262_s30 + $0x714] sm:$0xf0]  ;;  %v10852_v6 = vld [vmem:[%s12262_s30 + $0x8e4] sm:$0xf0] }
 0x273   : > { %7695 = vmatpush.bf16.msra.mxu3 %v9239_v31  ;;  %v9518_v31 = vld [vmem:[%s12262_s30 + $0x7d0] sm:$0xf]  ;;  %v10810_v25 = vld [vmem:[%s12262_s30 + $0x794] sm:$0xf0]  ;;  %v9718_v7 = vld [vmem:[%s12262_s30 + $0x960] sm:$0xf] }
 0x274   : > { %7657 = vmatpush.bf16.msra.mxu0 %v9039_v38  ;;  %v10768_v38 = vld [vmem:[%s12262_s30 + $0x644] sm:$0xf0]  ;;  %v9519_v40 = vor.u32 %v10818_v32, %v9518_v31  ;;  %v9350_v32 = vld [vmem:[%s12262_s30 + $0x680] sm:$0xf] }
 0x275   : > { %7670 = vmatpush.bf16.msra.mxu1 %v9103_v41  ;;  %v10784_v41 = vld [vmem:[%s12262_s30 + $0x6c4] sm:$0xf0] }
 0x276   : > { %7683 = vmatpush.bf16.msra.mxu2 %v9167_v42  ;;  %v9446_v42 = vld [vmem:[%s12262_s30 + $0x740] sm:$0xf]  ;;  %v9383_v47 = vor.u32 %v10784_v41, %v9382_v39  ;;  %v9598_v41 = vld [vmem:[%s12262_s30 + $0x870] sm:$0xf] }
 0x277   : > { %7696 = vmatpush.bf16.msra.mxu3 %v9231_v46  ;;  %v9319_v46 = vor.u32 %v10768_v38, %v9318_v37  ;;  %v9447_v48 = vor.u32 %v10800_v43, %v9446_v42  ;;  %v9423_v38 = vor.u32 %v10794_v23, %v9422_v22  ;;  %v9478_v39 = vld [vmem:[%s12262_s30 + $0x780] sm:$0xf]  ;;  %v10838_v42 = vld [vmem:[%s12262_s30 + $0x874] sm:$0xf0]  ;;  %v9710_v23 = vld [vmem:[%s12262_s30 + $0x950] sm:$0xf] }
 0x278   : > { %7658 = vmatpush.bf16.msra.mxu0 %v9031_v53  ;;  %v10782_v53 = vld [vmem:[%s12262_s30 + $0x6b4] sm:$0xf0] }
 0x279   : > { %7671 = vmatpush.bf16.msra.mxu1 %v9095_v57  ;;  %v10814_v57 = vld [vmem:[%s12262_s30 + $0x7b4] sm:$0xf0]  ;;  %v9375_v59 = vor.u32 %v10782_v53, %v9374_v51  ;;  %v9287_v51 = vor.u32 %v10760_v30, %v9286_v26 }
 0x27a   : > { %7684 = vmatpush.bf16.msra.mxu2 %v9159_v58  ;;  %v9311_v58 = vor.u32 %v10766_v50, %v9310_v49  ;;  %v12572_v49 = vld [vmem:[#allocation1 + $0x3f] sm:$0xff]  ;;  %v4395_v50 = vld [vmem:[%s13463_s0 + $0x10] sm:$0xff] }
 0x27b   : > { %7697 = vmatpush.bf16.msra.mxu3 %v9223_v62  ;;  %7659 = vmatmul.bf16.vlgmr.msra.gmra.mxu0 %v12500_v12  ;;  %v9302_v62 = vld [vmem:[%s12262_s30 + $0x620] sm:$0xf]  ;;  %v10870_v53 = vld [vmem:[%s12262_s30 + $0x974] sm:$0xf0] }
 0x27c   : > { %7703 = vmatpush.bf16.msrb.mxu0 %v9343_v63  ;;  %7672 = vmatmul.bf16.vlgmr.msra.gmra.mxu1 %v12506_v16  ;;  %v10764_v63 = vld [vmem:[%s12262_s30 + $0x624] sm:$0xf0]  ;;  %v10850_v22 = vld [vmem:[%s12262_s30 + $0x8d4] sm:$0xf0] }
 0x27d   : > { %7716 = vmatpush.bf16.msrb.mxu1 %v9407_v3  ;;  %7685 = vmatmul.bf16.vlgmr.msra.gmra.mxu2 %v12504_v15  ;;  %v9366_v3 = vld [vmem:[%s12262_s30 + $0x6a0] sm:$0xf]  ;;  %v9303_v10 = vor.u32 %v10764_v63, %v9302_v62  ;;  %v10882_v26 = vld [vmem:[%s12262_s30 + $0x9d4] sm:$0xf0] }
 0x27e   : > { %7729 = vmatpush.bf16.msrb.mxu2 %v9471_v4  ;;  %7698 = vmatmul.bf16.vlgmr.msra.gmra.mxu3 %v12508_v17  ;;  %v9503_v4 = vor.u32 %v10814_v57, %v9502_v56  ;;  %v9367_v13 = vor.u32 %v10780_v5, %v9366_v3  ;;  %v9790_v56 = vld [vmem:[%s12262_s30 + $0x9f0] sm:$0xf]  ;;  %v10886_v57 = vld [vmem:[%s12262_s30 + $0x9f4] sm:$0xf0]  ;;  %v9590_v63 = vld [vmem:[%s12262_s30 + $0x860] sm:$0xf] }
 0x27f   : > { %7742 = vmatpush.bf16.msrb.mxu3 %v9535_v8  ;;  %v9494_v8 = vld [vmem:[%s12262_s30 + $0x7a0] sm:$0xf]  ;;  %v10836_v3 = vld [vmem:[%s12262_s30 + $0x864] sm:$0xf0]  ;;  %v9791_v5 = vor.u32 %v10886_v57, %v9790_v56  ;;  %v10862_v56 = vld [vmem:[%s12262_s30 + $0x934] sm:$0xf0] }
 0x280   : > { %7704 = vmatpush.bf16.msrb.mxu0 %v9335_v18  ;;  %v10762_v18 = vld [vmem:[%s12262_s30 + $0x614] sm:$0xf0]  ;;  %v9495_v21 = vor.u32 %v10812_v9, %v9494_v8  ;;  %v10868_v8 = vld [vmem:[%s12262_s30 + $0x964] sm:$0xf0]  ;;  %v9782_v9 = vld [vmem:[%s12262_s30 + $0x9e0] sm:$0xf] }
 0x281   : > { %7717 = vmatpush.bf16.msrb.mxu1 %v9399_v19  ;;  %v9358_v19 = vld [vmem:[%s12262_s30 + $0x690] sm:$0xf]  ;;  %v9295_v31 = vor.u32 %v10762_v18, %v9294_v11  ;;  %v9591_v11 = vor.u32 %v10836_v3, %v9590_v63  ;;  %v9558_v63 = vld [vmem:[%s12262_s30 + $0x820] sm:$0xf]  ;;  %v10828_v3 = vld [vmem:[%s12262_s30 + $0x824] sm:$0xf0] }
 0x282   : > { %7730 = vmatpush.bf16.msrb.mxu2 %v9463_v20  ;;  %v10778_v20 = vld [vmem:[%s12262_s30 + $0x694] sm:$0xf0]  ;;  %v9582_v18 = vld [vmem:[%s12262_s30 + $0x850] sm:$0xf] }
 0x283   : > { %7743 = vmatpush.bf16.msrb.mxu3 %v9527_v24  ;;  %v9486_v24 = vld [vmem:[%s12262_s30 + $0x790] sm:$0xf]  ;;  %v9359_v37 = vor.u32 %v10778_v20, %v9358_v19  ;;  %v10834_v19 = vld [vmem:[%s12262_s30 + $0x854] sm:$0xf0] }
 0x284   : > { %7705 = vmatpush.bf16.msrb.mxu0 %v9327_v33  ;;  %v10776_v33 = vld [vmem:[%s12262_s30 + $0x684] sm:$0xf0]  ;;  %v9487_v43 = vor.u32 %v10810_v25, %v9486_v24  ;;  %v9646_v20 = vld [vmem:[%s12262_s30 + $0x8d0] sm:$0xf]  ;;  %v10866_v24 = vld [vmem:[%s12262_s30 + $0x954] sm:$0xf0]  ;;  %v9583_v30 = vor.u32 %v10834_v19, %v9582_v18 }
 0x285   : > { %7718 = vmatpush.bf16.msrb.mxu1 %v9391_v35  ;;  %v9414_v35 = vld [vmem:[%s12262_s30 + $0x700] sm:$0xf]  ;;  %v9351_v54 = vor.u32 %v10776_v33, %v9350_v32  ;;  %v9774_v25 = vld [vmem:[%s12262_s30 + $0x9d0] sm:$0xf]  ;;  %v9711_v32 = vor.u32 %v10866_v24, %v9710_v23  ;;  %v10826_v19 = vld [vmem:[%s12262_s30 + $0x814] sm:$0xf0] }
 0x286   : > { %7731 = vmatpush.bf16.msrb.mxu2 %v9455_v36  ;;  %v10792_v36 = vld [vmem:[%s12262_s30 + $0x704] sm:$0xf0]  ;;  %v9574_v33 = vld [vmem:[%s12262_s30 + $0x840] sm:$0xf]  ;;  %v9758_v57 = vld [vmem:[%s12262_s30 + $0x9b0] sm:$0xf] }
 0x287   : > { %7744 = vmatpush.bf16.msrb.mxu3 %v9519_v40  ;;  %v10808_v40 = vld [vmem:[%s12262_s30 + $0x784] sm:$0xf0]  ;;  %v9415_v55 = vor.u32 %v10792_v36, %v9414_v35  ;;  %v9638_v36 = vld [vmem:[%s12262_s30 + $0x8c0] sm:$0xf]  ;;  %v9550_v18 = vld [vmem:[%s12262_s30 + $0x810] sm:$0xf] }
 0x288   : > { %7706 = vmatpush.bf16.msrb.mxu0 %v9319_v46  ;;  %v12566_v46 = vld [vmem:[#allocation1 + $0x24] sm:$0xff]  ;;  %v10832_v35 = vld [vmem:[%s12262_s30 + $0x844] sm:$0xf0]  ;;  %v9678_v23 = vld [vmem:[%s12262_s30 + $0x910] sm:$0xf] }
 0x289   : > { %7719 = vmatpush.bf16.msrb.mxu1 %v9383_v47  ;;  %v12568_v47 = vld [vmem:[#allocation1 + $0x36] sm:$0xff]  ;;  %v10858_v24 = vld [vmem:[%s12262_s30 + $0x914] sm:$0xf0] }
 0x28a   : > { %7732 = vmatpush.bf16.msrb.mxu2 %v9447_v48  ;;  %v12570_v48 = vld [vmem:[#allocation1 + $0x2d] sm:$0xff] }
 0x28b   : > { %7745 = vmatpush.bf16.msrb.mxu3 %v9511_v52  ;;  %v9726_v52 = vld [vmem:[%s12262_s30 + $0x970] sm:$0xf]  ;;  %4936 = vst [vmem:[#allocation1] ss:$9 sm:$0xff] %v4395_v50 }
 0x28c   : > { %7707 = vmatpush.bf16.msrb.mxu0 %v9311_v58  ;;  %v9479_v58 = vor.u32 %v10808_v40, %v9478_v39  ;;  %v9727_v62 = vor.u32 %v10870_v53, %v9726_v52  ;;  %v9702_v39 = vld [vmem:[%s12262_s30 + $0x940] sm:$0xf]  ;;  %v10864_v40 = vld [vmem:[%s12262_s30 + $0x944] sm:$0xf0]  ;;  %v9566_v50 = vld [vmem:[%s12262_s30 + $0x830] sm:$0xf] }
 0x28d   : > { %7720 = vmatpush.bf16.msrb.mxu1 %v9375_v59  ;;  %v9599_v59 = vor.u32 %v10838_v42, %v9598_v41  ;;  %v9766_v41 = vld [vmem:[%s12262_s30 + $0x9c0] sm:$0xf]  ;;  %v10880_v42 = vld [vmem:[%s12262_s30 + $0x9c4] sm:$0xf0]  ;;  %v9630_v52 = vld [vmem:[%s12262_s30 + $0x8b0] sm:$0xf] }
 0x28e   : > { %7733 = vmatpush.bf16.msrb.mxu2 %v9439_v61  ;;  %v9663_v61 = vor.u32 %v10854_v45, %v9662_v44  ;;  %v9703_v45 = vor.u32 %v10864_v40, %v9702_v39  ;;  %v9767_v53 = vor.u32 %v10880_v42, %v9766_v41  ;;  %v10856_v40 = vld [vmem:[%s12262_s30 + $0x904] sm:$0xf0]  ;;  %v9734_v41 = vld [vmem:[%s12262_s30 + $0x980] sm:$0xf] }
 0x28f   : > { %7746 = vmatpush.bf16.msrb.mxu3 %v9503_v4  ;;  %v9654_v4 = vld [vmem:[%s12262_s30 + $0x8e0] sm:$0xf]  ;;  %v10872_v42 = vld [vmem:[%s12262_s30 + $0x984] sm:$0xf0] }
 0x290   : > { %7708 = vmatpush.bf16.msrb.mxu0 %v9303_v10  ;;  %v10884_v10 = vld [vmem:[%s12262_s30 + $0x9e4] sm:$0xf0] }
 0x291   : > { %7721 = vmatpush.bf16.msrb.mxu1 %v9367_v13  ;;  %v9655_v13 = vor.u32 %v10852_v6, %v9654_v4  ;;  %v9622_v4 = vld [vmem:[%s12262_s30 + $0x8a0] sm:$0xf]  ;;  %v10844_v6 = vld [vmem:[%s12262_s30 + $0x8a4] sm:$0xf0] }
 0x292   : > { %7734 = vmatpush.bf16.msrb.mxu2 %v9431_v14  ;;  %v9719_v14 = vor.u32 %v10868_v8, %v9718_v7  ;;  %v9686_v7 = vld [vmem:[%s12262_s30 + $0x920] sm:$0xf]  ;;  %v10860_v8 = vld [vmem:[%s12262_s30 + $0x924] sm:$0xf0] }
 0x293   : > { %7747 = vmatpush.bf16.msrb.mxu3 %v9495_v21  ;;  %v9783_v21 = vor.u32 %v10884_v10, %v9782_v9  ;;  %v9750_v9 = vld [vmem:[%s12262_s30 + $0x9a0] sm:$0xf]  ;;  %v10876_v10 = vld [vmem:[%s12262_s30 + $0x9a4] sm:$0xf0] }
 0x294   : > { %7709 = vmatpush.bf16.msrb.mxu0 %v9295_v31  ;;  %v9647_v31 = vor.u32 %v10850_v22, %v9646_v20  ;;  %v9614_v20 = vld [vmem:[%s12262_s30 + $0x890] sm:$0xf]  ;;  %v10842_v22 = vld [vmem:[%s12262_s30 + $0x894] sm:$0xf0] }
 0x295   : > { %7722 = vmatpush.bf16.msrb.mxu1 %v9359_v37  ;;  %v9775_v37 = vor.u32 %v10882_v26, %v9774_v25  ;;  %v9742_v25 = vld [vmem:[%s12262_s30 + $0x990] sm:$0xf]  ;;  %v10874_v26 = vld [vmem:[%s12262_s30 + $0x994] sm:$0xf0] }
 0x296   : > { %7735 = vmatpush.bf16.msrb.mxu2 %v9423_v38  ;;  %v10848_v38 = vld [vmem:[%s12262_s30 + $0x8c4] sm:$0xf0]  ;;  %v9743_v39 = vor.u32 %v10874_v26, %v9742_v25  ;;  %v10914_v26 = vld [vmem:[%s12262_s30 + $0xad4] sm:$0xf0] }
 0x297   : > { %7748 = vmatpush.bf16.msrb.mxu3 %v9487_v43  ;;  %v9575_v43 = vor.u32 %v10832_v35, %v9574_v33  ;;  %v9639_v44 = vor.u32 %v10848_v38, %v9638_v36  ;;  %v9615_v33 = vor.u32 %v10842_v22, %v9614_v20  ;;  %v9679_v35 = vor.u32 %v10858_v24, %v9678_v23  ;;  %v9606_v36 = vld [vmem:[%s12262_s30 + $0x880] sm:$0xf]  ;;  %v9838_v22 = vld [vmem:[%s12262_s30 + $0xa50] sm:$0xf]  ;;  %v10898_v23 = vld [vmem:[%s12262_s30 + $0xa54] sm:$0xf0] }
 0x298   : > { %7710 = vmatpush.bf16.msrb.mxu0 %v9287_v51  ;;  %v10830_v51 = vld [vmem:[%s12262_s30 + $0x834] sm:$0xf0]  ;;  %v9670_v38 = vld [vmem:[%s12262_s30 + $0x900] sm:$0xf]  ;;  %v9902_v24 = vld [vmem:[%s12262_s30 + $0xad0] sm:$0xf] }
 0x299   : > { %7723 = vmatpush.bf16.msrb.mxu1 %v9351_v54  ;;  %v10846_v54 = vld [vmem:[%s12262_s30 + $0x8b4] sm:$0xf0] }
 0x29a   : > { %7736 = vmatpush.bf16.msrb.mxu2 %v9415_v55  ;;  %v9694_v55 = vld [vmem:[%s12262_s30 + $0x930] sm:$0xf] }
 0x29b   : > { %7749 = vmatpush.bf16.msrb.mxu3 %v9479_v58  ;;  %7711 = vmatmul.bf16.vlgmr.msrb.gmra.mxu0 %v12566_v46  ;;  %v10878_v58 = vld [vmem:[%s12262_s30 + $0x9b4] sm:$0xf0] }
 0x29c   : > { %7755 = vmatpush.bf16.msra.mxu0 %v9599_v59  ;;  %7724 = vmatmul.bf16.vlgmr.msrb.gmra.mxu1 %v12570_v48  ;;  %v9567_v59 = vor.u32 %v10830_v51, %v9566_v50  ;;  %v10918_v51 = vld [vmem:[%s12262_s30 + $0xaf4] sm:$0xf0] }
 0x29d   : > { %7768 = vmatpush.bf16.msra.mxu1 %v9663_v61  ;;  %7737 = vmatmul.bf16.vlgmr.msrb.gmra.mxu2 %v12568_v47  ;;  %v9631_v61 = vor.u32 %v10846_v54, %v9630_v52  ;;  %v9982_v52 = vld [vmem:[%s12262_s30 + $0xb70] sm:$0xf] }
 0x29e   : > { %7781 = vmatpush.bf16.msra.mxu2 %v9727_v62  ;;  %7750 = vmatmul.bf16.vlgmr.msrb.gmra.mxu3 %v12572_v49  ;;  %v9695_v62 = vor.u32 %v10862_v56, %v9694_v55  ;;  %v9671_v55 = vor.u32 %v10856_v40, %v9670_v38  ;;  %v10046_v56 = vld [vmem:[%s12262_s30 + $0xbf0] sm:$0xf]  ;;  %v9830_v38 = vld [vmem:[%s12262_s30 + $0xa40] sm:$0xf] }
 0x29f   : > { %7794 = vmatpush.bf16.msra.mxu3 %v9791_v5  ;;  %v9759_v5 = vor.u32 %v10878_v58, %v9758_v57  ;;  %v10950_v57 = vld [vmem:[%s12262_s30 + $0xbf4] sm:$0xf0]  ;;  %v9735_v58 = vor.u32 %v10872_v42, %v9734_v41  ;;  %v9894_v40 = vld [vmem:[%s12262_s30 + $0xac0] sm:$0xf]  ;;  %v10912_v42 = vld [vmem:[%s12262_s30 + $0xac4] sm:$0xf0] }
 0x2a0   : > { %7756 = vmatpush.bf16.msra.mxu0 %v9591_v11  ;;  %v9559_v11 = vor.u32 %v10828_v3, %v9558_v63  ;;  %v9846_v63 = vld [vmem:[%s12262_s30 + $0xa60] sm:$0xf]  ;;  %v10900_v3 = vld [vmem:[%s12262_s30 + $0xa64] sm:$0xf0] }
 0x2a1   : > { %7769 = vmatpush.bf16.msra.mxu1 %v9655_v13  ;;  %v9623_v13 = vor.u32 %v10844_v6, %v9622_v4  ;;  %v9910_v4 = vld [vmem:[%s12262_s30 + $0xae0] sm:$0xf]  ;;  %v10916_v6 = vld [vmem:[%s12262_s30 + $0xae4] sm:$0xf0] }
 0x2a2   : > { %7782 = vmatpush.bf16.msra.mxu2 %v9719_v14  ;;  %v9687_v14 = vor.u32 %v10860_v8, %v9686_v7  ;;  %v9974_v7 = vld [vmem:[%s12262_s30 + $0xb60] sm:$0xf]  ;;  %v10932_v8 = vld [vmem:[%s12262_s30 + $0xb64] sm:$0xf0]  ;;  %v9911_v20 = vor.u32 %v10916_v6, %v9910_v4 }
 0x2a3   : > { %7795 = vmatpush.bf16.msra.mxu3 %v9783_v21  ;;  %v9751_v21 = vor.u32 %v10876_v10, %v9750_v9  ;;  %v12655_v9 = vld [vmem:[#allocation1] sm:$0xff]  ;;  %v10038_v10 = vld [vmem:[%s12262_s30 + $0xbe0] sm:$0xf] }
 0x2a4   : > { %7757 = vmatpush.bf16.msra.mxu0 %v9583_v30  ;;  %v9551_v30 = vor.u32 %v10826_v19, %v9550_v18  ;;  %v12663_v18 = vld [vmem:[#allocation1 + $0x1b] sm:$0xff]  ;;  %v9847_v19 = vor.u32 %v10900_v3, %v9846_v63  ;;  %v9814_v4 = vld [vmem:[%s12262_s30 + $0xa20] sm:$0xf] }
 0x2a5   : > { %7770 = vmatpush.bf16.msra.mxu1 %v9647_v31  ;;  %v9542_v31 = vld [vmem:[%s12262_s30 + $0x800] sm:$0xf]  ;;  %v10942_v63 = vld [vmem:[%s12262_s30 + $0xbb4] sm:$0xf0] }
 0x2a6   : > { %7783 = vmatpush.bf16.msra.mxu2 %v9711_v32  ;;  %v10824_v32 = vld [vmem:[%s12262_s30 + $0x804] sm:$0xf0] }
 0x2a7   : > { %7796 = vmatpush.bf16.msra.mxu3 %v9775_v37  ;;  %v10840_v37 = vld [vmem:[%s12262_s30 + $0x884] sm:$0xf0]  ;;  %v9543_v50 = vor.u32 %v10824_v32, %v9542_v31  ;;  %v10930_v31 = vld [vmem:[%s12262_s30 + $0xb54] sm:$0xf0]  ;;  %v10030_v32 = vld [vmem:[%s12262_s30 + $0xbd0] sm:$0xf] }
 0x2a8   : > { %7758 = vmatpush.bf16.msra.mxu0 %v9575_v43  ;;  %v9854_v43 = vld [vmem:[%s12262_s30 + $0xa70] sm:$0xf]  ;;  %v9607_v54 = vor.u32 %v10840_v37, %v9606_v36  ;;  %v9903_v36 = vor.u32 %v10914_v26, %v9902_v24  ;;  %v10890_v26 = vld [vmem:[%s12262_s30 + $0xa14] sm:$0xf0] }
 0x2a9   : > { %7771 = vmatpush.bf16.msra.mxu1 %v9639_v44  ;;  %v10902_v44 = vld [vmem:[%s12262_s30 + $0xa74] sm:$0xf0] }
 0x2aa   : > { %7784 = vmatpush.bf16.msra.mxu2 %v9703_v45  ;;  %v9918_v45 = vld [vmem:[%s12262_s30 + $0xaf0] sm:$0xf] }
 0x2ab   : > { %7797 = vmatpush.bf16.msra.mxu3 %v9767_v53  ;;  %v10934_v53 = vld [vmem:[%s12262_s30 + $0xb74] sm:$0xf0] }
 0x2ac   : > { %7759 = vmatpush.bf16.msra.mxu0 %v9567_v59  ;;  %v9855_v59 = vor.u32 %v10902_v44, %v9854_v43  ;;  %v9958_v43 = vld [vmem:[%s12262_s30 + $0xb40] sm:$0xf]  ;;  %v10928_v44 = vld [vmem:[%s12262_s30 + $0xb44] sm:$0xf0] }
 0x2ad   : > { %7772 = vmatpush.bf16.msra.mxu1 %v9631_v61  ;;  %v9919_v61 = vor.u32 %v10918_v51, %v9918_v45  ;;  %v10022_v45 = vld [vmem:[%s12262_s30 + $0xbc0] sm:$0xf] }
 0x2ae   : > { %7785 = vmatpush.bf16.msra.mxu2 %v9695_v62  ;;  %v9983_v62 = vor.u32 %v10934_v53, %v9982_v52  ;;  %v9895_v52 = vor.u32 %v10912_v42, %v9894_v40  ;;  %v9959_v53 = vor.u32 %v10928_v44, %v9958_v43  ;;  %v10938_v40 = vld [vmem:[%s12262_s30 + $0xb94] sm:$0xf0]  ;;  %v10888_v42 = vld [vmem:[%s12262_s30 + $0xa04] sm:$0xf0]  ;;  %v9862_v44 = vld [vmem:[%s12262_s30 + $0xa80] sm:$0xf] }
 0x2af   : > { %7798 = vmatpush.bf16.msra.mxu3 %v9759_v5  ;;  %v10047_v5 = vor.u32 %v10950_v57, %v10046_v56  ;;  %v9886_v56 = vld [vmem:[%s12262_s30 + $0xab0] sm:$0xf] }
 0x2b0   : > { %7760 = vmatpush.bf16.msra.mxu0 %v9559_v11  ;;  %v10948_v11 = vld [vmem:[%s12262_s30 + $0xbe4] sm:$0xf0] }
 0x2b1   : > { %7773 = vmatpush.bf16.msra.mxu1 %v9623_v13  ;;  %v12659_v13 = vld [vmem:[#allocation1 + $0x12] sm:$0xff]  ;;  %v10039_v25 = vor.u32 %v10948_v11, %v10038_v10 }
 0x2b2   : > { %7786 = vmatpush.bf16.msra.mxu2 %v9687_v14  ;;  %v12661_v14 = vld [vmem:[#allocation1 + $0x9] sm:$0xff] }
 0x2b3   : > { %7799 = vmatpush.bf16.msra.mxu3 %v9751_v21  ;;  %v9975_v21 = vor.u32 %v10932_v8, %v9974_v7  ;;  %v10892_v7 = vld [vmem:[%s12262_s30 + $0xa24] sm:$0xf0]  ;;  %v9878_v8 = vld [vmem:[%s12262_s30 + $0xaa0] sm:$0xf] }
 0x2b4   : > { %7761 = vmatpush.bf16.msra.mxu0 %v9551_v30  ;;  %v9966_v30 = vld [vmem:[%s12262_s30 + $0xb50] sm:$0xf]  ;;  %v10908_v10 = vld [vmem:[%s12262_s30 + $0xaa4] sm:$0xf0]  ;;  %v9815_v24 = vor.u32 %v10892_v7, %v9814_v4  ;;  %v12741_v4 = vld [vmem:[#allocation1 + $0x24] sm:$0xff] }
 0x2b5   : > { %7774 = vmatpush.bf16.msra.mxu1 %v9615_v33  ;;  %v10946_v33 = vld [vmem:[%s12262_s30 + $0xbd4] sm:$0xf0]  ;;  %v9967_v37 = vor.u32 %v10930_v31, %v9966_v30  ;;  %v9879_v30 = vor.u32 %v10908_v10, %v9878_v8  ;;  %v4396_v10 = vld [vmem:[%s13463_s0 + $0x18] sm:$0xff] }
 0x2b6   : > { %7787 = vmatpush.bf16.msra.mxu2 %v9679_v35  ;;  %v9839_v35 = vor.u32 %v10898_v23, %v9838_v22  ;;  %v10031_v41 = vor.u32 %v10946_v33, %v10030_v32  ;;  %v10006_v22 = vld [vmem:[%s12262_s30 + $0xba0] sm:$0xf]  ;;  %v10940_v23 = vld [vmem:[%s12262_s30 + $0xba4] sm:$0xf0]  ;;  %v9870_v32 = vld [vmem:[%s12262_s30 + $0xa90] sm:$0xf] }
 0x2b7   : > { %7800 = vmatpush.bf16.msra.mxu3 %v9743_v39  ;;  %v10896_v39 = vld [vmem:[%s12262_s30 + $0xa44] sm:$0xf0]  ;;  %v10906_v33 = vld [vmem:[%s12262_s30 + $0xa94] sm:$0xf0] }
 0x2b8   : > { %7762 = vmatpush.bf16.msra.mxu0 %v9543_v50  ;;  %v10944_v50 = vld [vmem:[%s12262_s30 + $0xbc4] sm:$0xf0]  ;;  %v9831_v51 = vor.u32 %v10896_v39, %v9830_v38  ;;  %v10922_v38 = vld [vmem:[%s12262_s30 + $0xb14] sm:$0xf0]  ;;  %v9998_v39 = vld [vmem:[%s12262_s30 + $0xb90] sm:$0xf] }
 0x2b9   : > { %7775 = vmatpush.bf16.msra.mxu1 %v9607_v54  ;;  %v9822_v54 = vld [vmem:[%s12262_s30 + $0xa30] sm:$0xf]  ;;  %v10023_v57 = vor.u32 %v10944_v50, %v10022_v45  ;;  %v10904_v45 = vld [vmem:[%s12262_s30 + $0xa84] sm:$0xf0]  ;;  %v9926_v50 = vld [vmem:[%s12262_s30 + $0xb00] sm:$0xf] }
 0x2ba   : > { %7788 = vmatpush.bf16.msra.mxu2 %v9671_v55  ;;  %v10894_v55 = vld [vmem:[%s12262_s30 + $0xa34] sm:$0xf0] }
 0x2bb   : > { %7801 = vmatpush.bf16.msra.mxu3 %v9735_v58  ;;  %7763 = vmatmul.bf16.vlgmr.msra.gmra.mxu0 %v12655_v9  ;;  %v10910_v58 = vld [vmem:[%s12262_s30 + $0xab4] sm:$0xf0]  ;;  %v9823_v3 = vor.u32 %v10894_v55, %v9822_v54  ;;  %v9990_v55 = vld [vmem:[%s12262_s30 + $0xb80] sm:$0xf] }
 0x2bc   : > { %7807 = vmatpush.bf16.msrb.mxu0 %v9855_v59  ;;  %7776 = vmatmul.bf16.vlgmr.msra.gmra.mxu1 %v12661_v14  ;;  %v9950_v59 = vld [vmem:[%s12262_s30 + $0xb30] sm:$0xf]  ;;  %v12747_v7 = vld [vmem:[#allocation1 + $0x3f] sm:$0xff] }
 0x2bd   : > { %7820 = vmatpush.bf16.msrb.mxu1 %v9919_v61  ;;  %7789 = vmatmul.bf16.vlgmr.msra.gmra.mxu2 %v12659_v13  ;;  %v10926_v61 = vld [vmem:[%s12262_s30 + $0xb34] sm:$0xf0] }
 0x2be   : > { %7833 = vmatpush.bf16.msrb.mxu2 %v9983_v62  ;;  %7802 = vmatmul.bf16.vlgmr.msra.gmra.mxu3 %v12663_v18  ;;  %v10014_v62 = vld [vmem:[%s12262_s30 + $0xbb0] sm:$0xf]  ;;  %v9951_v6 = vor.u32 %v10926_v61, %v9950_v59 }
 0x2bf   : > { %7846 = vmatpush.bf16.msrb.mxu3 %v10047_v5  ;;  %v9887_v5 = vor.u32 %v10910_v58, %v9886_v56  ;;  %v10015_v11 = vor.u32 %v10942_v63, %v10014_v62  ;;  %v10936_v56 = vld [vmem:[%s12262_s30 + $0xb84] sm:$0xf0]  ;;  %v10966_v58 = vld [vmem:[%s12262_s30 + $0xc74] sm:$0xf0]  ;;  %v9999_v62 = vor.u32 %v10938_v40, %v9998_v39  ;;  %v10174_v63 = vld [vmem:[%s12262_s30 + $0xcf0] sm:$0xf] }
 0x2c0   : > { %7808 = vmatpush.bf16.msrb.mxu0 %v9847_v19  ;;  %v9942_v19 = vld [vmem:[%s12262_s30 + $0xb20] sm:$0xf]  ;;  %v7569_v61 = vpop.f32.mrf.mxu1  ;;  %v10980_v40 = vld [vmem:[%s12262_s30 + $0xce4] sm:$0xf0] }
 0x2c1   : > { %7821 = vmatpush.bf16.msrb.mxu1 %v9911_v20  ;;  %v10924_v20 = vld [vmem:[%s12262_s30 + $0xb24] sm:$0xf0] }
 0x2c2   : > { %7834 = vmatpush.bf16.msrb.mxu2 %v9975_v21  ;;  %v4909_v21 = vld [vmem:[%s12710_s18] sm:$0x3]  ;;  %v9943_v31 = vor.u32 %v10924_v20, %v9942_v19  ;;  %v10238_v19 = vld [vmem:[%s12262_s30 + $0xd70] sm:$0xf] }
 0x2c3   : > { %7847 = vmatpush.bf16.msrb.mxu3 %v10039_v25  ;;  %v9806_v25 = vld [vmem:[%s12262_s30 + $0xa10] sm:$0xf]  ;;  %v10998_v20 = vld [vmem:[%s12262_s30 + $0xd74] sm:$0xf0] }
 0x2c4   : > { %7809 = vmatpush.bf16.msrb.mxu0 %v9839_v35  ;;  %v4911_v35 = vperm.slane %v4909_v21, 0  ;;  %v9807_v43 = vor.u32 %v10890_v26, %v9806_v25  ;;  %v9863_v21 = vor.u32 %v10904_v45, %v9862_v44  ;;  %v7582_v25 = vpop.f32.mrf.mxu2  ;;  %v9991_v26 = vor.u32 %v10936_v56, %v9990_v55  ;;  %v10294_v45 = vld [vmem:[%s12262_s30 + $0xde0] sm:$0xf]  ;;  %v10094_v55 = vld [vmem:[%s12262_s30 + $0xc50] sm:$0xf] }
 0x2c5   : > { %7822 = vmatpush.bf16.msrb.mxu1 %v9903_v36  ;;  %v10007_v36 = vor.u32 %v10940_v23, %v10006_v22  ;;  %v10302_v23 = vld [vmem:[%s12262_s30 + $0xdf0] sm:$0xf]  ;;  %v10962_v56 = vld [vmem:[%s12262_s30 + $0xc54] sm:$0xf0] }
 0x2c6   : > { %7835 = vmatpush.bf16.msrb.mxu2 %v9967_v37  ;;  %v9934_v37 = vld [vmem:[%s12262_s30 + $0xb10] sm:$0xf] }
 0x2c7   : > { %7848 = vmatpush.bf16.msrb.mxu3 %v10031_v41  ;;  %v9798_v41 = vld [vmem:[%s12262_s30 + $0xa00] sm:$0xf]  ;;  %v9935_v54 = vor.u32 %v10922_v38, %v9934_v37  ;;  %v10964_v37 = vld [vmem:[%s12262_s30 + $0xc64] sm:$0xf0] }
 0x2c8   : > { %7810 = vmatpush.bf16.msrb.mxu0 %v9831_v51  ;;  %v10920_v51 = vld [vmem:[%s12262_s30 + $0xb04] sm:$0xf0]  ;;  %v10166_v38 = vld [vmem:[%s12262_s30 + $0xce0] sm:$0xf] }
 0x2c9   : > { %7823 = vmatpush.bf16.msrb.mxu1 %v9895_v52  ;;  %v7556_v52 = vpop.f32.mrf.mxu0  ;;  %v9927_v22 = vor.u32 %v10920_v51, %v9926_v50  ;;  %v11012_v50 = vld [vmem:[%s12262_s30 + $0xde4] sm:$0xf0]  ;;  %v7571_v51 = vpop.f32.mrf.mxu1 }
 0x2ca   : > { %7836 = vmatpush.bf16.msrb.mxu2 %v9959_v53  ;;  %v9871_v53 = vor.u32 %v10906_v33, %v9870_v32  ;;  %v7557_v59 = vadd.f32 %v7556_v52, %v4911_v35  ;;  %v7595_v32 = vpop.f32.mrf.mxu3  ;;  %v10239_v35 = vor.u32 %v10998_v20, %v10238_v19  ;;  %v10990_v51 = vld [vmem:[%s12262_s30 + $0xd34] sm:$0xf0] }
 0x2cb   : > { %7849 = vmatpush.bf16.msrb.mxu3 %v10023_v57  ;;  %v10110_v57 = vld [vmem:[%s12262_s30 + $0xc70] sm:$0xf] }
 0x2cc   : > { %7811 = vmatpush.bf16.msrb.mxu0 %v9823_v3  ;;  %v10982_v3 = vld [vmem:[%s12262_s30 + $0xcf4] sm:$0xf0]  ;;  %v7570_v8 = vadd.f32 %v7569_v61, %v7557_v59  ;;  %v10222_v61 = vld [vmem:[%s12262_s30 + $0xd50] sm:$0xf] }
 0x2cd   : > { %7824 = vmatpush.bf16.msrb.mxu1 %v9887_v5  ;;  %v12743_v5 = vld [vmem:[#allocation1 + $0x36] sm:$0xff]  ;;  %v10175_v33 = vor.u32 %v10982_v3, %v10174_v63  ;;  %v10978_v59 = vld [vmem:[%s12262_s30 + $0xcd4] sm:$0xf0] }
 0x2ce   : > { %7837 = vmatpush.bf16.msrb.mxu2 %v9951_v6  ;;  %v12745_v6 = vld [vmem:[#allocation1 + $0x2d] sm:$0xff]  ;;  %v10286_v63 = vld [vmem:[%s12262_s30 + $0xdd0] sm:$0xf]  ;;  %v11010_v3 = vld [vmem:[%s12262_s30 + $0xdd4] sm:$0xf0] }
 0x2cf   : > { %7850 = vmatpush.bf16.msrb.mxu3 %v10015_v11  ;;  %v9799_v11 = vor.u32 %v10888_v42, %v9798_v41  ;;  %4946 = vst [vmem:[#allocation1] ss:$9 sm:$0xff] %v4396_v10  ;;  %v10230_v41 = vld [vmem:[%s12262_s30 + $0xd60] sm:$0xf]  ;;  %v10996_v42 = vld [vmem:[%s12262_s30 + $0xd64] sm:$0xf0]  ;;  %v10095_v10 = vor.u32 %v10962_v56, %v10094_v55 }
 0x2d0   : > { %7812 = vmatpush.bf16.msrb.mxu0 %v9815_v24  ;;  %v11014_v24 = vld [vmem:[%s12262_s30 + $0xdf4] sm:$0xf0] }
 0x2d1   : > { %7825 = vmatpush.bf16.msrb.mxu1 %v9879_v30  ;;  %v10111_v30 = vor.u32 %v10966_v58, %v10110_v57  ;;  %v10303_v39 = vor.u32 %v11014_v24, %v10302_v23  ;;  %v7558_v44 = vpop.f32.mrf.mxu0  ;;  %v10158_v57 = vld [vmem:[%s12262_s30 + $0xcd0] sm:$0xf]  ;;  %v10295_v58 = vor.u32 %v11012_v50, %v10294_v45  ;;  %v10150_v23 = vld [vmem:[%s12262_s30 + $0xcc0] sm:$0xf]  ;;  %v10287_v24 = vor.u32 %v11010_v3, %v10286_v63  ;;  %v10974_v45 = vld [vmem:[%s12262_s30 + $0xcb4] sm:$0xf0] }
 0x2d2   : > { %7838 = vmatpush.bf16.msrb.mxu2 %v9943_v31  ;;  %v7583_v31 = vadd.f32 %v7582_v25, %v7570_v8  ;;  %v7584_v8 = vpop.f32.mrf.mxu2  ;;  %v10159_v19 = vor.u32 %v10978_v59, %v10158_v57  ;;  %v10976_v25 = vld [vmem:[%s12262_s30 + $0xcc4] sm:$0xf0]  ;;  %v10206_v50 = vld [vmem:[%s12262_s30 + $0xd30] sm:$0xf]  ;;  %v10070_v57 = vld [vmem:[%s12262_s30 + $0xc20] sm:$0xf] }
 0x2d3   : > { %7851 = vmatpush.bf16.msrb.mxu3 %v10007_v36  ;;  %v10102_v36 = vld [vmem:[%s12262_s30 + $0xc60] sm:$0xf]  ;;  %v10207_v56 = vor.u32 %v10990_v51, %v10206_v50  ;;  %v10972_v63 = vld [vmem:[%s12262_s30 + $0xca4] sm:$0xf0] }
 0x2d4   : > { %7813 = vmatpush.bf16.msrb.mxu0 %v9807_v43  ;;  %v7596_v43 = vadd.f32 %v7595_v32, %v7583_v31  ;;  %v10103_v52 = vor.u32 %v10964_v37, %v10102_v36  ;;  %v10278_v31 = vld [vmem:[%s12262_s30 + $0xdc0] sm:$0xf]  ;;  %v11008_v32 = vld [vmem:[%s12262_s30 + $0xdc4] sm:$0xf0]  ;;  %v10151_v36 = vor.u32 %v10976_v25, %v10150_v23 }
 0x2d5   : > { %7826 = vmatpush.bf16.msrb.mxu1 %v9871_v53  ;;  %v10167_v53 = vor.u32 %v10980_v40, %v10166_v38  ;;  %v10078_v38 = vld [vmem:[%s12262_s30 + $0xc30] sm:$0xf]  ;;  %v10279_v44 = vor.u32 %v11008_v32, %v10278_v31  ;;  %v10134_v59 = vld [vmem:[%s12262_s30 + $0xca0] sm:$0xf]  ;;  %v10988_v8 = vld [vmem:[%s12262_s30 + $0xd24] sm:$0xf0] }
 0x2d6   : > { %7839 = vmatpush.bf16.msrb.mxu2 %v9935_v54  ;;  %v10231_v54 = vor.u32 %v10996_v42, %v10230_v41  ;;  %v10142_v40 = vld [vmem:[%s12262_s30 + $0xcb0] sm:$0xf]  ;;  %v10198_v3 = vld [vmem:[%s12262_s30 + $0xd20] sm:$0xf]  ;;  %v10968_v51 = vld [vmem:[%s12262_s30 + $0xc84] sm:$0xf0] }
 0x2d7   : > { %7852 = vmatpush.bf16.msrb.mxu3 %v9999_v62  ;;  %v10994_v62 = vld [vmem:[%s12262_s30 + $0xd54] sm:$0xf0]  ;;  %v10199_v25 = vor.u32 %v10988_v8, %v10198_v3  ;;  %v10126_v31 = vld [vmem:[%s12262_s30 + $0xc90] sm:$0xf]  ;;  %v10118_v50 = vld [vmem:[%s12262_s30 + $0xc80] sm:$0xf] }
 0x2d8   : > { %7814 = vmatpush.bf16.msrb.mxu0 %v9799_v11  ;;  %v7597_v11 = vpop.f32.mrf.mxu3  ;;  %v10223_v20 = vor.u32 %v10994_v62, %v10222_v61  ;;  %v10494_v3 = vld [vmem:[%s12262_s30 + $0xf70] sm:$0xf]  ;;  %v11062_v8 = vld [vmem:[%s12262_s30 + $0xf74] sm:$0xf0] }
 0x2d9   : > { %7827 = vmatpush.bf16.msrb.mxu1 %v9863_v21  ;;  %v10086_v21 = vld [vmem:[%s12262_s30 + $0xc40] sm:$0xf]  ;;  %v7621_v42 = vpop.f32.mrf.mxu1 }
 0x2da   : > { %7840 = vmatpush.bf16.msrb.mxu2 %v9927_v22  ;;  %v10960_v22 = vld [vmem:[%s12262_s30 + $0xc44] sm:$0xf0] }
 0x2db   : > { %7853 = vmatpush.bf16.msrb.mxu3 %v9991_v26  ;;  %7815 = vmatmul.bf16.vlgmr.msrb.gmra.mxu0 %v12741_v4  ;;  %v10214_v26 = vld [vmem:[%s12262_s30 + $0xd40] sm:$0xf] }
 0x2dc   : > { %7859 = vmatpush.bf16.msra.mxu0 %v10111_v30  ;;  %7828 = vmatmul.bf16.vlgmr.msrb.gmra.mxu1 %v12745_v6  ;;  %v10992_v30 = vld [vmem:[%s12262_s30 + $0xd44] sm:$0xf0] }
 0x2dd   : > { %7872 = vmatpush.bf16.msra.mxu1 %v10175_v33  ;;  %7841 = vmatmul.bf16.vlgmr.msrb.gmra.mxu2 %v12743_v5  ;;  %v10087_v33 = vor.u32 %v10960_v22, %v10086_v21  ;;  %v10215_v37 = vor.u32 %v10992_v30, %v10214_v26  ;;  %v10062_v26 = vld [vmem:[%s12262_s30 + $0xc10] sm:$0xf]  ;;  %v10954_v30 = vld [vmem:[%s12262_s30 + $0xc14] sm:$0xf0] }
 0x2de   : > { %7885 = vmatpush.bf16.msra.mxu2 %v10239_v35  ;;  %7854 = vmatmul.bf16.vlgmr.msrb.gmra.mxu3 %v12747_v7  ;;  %v7608_v35 = vpop.f32.mrf.mxu0 }
 0x2df   : > { %7898 = vmatpush.bf16.msra.mxu3 %v10303_v39  ;;  %v10958_v39 = vld [vmem:[%s12262_s30 + $0xc34] sm:$0xf0]  ;;  %v7609_v41 = vadd.f32 %v7608_v35, %v7596_v43  ;;  %v10143_v43 = vor.u32 %v10974_v45, %v10142_v40  ;;  %v10063_v40 = vor.u32 %v10954_v30, %v10062_v26  ;;  %v10358_v26 = vld [vmem:[%s12262_s30 + $0xe60] sm:$0xf]  ;;  %v11028_v30 = vld [vmem:[%s12262_s30 + $0xe64] sm:$0xf0] }
 0x2e0   : > { %7860 = vmatpush.bf16.msra.mxu0 %v10103_v52  ;;  %v10270_v52 = vld [vmem:[%s12262_s30 + $0xdb0] sm:$0xf]  ;;  %v10079_v55 = vor.u32 %v10958_v39, %v10078_v38  ;;  %v7634_v61 = vpop.f32.mrf.mxu2  ;;  %v10970_v35 = vld [vmem:[%s12262_s30 + $0xc94] sm:$0xf0] }
 0x2e1   : > { %7873 = vmatpush.bf16.msra.mxu1 %v10167_v53  ;;  %v11006_v53 = vld [vmem:[%s12262_s30 + $0xdb4] sm:$0xf0]  ;;  %v7647_v11 = vpop.f32.mrf.mxu3  ;;  %v7623_v32 = vpop.f32.mrf.mxu1  ;;  %v10254_v38 = vld [vmem:[%s12262_s30 + $0xd90] sm:$0xf] }
 0x2e2   : > { %7886 = vmatpush.bf16.msra.mxu2 %v10231_v54  ;;  %v7622_v54 = vadd.f32 %v7621_v42, %v7609_v41  ;;  %v10271_v62 = vor.u32 %v11006_v53, %v10270_v52  ;;  %v11002_v39 = vld [vmem:[%s12262_s30 + $0xd94] sm:$0xf0]  ;;  %v10054_v41 = vld [vmem:[%s12262_s30 + $0xc00] sm:$0xf]  ;;  %v10952_v42 = vld [vmem:[%s12262_s30 + $0xc04] sm:$0xf0] }
 0x2e3   : > { %7899 = vmatpush.bf16.msra.mxu3 %v10295_v58  ;;  %v10956_v58 = vld [vmem:[%s12262_s30 + $0xc24] sm:$0xf0]  ;;  %v10182_v52 = vld [vmem:[%s12262_s30 + $0xd00] sm:$0xf] }
 0x2e4   : > { %7861 = vmatpush.bf16.msra.mxu0 %v10095_v10  ;;  %v7635_v10 = vadd.f32 %v7634_v61, %v7622_v54  ;;  %v10071_v21 = vor.u32 %v10956_v58, %v10070_v57  ;;  %v10255_v54 = vor.u32 %v11002_v39, %v10254_v38  ;;  %v10366_v58 = vld [vmem:[%s12262_s30 + $0xe70] sm:$0xf]  ;;  %v10550_v38 = vld [vmem:[%s12262_s30 + $0xfe0] sm:$0xf]  ;;  %v11076_v39 = vld [vmem:[%s12262_s30 + $0xfe4] sm:$0xf0] }
 0x2e5   : > { %7874 = vmatpush.bf16.msra.mxu1 %v10159_v19  ;;  %v10262_v19 = vld [vmem:[%s12262_s30 + $0xda0] sm:$0xf]  ;;  %v10430_v61 = vld [vmem:[%s12262_s30 + $0xef0] sm:$0xf] }
 0x2e6   : > { %7887 = vmatpush.bf16.msra.mxu2 %v10223_v20  ;;  %v11004_v20 = vld [vmem:[%s12262_s30 + $0xda4] sm:$0xf0]  ;;  %v12800_v22 = vadd.f32 %v7647_v11, %v7635_v10  ;;  %v7610_v23 = vpop.f32.mrf.mxu0  ;;  %v10119_v10 = vor.u32 %v10968_v51, %v10118_v50  ;;  %v10350_v51 = vld [vmem:[%s12262_s30 + $0xe50] sm:$0xf] }
 0x2e7   : > { %7900 = vmatpush.bf16.msra.mxu3 %v10287_v24  ;;  %v10135_v24 = vor.u32 %v10972_v63, %v10134_v59  ;;  %v11030_v59 = vld [vmem:[%s12262_s30 + $0xe74] sm:$0xf0] }
 0x2e8   : > { %7862 = vmatpush.bf16.msra.mxu0 %v10087_v33  ;;  %v10263_v33 = vor.u32 %v11004_v20, %v10262_v19  ;;  %v7636_v53 = vpop.f32.mrf.mxu2  ;;  %v11046_v63 = vld [vmem:[%s12262_s30 + $0xef4] sm:$0xf0]  ;;  %v10558_v19 = vld [vmem:[%s12262_s30 + $0xff0] sm:$0xf]  ;;  %v10367_v23 = vor.u32 %v11030_v59, %v10366_v58 }
 0x2e9   : > { %7875 = vmatpush.bf16.msra.mxu1 %v10151_v36  ;;  %v10190_v36 = vld [vmem:[%s12262_s30 + $0xd10] sm:$0xf]  ;;  %v7649_v57 = vpop.f32.mrf.mxu3  ;;  %v11078_v20 = vld [vmem:[%s12262_s30 + $0xff4] sm:$0xf0] }
 0x2ea   : > { %7888 = vmatpush.bf16.msra.mxu2 %v10215_v37  ;;  %v10986_v37 = vld [vmem:[%s12262_s30 + $0xd14] sm:$0xf0]  ;;  %v10559_v32 = vor.u32 %v11078_v20, %v10558_v19  ;;  %v10414_v53 = vld [vmem:[%s12262_s30 + $0xed0] sm:$0xf]  ;;  %v10470_v19 = vld [vmem:[%s12262_s30 + $0xf40] sm:$0xf] }
 0x2eb   : > { %7901 = vmatpush.bf16.msra.mxu3 %v10279_v44  ;;  %v10127_v44 = vor.u32 %v10970_v35, %v10126_v31  ;;  %v10191_v45 = vor.u32 %v10986_v37, %v10190_v36  ;;  %v10422_v31 = vld [vmem:[%s12262_s30 + $0xee0] sm:$0xf]  ;;  %v11060_v36 = vld [vmem:[%s12262_s30 + $0xf64] sm:$0xf0]  ;;  %v4947_v37 = vld [vmem:[#allocation1] sm:$0xff] }
 0x2ec   : > { %7863 = vmatpush.bf16.msra.mxu0 %v10079_v55  ;;  %v10984_v55 = vld [vmem:[%s12262_s30 + $0xd04] sm:$0xf0]  ;;  %v10486_v35 = vld [vmem:[%s12262_s30 + $0xf60] sm:$0xf]  ;;  %v10542_v57 = vld [vmem:[%s12262_s30 + $0xfd0] sm:$0xf] }
 0x2ed   : > { %7876 = vmatpush.bf16.msra.mxu1 %v10143_v43  ;;  %v10246_v43 = vld [vmem:[%s12262_s30 + $0xd80] sm:$0xf]  ;;  %v10183_v11 = vor.u32 %v10984_v55, %v10182_v52  ;;  %v10487_v50 = vor.u32 %v11060_v36, %v10486_v35  ;;  %v11026_v52 = vld [vmem:[%s12262_s30 + $0xe54] sm:$0xf0]  ;;  %v11056_v20 = vld [vmem:[%s12262_s30 + $0xf44] sm:$0xf0] }
 0x2ee   : > { %7889 = vmatpush.bf16.msra.mxu2 %v10207_v56  ;;  %v11000_v56 = vld [vmem:[%s12262_s30 + $0xd84] sm:$0xf0]  ;;  %v11042_v55 = vld [vmem:[%s12262_s30 + $0xed4] sm:$0xf0]  ;;  %v10351_v59 = vor.u32 %v11026_v52, %v10350_v51  ;;  %v10398_v36 = vld [vmem:[%s12262_s30 + $0xeb0] sm:$0xf] }
 0x2ef   : > { %7902 = vmatpush.bf16.msra.mxu3 %v10271_v62  ;;  %v10055_v62 = vor.u32 %v10952_v42, %v10054_v41  ;;  %v4948_v41 = vld [vmem:[#allocation1 + $0x9] sm:$0xff]  ;;  %v4950_v42 = vld [vmem:[#allocation1 + $0x1b] sm:$0xff] }
 0x2f0   : > { %7864 = vmatpush.bf16.msra.mxu0 %v10071_v21  ;;  %v10247_v21 = vor.u32 %v11000_v56, %v10246_v43  ;;  %v10478_v43 = vld [vmem:[%s12262_s30 + $0xf50] sm:$0xf]  ;;  %v11058_v56 = vld [vmem:[%s12262_s30 + $0xf54] sm:$0xf0]  ;;  %v10326_v51 = vld [vmem:[%s12262_s30 + $0xe20] sm:$0xf] }
 0x2f1   : > { %7877 = vmatpush.bf16.msra.mxu1 %v10135_v24  ;;  %v10431_v24 = vor.u32 %v11046_v63, %v10430_v61  ;;  %v11074_v58 = vld [vmem:[%s12262_s30 + $0xfd4] sm:$0xf0]  ;;  %v10415_v61 = vor.u32 %v11042_v55, %v10414_v53  ;;  %v10342_v63 = vld [vmem:[%s12262_s30 + $0xe40] sm:$0xf]  ;;  %v11020_v52 = vld [vmem:[%s12262_s30 + $0xe24] sm:$0xf0] }
 0x2f2   : > { %7890 = vmatpush.bf16.msra.mxu2 %v10199_v25  ;;  %v10495_v25 = vor.u32 %v11062_v8, %v10494_v3  ;;  %v11024_v3 = vld [vmem:[%s12262_s30 + $0xe44] sm:$0xf0]  ;;  %v10406_v8 = vld [vmem:[%s12262_s30 + $0xec0] sm:$0xf]  ;;  %v11022_v35 = vld [vmem:[%s12262_s30 + $0xe34] sm:$0xf0] }
 0x2f3   : > { %7903 = vmatpush.bf16.msra.mxu3 %v10263_v33  ;;  %v11044_v33 = vld [vmem:[%s12262_s30 + $0xee4] sm:$0xf0]  ;;  %v10390_v53 = vld [vmem:[%s12262_s30 + $0xea0] sm:$0xf] }
 0x2f4   : > { %7865 = vmatpush.bf16.msra.mxu0 %v10063_v40  ;;  %v4949_v40 = vld [vmem:[#allocation1 + $0x12] sm:$0xff] }
 0x2f5   : > { %7878 = vmatpush.bf16.msra.mxu1 %v10127_v44  ;;  %v10359_v44 = vor.u32 %v11028_v30, %v10358_v26  ;;  %v10343_v26 = vor.u32 %v11024_v3, %v10342_v63  ;;  %v10327_v3 = vor.u32 %v11020_v52, %v10326_v51  ;;  %v10581_v51 = vld [vmem:[%s12262_s30 + $0x74] sm:$0xf]  ;;  %v8576_v52 = vld [vmem:[%s12262_s30 + $0x78] sm:$0xf0] }
 0x2f6   : > { %7891 = vmatpush.bf16.msra.mxu2 %v10191_v45  ;;  %v10423_v45 = vor.u32 %v11044_v33, %v10422_v31  ;;  %v10334_v33 = vld [vmem:[%s12262_s30 + $0xe30] sm:$0xf] }
 0x2f7   : > { %7904 = vmatpush.bf16.msra.mxu3 %v10255_v54  ;;  %v10551_v54 = vor.u32 %v11076_v39, %v10550_v38  ;;  %v11038_v39 = vld [vmem:[%s12262_s30 + $0xeb4] sm:$0xf0] }
 0x2f8   : > { %7866 = vmatpush.bf16.msra.mxu0 %v10055_v62  ;;  %v10479_v62 = vor.u32 %v11058_v56, %v10478_v43  ;;  %v11036_v43 = vld [vmem:[%s12262_s30 + $0xea4] sm:$0xf0]  ;;  %v10454_v56 = vld [vmem:[%s12262_s30 + $0xf20] sm:$0xf] }
 0x2f9   : > { %7879 = vmatpush.bf16.msra.mxu1 %v10119_v10  ;;  %v10543_v10 = vor.u32 %v11074_v58, %v10542_v57  ;;  %v7673_v30 = vpop.f32.mrf.mxu1  ;;  %v11052_v57 = vld [vmem:[%s12262_s30 + $0xf24] sm:$0xf0] }
 0x2fa   : > { %7892 = vmatpush.bf16.msra.mxu2 %v10183_v11  ;;  %v11040_v11 = vld [vmem:[%s12262_s30 + $0xec4] sm:$0xf0] }
 0x2fb   : > { %7905 = vmatpush.bf16.msra.mxu3 %v10247_v21  ;;  %7867 = vmatmul.bf16.vlgmr.msra.gmra.mxu0 %v4947_v37  ;;  %v7660_v21 = vpop.f32.mrf.mxu0  ;;  %v10407_v31 = vor.u32 %v11040_v11, %v10406_v8  ;;  %v10391_v11 = vor.u32 %v11036_v43, %v10390_v53  ;;  %v10597_v53 = vld [vmem:[%s12262_s30 + $0xf4] sm:$0xf]  ;;  %v8640_v43 = vld [vmem:[%s12262_s30 + $0xf8] sm:$0xf0] }
 0x2fc   : > { %7911 = vmatpush.bf16.msrb.mxu0 %v10367_v23  ;;  %7880 = vmatmul.bf16.vlgmr.msra.gmra.mxu1 %v4948_v41  ;;  %v10534_v23 = vld [vmem:[%s12262_s30 + $0xfc0] sm:$0xf]  ;;  %v10526_v41 = vld [vmem:[%s12262_s30 + $0xfb0] sm:$0xf] }
 0x2fd   : > { %7924 = vmatpush.bf16.msrb.mxu1 %v10431_v24  ;;  %7893 = vmatmul.bf16.vlgmr.msra.gmra.mxu2 %v4949_v40  ;;  %v11072_v24 = vld [vmem:[%s12262_s30 + $0xfc4] sm:$0xf0]  ;;  %v10462_v40 = vld [vmem:[%s12262_s30 + $0xf30] sm:$0xf] }
 0x2fe   : > { %7937 = vmatpush.bf16.msrb.mxu2 %v10495_v25  ;;  %7906 = vmatmul.bf16.vlgmr.msra.gmra.mxu3 %v4950_v42  ;;  %v7661_v25 = vadd.f32 %v7660_v21, %v12800_v22  ;;  %v10535_v37 = vor.u32 %v11072_v24, %v10534_v23  ;;  %v11054_v22 = vld [vmem:[%s12262_s30 + $0xf34] sm:$0xf0]  ;;  %v10382_v23 = vld [vmem:[%s12262_s30 + $0xe90] sm:$0xf] }
 0x2ff   : > { %7950 = vmatpush.bf16.msrb.mxu3 %v10559_v32  ;;  %v10471_v32 = vor.u32 %v11056_v20, %v10470_v19  ;;  %v11070_v42 = vld [vmem:[%s12262_s30 + $0xfb4] sm:$0xf0]  ;;  %v10455_v19 = vor.u32 %v11052_v57, %v10454_v56  ;;  %v10318_v20 = vld [vmem:[%s12262_s30 + $0xe10] sm:$0xf]  ;;  %v10613_v56 = vld [vmem:[%s12262_s30 + $0x174] sm:$0xf] }
 0x300   : > { %7912 = vmatpush.bf16.msrb.mxu0 %v10359_v44  ;;  %v7674_v38 = vadd.f32 %v7673_v30, %v7661_v25  ;;  %v10335_v44 = vor.u32 %v11022_v35, %v10334_v33  ;;  %v7686_v55 = vpop.f32.mrf.mxu2  ;;  %v11018_v21 = vld [vmem:[%s12262_s30 + $0xe14] sm:$0xf0]  ;;  %v10310_v35 = vld [vmem:[%s12262_s30 + $0xe00] sm:$0xf]  ;;  %v8704_v57 = vld [vmem:[%s12262_s30 + $0x178] sm:$0xf0] }
 0x301   : > { %7925 = vmatpush.bf16.msrb.mxu1 %v10423_v45  ;;  %v10399_v45 = vor.u32 %v11038_v39, %v10398_v36  ;;  %v7675_v8 = vpop.f32.mrf.mxu1  ;;  %v11034_v25 = vld [vmem:[%s12262_s30 + $0xe94] sm:$0xf0]  ;;  %v10319_v33 = vor.u32 %v11018_v21, %v10318_v20  ;;  %v11016_v36 = vld [vmem:[%s12262_s30 + $0xe04] sm:$0xf0]  ;;  %v10374_v39 = vld [vmem:[%s12262_s30 + $0xe80] sm:$0xf] }
 0x302   : > { %7938 = vmatpush.bf16.msrb.mxu2 %v10487_v50  ;;  %v10463_v50 = vor.u32 %v11054_v22, %v10462_v40  ;;  %v7687_v58 = vadd.f32 %v7686_v55, %v7674_v38  ;;  %v11050_v30 = vld [vmem:[%s12262_s30 + $0xf14] sm:$0xf0]  ;;  %v11032_v40 = vld [vmem:[%s12262_s30 + $0xe84] sm:$0xf0]  ;;  %v10438_v22 = vld [vmem:[%s12262_s30 + $0xf00] sm:$0xf]  ;;  %v10311_v55 = vor.u32 %v11016_v36, %v10310_v35  ;;  %v8643_v8 = vor.u32 %v10597_v53, %v8640_v43 }
 0x303   : > { %7951 = vmatpush.bf16.msrb.mxu3 %v10551_v54  ;;  %v10527_v54 = vor.u32 %v11070_v42, %v10526_v41  ;;  %v7662_v63 = vpop.f32.mrf.mxu0  ;;  %v11048_v42 = vld [vmem:[%s12262_s30 + $0xf04] sm:$0xf0]  ;;  %v8568_v20 = vld [vmem:[%s12262_s30 + $0x68] sm:$0xf0]  ;;  %v10595_v21 = vld [vmem:[%s12262_s30 + $0xe4] sm:$0xf] }
 0x304   : > { %7913 = vmatpush.bf16.msrb.mxu0 %v10351_v59  ;;  %v7699_v59 = vpop.f32.mrf.mxu3  ;;  %v4952_v35 = vld [vmem:[#allocation1 + $0x2d] sm:$0xff]  ;;  %v4954_v36 = vld [vmem:[#allocation1 + $0x3f] sm:$0xff] }
 0x305   : > { %7926 = vmatpush.bf16.msrb.mxu1 %v10415_v61  ;;  %v10518_v61 = vld [vmem:[%s12262_s30 + $0xfa0] sm:$0xf]  ;;  %v10575_v43 = vld [vmem:[%s12262_s30 + $0x44] sm:$0xf] }
 0x306   : > { %7939 = vmatpush.bf16.msrb.mxu2 %v10479_v62  ;;  %v11068_v62 = vld [vmem:[%s12262_s30 + $0xfa4] sm:$0xf0] }
 0x307   : > { %7952 = vmatpush.bf16.msrb.mxu3 %v10543_v10  ;;  %v12867_v10 = vadd.f32 %v7699_v59, %v7687_v58  ;;  %v10519_v24 = vor.u32 %v11068_v62, %v10518_v61  ;;  %v10375_v58 = vor.u32 %v11032_v40, %v10374_v39  ;;  %v10439_v59 = vor.u32 %v11048_v42, %v10438_v22  ;;  %v10629_v61 = vld [vmem:[%s12262_s30 + $0x1f4] sm:$0xf]  ;;  %v8768_v62 = vld [vmem:[%s12262_s30 + $0x1f8] sm:$0xf0] }
 0x308   : > { %7914 = vmatpush.bf16.msrb.mxu0 %v10343_v26  ;;  %v10446_v26 = vld [vmem:[%s12262_s30 + $0xf10] sm:$0xf]  ;;  %v10577_v40 = vld [vmem:[%s12262_s30 + $0x54] sm:$0xf]  ;;  %v8560_v22 = vld [vmem:[%s12262_s30 + $0x58] sm:$0xf0] }
 0x309   : > { %7927 = vmatpush.bf16.msrb.mxu1 %v10407_v31  ;;  %v10510_v31 = vld [vmem:[%s12262_s30 + $0xf90] sm:$0xf]  ;;  %v10447_v38 = vor.u32 %v11050_v30, %v10446_v26  ;;  %v8696_v26 = vld [vmem:[%s12262_s30 + $0x168] sm:$0xf0]  ;;  %v4951_v30 = vld [vmem:[#allocation1 + $0x24] sm:$0xff]  ;;  %v8563_v53 = vor.u32 %v10577_v40, %v8560_v22 }
 0x30a   : > { %7940 = vmatpush.bf16.msrb.mxu2 %v10471_v32  ;;  %v11066_v32 = vld [vmem:[%s12262_s30 + $0xf94] sm:$0xf0]  ;;  %v10571_v40 = vld [vmem:[%s12262_s30 + $0x24] sm:$0xf]  ;;  %v8536_v22 = vld [vmem:[%s12262_s30 + $0x28] sm:$0xf0] }
 0x30b   : > { %7953 = vmatpush.bf16.msrb.mxu3 %v10535_v37  ;;  %v10383_v37 = vor.u32 %v11034_v25, %v10382_v23  ;;  %v10511_v41 = vor.u32 %v11066_v32, %v10510_v31  ;;  %v8771_v23 = vor.u32 %v10629_v61, %v8768_v62  ;;  %v10611_v25 = vld [vmem:[%s12262_s30 + $0x164] sm:$0xf]  ;;  %v8760_v32 = vld [vmem:[%s12262_s30 + $0x1e8] sm:$0xf0] }
 0x30c   : > { %7915 = vmatpush.bf16.msrb.mxu0 %v10335_v44  ;;  %v10502_v44 = vld [vmem:[%s12262_s30 + $0xf80] sm:$0xf]  ;;  %v10627_v31 = vld [vmem:[%s12262_s30 + $0x1e4] sm:$0xf]  ;;  %v8699_v39 = vor.u32 %v10611_v25, %v8696_v26  ;;  %v8680_v62 = vld [vmem:[%s12262_s30 + $0x148] sm:$0xf0] }
 0x30d   : > { %7928 = vmatpush.bf16.msrb.mxu1 %v10399_v45  ;;  %v11064_v45 = vld [vmem:[%s12262_s30 + $0xf84] sm:$0xf0]  ;;  %v8763_v42 = vor.u32 %v10627_v31, %v8760_v32  ;;  %v10607_v61 = vld [vmem:[%s12262_s30 + $0x144] sm:$0xf]  ;;  %v8544_v25 = vld [vmem:[%s12262_s30 + $0x38] sm:$0xf0] }
 0x30e   : > { %7941 = vmatpush.bf16.msrb.mxu2 %v10463_v50  ;;  %v7688_v50 = vpop.f32.mrf.mxu2  ;;  %v10503_v63 = vor.u32 %v11064_v45, %v10502_v44  ;;  %v8624_v44 = vld [vmem:[%s12262_s30 + $0xd8] sm:$0xf0]  ;;  %v10609_v45 = vld [vmem:[%s12262_s30 + $0x154] sm:$0xf] }
 0x30f   : > { %7954 = vmatpush.bf16.msrb.mxu3 %v10527_v54  ;;  %v7701_v54 = vpop.f32.mrf.mxu3  ;;  %v8688_v50 = vld [vmem:[%s12262_s30 + $0x158] sm:$0xf0]  ;;  %v10589_v26 = vld [vmem:[%s12262_s30 + $0xb4] sm:$0xf] }
 0x310   : > { %7916 = vmatpush.bf16.msrb.mxu0 %v10327_v3  ;;  %v8579_v3 = vor.u32 %v10581_v51, %v8576_v52  ;;  %v10625_v51 = vld [vmem:[%s12262_s30 + $0x1d4] sm:$0xf]  ;;  %v8752_v52 = vld [vmem:[%s12262_s30 + $0x1d8] sm:$0xf0] }
 0x311   : > { %7929 = vmatpush.bf16.msrb.mxu1 %v10391_v11  ;;  %v8707_v11 = vor.u32 %v10613_v56, %v8704_v57  ;;  %v8552_v56 = vld [vmem:[%s12262_s30 + $0x48] sm:$0xf0]  ;;  %v10591_v57 = vld [vmem:[%s12262_s30 + $0xc4] sm:$0xf]  ;;  %v8608_v32 = vld [vmem:[%s12262_s30 + $0xb8] sm:$0xf0] }
 0x312   : > { %7942 = vmatpush.bf16.msrb.mxu2 %v10455_v19  ;;  %v10579_v19 = vld [vmem:[%s12262_s30 + $0x64] sm:$0xf] }
 0x313   : > { %7955 = vmatpush.bf16.msrb.mxu3 %v10519_v24  ;;  %v8632_v24 = vld [vmem:[%s12262_s30 + $0xe8] sm:$0xf0] }
 0x314   : > { %7917 = vmatpush.bf16.msrb.mxu0 %v10319_v33  ;;  %v4953_v33 = vld [vmem:[#allocation1 + $0x36] sm:$0xff] }
 0x315   : > { %7930 = vmatpush.bf16.msrb.mxu1 %v10383_v37  ;;  %v8571_v37 = vor.u32 %v10579_v19, %v8568_v20  ;;  %v8555_v19 = vor.u32 %v10575_v43, %v8552_v56  ;;  %v8539_v56 = vor.u32 %v10571_v40, %v8536_v22  ;;  %v10645_v40 = vld [vmem:[%s12262_s30 + $0x274] sm:$0xf]  ;;  %v8832_v22 = vld [vmem:[%s12262_s30 + $0x278] sm:$0xf0] }
 0x316   : > { %7943 = vmatpush.bf16.msrb.mxu2 %v10447_v38  ;;  %v8635_v38 = vor.u32 %v10595_v21, %v8632_v24  ;;  %v10573_v24 = vld [vmem:[%s12262_s30 + $0x34] sm:$0xf] }
 0x317   : > { %7956 = vmatpush.bf16.msrb.mxu3 %v10511_v41  ;;  %v10593_v41 = vld [vmem:[%s12262_s30 + $0xd4] sm:$0xf] }
 0x318   : > { %7918 = vmatpush.bf16.msrb.mxu0 %v10311_v55  ;;  %v8627_v54 = vor.u32 %v10593_v41, %v8624_v44  ;;  %v8691_v55 = vor.u32 %v10609_v45, %v8688_v50  ;;  %v10587_v41 = vld [vmem:[%s12262_s30 + $0xa4] sm:$0xf]  ;;  %v8600_v45 = vld [vmem:[%s12262_s30 + $0xa8] sm:$0xf0] }
 0x319   : > { %7931 = vmatpush.bf16.msrb.mxu1 %v10375_v58  ;;  %v8755_v58 = vor.u32 %v10625_v51, %v8752_v52  ;;  %v7725_v20 = vpop.f32.mrf.mxu1  ;;  %v10603_v50 = vld [vmem:[%s12262_s30 + $0x124] sm:$0xf]  ;;  %v8664_v51 = vld [vmem:[%s12262_s30 + $0x128] sm:$0xf0] }
 0x31a   : > { %7944 = vmatpush.bf16.msrb.mxu2 %v10439_v59  ;;  %v8616_v59 = vld [vmem:[%s12262_s30 + $0xc8] sm:$0xf0] }
 0x31b   : > { %7957 = vmatpush.bf16.msrb.mxu3 %v10503_v63  ;;  %7919 = vmatmul.bf16.vlgmr.msrb.gmra.mxu0 %v4951_v30  ;;  %v7712_v63 = vpop.f32.mrf.mxu0  ;;  %v8619_v21 = vor.u32 %v10591_v57, %v8616_v59  ;;  %v8603_v59 = vor.u32 %v10587_v41, %v8600_v45  ;;  %v10661_v41 = vld [vmem:[%s12262_s30 + $0x2f4] sm:$0xf]  ;;  %v8896_v45 = vld [vmem:[%s12262_s30 + $0x2f8] sm:$0xf0] }
 0x31c   : > { %7963 = vmatpush.bf16.msra.mxu0 %v8579_v3  ;;  %7932 = vmatmul.bf16.vlgmr.msrb.gmra.mxu1 %v4952_v35  ;;  %v10623_v3 = vld [vmem:[%s12262_s30 + $0x1c4] sm:$0xf]  ;;  %v10621_v35 = vld [vmem:[%s12262_s30 + $0x1b4] sm:$0xf] }
 0x31d   : > { %7976 = vmatpush.bf16.msra.mxu1 %v8643_v8  ;;  %7945 = vmatmul.bf16.vlgmr.msrb.gmra.mxu2 %v4953_v33  ;;  %v8744_v8 = vld [vmem:[%s12262_s30 + $0x1c8] sm:$0xf0]  ;;  %v10605_v33 = vld [vmem:[%s12262_s30 + $0x134] sm:$0xf] }
 0x31e   : > { %7989 = vmatpush.bf16.msra.mxu2 %v8707_v11  ;;  %7958 = vmatmul.bf16.vlgmr.msrb.gmra.mxu3 %v4954_v36  ;;  %v7713_v11 = vadd.f32 %v7712_v63, %v12867_v10  ;;  %v8747_v30 = vor.u32 %v10623_v3, %v8744_v8  ;;  %v8672_v10 = vld [vmem:[%s12262_s30 + $0x138] sm:$0xf0]  ;;  %v10585_v3 = vld [vmem:[%s12262_s30 + $0x94] sm:$0xf] }
 0x31f   : > { %8002 = vmatpush.bf16.msra.mxu3 %v8771_v23  ;;  %v8683_v23 = vor.u32 %v10607_v61, %v8680_v62  ;;  %v8736_v36 = vld [vmem:[%s12262_s30 + $0x1b8] sm:$0xf0]  ;;  %v8667_v61 = vor.u32 %v10603_v50, %v8664_v51  ;;  %v10569_v62 = vld [vmem:[%s12262_s30 + $0x14] sm:$0xf] }
 0x320   : > { %7964 = vmatpush.bf16.msra.mxu0 %v8571_v37  ;;  %v7726_v31 = vadd.f32 %v7725_v20, %v7713_v11  ;;  %v8547_v37 = vor.u32 %v10573_v24, %v8544_v25  ;;  %v7738_v44 = vpop.f32.mrf.mxu2  ;;  %v8528_v63 = vld [vmem:[%s12262_s30 + $0x18] sm:$0xf0]  ;;  %v10567_v25 = vld [vmem:[%s12262_s30 + $0x4] sm:$0xf]  ;;  %v10677_v50 = vld [vmem:[%s12262_s30 + $0x374] sm:$0xf] }
 0x321   : > { %7977 = vmatpush.bf16.msra.mxu1 %v8635_v38  ;;  %v8611_v38 = vor.u32 %v10589_v26, %v8608_v32  ;;  %v7727_v57 = vpop.f32.mrf.mxu1  ;;  %v8592_v11 = vld [vmem:[%s12262_s30 + $0x98] sm:$0xf0]  ;;  %v8531_v24 = vor.u32 %v10569_v62, %v8528_v63  ;;  %v8520_v26 = vld [vmem:[%s12262_s30 + $0x8] sm:$0xf0]  ;;  %v10583_v32 = vld [vmem:[%s12262_s30 + $0x84] sm:$0xf] }
 0x322   : > { %7990 = vmatpush.bf16.msra.mxu2 %v8699_v39  ;;  %v8675_v39 = vor.u32 %v10605_v33, %v8672_v10  ;;  %v7739_v52 = vadd.f32 %v7738_v44, %v7726_v31  ;;  %v8656_v20 = vld [vmem:[%s12262_s30 + $0x118] sm:$0xf0]  ;;  %v8584_v33 = vld [vmem:[%s12262_s30 + $0x88] sm:$0xf0]  ;;  %v10599_v10 = vld [vmem:[%s12262_s30 + $0x104] sm:$0xf]  ;;  %v8523_v44 = vor.u32 %v10567_v25, %v8520_v26  ;;  %v8899_v57 = vor.u32 %v10661_v41, %v8896_v45 }
 0x323   : > { %8003 = vmatpush.bf16.msra.mxu3 %v8763_v42  ;;  %v8739_v42 = vor.u32 %v10621_v35, %v8736_v36  ;;  %v7714_v43 = vpop.f32.mrf.mxu0  ;;  %v8648_v36 = vld [vmem:[%s12262_s30 + $0x108] sm:$0xf0]  ;;  %v8960_v51 = vld [vmem:[%s12262_s30 + $0x378] sm:$0xf0]  ;;  %v10659_v63 = vld [vmem:[%s12262_s30 + $0x2e4] sm:$0xf] }
 0x324   : > { %7965 = vmatpush.bf16.msra.mxu0 %v8563_v53  ;;  %v7751_v53 = vpop.f32.mrf.mxu3  ;;  %v8824_v62 = vld [vmem:[%s12262_s30 + $0x268] sm:$0xf0]  ;;  %v10641_v26 = vld [vmem:[%s12262_s30 + $0x254] sm:$0xf]  ;;  %v10655_v41 = vld [vmem:[%s12262_s30 + $0x2c4] sm:$0xf] }
 0x325   : > { %7978 = vmatpush.bf16.msra.mxu1 %v8627_v54  ;;  %v10619_v54 = vld [vmem:[%s12262_s30 + $0x1a4] sm:$0xf] }
 0x326   : > { %7991 = vmatpush.bf16.msra.mxu2 %v8691_v55  ;;  %v8728_v55 = vld [vmem:[%s12262_s30 + $0x1a8] sm:$0xf0] }
 0x327   : > { %8004 = vmatpush.bf16.msra.mxu3 %v8755_v58  ;;  %v12934_v58 = vadd.f32 %v7751_v53, %v7739_v52  ;;  %v8731_v8 = vor.u32 %v10619_v54, %v8728_v55  ;;  %v8587_v52 = vor.u32 %v10583_v32, %v8584_v33  ;;  %v8651_v53 = vor.u32 %v10599_v10, %v8648_v36  ;;  %v10693_v54 = vld [vmem:[%s12262_s30 + $0x3f4] sm:$0xf]  ;;  %v9024_v55 = vld [vmem:[%s12262_s30 + $0x3f8] sm:$0xf0] }
 0x328   : > { %7966 = vmatpush.bf16.msra.mxu0 %v8555_v19  ;;  %v10601_v19 = vld [vmem:[%s12262_s30 + $0x114] sm:$0xf]  ;;  %v8880_v33 = vld [vmem:[%s12262_s30 + $0x2d8] sm:$0xf0] }
 0x329   : > { %7979 = vmatpush.bf16.msra.mxu1 %v8619_v21  ;;  %v10617_v21 = vld [vmem:[%s12262_s30 + $0x194] sm:$0xf]  ;;  %v8659_v31 = vor.u32 %v10601_v19, %v8656_v20  ;;  %v8952_v19 = vld [vmem:[%s12262_s30 + $0x368] sm:$0xf0]  ;;  %v10691_v20 = vld [vmem:[%s12262_s30 + $0x3e4] sm:$0xf] }
 0x32a   : > { %7992 = vmatpush.bf16.msra.mxu2 %v8683_v23  ;;  %v8720_v23 = vld [vmem:[%s12262_s30 + $0x198] sm:$0xf0]  ;;  %v10673_v10 = vld [vmem:[%s12262_s30 + $0x354] sm:$0xf] }
 0x32b   : > { %8005 = vmatpush.bf16.msra.mxu3 %v8747_v30  ;;  %v8595_v30 = vor.u32 %v10585_v3, %v8592_v11  ;;  %v8723_v35 = vor.u32 %v10617_v21, %v8720_v23  ;;  %v9027_v3 = vor.u32 %v10693_v54, %v9024_v55  ;;  %v10675_v11 = vld [vmem:[%s12262_s30 + $0x364] sm:$0xf]  ;;  %v9016_v21 = vld [vmem:[%s12262_s30 + $0x3e8] sm:$0xf0]  ;;  %v10689_v36 = vld [vmem:[%s12262_s30 + $0x3d4] sm:$0xf] }
 0x32c   : > { %7967 = vmatpush.bf16.msra.mxu0 %v8547_v37  ;;  %v10615_v37 = vld [vmem:[%s12262_s30 + $0x184] sm:$0xf]  ;;  %v8955_v25 = vor.u32 %v10675_v11, %v8952_v19  ;;  %v9019_v32 = vor.u32 %v10691_v20, %v9016_v21 }
 0x32d   : > { %7980 = vmatpush.bf16.msra.mxu1 %v8611_v38  ;;  %v8712_v38 = vld [vmem:[%s12262_s30 + $0x188] sm:$0xf0]  ;;  %v10635_v21 = vld [vmem:[%s12262_s30 + $0x224] sm:$0xf] }
 0x32e   : > { %7993 = vmatpush.bf16.msra.mxu2 %v8675_v39  ;;  %v7740_v39 = vpop.f32.mrf.mxu2  ;;  %v8715_v43 = vor.u32 %v10615_v37, %v8712_v38  ;;  %v9008_v37 = vld [vmem:[%s12262_s30 + $0x3d8] sm:$0xf0] }
 0x32f   : > { %8006 = vmatpush.bf16.msra.mxu3 %v8739_v42  ;;  %v7753_v42 = vpop.f32.mrf.mxu3 }
 0x330   : > { %7968 = vmatpush.bf16.msra.mxu0 %v8539_v56  ;;  %v8835_v56 = vor.u32 %v10645_v40, %v8832_v22  ;;  %v8808_v22 = vld [vmem:[%s12262_s30 + $0x248] sm:$0xf0]  ;;  %v9011_v42 = vor.u32 %v10689_v36, %v9008_v37 }
 0x331   : > { %7981 = vmatpush.bf16.msra.mxu1 %v8603_v59  ;;  %v8963_v59 = vor.u32 %v10677_v50, %v8960_v51  ;;  %v10687_v50 = vld [vmem:[%s12262_s30 + $0x3c4] sm:$0xf]  ;;  %v9000_v51 = vld [vmem:[%s12262_s30 + $0x3c8] sm:$0xf0] }
 0x332   : > { %7994 = vmatpush.bf16.msra.mxu2 %v8667_v61  ;;  %v10643_v61 = vld [vmem:[%s12262_s30 + $0x264] sm:$0xf]  ;;  %v8984_v36 = vld [vmem:[%s12262_s30 + $0x3a8] sm:$0xf0] }
 0x333   : > { %8007 = vmatpush.bf16.msra.mxu3 %v8731_v8  ;;  %v8888_v8 = vld [vmem:[%s12262_s30 + $0x2e8] sm:$0xf0]  ;;  %v8827_v23 = vor.u32 %v10643_v61, %v8824_v62  ;;  %v8864_v62 = vld [vmem:[%s12262_s30 + $0x2b8] sm:$0xf0] }
 0x334   : > { %7969 = vmatpush.bf16.msra.mxu0 %v8531_v24  ;;  %v8891_v24 = vor.u32 %v10659_v63, %v8888_v8  ;;  %v10669_v63 = vld [vmem:[%s12262_s30 + $0x334] sm:$0xf]  ;;  %v8992_v8 = vld [vmem:[%s12262_s30 + $0x3b8] sm:$0xf0] }
 0x335   : > { %7982 = vmatpush.bf16.msra.mxu1 %v8595_v30  ;;  %v8816_v30 = vld [vmem:[%s12262_s30 + $0x258] sm:$0xf0] }
 0x336   : > { %7995 = vmatpush.bf16.msra.mxu2 %v8659_v31  ;;  %v10657_v31 = vld [vmem:[%s12262_s30 + $0x2d4] sm:$0xf]  ;;  %v8819_v38 = vor.u32 %v10641_v26, %v8816_v30  ;;  %v8856_v30 = vld [vmem:[%s12262_s30 + $0x2a8] sm:$0xf0] }
 0x337   : > { %8008 = vmatpush.bf16.msra.mxu3 %v8723_v35  ;;  %v8944_v35 = vld [vmem:[%s12262_s30 + $0x358] sm:$0xf0]  ;;  %v8883_v39 = vor.u32 %v10657_v31, %v8880_v33  ;;  %v10667_v31 = vld [vmem:[%s12262_s30 + $0x324] sm:$0xf] }
 0x338   : > { %7970 = vmatpush.bf16.msra.mxu0 %v8523_v44  ;;  %v8947_v40 = vor.u32 %v10673_v10, %v8944_v35  ;;  %v8936_v44 = vld [vmem:[%s12262_s30 + $0x348] sm:$0xf0]  ;;  %v7764_v45 = vpop.f32.mrf.mxu0  ;;  %v10683_v35 = vld [vmem:[%s12262_s30 + $0x3a4] sm:$0xf] }
 0x339   : > { %7983 = vmatpush.bf16.msra.mxu1 %v8587_v52 }
 0x33a   : > { %7996 = vmatpush.bf16.msra.mxu2 %v8651_v53  ;;  %v7777_v53 = vpop.f32.mrf.mxu1 }
 0x33b   : > { %8009 = vmatpush.bf16.msra.mxu3 %v8715_v43  ;;  %7971 = vmatmul.bf16.vlgmr.msra.gmra.mxu0 %v12374_v28  ;;  %v8872_v28 = vld [vmem:[%s12262_s30 + $0x2c8] sm:$0xf0]  ;;  %v10637_v43 = vld [vmem:[%s12262_s30 + $0x234] sm:$0xf] }
 0x33c   : > { %8015 = vmatpush.bf16.msrb.mxu0 %v8835_v56  ;;  %7984 = vmatmul.bf16.vlgmr.msra.gmra.mxu1 %v12380_v34  ;;  %v7765_v34 = vadd.f32 %v7764_v45, %v12934_v58  ;;  %v8875_v54 = vor.u32 %v10655_v41, %v8872_v28  ;;  %v8800_v56 = vld [vmem:[%s12262_s30 + $0x238] sm:$0xf0]  ;;  %v10633_v41 = vld [vmem:[%s12262_s30 + $0x214] sm:$0xf] }
 0x33d   : > { %8028 = vmatpush.bf16.msrb.mxu1 %v8899_v57  ;;  %7997 = vmatmul.bf16.vlgmr.msra.gmra.mxu2 %v12372_v27  ;;  %v10639_v27 = vld [vmem:[%s12262_s30 + $0x244] sm:$0xf]  ;;  %v10653_v57 = vld [vmem:[%s12262_s30 + $0x2b4] sm:$0xf]  ;;  %v8928_v58 = vld [vmem:[%s12262_s30 + $0x338] sm:$0xf0]  ;;  %v8803_v11 = vor.u32 %v10637_v43, %v8800_v56 }
 0x33e   : > { %8041 = vmatpush.bf16.msrb.mxu2 %v8963_v59  ;;  %8010 = vmatmul.bf16.vlgmr.msra.gmra.mxu3 %v12376_v29  ;;  %v10671_v29 = vld [vmem:[%s12262_s30 + $0x344] sm:$0xf]  ;;  %v8811_v52 = vor.u32 %v10639_v27, %v8808_v22  ;;  %v9003_v59 = vor.u32 %v10687_v50, %v9000_v51  ;;  %v7778_v61 = vadd.f32 %v7777_v53, %v7765_v34  ;;  %v10649_v28 = vld [vmem:[%s12262_s30 + $0x294] sm:$0xf]  ;;  %v8912_v50 = vld [vmem:[%s12262_s30 + $0x318] sm:$0xf0] }
 0x33f   : > { %8054 = vmatpush.bf16.msrb.mxu3 %v9027_v3  ;;  %v8939_v55 = vor.u32 %v10671_v29, %v8936_v44  ;;  %v10685_v3 = vld [vmem:[%s12262_s30 + $0x3b4] sm:$0xf]  ;;  %v8867_v19 = vor.u32 %v10653_v57, %v8864_v62  ;;  %v8931_v20 = vor.u32 %v10669_v63, %v8928_v58  ;;  %v8987_v29 = vor.u32 %v10683_v35, %v8984_v36  ;;  %v8848_v44 = vld [vmem:[%s12262_s30 + $0x298] sm:$0xf0]  ;;  %v10631_v53 = vld [vmem:[%s12262_s30 + $0x204] sm:$0xf] }
 0x340   : > { %8016 = vmatpush.bf16.msrb.mxu0 %v8827_v23  ;;  %v8792_v23 = vld [vmem:[%s12262_s30 + $0x228] sm:$0xf0]  ;;  %v7790_v26 = vpop.f32.mrf.mxu2  ;;  %v7766_v37 = vpop.f32.mrf.mxu0  ;;  %v10665_v45 = vld [vmem:[%s12262_s30 + $0x314] sm:$0xf]  ;;  %v8976_v34 = vld [vmem:[%s12262_s30 + $0x398] sm:$0xf0] }
 0x341   : > { %8029 = vmatpush.bf16.msrb.mxu1 %v8891_v24  ;;  %v10651_v24 = vld [vmem:[%s12262_s30 + $0x2a4] sm:$0xf]  ;;  %v7791_v33 = vadd.f32 %v7790_v26, %v7778_v61  ;;  %v7803_v10 = vpop.f32.mrf.mxu3  ;;  %v10681_v51 = vld [vmem:[%s12262_s30 + $0x394] sm:$0xf]  ;;  %v8915_v43 = vor.u32 %v10665_v45, %v8912_v50  ;;  %v8840_v57 = vld [vmem:[%s12262_s30 + $0x288] sm:$0xf0] }
 0x342   : > { %8042 = vmatpush.bf16.msrb.mxu2 %v8955_v25  ;;  %v8995_v25 = vor.u32 %v10685_v3, %v8992_v8  ;;  %v8859_v27 = vor.u32 %v10651_v24, %v8856_v30  ;;  %v10647_v56 = vld [vmem:[%s12262_s30 + $0x284] sm:$0xf]  ;;  %v8979_v61 = vor.u32 %v10681_v51, %v8976_v34  ;;  %v8904_v62 = vld [vmem:[%s12262_s30 + $0x308] sm:$0xf0]  ;;  %v10709_v8 = vld [vmem:[%s12262_s30 + $0x474] sm:$0xf] }
 0x343   : > { %8055 = vmatpush.bf16.msrb.mxu3 %v9019_v32  ;;  %v8920_v32 = vld [vmem:[%s12262_s30 + $0x328] sm:$0xf0]  ;;  %v10679_v63 = vld [vmem:[%s12262_s30 + $0x384] sm:$0xf]  ;;  %v10741_v24 = vld [vmem:[%s12262_s30 + $0x574] sm:$0xf]  ;;  %v8843_v26 = vor.u32 %v10647_v56, %v8840_v57 }
 0x344   : > { %8017 = vmatpush.bf16.msrb.mxu0 %v8819_v38  ;;  %v8795_v38 = vor.u32 %v10635_v21, %v8792_v23  ;;  %v8923_v22 = vor.u32 %v10667_v31, %v8920_v32  ;;  %v8968_v58 = vld [vmem:[%s12262_s30 + $0x388] sm:$0xf0]  ;;  %v9152_v23 = vld [vmem:[%s12262_s30 + $0x4f8] sm:$0xf0]  ;;  %v10757_v31 = vld [vmem:[%s12262_s30 + $0x5f4] sm:$0xf] }
 0x345   : > { %8030 = vmatpush.bf16.msrb.mxu1 %v8883_v39  ;;  %v7779_v39 = vpop.f32.mrf.mxu1  ;;  %v9280_v32 = vld [vmem:[%s12262_s30 + $0x5f8] sm:$0xf0]  ;;  %v10707_v37 = vld [vmem:[%s12262_s30 + $0x464] sm:$0xf]  ;;  %v10705_v51 = vld [vmem:[%s12262_s30 + $0x454] sm:$0xf] }
 0x346   : > { %8043 = vmatpush.bf16.msrb.mxu2 %v8947_v40  ;;  %v13005_v40 = vadd.f32 %v7803_v10, %v7791_v33  ;;  %v8971_v33 = vor.u32 %v10679_v63, %v8968_v58  ;;  %v10723_v39 = vld [vmem:[%s12262_s30 + $0x4e4] sm:$0xf]  ;;  %v9072_v34 = vld [vmem:[%s12262_s30 + $0x458] sm:$0xf0]  ;;  %v10753_v56 = vld [vmem:[%s12262_s30 + $0x5d4] sm:$0xf] }
 0x347   : > { %8056 = vmatpush.bf16.msrb.mxu3 %v9011_v42  ;;  %v8784_v42 = vld [vmem:[%s12262_s30 + $0x218] sm:$0xf0]  ;;  %v9064_v63 = vld [vmem:[%s12262_s30 + $0x448] sm:$0xf0]  ;;  %v10719_v58 = vld [vmem:[%s12262_s30 + $0x4c4] sm:$0xf] }
 0x348   : > { %8018 = vmatpush.bf16.msrb.mxu0 %v8811_v52  ;;  %v8787_v52 = vor.u32 %v10633_v41, %v8784_v42  ;;  %v7792_v3 = vpop.f32.mrf.mxu2  ;;  %v10739_v41 = vld [vmem:[%s12262_s30 + $0x564] sm:$0xf]  ;;  %v9208_v42 = vld [vmem:[%s12262_s30 + $0x568] sm:$0xf0]  ;;  %v9264_v57 = vld [vmem:[%s12262_s30 + $0x5d8] sm:$0xf0] }
 0x349   : > { %8031 = vmatpush.bf16.msrb.mxu1 %v8875_v54  ;;  %v8776_v54 = vld [vmem:[%s12262_s30 + $0x208] sm:$0xf0]  ;;  %v9211_v50 = vor.u32 %v10739_v41, %v9208_v42  ;;  %v9267_v3 = vor.u32 %v10753_v56, %v9264_v57  ;;  %v10715_v42 = vld [vmem:[%s12262_s30 + $0x4a4] sm:$0xf] }
 0x34a   : > { %8044 = vmatpush.bf16.msrb.mxu2 %v8939_v55  ;;  %v8851_v55 = vor.u32 %v10649_v28, %v8848_v44  ;;  %v8779_v21 = vor.u32 %v10631_v53, %v8776_v54  ;;  %v10755_v28 = vld [vmem:[%s12262_s30 + $0x5e4] sm:$0xf]  ;;  %v9136_v54 = vld [vmem:[%s12262_s30 + $0x4d8] sm:$0xf0]  ;;  %v9048_v41 = vld [vmem:[%s12262_s30 + $0x428] sm:$0xf0] }
 0x34b   : > { %8057 = vmatpush.bf16.msrb.mxu3 %v9003_v59  ;;  %v10663_v59 = vld [vmem:[%s12262_s30 + $0x304] sm:$0xf] }
 0x34c   : > { %8019 = vmatpush.bf16.msrb.mxu0 %v8803_v11  ;;  %v9088_v11 = vld [vmem:[%s12262_s30 + $0x478] sm:$0xf0]  ;;  %v8907_v30 = vor.u32 %v10663_v59, %v8904_v62  ;;  %v9075_v59 = vor.u32 %v10705_v51, %v9072_v34  ;;  %v10703_v62 = vld [vmem:[%s12262_s30 + $0x444] sm:$0xf] }
 0x34d   : > { %8032 = vmatpush.bf16.msrb.mxu1 %v8867_v19  ;;  %v10725_v19 = vld [vmem:[%s12262_s30 + $0x4f4] sm:$0xf]  ;;  %v9091_v10 = vor.u32 %v10709_v8, %v9088_v11  ;;  %v9192_v8 = vld [vmem:[%s12262_s30 + $0x548] sm:$0xf0] }
 0x34e   : > { %8045 = vmatpush.bf16.msrb.mxu2 %v8931_v20  ;;  %v7805_v20 = vpop.f32.mrf.mxu3  ;;  %v9155_v35 = vor.u32 %v10725_v19, %v9152_v23  ;;  %v10751_v19 = vld [vmem:[%s12262_s30 + $0x5c4] sm:$0xf] }
 0x34f   : > { %8058 = vmatpush.bf16.msrb.mxu3 %v8995_v25  ;;  %v9216_v25 = vld [vmem:[%s12262_s30 + $0x578] sm:$0xf0]  ;;  %v9256_v20 = vld [vmem:[%s12262_s30 + $0x5c8] sm:$0xf0] }
 0x350   : > { %8020 = vmatpush.bf16.msrb.mxu0 %v8795_v38  ;;  %v9219_v36 = vor.u32 %v10741_v24, %v9216_v25  ;;  %v9080_v38 = vld [vmem:[%s12262_s30 + $0x468] sm:$0xf0] }
 0x351   : > { %8033 = vmatpush.bf16.msrb.mxu1 %v8859_v27  ;;  %v9283_v27 = vor.u32 %v10757_v31, %v9280_v32  ;;  %v9083_v44 = vor.u32 %v10707_v37, %v9080_v38  ;;  %v10717_v31 = vld [vmem:[%s12262_s30 + $0x4b4] sm:$0xf]  ;;  %v9259_v32 = vor.u32 %v10751_v19, %v9256_v20  ;;  %v9248_v37 = vld [vmem:[%s12262_s30 + $0x5b8] sm:$0xf0]  ;;  %v10695_v19 = vld [vmem:[%s12262_s30 + $0x404] sm:$0xf] }
 0x352   : > { %8046 = vmatpush.bf16.msrb.mxu2 %v8923_v22  ;;  %v9144_v22 = vld [vmem:[%s12262_s30 + $0x4e8] sm:$0xf0] }
 0x353   : > { %8059 = vmatpush.bf16.msrb.mxu3 %v8987_v29  ;;  %v9272_v29 = vld [vmem:[%s12262_s30 + $0x5e8] sm:$0xf0]  ;;  %v9147_v45 = vor.u32 %v10723_v39, %v9144_v22  ;;  %v10699_v22 = vld [vmem:[%s12262_s30 + $0x424] sm:$0xf] }
 0x354   : > { %8021 = vmatpush.bf16.msrb.mxu0 %v8787_v52  ;;  %v10721_v52 = vld [vmem:[%s12262_s30 + $0x4d4] sm:$0xf]  ;;  %v9275_v53 = vor.u32 %v10755_v28, %v9272_v29  ;;  %v9032_v20 = vld [vmem:[%s12262_s30 + $0x408] sm:$0xf0] }
 0x355   : > { %8034 = vmatpush.bf16.msrb.mxu1 %v8851_v55  ;;  %v10737_v55 = vld [vmem:[%s12262_s30 + $0x554] sm:$0xf] }
 0x356   : > { %8047 = vmatpush.bf16.msrb.mxu2 %v8915_v43  ;;  %v9200_v43 = vld [vmem:[%s12262_s30 + $0x558] sm:$0xf0] }
 0x357   : > { %8060 = vmatpush.bf16.msrb.mxu3 %v8979_v61  ;;  %v9203_v61 = vor.u32 %v10737_v55, %v9200_v43  ;;  %v9051_v55 = vor.u32 %v10699_v22, %v9048_v41 }
 0x358   : > { %8022 = vmatpush.bf16.msrb.mxu0 %v8779_v21  ;;  %v7816_v11 = vpop.f32.mrf.mxu0  ;;  %v9067_v21 = vor.u32 %v10703_v62, %v9064_v63  ;;  %v10713_v62 = vld [vmem:[%s12262_s30 + $0x494] sm:$0xf] }
 0x359   : > { %8035 = vmatpush.bf16.msrb.mxu1 %v8843_v26  ;;  %v7829_v23 = vpop.f32.mrf.mxu1  ;;  %v10701_v26 = vld [vmem:[%s12262_s30 + $0x434] sm:$0xf] }
 0x35a   : > { %8048 = vmatpush.bf16.msrb.mxu2 %v8907_v30  ;;  %v9056_v30 = vld [vmem:[%s12262_s30 + $0x438] sm:$0xf0] }
 0x35b   : > { %8061 = vmatpush.bf16.msrb.mxu3 %v8971_v33  ;;  %8023 = vmatmul.bf16.vlgmr.msrb.gmra.mxu0 %v12410_v0  ;;  %v9128_v0 = vld [vmem:[%s12262_s30 + $0x4c8] sm:$0xf0]  ;;  %v9059_v38 = vor.u32 %v10701_v26, %v9056_v30 }
 0x35c   : > { %8067 = vmatpush.bf16.msra.mxu0 %v9091_v10  ;;  %8036 = vmatmul.bf16.vlgmr.msrb.gmra.mxu1 %v12414_v2  ;;  %v7817_v2 = vadd.f32 %v7816_v11, %v13005_v40  ;;  %v9131_v24 = vor.u32 %v10719_v58, %v9128_v0  ;;  %v9120_v10 = vld [vmem:[%s12262_s30 + $0x4b8] sm:$0xf0]  ;;  %v9160_v30 = vld [vmem:[%s12262_s30 + $0x508] sm:$0xf0] }
 0x35d   : > { %8080 = vmatpush.bf16.msra.mxu1 %v9155_v35  ;;  %8049 = vmatmul.bf16.vlgmr.msrb.gmra.mxu2 %v12405_v60  ;;  %v9139_v60 = vor.u32 %v10721_v52, %v9136_v54  ;;  %v10733_v35 = vld [vmem:[%s12262_s30 + $0x534] sm:$0xf]  ;;  %v9184_v40 = vld [vmem:[%s12262_s30 + $0x538] sm:$0xf0]  ;;  %v9123_v39 = vor.u32 %v10717_v31, %v9120_v10  ;;  %v10747_v52 = vld [vmem:[%s12262_s30 + $0x5a4] sm:$0xf] }
 0x35e   : > { %8093 = vmatpush.bf16.msra.mxu2 %v9219_v36  ;;  %8062 = vmatmul.bf16.vlgmr.msrb.gmra.mxu3 %v12412_v1  ;;  %v10735_v1 = vld [vmem:[%s12262_s30 + $0x544] sm:$0xf]  ;;  %v7830_v33 = vadd.f32 %v7829_v23, %v7817_v2  ;;  %v10749_v36 = vld [vmem:[%s12262_s30 + $0x5b4] sm:$0xf]  ;;  %v9104_v58 = vld [vmem:[%s12262_s30 + $0x498] sm:$0xf0] }
 0x35f   : > { %8106 = vmatpush.bf16.msra.mxu3 %v9283_v27  ;;  %v9195_v25 = vor.u32 %v10735_v1, %v9192_v8  ;;  %v9187_v27 = vor.u32 %v10733_v35, %v9184_v40  ;;  %v9251_v28 = vor.u32 %v10749_v36, %v9248_v37  ;;  %v9168_v0 = vld [vmem:[%s12262_s30 + $0x518] sm:$0xf0]  ;;  %v10745_v1 = vld [vmem:[%s12262_s30 + $0x594] sm:$0xf]  ;;  %v9107_v2 = vor.u32 %v10713_v62, %v9104_v58  ;;  %v10711_v23 = vld [vmem:[%s12262_s30 + $0x484] sm:$0xf] }
 0x360   : > { %8068 = vmatpush.bf16.msra.mxu0 %v9083_v44  ;;  %v7842_v29 = vpop.f32.mrf.mxu2  ;;  %v9112_v44 = vld [vmem:[%s12262_s30 + $0x4a8] sm:$0xf0]  ;;  %v7818_v54 = vpop.f32.mrf.mxu0  ;;  %v9232_v8 = vld [vmem:[%s12262_s30 + $0x598] sm:$0xf0]  ;;  %v10743_v31 = vld [vmem:[%s12262_s30 + $0x584] sm:$0xf]  ;;  %v9035_v37 = vor.u32 %v10695_v19, %v9032_v20 }
 0x361   : > { %8081 = vmatpush.bf16.msra.mxu1 %v9147_v45  ;;  %v10731_v45 = vld [vmem:[%s12262_s30 + $0x524] sm:$0xf]  ;;  %v7843_v51 = vadd.f32 %v7842_v29, %v7830_v33  ;;  %v7855_v34 = vpop.f32.mrf.mxu3  ;;  %v7831_v43 = vpop.f32.mrf.mxu1  ;;  %v9115_v57 = vor.u32 %v10715_v42, %v9112_v44  ;;  %v9235_v26 = vor.u32 %v10745_v1, %v9232_v8  ;;  %v10773_v10 = vld [vmem:[%s12262_s30 + $0x674] sm:$0xf]  ;;  %v9344_v35 = vld [vmem:[%s12262_s30 + $0x678] sm:$0xf0] }
 0x362   : > { %8094 = vmatpush.bf16.msra.mxu2 %v9211_v50  ;;  %v9176_v50 = vld [vmem:[%s12262_s30 + $0x528] sm:$0xf0]  ;;  %v10789_v40 = vld [vmem:[%s12262_s30 + $0x6f4] sm:$0xf]  ;;  %v9347_v44 = vor.u32 %v10773_v10, %v9344_v35  ;;  %v9328_v58 = vld [vmem:[%s12262_s30 + $0x658] sm:$0xf0] }
 0x363   : > { %8107 = vmatpush.bf16.msra.mxu3 %v9275_v53  ;;  %v9240_v53 = vld [vmem:[%s12262_s30 + $0x5a8] sm:$0xf0]  ;;  %v13076_v56 = vadd.f32 %v7855_v34, %v7843_v51  ;;  %v10821_v42 = vld [vmem:[%s12262_s30 + $0x7f4] sm:$0xf]  ;;  %v10771_v51 = vld [vmem:[%s12262_s30 + $0x664] sm:$0xf] }
 0x364   : > { %8069 = vmatpush.bf16.msra.mxu0 %v9075_v59  ;;  %v9179_v59 = vor.u32 %v10731_v45, %v9176_v50  ;;  %v9243_v63 = vor.u32 %v10747_v52, %v9240_v53  ;;  %v9336_v34 = vld [vmem:[%s12262_s30 + $0x668] sm:$0xf0]  ;;  %v10787_v52 = vld [vmem:[%s12262_s30 + $0x6e4] sm:$0xf]  ;;  %v9392_v1 = vld [vmem:[%s12262_s30 + $0x6d8] sm:$0xf0] }
 0x365   : > { %8082 = vmatpush.bf16.msra.mxu1 %v9139_v60  ;;  %v10697_v60 = vld [vmem:[%s12262_s30 + $0x414] sm:$0xf]  ;;  %v9400_v54 = vld [vmem:[%s12262_s30 + $0x6e8] sm:$0xf0]  ;;  %v9520_v20 = vld [vmem:[%s12262_s30 + $0x7d8] sm:$0xf0] }
 0x366   : > { %8095 = vmatpush.bf16.msra.mxu2 %v9203_v61  ;;  %v9040_v61 = vld [vmem:[%s12262_s30 + $0x418] sm:$0xf0]  ;;  %v9464_v43 = vld [vmem:[%s12262_s30 + $0x768] sm:$0xf0]  ;;  %v10801_v8 = vld [vmem:[%s12262_s30 + $0x754] sm:$0xf] }
 0x367   : > { %8108 = vmatpush.bf16.msra.mxu3 %v9267_v3  ;;  %v10729_v3 = vld [vmem:[%s12262_s30 + $0x514] sm:$0xf]  ;;  %v9043_v11 = vor.u32 %v10697_v60, %v9040_v61  ;;  %v9339_v60 = vor.u32 %v10771_v51, %v9336_v34  ;;  %v9403_v61 = vor.u32 %v10787_v52, %v9400_v54  ;;  %v10763_v51 = vld [vmem:[%s12262_s30 + $0x624] sm:$0xf]  ;;  %v9304_v34 = vld [vmem:[%s12262_s30 + $0x628] sm:$0xf0] }
 0x368   : > { %8070 = vmatpush.bf16.msra.mxu0 %v9067_v21  ;;  %v9171_v21 = vor.u32 %v10729_v3, %v9168_v0  ;;  %v7844_v33 = vpop.f32.mrf.mxu2  ;;  %v10785_v3 = vld [vmem:[%s12262_s30 + $0x6d4] sm:$0xf]  ;;  %v10779_v52 = vld [vmem:[%s12262_s30 + $0x6a4] sm:$0xf] }
 0x369   : > { %8083 = vmatpush.bf16.msra.mxu1 %v9131_v24  ;;  %v9096_v24 = vld [vmem:[%s12262_s30 + $0x488] sm:$0xf0]  ;;  %v7857_v36 = vpop.f32.mrf.mxu3  ;;  %v10817_v19 = vld [vmem:[%s12262_s30 + $0x7d4] sm:$0xf] }
 0x36a   : > { %8096 = vmatpush.bf16.msra.mxu2 %v9195_v25  ;;  %v10727_v25 = vld [vmem:[%s12262_s30 + $0x504] sm:$0xf]  ;;  %v9099_v22 = vor.u32 %v10711_v23, %v9096_v24  ;;  %v9320_v24 = vld [vmem:[%s12262_s30 + $0x648] sm:$0xf0] }
 0x36b   : > { %8109 = vmatpush.bf16.msra.mxu3 %v9259_v32  ;;  %v9224_v32 = vld [vmem:[%s12262_s30 + $0x588] sm:$0xf0]  ;;  %v9163_v41 = vor.u32 %v10727_v25, %v9160_v30  ;;  %v10767_v23 = vld [vmem:[%s12262_s30 + $0x644] sm:$0xf] }
 0x36c   : > { %8071 = vmatpush.bf16.msra.mxu0 %v9059_v38  ;;  %v9408_v38 = vld [vmem:[%s12262_s30 + $0x6f8] sm:$0xf0]  ;;  %v9227_v29 = vor.u32 %v10743_v31, %v9224_v32  ;;  %v9384_v25 = vld [vmem:[%s12262_s30 + $0x6c8] sm:$0xf0]  ;;  %v10815_v31 = vld [vmem:[%s12262_s30 + $0x7c4] sm:$0xf]  ;;  %v9323_v10 = vor.u32 %v10767_v23, %v9320_v24 }
 0x36d   : > { %8084 = vmatpush.bf16.msra.mxu1 %v9123_v39  ;;  %v10805_v39 = vld [vmem:[%s12262_s30 + $0x774] sm:$0xf]  ;;  %v9411_v45 = vor.u32 %v10789_v40, %v9408_v38  ;;  %v9448_v30 = vld [vmem:[%s12262_s30 + $0x748] sm:$0xf0]  ;;  %v9312_v38 = vld [vmem:[%s12262_s30 + $0x638] sm:$0xf0] }
 0x36e   : > { %8097 = vmatpush.bf16.msra.mxu2 %v9187_v27  ;;  %v9472_v27 = vld [vmem:[%s12262_s30 + $0x778] sm:$0xf0]  ;;  %v9512_v32 = vld [vmem:[%s12262_s30 + $0x7c8] sm:$0xf0]  ;;  %v10809_v24 = vld [vmem:[%s12262_s30 + $0x794] sm:$0xf] }
 0x36f   : > { %8110 = vmatpush.bf16.msra.mxu3 %v9251_v28  ;;  %v9536_v28 = vld [vmem:[%s12262_s30 + $0x7f8] sm:$0xf0]  ;;  %v9475_v50 = vor.u32 %v10805_v39, %v9472_v27  ;;  %v10781_v39 = vld [vmem:[%s12262_s30 + $0x6b4] sm:$0xf]  ;;  %v9515_v27 = vor.u32 %v10815_v31, %v9512_v32  ;;  %v10775_v31 = vld [vmem:[%s12262_s30 + $0x684] sm:$0xf] }
 0x370   : > { %8072 = vmatpush.bf16.msra.mxu0 %v9051_v55  ;;  %v9539_v53 = vor.u32 %v10821_v42, %v9536_v28  ;;  %v10803_v55 = vld [vmem:[%s12262_s30 + $0x764] sm:$0xf]  ;;  %v10797_v42 = vld [vmem:[%s12262_s30 + $0x734] sm:$0xf]  ;;  %v9424_v23 = vld [vmem:[%s12262_s30 + $0x718] sm:$0xf0] }
 0x371   : > { %8085 = vmatpush.bf16.msra.mxu1 %v9115_v57  ;;  %v10819_v57 = vld [vmem:[%s12262_s30 + $0x7e4] sm:$0xf]  ;;  %v9467_v62 = vor.u32 %v10803_v55, %v9464_v43  ;;  %v10813_v28 = vld [vmem:[%s12262_s30 + $0x7b4] sm:$0xf]  ;;  %v9368_v55 = vld [vmem:[%s12262_s30 + $0x6a8] sm:$0xf0] }
 0x372   : > { %8098 = vmatpush.bf16.msra.mxu2 %v9179_v59  ;;  %v9528_v59 = vld [vmem:[%s12262_s30 + $0x7e8] sm:$0xf0]  ;;  %v10795_v43 = vld [vmem:[%s12262_s30 + $0x724] sm:$0xf] }
 0x373   : > { %8111 = vmatpush.bf16.msra.mxu3 %v9243_v63  ;;  %v10769_v63 = vld [vmem:[%s12262_s30 + $0x654] sm:$0xf]  ;;  %v9531_v0 = vor.u32 %v10819_v57, %v9528_v59  ;;  %v9432_v57 = vld [vmem:[%s12262_s30 + $0x728] sm:$0xf0] }
 0x374   : > { %8073 = vmatpush.bf16.msra.mxu0 %v9043_v11  ;;  %v9456_v11 = vld [vmem:[%s12262_s30 + $0x758] sm:$0xf0]  ;;  %v9352_v32 = vld [vmem:[%s12262_s30 + $0x688] sm:$0xf0] }
 0x375   : > { %8086 = vmatpush.bf16.msra.mxu1 %v9107_v2  ;;  %v9395_v2 = vor.u32 %v10785_v3, %v9392_v1  ;;  %v9371_v1 = vor.u32 %v10779_v52, %v9368_v55  ;;  %v9592_v55 = vld [vmem:[%s12262_s30 + $0x868] sm:$0xf0] }
 0x376   : > { %8099 = vmatpush.bf16.msra.mxu2 %v9171_v21  ;;  %v9459_v21 = vor.u32 %v10801_v8, %v9456_v11  ;;  %v9435_v8 = vor.u32 %v10795_v43, %v9432_v57  ;;  %v10761_v11 = vld [vmem:[%s12262_s30 + $0x614] sm:$0xf]  ;;  %v10851_v43 = vld [vmem:[%s12262_s30 + $0x8e4] sm:$0xf] }
 0x377   : > { %8112 = vmatpush.bf16.msra.mxu3 %v9235_v26  ;;  %v10799_v26 = vld [vmem:[%s12262_s30 + $0x744] sm:$0xf] }
 0x378   : > { %8074 = vmatpush.bf16.msra.mxu0 %v9035_v37  ;;  %v9451_v36 = vor.u32 %v10799_v26, %v9448_v30  ;;  %v10765_v37 = vld [vmem:[%s12262_s30 + $0x634] sm:$0xf]  ;;  %v9288_v26 = vld [vmem:[%s12262_s30 + $0x608] sm:$0xf0] }
 0x379   : > { %8087 = vmatpush.bf16.msra.mxu1 %v9099_v22  ;;  %v7881_v35 = vpop.f32.mrf.mxu1 }
 0x37a   : > { %8100 = vmatpush.bf16.msra.mxu2 %v9163_v41  ;;  %v9376_v41 = vld [vmem:[%s12262_s30 + $0x6b8] sm:$0xf0] }
 0x37b   : > { %8113 = vmatpush.bf16.msra.mxu3 %v9227_v29  ;;  %8075 = vmatmul.bf16.vlgmr.msra.gmra.mxu0 %v12500_v12  ;;  %v9331_v12 = vor.u32 %v10769_v63, %v9328_v58  ;;  %v9504_v29 = vld [vmem:[%s12262_s30 + $0x7b8] sm:$0xf0]  ;;  %v9307_v58 = vor.u32 %v10763_v51, %v9304_v34 }
 0x37c   : > { %8119 = vmatpush.bf16.msrb.mxu0 %v9347_v44  ;;  %8088 = vmatmul.bf16.vlgmr.msra.gmra.mxu1 %v12506_v16  ;;  %v9523_v16 = vor.u32 %v10817_v19, %v9520_v20  ;;  %v9315_v44 = vor.u32 %v10765_v37, %v9312_v38  ;;  %v9296_v19 = vld [vmem:[%s12262_s30 + $0x618] sm:$0xf0]  ;;  %v10777_v20 = vld [vmem:[%s12262_s30 + $0x694] sm:$0xf] }
 0x37d   : > { %8132 = vmatpush.bf16.msrb.mxu1 %v9411_v45  ;;  %8101 = vmatmul.bf16.vlgmr.msra.gmra.mxu2 %v12504_v15  ;;  %v10783_v15 = vld [vmem:[%s12262_s30 + $0x6c4] sm:$0xf]  ;;  %v9379_v45 = vor.u32 %v10781_v39, %v9376_v41  ;;  %v10837_v38 = vld [vmem:[%s12262_s30 + $0x874] sm:$0xf]  ;;  %v9600_v39 = vld [vmem:[%s12262_s30 + $0x878] sm:$0xf0] }
 0x37e   : > { %8145 = vmatpush.bf16.msrb.mxu2 %v9475_v50  ;;  %8114 = vmatmul.bf16.vlgmr.msra.gmra.mxu3 %v12508_v17  ;;  %v7868_v17 = vpop.f32.mrf.mxu0  ;;  %v9387_v40 = vor.u32 %v10783_v15, %v9384_v25  ;;  %v9488_v15 = vld [vmem:[%s12262_s30 + $0x798] sm:$0xf0]  ;;  %v10759_v25 = vld [vmem:[%s12262_s30 + $0x604] sm:$0xf]  ;;  %v9603_v34 = vor.u32 %v10837_v38, %v9600_v39  ;;  %v10829_v38 = vld [vmem:[%s12262_s30 + $0x834] sm:$0xf] }
 0x37f   : > { %8158 = vmatpush.bf16.msrb.mxu3 %v9539_v53  ;;  %v7869_v33 = vadd.f32 %v7868_v17, %v13076_v56  ;;  %v9440_v56 = vld [vmem:[%s12262_s30 + $0x738] sm:$0xf0]  ;;  %v9507_v53 = vor.u32 %v10813_v28, %v9504_v29  ;;  %v9291_v41 = vor.u32 %v10759_v25, %v9288_v26  ;;  %v9355_v29 = vor.u32 %v10775_v31, %v9352_v32  ;;  %v10831_v25 = vld [vmem:[%s12262_s30 + $0x844] sm:$0xf]  ;;  %v9576_v26 = vld [vmem:[%s12262_s30 + $0x848] sm:$0xf0] }
 0x380   : > { %8120 = vmatpush.bf16.msrb.mxu0 %v9339_v60  ;;  %v9443_v50 = vor.u32 %v10797_v42, %v9440_v56  ;;  %v7894_v54 = vpop.f32.mrf.mxu2  ;;  %v9664_v42 = vld [vmem:[%s12262_s30 + $0x8f8] sm:$0xf0]  ;;  %v10869_v56 = vld [vmem:[%s12262_s30 + $0x974] sm:$0xf]  ;;  %v9704_v31 = vld [vmem:[%s12262_s30 + $0x948] sm:$0xf0] }
 0x381   : > { %8133 = vmatpush.bf16.msrb.mxu1 %v9403_v61  ;;  %v7882_v22 = vadd.f32 %v7881_v35, %v7869_v33  ;;  %v7907_v60 = vpop.f32.mrf.mxu3  ;;  %v10811_v61 = vld [vmem:[%s12262_s30 + $0x7a4] sm:$0xf]  ;;  %v7883_v3 = vpop.f32.mrf.mxu1  ;;  %v9416_v35 = vld [vmem:[%s12262_s30 + $0x708] sm:$0xf0]  ;;  %v9728_v28 = vld [vmem:[%s12262_s30 + $0x978] sm:$0xf0] }
 0x382   : > { %8146 = vmatpush.bf16.msrb.mxu2 %v9467_v62  ;;  %v9496_v62 = vld [vmem:[%s12262_s30 + $0x7a8] sm:$0xf0]  ;;  %v10791_v33 = vld [vmem:[%s12262_s30 + $0x704] sm:$0xf]  ;;  %v9568_v39 = vld [vmem:[%s12262_s30 + $0x838] sm:$0xf0] }
 0x383   : > { %8159 = vmatpush.bf16.msrb.mxu3 %v9531_v0  ;;  %v7895_v59 = vadd.f32 %v7894_v54, %v7882_v22  ;;  %v10835_v54 = vld [vmem:[%s12262_s30 + $0x864] sm:$0xf] }
 0x384   : > { %8121 = vmatpush.bf16.msrb.mxu0 %v9331_v12  ;;  %v9499_v12 = vor.u32 %v10811_v61, %v9496_v62  ;;  %v9720_v61 = vld [vmem:[%s12262_s30 + $0x968] sm:$0xf0]  ;;  %v10883_v62 = vld [vmem:[%s12262_s30 + $0x9e4] sm:$0xf] }
 0x385   : > { %8134 = vmatpush.bf16.msrb.mxu1 %v9395_v2  ;;  %v13147_v0 = vadd.f32 %v7907_v60, %v7895_v59  ;;  %v9360_v2 = vld [vmem:[%s12262_s30 + $0x698] sm:$0xf0]  ;;  %v9656_v59 = vld [vmem:[%s12262_s30 + $0x8e8] sm:$0xf0]  ;;  %v10867_v60 = vld [vmem:[%s12262_s30 + $0x964] sm:$0xf] }
 0x386   : > { %8147 = vmatpush.bf16.msrb.mxu2 %v9459_v21  ;;  %v7870_v63 = vpop.f32.mrf.mxu0  ;;  %v10793_v21 = vld [vmem:[%s12262_s30 + $0x714] sm:$0xf]  ;;  %v9363_v30 = vor.u32 %v10777_v20, %v9360_v2  ;;  %v9659_v3 = vor.u32 %v10851_v43, %v9656_v59  ;;  %v10879_v32 = vld [vmem:[%s12262_s30 + $0x9c4] sm:$0xf] }
 0x387   : > { %8160 = vmatpush.bf16.msrb.mxu3 %v9523_v16  ;;  %v9299_v16 = vor.u32 %v10761_v11, %v9296_v19  ;;  %v9427_v17 = vor.u32 %v10793_v21, %v9424_v23  ;;  %v9784_v63 = vld [vmem:[%s12262_s30 + $0x9e8] sm:$0xf0]  ;;  %v9584_v11 = vld [vmem:[%s12262_s30 + $0x858] sm:$0xf0]  ;;  %v10849_v19 = vld [vmem:[%s12262_s30 + $0x8d4] sm:$0xf] }
 0x388   : > { %8122 = vmatpush.bf16.msrb.mxu0 %v9323_v10  ;;  %v9491_v10 = vor.u32 %v10809_v24, %v9488_v15  ;;  %v7896_v37 = vpop.f32.mrf.mxu2  ;;  %v9787_v20 = vor.u32 %v10883_v62, %v9784_v63  ;;  %v10865_v2 = vld [vmem:[%s12262_s30 + $0x954] sm:$0xf]  ;;  %v9712_v21 = vld [vmem:[%s12262_s30 + $0x958] sm:$0xf0]  ;;  %v10859_v43 = vld [vmem:[%s12262_s30 + $0x924] sm:$0xf] }
 0x389   : > { %8135 = vmatpush.bf16.msrb.mxu1 %v9387_v40  ;;  %v10807_v40 = vld [vmem:[%s12262_s30 + $0x784] sm:$0xf]  ;;  %v7909_v22 = vpop.f32.mrf.mxu3  ;;  %v10881_v23 = vld [vmem:[%s12262_s30 + $0x9d4] sm:$0xf]  ;;  %v9776_v24 = vld [vmem:[%s12262_s30 + $0x9d8] sm:$0xf0] }
 0x38a   : > { %8148 = vmatpush.bf16.msrb.mxu2 %v9451_v36  ;;  %v9480_v36 = vld [vmem:[%s12262_s30 + $0x788] sm:$0xf0] }
 0x38b   : > { %8161 = vmatpush.bf16.msrb.mxu3 %v9515_v27  ;;  %v10853_v27 = vld [vmem:[%s12262_s30 + $0x8f4] sm:$0xf]  ;;  %v9483_v51 = vor.u32 %v10807_v40, %v9480_v36  ;;  %v9752_v62 = vld [vmem:[%s12262_s30 + $0x9a8] sm:$0xf0] }
 0x38c   : > { %8123 = vmatpush.bf16.msrb.mxu0 %v9315_v44  ;;  %v9419_v44 = vor.u32 %v10791_v33, %v9416_v35  ;;  %v9667_v52 = vor.u32 %v10853_v27, %v9664_v42  ;;  %v9768_v33 = vld [vmem:[%s12262_s30 + $0x9c8] sm:$0xf0]  ;;  %v9579_v35 = vor.u32 %v10831_v25, %v9576_v26  ;;  %v10845_v27 = vld [vmem:[%s12262_s30 + $0x8b4] sm:$0xf]  ;;  %v9632_v42 = vld [vmem:[%s12262_s30 + $0x8b8] sm:$0xf0] }
 0x38d   : > { %8136 = vmatpush.bf16.msrb.mxu1 %v9379_v45  ;;  %v10885_v45 = vld [vmem:[%s12262_s30 + $0x9f4] sm:$0xf]  ;;  %v9771_v22 = vor.u32 %v10879_v32, %v9768_v33  ;;  %v10823_v25 = vld [vmem:[%s12262_s30 + $0x804] sm:$0xf]  ;;  %v9544_v26 = vld [vmem:[%s12262_s30 + $0x808] sm:$0xf0] }
 0x38e   : > { %8149 = vmatpush.bf16.msrb.mxu2 %v9443_v50  ;;  %v9792_v50 = vld [vmem:[%s12262_s30 + $0x9f8] sm:$0xf0]  ;;  %v9672_v32 = vld [vmem:[%s12262_s30 + $0x908] sm:$0xf0]  ;;  %v10871_v33 = vld [vmem:[%s12262_s30 + $0x984] sm:$0xf] }
 0x38f   : > { %8162 = vmatpush.bf16.msrb.mxu3 %v9507_v53  ;;  %v9731_v53 = vor.u32 %v10869_v56, %v9728_v28  ;;  %v9795_v57 = vor.u32 %v10885_v45, %v9792_v50  ;;  %v10861_v56 = vld [vmem:[%s12262_s30 + $0x934] sm:$0xf]  ;;  %v9635_v45 = vor.u32 %v10845_v27, %v9632_v42  ;;  %v9920_v27 = vld [vmem:[%s12262_s30 + $0xaf8] sm:$0xf0] }
 0x390   : > { %8124 = vmatpush.bf16.msrb.mxu0 %v9307_v58  ;;  %v9595_v58 = vor.u32 %v10835_v54, %v9592_v55  ;;  %v10877_v28 = vld [vmem:[%s12262_s30 + $0x9b4] sm:$0xf]  ;;  %v9624_v55 = vld [vmem:[%s12262_s30 + $0x8a8] sm:$0xf0] }
 0x391   : > { %8137 = vmatpush.bf16.msrb.mxu1 %v9371_v1  ;;  %v9723_v1 = vor.u32 %v10867_v60, %v9720_v61  ;;  %v10875_v61 = vld [vmem:[%s12262_s30 + $0x9a4] sm:$0xf] }
 0x392   : > { %8150 = vmatpush.bf16.msrb.mxu2 %v9435_v8  ;;  %v10833_v8 = vld [vmem:[%s12262_s30 + $0x854] sm:$0xf] }
 0x393   : > { %8163 = vmatpush.bf16.msrb.mxu3 %v9499_v12  ;;  %v9648_v12 = vld [vmem:[%s12262_s30 + $0x8d8] sm:$0xf0] }
 0x394   : > { %8125 = vmatpush.bf16.msrb.mxu0 %v9299_v16  ;;  %v9651_v15 = vor.u32 %v10849_v19, %v9648_v12  ;;  %v9715_v16 = vor.u32 %v10865_v2, %v9712_v21  ;;  %v10825_v19 = vld [vmem:[%s12262_s30 + $0x814] sm:$0xf]  ;;  %v9755_v2 = vor.u32 %v10875_v61, %v9752_v62  ;;  %v9616_v21 = vld [vmem:[%s12262_s30 + $0x898] sm:$0xf0] }
 0x395   : > { %8138 = vmatpush.bf16.msrb.mxu1 %v9363_v30  ;;  %v9640_v30 = vld [vmem:[%s12262_s30 + $0x8c8] sm:$0xf0]  ;;  %v10841_v12 = vld [vmem:[%s12262_s30 + $0x894] sm:$0xf] }
 0x396   : > { %8151 = vmatpush.bf16.msrb.mxu2 %v9427_v17  ;;  %v10863_v17 = vld [vmem:[%s12262_s30 + $0x944] sm:$0xf] }
 0x397   : > { %8164 = vmatpush.bf16.msrb.mxu3 %v9491_v10  ;;  %v9707_v37 = vor.u32 %v10863_v17, %v9704_v31  ;;  %v9608_v17 = vld [vmem:[%s12262_s30 + $0x888] sm:$0xf0]  ;;  %v10855_v31 = vld [vmem:[%s12262_s30 + $0x904] sm:$0xf] }
 0x398   : > { %8126 = vmatpush.bf16.msrb.mxu0 %v9291_v41 }
 0x399   : > { %8139 = vmatpush.bf16.msrb.mxu1 %v9355_v29  ;;  %v7933_v40 = vpop.f32.mrf.mxu1  ;;  %v9760_v29 = vld [vmem:[%s12262_s30 + $0x9b8] sm:$0xf0] }
 0x39a   : > { %8152 = vmatpush.bf16.msrb.mxu2 %v9419_v44  ;;  %v9571_v44 = vor.u32 %v10829_v38, %v9568_v39  ;;  %v9547_v39 = vor.u32 %v10823_v25, %v9544_v26  ;;  %v10927_v25 = vld [vmem:[%s12262_s30 + $0xb44] sm:$0xf]  ;;  %v9960_v26 = vld [vmem:[%s12262_s30 + $0xb48] sm:$0xf0] }
 0x39b   : > { %8165 = vmatpush.bf16.msrb.mxu3 %v9483_v51  ;;  %8127 = vmatmul.bf16.vlgmr.msrb.gmra.mxu0 %v12566_v46  ;;  %v9587_v46 = vor.u32 %v10833_v8, %v9584_v11  ;;  %v10827_v51 = vld [vmem:[%s12262_s30 + $0x824] sm:$0xf] }
 0x39c   : > { %8171 = vmatpush.bf16.msra.mxu0 %v9603_v34  ;;  %8140 = vmatmul.bf16.vlgmr.msrb.gmra.mxu1 %v12570_v48  ;;  %v9779_v48 = vor.u32 %v10881_v23, %v9776_v24  ;;  %v9560_v34 = vld [vmem:[%s12262_s30 + $0x828] sm:$0xf0]  ;;  %v10857_v23 = vld [vmem:[%s12262_s30 + $0x914] sm:$0xf]  ;;  %v9680_v24 = vld [vmem:[%s12262_s30 + $0x918] sm:$0xf0] }
 0x39d   : > { %8184 = vmatpush.bf16.msra.mxu1 %v9667_v52  ;;  %8153 = vmatmul.bf16.vlgmr.msrb.gmra.mxu2 %v12568_v47  ;;  %v10847_v47 = vld [vmem:[%s12262_s30 + $0x8c4] sm:$0xf] }
 0x39e   : > { %8197 = vmatpush.bf16.msra.mxu2 %v9731_v53  ;;  %8166 = vmatmul.bf16.vlgmr.msrb.gmra.mxu3 %v12572_v49  ;;  %v7920_v49 = vpop.f32.mrf.mxu0  ;;  %v9643_v36 = vor.u32 %v10847_v47, %v9640_v30  ;;  %v10843_v52 = vld [vmem:[%s12262_s30 + $0x8a4] sm:$0xf]  ;;  %v9763_v53 = vor.u32 %v10877_v28, %v9760_v29  ;;  %v9619_v47 = vor.u32 %v10841_v12, %v9616_v21  ;;  %v10048_v28 = vld [vmem:[%s12262_s30 + $0xbf8] sm:$0xf0]  ;;  %v10945_v12 = vld [vmem:[%s12262_s30 + $0xbd4] sm:$0xf] }
 0x39f   : > { %8210 = vmatpush.bf16.msra.mxu3 %v9795_v57  ;;  %v7921_v10 = vadd.f32 %v7920_v49, %v13147_v0  ;;  %v9696_v0 = vld [vmem:[%s12262_s30 + $0x938] sm:$0xf0]  ;;  %v9688_v57 = vld [vmem:[%s12262_s30 + $0x928] sm:$0xf0]  ;;  %v9627_v8 = vor.u32 %v10843_v52, %v9624_v55  ;;  %v10839_v30 = vld [vmem:[%s12262_s30 + $0x884] sm:$0xf] }
 0x3a0   : > { %8172 = vmatpush.bf16.msra.mxu0 %v9595_v58  ;;  %v9699_v50 = vor.u32 %v10861_v56, %v9696_v0  ;;  %v7946_v54 = vpop.f32.mrf.mxu2  ;;  %v9563_v58 = vor.u32 %v10827_v51, %v9560_v34  ;;  %v9691_v11 = vor.u32 %v10859_v43, %v9688_v57  ;;  %v9611_v42 = vor.u32 %v10839_v30, %v9608_v17  ;;  %v10949_v0 = vld [vmem:[%s12262_s30 + $0xbf4] sm:$0xf]  ;;  %v10899_v51 = vld [vmem:[%s12262_s30 + $0xa64] sm:$0xf]  ;;  %v9848_v34 = vld [vmem:[%s12262_s30 + $0xa68] sm:$0xf0] }
 0x3a1   : > { %8185 = vmatpush.bf16.msra.mxu1 %v9659_v3  ;;  %v7934_v41 = vadd.f32 %v7933_v40, %v7921_v10  ;;  %v7959_v60 = vpop.f32.mrf.mxu3  ;;  %v7935_v3 = vpop.f32.mrf.mxu1  ;;  %v9736_v10 = vld [vmem:[%s12262_s30 + $0x988] sm:$0xf0]  ;;  %v10901_v40 = vld [vmem:[%s12262_s30 + $0xa74] sm:$0xf]  ;;  %v9675_v56 = vor.u32 %v10855_v31, %v9672_v32  ;;  %v10915_v52 = vld [vmem:[%s12262_s30 + $0xae4] sm:$0xf] }
 0x3a2   : > { %8198 = vmatpush.bf16.msra.mxu2 %v9723_v1  ;;  %v9739_v29 = vor.u32 %v10871_v33, %v9736_v10  ;;  %v10931_v55 = vld [vmem:[%s12262_s30 + $0xb64] sm:$0xf]  ;;  %v9976_v43 = vld [vmem:[%s12262_s30 + $0xb68] sm:$0xf0]  ;;  %v10913_v3 = vld [vmem:[%s12262_s30 + $0xad4] sm:$0xf] }
 0x3a3   : > { %8211 = vmatpush.bf16.msra.mxu3 %v9787_v20  ;;  %v7947_v59 = vadd.f32 %v7946_v54, %v7934_v41  ;;  %v9552_v20 = vld [vmem:[%s12262_s30 + $0x818] sm:$0xf0]  ;;  %v9912_v54 = vld [vmem:[%s12262_s30 + $0xae8] sm:$0xf0]  ;;  %v10947_v57 = vld [vmem:[%s12262_s30 + $0xbe4] sm:$0xf]  ;;  %v9979_v62 = vor.u32 %v10931_v55, %v9976_v43 }
 0x3a4   : > { %8173 = vmatpush.bf16.msra.mxu0 %v9587_v46  ;;  %v10873_v46 = vld [vmem:[%s12262_s30 + $0x994] sm:$0xf]  ;;  %v9984_v41 = vld [vmem:[%s12262_s30 + $0xb78] sm:$0xf0]  ;;  %v9915_v61 = vor.u32 %v10915_v52, %v9912_v54  ;;  %v10895_v21 = vld [vmem:[%s12262_s30 + $0xa44] sm:$0xf] }
 0x3a5   : > { %8186 = vmatpush.bf16.msra.mxu1 %v9651_v15  ;;  %v13218_v1 = vadd.f32 %v7959_v60, %v7947_v59  ;;  %v9744_v15 = vld [vmem:[%s12262_s30 + $0x998] sm:$0xf0]  ;;  %v10040_v59 = vld [vmem:[%s12262_s30 + $0xbe8] sm:$0xf0]  ;;  %v9851_v60 = vor.u32 %v10899_v51, %v9848_v34  ;;  %v10893_v32 = vld [vmem:[%s12262_s30 + $0xa34] sm:$0xf] }
 0x3a6   : > { %8199 = vmatpush.bf16.msra.mxu2 %v9715_v16  ;;  %v7922_v63 = vpop.f32.mrf.mxu0  ;;  %v9555_v16 = vor.u32 %v10825_v19, %v9552_v20  ;;  %v9747_v49 = vor.u32 %v10873_v46, %v9744_v15  ;;  %v10929_v19 = vld [vmem:[%s12262_s30 + $0xb54] sm:$0xf]  ;;  %v9968_v20 = vld [vmem:[%s12262_s30 + $0xb58] sm:$0xf0]  ;;  %v9832_v46 = vld [vmem:[%s12262_s30 + $0xa48] sm:$0xf0] }
 0x3a7   : > { %8212 = vmatpush.bf16.msra.mxu3 %v9779_v48  ;;  %v9683_v48 = vor.u32 %v10857_v23, %v9680_v24  ;;  %v10897_v63 = vld [vmem:[%s12262_s30 + $0xa54] sm:$0xf]  ;;  %v9971_v24 = vor.u32 %v10929_v19, %v9968_v20  ;;  %v11119_v15 = vld [vmem:[%s12710_s18] sm:$0x3]  ;;  %v9835_v30 = vor.u32 %v10895_v21, %v9832_v46  ;;  %v9824_v33 = vld [vmem:[%s12262_s30 + $0xa38] sm:$0xf0] }
 0x3a8   : > { %8174 = vmatpush.bf16.msra.mxu0 %v9579_v35  ;;  %v7948_v35 = vpop.f32.mrf.mxu2  ;;  %v10909_v10 = vld [vmem:[%s12262_s30 + $0xab4] sm:$0xf]  ;;  %v9880_v51 = vld [vmem:[%s12262_s30 + $0xaa8] sm:$0xf0]  ;;  %v10923_v34 = vld [vmem:[%s12262_s30 + $0xb24] sm:$0xf] }
 0x3a9   : > { %8187 = vmatpush.bf16.msra.mxu1 %v9643_v36  ;;  %v9856_v36 = vld [vmem:[%s12262_s30 + $0xa78] sm:$0xf0]  ;;  %v7961_v38 = vpop.f32.mrf.mxu3  ;;  %v9944_v52 = vld [vmem:[%s12262_s30 + $0xb28] sm:$0xf0]  ;;  %v10939_v55 = vld [vmem:[%s12262_s30 + $0xba4] sm:$0xf] }
 0x3aa   : > { %8200 = vmatpush.bf16.msra.mxu2 %v9707_v37  ;;  %v10917_v37 = vld [vmem:[%s12262_s30 + $0xaf4] sm:$0xf]  ;;  %v10008_v43 = vld [vmem:[%s12262_s30 + $0xba8] sm:$0xf0]  ;;  %v9872_v19 = vld [vmem:[%s12262_s30 + $0xa98] sm:$0xf0] }
 0x3ab   : > { %8213 = vmatpush.bf16.msra.mxu3 %v9771_v22  ;;  %v10933_v22 = vld [vmem:[%s12262_s30 + $0xb74] sm:$0xf] }
 0x3ac   : > { %8175 = vmatpush.bf16.msra.mxu0 %v9571_v44  ;;  %v9859_v44 = vor.u32 %v10901_v40, %v9856_v36  ;;  %v10925_v38 = vld [vmem:[%s12262_s30 + $0xb34] sm:$0xf] }
 0x3ad   : > { %8188 = vmatpush.bf16.msra.mxu1 %v9635_v45  ;;  %v9923_v45 = vor.u32 %v10917_v37, %v9920_v27  ;;  %v9888_v37 = vld [vmem:[%s12262_s30 + $0xab8] sm:$0xf0]  ;;  %v10941_v27 = vld [vmem:[%s12262_s30 + $0xbb4] sm:$0xf] }
 0x3ae   : > { %8201 = vmatpush.bf16.msra.mxu2 %v9699_v50  ;;  %v9987_v50 = vor.u32 %v10933_v22, %v9984_v41  ;;  %v10016_v22 = vld [vmem:[%s12262_s30 + $0xbb8] sm:$0xf0]  ;;  %v10921_v20 = vld [vmem:[%s12262_s30 + $0xb14] sm:$0xf] }
 0x3af   : > { %8214 = vmatpush.bf16.msra.mxu3 %v9763_v53  ;;  %v10051_v53 = vor.u32 %v10949_v0, %v10048_v28  ;;  %v10891_v28 = vld [vmem:[%s12262_s30 + $0xa24] sm:$0xf] }
 0x3b0   : > { %8176 = vmatpush.bf16.msra.mxu0 %v9563_v58  ;;  %v9840_v58 = vld [vmem:[%s12262_s30 + $0xa58] sm:$0xf0] }
 0x3b1   : > { %8189 = vmatpush.bf16.msra.mxu1 %v9627_v8  ;;  %v10043_v8 = vor.u32 %v10947_v57, %v10040_v59 }
 0x3b2   : > { %8202 = vmatpush.bf16.msra.mxu2 %v9691_v11  ;;  %v9904_v11 = vld [vmem:[%s12262_s30 + $0xad8] sm:$0xf0] }
 0x3b3   : > { %8215 = vmatpush.bf16.msra.mxu3 %v9755_v2  ;;  %v10032_v2 = vld [vmem:[%s12262_s30 + $0xbd8] sm:$0xf0]  ;;  %v9907_v23 = vor.u32 %v10913_v3, %v9904_v11  ;;  %v10905_v3 = vld [vmem:[%s12262_s30 + $0xa94] sm:$0xf]  ;;  %v10011_v11 = vor.u32 %v10939_v55, %v10008_v43 }
 0x3b4   : > { %8177 = vmatpush.bf16.msra.mxu0 %v9555_v16  ;;  %v10035_v16 = vor.u32 %v10945_v12, %v10032_v2  ;;  %v9936_v12 = vld [vmem:[%s12262_s30 + $0xb18] sm:$0xf0]  ;;  %v10937_v2 = vld [vmem:[%s12262_s30 + $0xb94] sm:$0xf]  ;;  %v9875_v46 = vor.u32 %v10905_v3, %v9872_v19  ;;  %v10088_v19 = vld [vmem:[%s12262_s30 + $0xc48] sm:$0xf0] }
 0x3b5   : > { %8190 = vmatpush.bf16.msra.mxu1 %v9619_v47  ;;  %v10943_v47 = vld [vmem:[%s12262_s30 + $0xbc4] sm:$0xf]  ;;  %v10096_v55 = vld [vmem:[%s12262_s30 + $0xc58] sm:$0xf0]  ;;  %v10977_v43 = vld [vmem:[%s12262_s30 + $0xcd4] sm:$0xf] }
 0x3b6   : > { %8203 = vmatpush.bf16.msra.mxu2 %v9683_v48  ;;  %v10024_v48 = vld [vmem:[%s12262_s30 + $0xbc8] sm:$0xf0] }
 0x3b7   : > { %8216 = vmatpush.bf16.msra.mxu3 %v9747_v49  ;;  %v9963_v49 = vor.u32 %v10927_v25, %v9960_v26  ;;  %v10027_v36 = vor.u32 %v10943_v47, %v10024_v48  ;;  %v9928_v26 = vld [vmem:[%s12262_s30 + $0xb08] sm:$0xf0]  ;;  %v10935_v47 = vld [vmem:[%s12262_s30 + $0xb84] sm:$0xf] }
 0x3b8   : > { %8178 = vmatpush.bf16.msra.mxu0 %v9547_v39  ;;  %v7972_v17 = vpop.f32.mrf.mxu0  ;;  %v9952_v39 = vld [vmem:[%s12262_s30 + $0xb38] sm:$0xf0]  ;;  %v9992_v48 = vld [vmem:[%s12262_s30 + $0xb88] sm:$0xf0] }
 0x3b9   : > { %8191 = vmatpush.bf16.msra.mxu1 %v9611_v42  ;;  %v7985_v40 = vpop.f32.mrf.mxu1  ;;  %v9827_v42 = vor.u32 %v10893_v32, %v9824_v33  ;;  %v9955_v0 = vor.u32 %v10925_v38, %v9952_v39  ;;  %v10176_v33 = vld [vmem:[%s12262_s30 + $0xcf8] sm:$0xf0]  ;;  %v9995_v39 = vor.u32 %v10935_v47, %v9992_v48  ;;  %v10989_v47 = vld [vmem:[%s12262_s30 + $0xd34] sm:$0xf] }
 0x3ba   : > { %8204 = vmatpush.bf16.msra.mxu2 %v9675_v56  ;;  %v9891_v56 = vor.u32 %v10909_v10, %v9888_v37  ;;  %v10997_v10 = vld [vmem:[%s12262_s30 + $0xd74] sm:$0xf]  ;;  %v10304_v38 = vld [vmem:[%s12262_s30 + $0xdf8] sm:$0xf0] }
 0x3bb   : > { %8217 = vmatpush.bf16.msra.mxu3 %v9739_v29  ;;  %8179 = vmatmul.bf16.vlgmr.msra.gmra.mxu0 %v12655_v9  ;;  %v9843_v9 = vor.u32 %v10897_v63, %v9840_v58  ;;  %v9816_v29 = vld [vmem:[%s12262_s30 + $0xa28] sm:$0xf0]  ;;  %v10889_v63 = vld [vmem:[%s12262_s30 + $0xa14] sm:$0xf]  ;;  %v9808_v58 = vld [vmem:[%s12262_s30 + $0xa18] sm:$0xf0] }
 0x3bc   : > { %8223 = vmatpush.bf16.msrb.mxu0 %v9859_v44  ;;  %8192 = vmatmul.bf16.vlgmr.msra.gmra.mxu1 %v12661_v14  ;;  %v4912_v14 = vperm.slane %v11119_v15, 1  ;;  %v10907_v44 = vld [vmem:[%s12262_s30 + $0xaa4] sm:$0xf]  ;;  %v9819_v57 = vor.u32 %v10891_v28, %v9816_v29  ;;  %v9811_v21 = vor.u32 %v10889_v63, %v9808_v58  ;;  %v11013_v37 = vld [vmem:[%s12262_s30 + $0xdf4] sm:$0xf] }
 0x3bd   : > { %8236 = vmatpush.bf16.msrb.mxu1 %v9923_v45  ;;  %8205 = vmatmul.bf16.vlgmr.msra.gmra.mxu2 %v12659_v13  ;;  %v10911_v13 = vld [vmem:[%s12262_s30 + $0xac4] sm:$0xf]  ;;  %v10307_v28 = vor.u32 %v11013_v37, %v10304_v38  ;;  %v10168_v29 = vld [vmem:[%s12262_s30 + $0xce8] sm:$0xf0]  ;;  %v11009_v63 = vld [vmem:[%s12262_s30 + $0xdd4] sm:$0xf] }
 0x3be   : > { %8249 = vmatpush.bf16.msrb.mxu2 %v9987_v50  ;;  %8218 = vmatmul.bf16.vlgmr.msra.gmra.mxu3 %v12663_v18  ;;  %v9896_v18 = vld [vmem:[%s12262_s30 + $0xac8] sm:$0xf0]  ;;  %v7973_v35 = vadd.f32 %v7972_v17, %v4912_v14  ;;  %v10019_v50 = vor.u32 %v10941_v27, %v10016_v22  ;;  %v10903_v15 = vld [vmem:[%s12262_s30 + $0xa84] sm:$0xf]  ;;  %v10965_v17 = vld [vmem:[%s12262_s30 + $0xc74] sm:$0xf] }
 0x3bf   : > { %8262 = vmatpush.bf16.msrb.mxu3 %v10051_v53  ;;  %v9899_v31 = vor.u32 %v10911_v13, %v9896_v18  ;;  %v9939_v13 = vor.u32 %v10921_v20, %v9936_v12  ;;  %v9864_v14 = vld [vmem:[%s12262_s30 + $0xa88] sm:$0xf0]  ;;  %v10288_v58 = vld [vmem:[%s12262_s30 + $0xdd8] sm:$0xf0]  ;;  %v10991_v12 = vld [vmem:[%s12262_s30 + $0xd44] sm:$0xf] }
 0x3c0   : > { %8224 = vmatpush.bf16.msrb.mxu0 %v9851_v60  ;;  %v7986_v41 = vadd.f32 %v7985_v40, %v7973_v35  ;;  %v7998_v45 = vpop.f32.mrf.mxu2  ;;  %v7974_v60 = vpop.f32.mrf.mxu0  ;;  %v10240_v35 = vld [vmem:[%s12262_s30 + $0xd78] sm:$0xf0]  ;;  %v9867_v40 = vor.u32 %v10903_v15, %v9864_v14  ;;  %v10152_v20 = vld [vmem:[%s12262_s30 + $0xcc8] sm:$0xf0]  ;;  %v10973_v14 = vld [vmem:[%s12262_s30 + $0xcb4] sm:$0xf] }
 0x3c1   : > { %8237 = vmatpush.bf16.msrb.mxu1 %v9915_v61  ;;  %v8011_v54 = vpop.f32.mrf.mxu3  ;;  %v9883_v61 = vor.u32 %v10907_v44, %v9880_v51  ;;  %v10995_v44 = vld [vmem:[%s12262_s30 + $0xd64] sm:$0xf]  ;;  %v10296_v51 = vld [vmem:[%s12262_s30 + $0xde8] sm:$0xf0]  ;;  %v10160_v60 = vld [vmem:[%s12262_s30 + $0xcd8] sm:$0xf0] }
 0x3c2   : > { %8250 = vmatpush.bf16.msrb.mxu2 %v9979_v62  ;;  %v7999_v53 = vadd.f32 %v7998_v45, %v7986_v41  ;;  %v9947_v62 = vor.u32 %v10923_v34, %v9944_v52  ;;  %v10243_v41 = vor.u32 %v10997_v10, %v10240_v35  ;;  %v10232_v45 = vld [vmem:[%s12262_s30 + $0xd68] sm:$0xf0]  ;;  %v10163_v3 = vor.u32 %v10977_v43, %v10160_v60  ;;  %v10080_v15 = vld [vmem:[%s12262_s30 + $0xc38] sm:$0xf0]  ;;  %v10971_v35 = vld [vmem:[%s12262_s30 + $0xca4] sm:$0xf] }
 0x3c3   : > { %8263 = vmatpush.bf16.msrb.mxu3 %v10043_v8  ;;  %v7987_v8 = vpop.f32.mrf.mxu1  ;;  %v10208_v48 = vld [vmem:[%s12262_s30 + $0xd38] sm:$0xf0]  ;;  %v10072_v10 = vld [vmem:[%s12262_s30 + $0xc28] sm:$0xf0]  ;;  %v10987_v38 = vld [vmem:[%s12262_s30 + $0xd24] sm:$0xf] }
 0x3c4   : > { %8225 = vmatpush.bf16.msrb.mxu0 %v9843_v9  ;;  %v13289_v59 = vadd.f32 %v8011_v54, %v7999_v53  ;;  %v10000_v9 = vld [vmem:[%s12262_s30 + $0xb98] sm:$0xf0]  ;;  %v10235_v53 = vor.u32 %v10995_v44, %v10232_v45  ;;  %v10961_v54 = vld [vmem:[%s12262_s30 + $0xc54] sm:$0xf]  ;;  %v10136_v37 = vld [vmem:[%s12262_s30 + $0xca8] sm:$0xf0] }
 0x3c5   : > { %8238 = vmatpush.bf16.msrb.mxu1 %v9907_v23  ;;  %v10887_v23 = vld [vmem:[%s12262_s30 + $0xa04] sm:$0xf]  ;;  %v10003_v25 = vor.u32 %v10937_v2, %v10000_v9  ;;  %v10216_v2 = vld [vmem:[%s12262_s30 + $0xd48] sm:$0xf0]  ;;  %v10953_v45 = vld [vmem:[%s12262_s30 + $0xc14] sm:$0xf] }
 0x3c6   : > { %8251 = vmatpush.bf16.msrb.mxu2 %v9971_v24  ;;  %v9800_v24 = vld [vmem:[%s12262_s30 + $0xa08] sm:$0xf0]  ;;  %v11007_v9 = vld [vmem:[%s12262_s30 + $0xdc4] sm:$0xf]  ;;  %v11001_v43 = vld [vmem:[%s12262_s30 + $0xd94] sm:$0xf] }
 0x3c7   : > { %8264 = vmatpush.bf16.msrb.mxu3 %v10035_v16  ;;  %v10919_v16 = vld [vmem:[%s12262_s30 + $0xb04] sm:$0xf]  ;;  %v9803_v32 = vor.u32 %v10887_v23, %v9800_v24 }
 0x3c8   : > { %8226 = vmatpush.bf16.msrb.mxu0 %v9835_v30  ;;  %v8000_v18 = vpop.f32.mrf.mxu2 }
 0x3c9   : > { %8239 = vmatpush.bf16.msrb.mxu1 %v9899_v31  ;;  %v8013_v30 = vpop.f32.mrf.mxu3  ;;  %v10112_v31 = vld [vmem:[%s12262_s30 + $0xc78] sm:$0xf0] }
 0x3ca   : > { %8252 = vmatpush.bf16.msrb.mxu2 %v9963_v49  ;;  %v10981_v49 = vld [vmem:[%s12262_s30 + $0xcf4] sm:$0xf]  ;;  %v10115_v27 = vor.u32 %v10965_v17, %v10112_v31  ;;  %v10272_v17 = vld [vmem:[%s12262_s30 + $0xdb8] sm:$0xf0] }
 0x3cb   : > { %8265 = vmatpush.bf16.msrb.mxu3 %v10027_v36  ;;  %v9931_v36 = vor.u32 %v10919_v16, %v9928_v26  ;;  %v10179_v22 = vor.u32 %v10981_v49, %v10176_v33  ;;  %v10144_v26 = vld [vmem:[%s12262_s30 + $0xcb8] sm:$0xf0]  ;;  %v11005_v30 = vld [vmem:[%s12262_s30 + $0xdb4] sm:$0xf]  ;;  %v10955_v33 = vld [vmem:[%s12262_s30 + $0xc24] sm:$0xf] }
 0x3cc   : > { %8227 = vmatpush.bf16.msrb.mxu0 %v9827_v42  ;;  %v10963_v42 = vld [vmem:[%s12262_s30 + $0xc64] sm:$0xf] }
 0x3cd   : > { %8240 = vmatpush.bf16.msrb.mxu1 %v9891_v56  ;;  %v10104_v56 = vld [vmem:[%s12262_s30 + $0xc68] sm:$0xf0] }
 0x3ce   : > { %8253 = vmatpush.bf16.msrb.mxu2 %v9955_v0  ;;  %v10979_v0 = vld [vmem:[%s12262_s30 + $0xce4] sm:$0xf]  ;;  %v10107_v34 = vor.u32 %v10963_v42, %v10104_v56  ;;  %v10264_v42 = vld [vmem:[%s12262_s30 + $0xda8] sm:$0xf0]  ;;  %v10075_v56 = vor.u32 %v10955_v33, %v10072_v10 }
 0x3cf   : > { %8266 = vmatpush.bf16.msrb.mxu3 %v10019_v50  ;;  %v11011_v50 = vld [vmem:[%s12262_s30 + $0xde4] sm:$0xf]  ;;  %v10171_v52 = vor.u32 %v10979_v0, %v10168_v29  ;;  %v10139_v29 = vor.u32 %v10971_v35, %v10136_v37  ;;  %v10552_v10 = vld [vmem:[%s12262_s30 + $0xfe8] sm:$0xf0]  ;;  %v11025_v37 = vld [vmem:[%s12262_s30 + $0xe54] sm:$0xf] }
 0x3d0   : > { %8228 = vmatpush.bf16.msrb.mxu0 %v9819_v57  ;;  %v10299_v57 = vor.u32 %v11011_v50, %v10296_v51  ;;  %v10064_v50 = vld [vmem:[%s12262_s30 + $0xc18] sm:$0xf0]  ;;  %v10969_v51 = vld [vmem:[%s12262_s30 + $0xc94] sm:$0xf]  ;;  %v11075_v33 = vld [vmem:[%s12262_s30 + $0xfe4] sm:$0xf] }
 0x3d1   : > { %8241 = vmatpush.bf16.msrb.mxu1 %v9883_v61  ;;  %v10993_v61 = vld [vmem:[%s12262_s30 + $0xd54] sm:$0xf]  ;;  %v10067_v60 = vor.u32 %v10953_v45, %v10064_v50  ;;  %v10544_v45 = vld [vmem:[%s12262_s30 + $0xfd8] sm:$0xf0] }
 0x3d2   : > { %8254 = vmatpush.bf16.msrb.mxu2 %v9947_v62  ;;  %v10224_v62 = vld [vmem:[%s12262_s30 + $0xd58] sm:$0xf0]  ;;  %v11123_v50 = vld [vmem:[#allocation1 + $0x1b] sm:$0xff] }
 0x3d3   : > { %8267 = vmatpush.bf16.msrb.mxu3 %v10011_v11  ;;  %v10227_v8 = vor.u32 %v10993_v61, %v10224_v62  ;;  %v10959_v11 = vld [vmem:[%s12262_s30 + $0xc44] sm:$0xf]  ;;  %v10056_v62 = vld [vmem:[%s12262_s30 + $0xc08] sm:$0xf0] }
 0x3d4   : > { %8229 = vmatpush.bf16.msrb.mxu0 %v9811_v21  ;;  %v10091_v21 = vor.u32 %v10959_v11, %v10088_v19  ;;  %v10951_v61 = vld [vmem:[%s12262_s30 + $0xc04] sm:$0xf] }
 0x3d5   : > { %8242 = vmatpush.bf16.msrb.mxu1 %v9875_v46  ;;  %v10219_v46 = vor.u32 %v10991_v12, %v10216_v2  ;;  %v11029_v2 = vld [vmem:[%s12262_s30 + $0xe74] sm:$0xf] }
 0x3d6   : > { %8255 = vmatpush.bf16.msrb.mxu2 %v9939_v13  ;;  %v10957_v13 = vld [vmem:[%s12262_s30 + $0xc34] sm:$0xf] }
 0x3d7   : > { %8268 = vmatpush.bf16.msrb.mxu3 %v10003_v25  ;;  %v10083_v49 = vor.u32 %v10957_v13, %v10080_v15 }
 0x3d8   : > { %8230 = vmatpush.bf16.msrb.mxu0 %v9803_v32  ;;  %v8024_v23 = vpop.f32.mrf.mxu0  ;;  %v10211_v32 = vor.u32 %v10989_v47, %v10208_v48  ;;  %v11027_v48 = vld [vmem:[%s12262_s30 + $0xe64] sm:$0xf] }
 0x3d9   : > { %8243 = vmatpush.bf16.msrb.mxu1 %v9867_v40  ;;  %v8025_v16 = vadd.f32 %v8024_v23, %v13289_v59  ;;  %v8037_v18 = vpop.f32.mrf.mxu1  ;;  %v10147_v59 = vor.u32 %v10973_v14, %v10144_v26  ;;  %v10432_v23 = vld [vmem:[%s12262_s30 + $0xef8] sm:$0xf0]  ;;  %v11077_v14 = vld [vmem:[%s12262_s30 + $0xff4] sm:$0xf] }
 0x3da   : > { %8256 = vmatpush.bf16.msrb.mxu2 %v9931_v36  ;;  %v10275_v36 = vor.u32 %v11005_v30, %v10272_v17  ;;  %v10360_v30 = vld [vmem:[%s12262_s30 + $0xe68] sm:$0xf0]  ;;  %v11043_v17 = vld [vmem:[%s12262_s30 + $0xee4] sm:$0xf] }
 0x3db   : > { %8269 = vmatpush.bf16.msrb.mxu3 %v9995_v39  ;;  %8231 = vmatmul.bf16.vlgmr.msrb.gmra.mxu0 %v12741_v4  ;;  %v10099_v4 = vor.u32 %v10961_v54, %v10096_v55  ;;  %v8038_v31 = vadd.f32 %v8037_v18, %v8025_v16  ;;  %v10200_v39 = vld [vmem:[%s12262_s30 + $0xd28] sm:$0xf0]  ;;  %v10985_v54 = vld [vmem:[%s12262_s30 + $0xd14] sm:$0xf]  ;;  %v10192_v55 = vld [vmem:[%s12262_s30 + $0xd18] sm:$0xf0]  ;;  %v10363_v35 = vor.u32 %v11027_v48, %v10360_v30 }
 0x3dc   : > { %8275 = vmatpush.bf16.msra.mxu0 %v10115_v27  ;;  %8244 = vmatmul.bf16.vlgmr.msrb.gmra.mxu1 %v12745_v6  ;;  %v10291_v6 = vor.u32 %v11009_v63, %v10288_v58  ;;  %v10203_v44 = vor.u32 %v10987_v38, %v10200_v39  ;;  %v10195_v58 = vor.u32 %v10985_v54, %v10192_v55  ;;  %v10560_v16 = vld [vmem:[%s12262_s30 + $0xff8] sm:$0xf0]  ;;  %v11041_v39 = vld [vmem:[%s12262_s30 + $0xed4] sm:$0xf]  ;;  %v10344_v54 = vld [vmem:[%s12262_s30 + $0xe48] sm:$0xf0] }
 0x3dd   : > { %8288 = vmatpush.bf16.msra.mxu1 %v10179_v22  ;;  %8257 = vmatmul.bf16.vlgmr.msrb.gmra.mxu2 %v12743_v5  ;;  %v10975_v5 = vld [vmem:[%s12262_s30 + $0xcc4] sm:$0xf]  ;;  %v10352_v38 = vld [vmem:[%s12262_s30 + $0xe58] sm:$0xf0]  ;;  %v10456_v48 = vld [vmem:[%s12262_s30 + $0xf28] sm:$0xf0] }
 0x3de   : > { %8301 = vmatpush.bf16.msra.mxu2 %v10243_v41  ;;  %8270 = vmatmul.bf16.vlgmr.msrb.gmra.mxu3 %v12747_v7  ;;  %v10280_v7 = vld [vmem:[%s12262_s30 + $0xdc8] sm:$0xf0]  ;;  %v10155_v24 = vor.u32 %v10975_v5, %v10152_v20  ;;  %v11003_v41 = vld [vmem:[%s12262_s30 + $0xda4] sm:$0xf] }
 0x3df   : > { %8314 = vmatpush.bf16.msra.mxu3 %v10307_v28  ;;  %v10283_v25 = vor.u32 %v11007_v9, %v10280_v7  ;;  %v10184_v5 = vld [vmem:[%s12262_s30 + $0xd08] sm:$0xf0]  ;;  %v10368_v9 = vld [vmem:[%s12262_s30 + $0xe78] sm:$0xf0]  ;;  %v11045_v7 = vld [vmem:[%s12262_s30 + $0xef4] sm:$0xf] }
 0x3e0   : > { %8276 = vmatpush.bf16.msra.mxu0 %v10107_v34  ;;  %v8050_v40 = vpop.f32.mrf.mxu2  ;;  %v8026_v28 = vpop.f32.mrf.mxu0  ;;  %v10248_v20 = vld [vmem:[%s12262_s30 + $0xd88] sm:$0xf0]  ;;  %v10435_v26 = vor.u32 %v11045_v7, %v10432_v23  ;;  %v11039_v55 = vld [vmem:[%s12262_s30 + $0xec4] sm:$0xf]  ;;  %v11053_v7 = vld [vmem:[%s12262_s30 + $0xf34] sm:$0xf] }
 0x3e1   : > { %8289 = vmatpush.bf16.msra.mxu1 %v10171_v52  ;;  %v8051_v27 = vadd.f32 %v8050_v40, %v8038_v31  ;;  %v8063_v22 = vpop.f32.mrf.mxu3  ;;  %v8039_v34 = vpop.f32.mrf.mxu1  ;;  %v10267_v52 = vor.u32 %v11003_v41, %v10264_v42  ;;  %v10563_v31 = vor.u32 %v11077_v14, %v10560_v16  ;;  %v10416_v41 = vld [vmem:[%s12262_s30 + $0xed8] sm:$0xf0]  ;;  %v11057_v42 = vld [vmem:[%s12262_s30 + $0xf54] sm:$0xf]  ;;  %v11121_v28 = vld [vmem:[#allocation1 + $0x12] sm:$0xff] }
 0x3e2   : > { %8302 = vmatpush.bf16.msra.mxu2 %v10235_v53  ;;  %v10128_v53 = vld [vmem:[%s12262_s30 + $0xc98] sm:$0xf0]  ;;  %v10419_v34 = vor.u32 %v11041_v39, %v10416_v41  ;;  %v10328_v14 = vld [vmem:[%s12262_s30 + $0xe28] sm:$0xf0]  ;;  %v11035_v16 = vld [vmem:[%s12262_s30 + $0xea4] sm:$0xf] }
 0x3e3   : > { %8315 = vmatpush.bf16.msra.mxu3 %v10299_v57  ;;  %v13360_v0 = vadd.f32 %v8063_v22, %v8051_v27  ;;  %v10256_v57 = vld [vmem:[%s12262_s30 + $0xd98] sm:$0xf0]  ;;  %v10131_v63 = vor.u32 %v10969_v51, %v10128_v53  ;;  %v10555_v22 = vor.u32 %v11075_v33, %v10552_v10  ;;  %v10355_v51 = vor.u32 %v11025_v37, %v10352_v38  ;;  %v11023_v53 = vld [vmem:[%s12262_s30 + $0xe44] sm:$0xf]  ;;  %v11033_v38 = vld [vmem:[%s12262_s30 + $0xe94] sm:$0xf] }
 0x3e4   : > { %8277 = vmatpush.bf16.msra.mxu0 %v10099_v4  ;;  %v10967_v4 = vld [vmem:[%s12262_s30 + $0xc84] sm:$0xf]  ;;  %v10259_v19 = vor.u32 %v11001_v43, %v10256_v57  ;;  %v11120_v27 = vld [vmem:[#allocation1] sm:$0xff]  ;;  %v10408_v57 = vld [vmem:[%s12262_s30 + $0xec8] sm:$0xf0] }
 0x3e5   : > { %8290 = vmatpush.bf16.msra.mxu1 %v10163_v3  ;;  %v10120_v3 = vld [vmem:[%s12262_s30 + $0xc88] sm:$0xf0]  ;;  %v10528_v23 = vld [vmem:[%s12262_s30 + $0xfb8] sm:$0xf0] }
 0x3e6   : > { %8303 = vmatpush.bf16.msra.mxu2 %v10227_v8  ;;  %v10983_v8 = vld [vmem:[%s12262_s30 + $0xd04] sm:$0xf]  ;;  %v10123_v13 = vor.u32 %v10967_v4, %v10120_v3  ;;  %v10347_v3 = vor.u32 %v11023_v53, %v10344_v54  ;;  %v10320_v37 = vld [vmem:[%s12262_s30 + $0xe18] sm:$0xf0]  ;;  %v10440_v54 = vld [vmem:[%s12262_s30 + $0xf08] sm:$0xf0] }
 0x3e7   : > { %8316 = vmatpush.bf16.msra.mxu3 %v10291_v6  ;;  %v10999_v6 = vld [vmem:[%s12262_s30 + $0xd84] sm:$0xf]  ;;  %v10187_v15 = vor.u32 %v10983_v8, %v10184_v5  ;;  %v11021_v5 = vld [vmem:[%s12262_s30 + $0xe34] sm:$0xf]  ;;  %v10448_v41 = vld [vmem:[%s12262_s30 + $0xf18] sm:$0xf0] }
 0x3e8   : > { %8278 = vmatpush.bf16.msra.mxu0 %v10091_v21  ;;  %v8052_v11 = vpop.f32.mrf.mxu2  ;;  %v10059_v21 = vor.u32 %v10951_v61, %v10056_v62  ;;  %v10251_v18 = vor.u32 %v10999_v6, %v10248_v20  ;;  %v10472_v61 = vld [vmem:[%s12262_s30 + $0xf48] sm:$0xf0]  ;;  %v10336_v6 = vld [vmem:[%s12262_s30 + $0xe38] sm:$0xf0]  ;;  %v11037_v20 = vld [vmem:[%s12262_s30 + $0xeb4] sm:$0xf] }
 0x3e9   : > { %8291 = vmatpush.bf16.msra.mxu1 %v10155_v24  ;;  %v8065_v12 = vpop.f32.mrf.mxu3  ;;  %v11061_v24 = vld [vmem:[%s12262_s30 + $0xf74] sm:$0xf]  ;;  %v10411_v11 = vor.u32 %v11039_v55, %v10408_v57  ;;  %v11047_v53 = vld [vmem:[%s12262_s30 + $0xf04] sm:$0xf]  ;;  %v10504_v57 = vld [vmem:[%s12262_s30 + $0xf88] sm:$0xf0] }
 0x3ea   : > { %8304 = vmatpush.bf16.msra.mxu2 %v10219_v46  ;;  %v10496_v46 = vld [vmem:[%s12262_s30 + $0xf78] sm:$0xf0] }
 0x3eb   : > { %8317 = vmatpush.bf16.msra.mxu3 %v10283_v25  ;;  %v10371_v25 = vor.u32 %v11029_v2, %v10368_v9  ;;  %v10499_v47 = vor.u32 %v11061_v24, %v10496_v46  ;;  %v10400_v9 = vld [vmem:[%s12262_s30 + $0xeb8] sm:$0xf0]  ;;  %v10339_v24 = vor.u32 %v11021_v5, %v10336_v6 }
 0x3ec   : > { %8279 = vmatpush.bf16.msra.mxu0 %v10083_v49  ;;  %v10424_v49 = vld [vmem:[%s12262_s30 + $0xee8] sm:$0xf0]  ;;  %v10403_v46 = vor.u32 %v11037_v20, %v10400_v9 }
 0x3ed   : > { %8292 = vmatpush.bf16.msra.mxu1 %v10147_v59  ;;  %v11059_v59 = vld [vmem:[%s12262_s30 + $0xf64] sm:$0xf]  ;;  %v10427_v40 = vor.u32 %v11043_v17, %v10424_v49  ;;  %v10520_v49 = vld [vmem:[%s12262_s30 + $0xfa8] sm:$0xf0] }
 0x3ee   : > { %8305 = vmatpush.bf16.msra.mxu2 %v10211_v32  ;;  %v10488_v32 = vld [vmem:[%s12262_s30 + $0xf68] sm:$0xf0] }
 0x3ef   : > { %8318 = vmatpush.bf16.msra.mxu3 %v10275_v36  ;;  %v10491_v36 = vor.u32 %v11059_v59, %v10488_v32 }
 0x3f0   : > { %8280 = vmatpush.bf16.msra.mxu0 %v10075_v56  ;;  %v10480_v56 = vld [vmem:[%s12262_s30 + $0xf58] sm:$0xf0] }
 0x3f1   : > { %8293 = vmatpush.bf16.msra.mxu1 %v10139_v29  ;;  %v11122_v29 = vld [vmem:[#allocation1 + $0x9] sm:$0xff] }
 0x3f2   : > { %8306 = vmatpush.bf16.msra.mxu2 %v10203_v44  ;;  %v11073_v44 = vld [vmem:[%s12262_s30 + $0xfd4] sm:$0xf] }
 0x3f3   : > { %8319 = vmatpush.bf16.msra.mxu3 %v10267_v52  ;;  %v10483_v52 = vor.u32 %v11057_v42, %v10480_v56  ;;  %v10547_v43 = vor.u32 %v11073_v44, %v10544_v45  ;;  %v11065_v42 = vld [vmem:[%s12262_s30 + $0xf94] sm:$0xf]  ;;  %v10512_v56 = vld [vmem:[%s12262_s30 + $0xf98] sm:$0xf0]  ;;  %v11015_v45 = vld [vmem:[%s12262_s30 + $0xe04] sm:$0xf] }
 0x3f4   : > { %8281 = vmatpush.bf16.msra.mxu0 %v10067_v60  ;;  %v11055_v60 = vld [vmem:[%s12262_s30 + $0xf44] sm:$0xf] }
 0x3f5   : > { %8294 = vmatpush.bf16.msra.mxu1 %v10131_v63  ;;  %v11071_v63 = vld [vmem:[%s12262_s30 + $0xfc4] sm:$0xf] }
 0x3f6   : > { %8307 = vmatpush.bf16.msra.mxu2 %v10195_v58  ;;  %v10536_v58 = vld [vmem:[%s12262_s30 + $0xfc8] sm:$0xf0] }
 0x3f7   : > { %8320 = vmatpush.bf16.msra.mxu3 %v10259_v19  ;;  %v10475_v19 = vor.u32 %v11055_v60, %v10472_v61  ;;  %v10539_v12 = vor.u32 %v11071_v63, %v10536_v58  ;;  %v10443_v63 = vor.u32 %v11047_v53, %v10440_v54 }
 0x3f8   : > { %8282 = vmatpush.bf16.msra.mxu0 %v10059_v21  ;;  %v8076_v62 = vpop.f32.mrf.mxu0  ;;  %v11069_v21 = vld [vmem:[%s12262_s30 + $0xfb4] sm:$0xf] }
 0x3f9   : > { %8295 = vmatpush.bf16.msra.mxu1 %v10123_v13  ;;  %v8077_v4 = vadd.f32 %v8076_v62, %v13360_v0  ;;  %v8089_v8 = vpop.f32.mrf.mxu1  ;;  %v10464_v0 = vld [vmem:[%s12262_s30 + $0xf38] sm:$0xf0] }
 0x3fa   : > { %8308 = vmatpush.bf16.msra.mxu2 %v10187_v15  ;;  %v10467_v13 = vor.u32 %v11053_v7, %v10464_v0  ;;  %v11019_v15 = vld [vmem:[%s12262_s30 + $0xe24] sm:$0xf] }
 0x3fb   : > { %8321 = vmatpush.bf16.msra.mxu3 %v10251_v18  ;;  %8283 = vmatmul.bf16.vlgmr.msra.gmra.mxu0 %v11120_v27  ;;  %v8090_v2 = vadd.f32 %v8089_v8, %v8077_v4  ;;  %v10531_v18 = vor.u32 %v11069_v21, %v10528_v23  ;;  %v10331_v32 = vor.u32 %v11019_v15, %v10328_v14  ;;  %v10384_v27 = vld [vmem:[%s12262_s30 + $0xe98] sm:$0xf0]  ;;  %v11126_v8 = vld [vmem:[#allocation1 + $0x36] sm:$0xff] }
 0x3fc   : > { %8327 = vmatpush.bf16.msrb.mxu0 %v10371_v25  ;;  %8296 = vmatmul.bf16.vlgmr.msra.gmra.mxu1 %v11122_v29  ;;  %v10387_v29 = vor.u32 %v11033_v38, %v10384_v27  ;;  %v11124_v4 = vld [vmem:[#allocation1 + $0x24] sm:$0xff] }
 0x3fd   : > { %8340 = vmatpush.bf16.msrb.mxu1 %v10435_v26  ;;  %8309 = vmatmul.bf16.vlgmr.msra.gmra.mxu2 %v11121_v28  ;;  %v10392_v26 = vld [vmem:[%s12262_s30 + $0xea8] sm:$0xf0] }
 0x3fe   : > { %8353 = vmatpush.bf16.msrb.mxu2 %v10499_v47  ;;  %8322 = vmatmul.bf16.vlgmr.msra.gmra.mxu3 %v11123_v50  ;;  %v11051_v47 = vld [vmem:[%s12262_s30 + $0xf24] sm:$0xf]  ;;  %v10312_v50 = vld [vmem:[%s12262_s30 + $0xe08] sm:$0xf0] }
 0x3ff   : > { %8366 = vmatpush.bf16.msrb.mxu3 %v10563_v31  ;;  %v11067_v31 = vld [vmem:[%s12262_s30 + $0xfa4] sm:$0xf]  ;;  %v10315_v61 = vor.u32 %v11015_v45, %v10312_v50 }
 0x400   : > { %8328 = vmatpush.bf16.msrb.mxu0 %v10363_v35  ;;  %v8102_v25 = vpop.f32.mrf.mxu2  ;;  %v8078_v59 = vpop.f32.mrf.mxu0  ;;  %v10395_v35 = vor.u32 %v11035_v16, %v10392_v26  ;;  %v10523_v39 = vor.u32 %v11067_v31, %v10520_v49 }
 0x401   : > { %8341 = vmatpush.bf16.msrb.mxu1 %v10427_v40  ;;  %v8103_v30 = vadd.f32 %v8102_v25, %v8090_v2  ;;  %v8115_v17 = vpop.f32.mrf.mxu3  ;;  %v8091_v33 = vpop.f32.mrf.mxu1  ;;  %v10459_v40 = vor.u32 %v11051_v47, %v10456_v48 }
 0x402   : > { %8354 = vmatpush.bf16.msrb.mxu2 %v10491_v36  ;;  %v11017_v36 = vld [vmem:[%s12262_s30 + $0xe14] sm:$0xf] }
 0x403   : > { %8367 = vmatpush.bf16.msrb.mxu3 %v10555_v22  ;;  %v8116_v10 = vadd.f32 %v8115_v17, %v8103_v30  ;;  %v11049_v22 = vld [vmem:[%s12262_s30 + $0xf14] sm:$0xf]  ;;  %v10323_v28 = vor.u32 %v11017_v36, %v10320_v37 }
 0x404   : > { %8329 = vmatpush.bf16.msrb.mxu0 %v10355_v51  ;;  %v10451_v44 = vor.u32 %v11049_v22, %v10448_v41  ;;  %v11031_v51 = vld [vmem:[%s12262_s30 + $0xe84] sm:$0xf] }
 0x405   : > { %8342 = vmatpush.bf16.msrb.mxu1 %v10419_v34  ;;  %v10515_v34 = vor.u32 %v11065_v42, %v10512_v56 }
 0x406   : > { %8355 = vmatpush.bf16.msrb.mxu2 %v10483_v52  ;;  %v10376_v52 = vld [vmem:[%s12262_s30 + $0xe88] sm:$0xf0] }
 0x407   : > { %8368 = vmatpush.bf16.msrb.mxu3 %v10547_v43  ;;  %v11063_v43 = vld [vmem:[%s12262_s30 + $0xf84] sm:$0xf]  ;;  %v10379_v62 = vor.u32 %v11031_v51, %v10376_v52 }
 0x408   : > { %8330 = vmatpush.bf16.msrb.mxu0 %v10347_v3  ;;  %v8104_v55 = vpop.f32.mrf.mxu2  ;;  %v10507_v58 = vor.u32 %v11063_v43, %v10504_v57  ;;  %v11125_v3 = vld [vmem:[#allocation1 + $0x2d] sm:$0xff] }
 0x409   : > { %8343 = vmatpush.bf16.msrb.mxu1 %v10411_v11  ;;  %v8117_v60 = vpop.f32.mrf.mxu3  ;;  %v11127_v11 = vld [vmem:[#allocation1 + $0x3f] sm:$0xff] }
 0x40a   : > { %8356 = vmatpush.bf16.msrb.mxu2 %v10475_v19 }
 0x40b   : > { %8369 = vmatpush.bf16.msrb.mxu3 %v10539_v12 }
 0x40c   : > { %8331 = vmatpush.bf16.msrb.mxu0 %v10339_v24 }
 0x40d   : > { %8344 = vmatpush.bf16.msrb.mxu1 %v10403_v46 }
 0x40e   : > { %8357 = vmatpush.bf16.msrb.mxu2 %v10467_v13 }
 0x40f   : > { %8370 = vmatpush.bf16.msrb.mxu3 %v10531_v18 }
 0x410   : > { %8332 = vmatpush.bf16.msrb.mxu0 %v10331_v32 }
 0x411   : > { %8345 = vmatpush.bf16.msrb.mxu1 %v10395_v35 }
 0x412   : > { %8358 = vmatpush.bf16.msrb.mxu2 %v10459_v40 }
 0x413   : > { %8371 = vmatpush.bf16.msrb.mxu3 %v10523_v39 }
 0x414   : > { %8333 = vmatpush.bf16.msrb.mxu0 %v10323_v28 }
 0x415   : > { %8346 = vmatpush.bf16.msrb.mxu1 %v10387_v29 }
 0x416   : > { %8359 = vmatpush.bf16.msrb.mxu2 %v10451_v44 }
 0x417   : > { %8372 = vmatpush.bf16.msrb.mxu3 %v10515_v34 }
 0x418   : > { %8334 = vmatpush.bf16.msrb.mxu0 %v10315_v61  ;;  %v8128_v19 = vpop.f32.mrf.mxu0 }
 0x419   : > { %8347 = vmatpush.bf16.msrb.mxu1 %v10379_v62  ;;  %v8129_v5 = vadd.f32 %v8128_v19, %v8116_v10  ;;  %v8141_v6 = vpop.f32.mrf.mxu1 }
 0x41a   : > { %8360 = vmatpush.bf16.msrb.mxu2 %v10443_v63 }
 0x41b   : > { %8373 = vmatpush.bf16.msrb.mxu3 %v10507_v58  ;;  %8335 = vmatmul.bf16.vlgmr.msrb.gmra.mxu0 %v11124_v4  ;;  %v8142_v20 = vadd.f32 %v8141_v6, %v8129_v5  ;;  %v8379_v58 = vmax.f32 %v13218_v1, 0.0 }
 0x41c   : > { %8348 = vmatmul.bf16.vlgmr.msrb.gmra.mxu1 %v11125_v3 }
 0x41d   : > { %8361 = vmatmul.bf16.vlgmr.msrb.gmra.mxu2 %v11126_v8 }
 0x41e   : > { %8374 = vmatmul.bf16.vlgmr.msrb.gmra.mxu3 %v11127_v11 }
 0x420   : > { %v8154_v12 = vpop.f32.mrf.mxu2  ;;  %v8130_v7 = vpop.f32.mrf.mxu0 }
 0x421   : > { %v8155_v2 = vadd.f32 %v8154_v12, %v8142_v20  ;;  %v8167_v9 = vpop.f32.mrf.mxu3  ;;  %v8143_v0 = vpop.f32.mrf.mxu1 }
 0x423   : > { %v8168_v21 = vadd.f32 %v8167_v9, %v8155_v2 }
 0x428   : > { %v8156_v23 = vpop.f32.mrf.mxu2 }
 0x429   : > { %v8169_v24 = vpop.f32.mrf.mxu3 }
 0x438   : > { %v8180_v46 = vpop.f32.mrf.mxu0 }
 0x439   : > { %v8181_v13 = vadd.f32 %v8180_v46, %v8168_v21  ;;  %v8193_v15 = vpop.f32.mrf.mxu1 }
 0x43b   : > { %v8194_v14 = vadd.f32 %v8193_v15, %v8181_v13 }
 0x440   : > { %v8206_v16 = vpop.f32.mrf.mxu2  ;;  %v8182_v26 = vpop.f32.mrf.mxu0 }
 0x441   : > { %v8207_v18 = vadd.f32 %v8206_v16, %v8194_v14  ;;  %v8219_v25 = vpop.f32.mrf.mxu3  ;;  %v8195_v47 = vpop.f32.mrf.mxu1 }
 0x443   : > { %v8220_v48 = vadd.f32 %v8219_v25, %v8207_v18 }
 0x448   : > { %v8208_v30 = vpop.f32.mrf.mxu2 }
 0x449   : > { %v8221_v17 = vpop.f32.mrf.mxu3 }
 0x458   : > { %v8232_v31 = vpop.f32.mrf.mxu0 }
 0x459   : > { %v8245_v49 = vpop.f32.mrf.mxu1  ;;  %v8233_v38 = vadd.f32 %v8232_v31, %v8220_v48 }
 0x45b   : > { %v8246_v42 = vadd.f32 %v8245_v49, %v8233_v38 }
 0x460   : > { %v8258_v59 = vpop.f32.mrf.mxu2  ;;  %v8234_v33 = vpop.f32.mrf.mxu0 }
 0x461   : > { %v8271_v32 = vpop.f32.mrf.mxu3  ;;  %v8247_v10 = vpop.f32.mrf.mxu1  ;;  %v8259_v56 = vadd.f32 %v8258_v59, %v8246_v42 }
 0x463   : > { %v8272_v44 = vadd.f32 %v8271_v32, %v8259_v56 }
 0x468   : > { %v8260_v35 = vpop.f32.mrf.mxu2 }
 0x469   : > { %v8273_v40 = vpop.f32.mrf.mxu3 }
 0x478   : > { %v8284_v36 = vpop.f32.mrf.mxu0 }
 0x479   : > { %v8297_v37 = vpop.f32.mrf.mxu1  ;;  %v8285_v45 = vadd.f32 %v8284_v36, %v8272_v44 }
 0x47b   : > { %v8298_v50 = vadd.f32 %v8297_v37, %v8285_v45 }
 0x480   : > { %v8310_v39 = vpop.f32.mrf.mxu2  ;;  %v8286_v22 = vpop.f32.mrf.mxu0 }
 0x481   : > { %v8323_v27 = vpop.f32.mrf.mxu3  ;;  %v8299_v41 = vpop.f32.mrf.mxu1  ;;  %v8311_v51 = vadd.f32 %v8310_v39, %v8298_v50 }
 0x483   : > { %v8324_v34 = vadd.f32 %v8323_v27, %v8311_v51 }
 0x488   : > { %v8312_v28 = vpop.f32.mrf.mxu2 }
 0x489   : > { %v8325_v29 = vpop.f32.mrf.mxu3 }
 0x498   : > { %v8336_v52 = vpop.f32.mrf.mxu0 }
 0x499   : > { %v8349_v53 = vpop.f32.mrf.mxu1  ;;  %v8337_v54 = vadd.f32 %v8336_v52, %v8324_v34 }
 0x49b   : > { %v8350_v55 = vadd.f32 %v8349_v53, %v8337_v54 }
 0x4a0   : > { %v8362_v43 = vpop.f32.mrf.mxu2  ;;  %v8338_v61 = vpop.f32.mrf.mxu0 }
 0x4a1   : > { %v8363_v57 = vadd.f32 %v8362_v43, %v8350_v55  ;;  %v8375_v60 = vpop.f32.mrf.mxu3  ;;  %v8351_v62 = vpop.f32.mrf.mxu1 }
 0x4a3   : > { %v8376_v63 = vadd.f32 %v8375_v60, %v8363_v57 }
 0x4a5   : > { %v8380_v4 = vmax.f32 %v8376_v63, 0.0 }
 0x4a7   : > { %v8381_v3 = vpack.c.bf16 %v8380_v4, %v8379_v58 }
 0x4a8   : > { %v8364_v8 = vpop.f32.mrf.mxu2 }
 0x4a9   : > { %v8383_v11 = vrot.slane %v8381_v3, 3  ;;  %v8377_v19 = vpop.f32.mrf.mxu3 }
 0x4ab   : > { %v8387_v5 = vsel %vm8384_vm0, %v8381_v3, %v8383_v11 }
 0x4ac   : > { %8389 = vst [vmem:[%s4391_s24] sm:$0x3] %v8387_v5 }
 0x4ad PF: > { %s13_s16 = sadd.s32 1, %s11166_s16   ;;  %s13468_s12 = smov %s11154_s13 }
 0x4ae   : > { %p10_p10 = scmp.ge.s32.totalorder %s13_s16, 6   ;;  %s13469_s13 = smov %s11223_s20 }
 0x4af   : > { %s13470_s14 = smov %s11162_s15  ;;  %s13471_s15 = smov %s13473_s17 }
 0x4b0   :  { %12 = sbr.rel (!%p10_p10) target bundleno = 3 (0x3), region = 131 }

// kernel: cnn_forward.11
= control target key start
LH: loop header
LB: loop body
LE: loop exit
PB: predicated region body
PF: predicated region fallthrough
CT: control target
= control target key end

     0   :  { %s670_s0 = inlined_call_operand.vmem [shape: bf16[2,512], index: 0, kind: input, shape index: {}]   ;;  %s671_s1 = inlined_call_operand.vmem [shape: bf16[512,10], index: 1, kind: input, shape index: {}]   ;;  %s672_s2 = inlined_call_operand.vmem [shape: f32[1,10], index: 2, kind: input, shape index: {}]   ;;  %s673_s3 = inlined_call_operand.hbm [shape: f32[2,10], index: 3, kind: output, shape index: {}]  }
   0x1   :  { %v491_v0 = vld [vmem:[%s671_s1 + $0x38] sm:$0xff]  ;;  %v490_v4 = vld [vmem:[%s671_s1 + $0x30] sm:$0xff]  ;;  %v489_v8 = vld [vmem:[%s671_s1 + $0x28] sm:$0xff] }
   0x2   :  { %v499_v1 = vld [vmem:[%s671_s1 + $0x78] sm:$0xff]  ;;  %286 = vmatpush.bf16.msra.mxu0 %v491_v0  ;;  %v498_v5 = vld [vmem:[%s671_s1 + $0x70] sm:$0xff]  ;;  %v497_v9 = vld [vmem:[%s671_s1 + $0x68] sm:$0xff] }
   0x3   :  { %v507_v2 = vld [vmem:[%s671_s1 + $0xb8] sm:$0xff]  ;;  %299 = vmatpush.bf16.msra.mxu1 %v499_v1  ;;  %v506_v6 = vld [vmem:[%s671_s1 + $0xb0] sm:$0xff]  ;;  %v505_v10 = vld [vmem:[%s671_s1 + $0xa8] sm:$0xff] }
   0x4   :  { %v515_v3 = vld [vmem:[%s671_s1 + $0xf8] sm:$0xff]  ;;  %312 = vmatpush.bf16.msra.mxu2 %v507_v2  ;;  %v514_v7 = vld [vmem:[%s671_s1 + $0xf0] sm:$0xff]  ;;  %v513_v11 = vld [vmem:[%s671_s1 + $0xe8] sm:$0xff] }
   0x5   :  { %325 = vmatpush.bf16.msra.mxu3 %v515_v3  ;;  %v488_v12 = vld [vmem:[%s671_s1 + $0x20] sm:$0xff] }
   0x6   :  { %287 = vmatpush.bf16.msra.mxu0 %v490_v4  ;;  %v496_v13 = vld [vmem:[%s671_s1 + $0x60] sm:$0xff] }
   0x7   :  { %300 = vmatpush.bf16.msra.mxu1 %v498_v5  ;;  %v15_v14 = vld [vmem:[%s670_s0] sm:$0xf] }
   0x8   :  { %313 = vmatpush.bf16.msra.mxu2 %v506_v6  ;;  %v504_v15 = vld [vmem:[%s671_s1 + $0xa0] sm:$0xff]  ;;  %85 = vst [vmem:[#allocation1] ss:$9 sm:$0xff] %v15_v14 }
   0x9   :  { %326 = vmatpush.bf16.msra.mxu3 %v514_v7  ;;  %v512_v16 = vld [vmem:[%s671_s1 + $0xe0] sm:$0xff] }
   0xa   :  { %288 = vmatpush.bf16.msra.mxu0 %v489_v8 }
   0xb   :  { %301 = vmatpush.bf16.msra.mxu1 %v497_v9 }
   0xc   :  { %314 = vmatpush.bf16.msra.mxu2 %v505_v10 }
   0xd   :  { %327 = vmatpush.bf16.msra.mxu3 %v513_v11 }
   0xe   :  { %8 = vsyncpa [#allocation3], 0  ;;  %289 = vmatpush.bf16.msra.mxu0 %v488_v12  ;;  %v487_v17 = vld [vmem:[%s671_s1 + $0x18] sm:$0xff]  ;;  %v486_v21 = vld [vmem:[%s671_s1 + $0x10] sm:$0xff]  ;;  %s347_s27 = sshll.u32 %s673_s3, 4  ;;  %vm338_vm0 = vcmask 74752   ;;  %s348_s27 = int_to_ptr.hbm [resolvable:$true] %s347_s27 }
   0xf   :  { %302 = vmatpush.bf16.msra.mxu1 %v496_v13  ;;  %v495_v18 = vld [vmem:[%s671_s1 + $0x58] sm:$0xff]  ;;  %v494_v22 = vld [vmem:[%s671_s1 + $0x50] sm:$0xff]  ;;  %v485_v25 = vld [vmem:[%s671_s1 + $0x8] sm:$0xff] }
  0x10   :  { %315 = vmatpush.bf16.msra.mxu2 %v504_v15  ;;  %v503_v19 = vld [vmem:[%s671_s1 + $0x98] sm:$0xff]  ;;  %v502_v23 = vld [vmem:[%s671_s1 + $0x90] sm:$0xff]  ;;  %v493_v26 = vld [vmem:[%s671_s1 + $0x48] sm:$0xff] }
  0x11   :  { %328 = vmatpush.bf16.msra.mxu3 %v512_v16  ;;  %v511_v20 = vld [vmem:[%s671_s1 + $0xd8] sm:$0xff]  ;;  %v510_v24 = vld [vmem:[%s671_s1 + $0xd0] sm:$0xff]  ;;  %v501_v27 = vld [vmem:[%s671_s1 + $0x88] sm:$0xff] }
  0x12   :  { %290 = vmatpush.bf16.msra.mxu0 %v487_v17  ;;  %v509_v28 = vld [vmem:[%s671_s1 + $0xc8] sm:$0xff]  ;;  %v484_v29 = vld [vmem:[%s671_s1] sm:$0xff]  ;;  %v88_v35 = vld [vmem:[#allocation1 + $0x12] sm:$0xff] }
  0x13   :  { %303 = vmatpush.bf16.msra.mxu1 %v495_v18  ;;  %v492_v30 = vld [vmem:[%s671_s1 + $0x40] sm:$0xff]  ;;  %v87_v34 = vld [vmem:[#allocation1 + $0x9] sm:$0xff] }
  0x14   :  { %316 = vmatpush.bf16.msra.mxu2 %v503_v19  ;;  %v500_v31 = vld [vmem:[%s671_s1 + $0x80] sm:$0xff] }
  0x15   :  { %329 = vmatpush.bf16.msra.mxu3 %v511_v20  ;;  %v508_v32 = vld [vmem:[%s671_s1 + $0xc0] sm:$0xff]  ;;  %s544_s1 = smov [#allocation2]  }
  0x16   :  { %291 = vmatpush.bf16.msra.mxu0 %v486_v21  ;;  %v86_v33 = vld [vmem:[#allocation1] sm:$0xff]  ;;  %s345_s24 = sshll.u32 %s544_s1, 4  ;;  %s346_s24 = int_to_ptr.vmem [resolvable:$true] %s345_s24 }
  0x17   :  { %304 = vmatpush.bf16.msra.mxu1 %v494_v22  ;;  %v89_v36 = vld [vmem:[#allocation1 + $0x1b] sm:$0xff] }
  0x18   :  { %317 = vmatpush.bf16.msra.mxu2 %v502_v23  ;;  %v517_v37 = vld [vmem:[%s672_s2] ss:$0 sm:$0xff] }
  0x19   :  { %330 = vmatpush.bf16.msra.mxu3 %v510_v24 }
  0x1a   :  { %292 = vmatpush.bf16.msra.mxu0 %v485_v25 }
  0x1b   :  { %305 = vmatpush.bf16.msra.mxu1 %v493_v26 }
  0x1c   :  { %318 = vmatpush.bf16.msra.mxu2 %v501_v27 }
  0x1d   :  { %331 = vmatpush.bf16.msra.mxu3 %v509_v28 }
  0x1e   :  { %293 = vmatpush.bf16.msra.mxu0 %v484_v29 }
  0x1f   :  { %306 = vmatpush.bf16.msra.mxu1 %v492_v30 }
  0x20   :  { %319 = vmatpush.bf16.msra.mxu2 %v500_v31 }
  0x21   :  { %332 = vmatpush.bf16.msra.mxu3 %v508_v32  ;;  %294 = vmatmul.bf16.vlgmr.msra.gmra.mxu0 %v86_v33 }
  0x22   :  { %307 = vmatmul.bf16.vlgmr.msra.gmra.mxu1 %v87_v34 }
  0x23   :  { %320 = vmatmul.bf16.vlgmr.msra.gmra.mxu2 %v88_v35 }
  0x24   :  { %333 = vmatmul.bf16.vlgmr.msra.gmra.mxu3 %v89_v36 }
  0x9e   :  { %v295_v38 = vpop.f32.mrf.mxu0 }
  0x9f   :  { %v308_v39 = vpop.f32.mrf.mxu1  ;;  %v296_v40 = vadd.f32 %v517_v37, %v295_v38 }
  0xa1   :  { %v309_v41 = vadd.f32 %v308_v39, %v296_v40 }
  0xa6   :  { %v321_v42 = vpop.f32.mrf.mxu2  ;;  %v297_v45 = vpop.f32.mrf.mxu0 }
  0xa7   :  { %v334_v43 = vpop.f32.mrf.mxu3  ;;  %v322_v44 = vadd.f32 %v321_v42, %v309_v41  ;;  %v310_v46 = vpop.f32.mrf.mxu1 }
  0xa9   :  { %v335_v47 = vadd.f32 %v334_v43, %v322_v44 }
  0xab   :  { %339 = vst.msk [vmem:[#allocation2] sm:$0x3] %vm338_vm0, %v335_v47 }
  0xac   :  { %350 = dma.vmem_to_hbm [thread:$0]  %s346_s24, 32, %s348_s27, [#allocation3]  }
  0xae   :  { %v323_v48 = vpop.f32.mrf.mxu2 }
  0xaf   :  { %v336_v49 = vpop.f32.mrf.mxu3 }
  0xb0   :  { %542 = dma.done.wait [#allocation3], 32  }
  0xb1   :  { %543 = vsyncadd [#allocation3], 4294967264 }
  0xb2   :  { %355 = vsyncpa [#allocation3], 1 }

</bundles_post_ra>
